<compile_context>
chip_gen: v6e
topology: v6e:2x2x1
jax: 0.10.0
libtpu: 0.0.40
codegen_flags: <defaults>
</compile_context>

<pallas_src>
import jax
import jax.numpy as jnp
import numpy as np
from jax.experimental import pallas as pl
from jax.experimental.pallas import tpu as pltpu


BLOCK_M = 256   # conv output rows per grid step (per pool group)
BLOCK_N = 128   # MLP batch rows per grid step


def _round_up(x, m):
    return (x + m - 1) // m * m


# ----------------------------------------------------------------------------- kernels

def conv_pool_relu_kernel(p_ref, w_ref, b_ref, o_ref):
    """Fused conv (im2col matmul) + 2x2 max-pool + bias + ReLU.

    p_ref : (4, bm, K) bf16 -- one patch block per position in the 2x2 pool window
    w_ref : (K, Cout) bf16,  b_ref : (1, Cout) f32,  o_ref : (bm, Cout) f32
    """
    g, bm, k = p_ref.shape
    # One long matmul over all 4 pool offsets (keeps the RHS resident in the MXU).
    s = jnp.dot(p_ref[...].reshape(g * bm, k), w_ref[...],
                preferred_element_type=jnp.float32)            # (4*bm, Cout) f32
    m = jnp.maximum(jnp.maximum(s[0 * bm:1 * bm], s[1 * bm:2 * bm]),
                    jnp.maximum(s[2 * bm:3 * bm], s[3 * bm:4 * bm]))
    o_ref[...] = jnp.maximum(m + b_ref[...], 0.0).astype(o_ref.dtype)


def mlp_kernel(x_ref, w1_ref, b1_ref, w2_ref, b2_ref, o_ref):
    """fc1 + ReLU + fc2 fused.  x: (bn, 3136) bf16 -> o: (bn, 10) f32."""
    h = jnp.dot(x_ref[...], w1_ref[...], preferred_element_type=jnp.float32)
    h = jnp.maximum(h + b1_ref[...], 0.0)
    o = jnp.dot(h.astype(w2_ref.dtype), w2_ref[...],
                preferred_element_type=jnp.float32)
    o_ref[...] = (o + b2_ref[...]).astype(o_ref.dtype)


# ----------------------------------------------------------------------------- wrappers

def _pool_patch_groups(x_bf16, ksize, pad):
    """Build the stacked (4, M, K) patch matrices for a 5x5 SAME conv + 2x2 pool."""
    N, H, W, Cin = x_bf16.shape
    Ho, Wo = H // 2, W // 2
    M = N * Ho * Wo
    xp = jnp.pad(x_bf16, ((0, 0), (pad, pad), (pad, pad), (0, 0)))
    groups = []
    for dy in range(2):
        for dx in range(2):
            cols = [xp[:, dy + kh: dy + kh + 2 * Ho: 2,
                       dx + kw: dx + kw + 2 * Wo: 2, :]
                    for kh in range(ksize) for kw in range(ksize)]
            groups.append(jnp.concatenate(cols, axis=-1).reshape(M, -1))
    return jnp.stack(groups, axis=0), (N, Ho, Wo)               # (4, M, K)


def conv_relu_pool(x_nhwc, w_kc, b_1c, *, ksize=5, block_m=BLOCK_M):
    """x: (N, H, W, Cin) f32, w: (K=k*k*Cin, Cout) bf16, b: (1, Cout) f32."""
    Cout = w_kc.shape[1]
    x = x_nhwc.astype(jnp.bfloat16)                             # bf16 MXU operands
    p, (N, Ho, Wo) = _pool_patch_groups(x, ksize, ksize // 2)
    K = p.shape[-1]
    M = N * Ho * Wo
    Mp = _round_up(M, block_m)
    if Mp != M:
        p = jnp.pad(p, ((0, 0), (0, Mp - M), (0, 0)))           # zero rows, sliced off below

    out = pl.pallas_call(
        conv_pool_relu_kernel,
        out_shape=jax.ShapeDtypeStruct((Mp, Cout), jnp.float32),
        grid=(Mp // block_m,),
        in_specs=[
            pl.BlockSpec((4, block_m, K), lambda i: (0, i, 0)),   # streamed patches
            pl.BlockSpec((K, Cout), lambda i: (0, 0)),            # resident weights
            pl.BlockSpec((1, Cout), lambda i: (0, 0)),            # resident bias
        ],
        out_specs=pl.BlockSpec((block_m, Cout), lambda i: (i, 0)),
        compiler_params=pltpu.CompilerParams(
            dimension_semantics=("parallel",),
            vmem_limit_bytes=32 << 20),
    )(p, w_kc, b_1c)
    return out[:M].reshape(N, Ho, Wo, Cout)


def mlp(x_bf16, w1, b1, w2, b2, *, block_n=BLOCK_N):
    N, D = x_bf16.shape
    H = w1.shape[1]
    O = w2.shape[1]
    bn = N if N < block_n else block_n
    return pl.pallas_call(
        mlp_kernel,
        out_shape=jax.ShapeDtypeStruct((N, O), jnp.float32),
        grid=(pl.cdiv(N, bn),),
        in_specs=[
            pl.BlockSpec((bn, D), lambda i: (i, 0)),              # streamed activations
            pl.BlockSpec((D, H), lambda i: (0, 0)),               # resident fc1 weights
            pl.BlockSpec((1, H), lambda i: (0, 0)),
            pl.BlockSpec((H, O), lambda i: (0, 0)),               # resident fc2 weights
            pl.BlockSpec((1, O), lambda i: (0, 0)),
        ],
        out_specs=pl.BlockSpec((bn, O), lambda i: (i, 0)),
        compiler_params=pltpu.CompilerParams(
            dimension_semantics=("parallel",),
            vmem_limit_bytes=32 << 20),
    )(x_bf16, w1, b1, w2, b2)


# ----------------------------------------------------------------------------- params

def init_params(key):
    ks = jax.random.split(key, 8)

    def u(k, shape, fan_in):
        bound = 1.0 / np.sqrt(fan_in)
        return jax.random.uniform(k, shape, jnp.float32, -bound, bound)

    return {
        "conv1_w": u(ks[0], (5, 5, 1, 32), 5 * 5 * 1),
        "conv1_b": u(ks[1], (32,), 5 * 5 * 1),
        "conv2_w": u(ks[2], (5, 5, 32, 64), 5 * 5 * 32),
        "conv2_b": u(ks[3], (64,), 5 * 5 * 32),
        "fc1_w":   u(ks[4], (64 * 7 * 7, 512), 64 * 7 * 7),
        "fc1_b":   u(ks[5], (512,), 64 * 7 * 7),
        "fc2_w":   u(ks[6], (512, 10), 512),
        "fc2_b":   u(ks[7], (10,), 512),
    }


def prepare_params(params):
    """One-time parameter prep (done once, outside the forward pass):
       * conv weights flattened to (K, Cout), matmul operands cast to bf16,
       * fc1 rows permuted from NCHW-flatten order (PyTorch x.view) to NHWC
         order so the runtime transpose before fc1 disappears."""
    c1, c2 = params["conv1_w"], params["conv2_w"]
    fc1_nhwc = (params["fc1_w"].reshape(64, 7, 7, 512)
                .transpose(1, 2, 0, 3).reshape(64 * 7 * 7, 512))
    return {
        "conv1_w": c1.reshape(-1, c1.shape[-1]).astype(jnp.bfloat16),
        "conv1_b": params["conv1_b"].reshape(1, -1).astype(jnp.float32),
        "conv2_w": c2.reshape(-1, c2.shape[-1]).astype(jnp.bfloat16),
        "conv2_b": params["conv2_b"].reshape(1, -1).astype(jnp.float32),
        "fc1_w":   fc1_nhwc.astype(jnp.bfloat16),
        "fc1_b":   params["fc1_b"].reshape(1, -1).astype(jnp.float32),
        "fc2_w":   params["fc2_w"].astype(jnp.bfloat16),
        "fc2_b":   params["fc2_b"].reshape(1, -1).astype(jnp.float32),
    }


@jax.jit
def global_model_forward(x_nchw, prepared):
    """Pallas implementation of Global_Model.forward; x_nchw: (N, 1, 28, 28) f32."""
    x = jnp.transpose(x_nchw, (0, 2, 3, 1))                       # NCHW -> NHWC (Cin=1: free)
    x = conv_relu_pool(x, prepared["conv1_w"], prepared["conv1_b"])   # (N, 14, 14, 32)
    x = conv_relu_pool(x, prepared["conv2_w"], prepared["conv2_b"])   # (N, 7, 7, 64)
    x = x.reshape(x.shape[0], -1).astype(jnp.bfloat16)            # NHWC flatten (fc1_w pre-permuted)
    return mlp(x, prepared["fc1_w"], prepared["fc1_b"],
               prepared["fc2_w"], prepared["fc2_b"])              # (N, 10) f32


# ----------------------------------------------------------------------------- reference

def reference_forward(x_nchw, params):
    """Pure-JAX reference (same mixed bf16/f32 precision as the kernels)."""
    bf16, f32 = jnp.bfloat16, jnp.float32

    def conv(x, w_hwio, b):
        w_oihw = jnp.transpose(w_hwio, (3, 2, 0, 1)).astype(bf16)
        y = jax.lax.conv_general_dilated(
            x.astype(bf16), w_oihw, (1, 1), ((2, 2), (2, 2)),
            dimension_numbers=("NCHW", "OIHW", "NCHW"),
            preferred_element_type=f32)
        return y + b.reshape(1, -1, 1, 1)

    def pool(x):
        return jax.lax.reduce_window(x, -jnp.inf, jax.lax.max,
                                     (1, 1, 2, 2), (1, 1, 2, 2), "VALID")

    x = pool(jax.nn.relu(conv(x_nchw, params["conv1_w"], params["conv1_b"])))
    x = pool(jax.nn.relu(conv(x, params["conv2_w"], params["conv2_b"])))
    x = x.reshape(x.shape[0], -1)                                 # NCHW flatten (PyTorch order)
    h = jnp.dot(x.astype(bf16), params["fc1_w"].astype(bf16),
                preferred_element_type=f32) + params["fc1_b"]
    h = jax.nn.relu(h)
    return jnp.dot(h.astype(bf16), params["fc2_w"].astype(bf16),
                   preferred_element_type=f32) + params["fc2_b"]


# ----------------------------------------------------------------------------- main

if __name__ == "__main__":
    key = jax.random.PRNGKey(0)
    kp, kx = jax.random.split(key)
    params = init_params(kp)
    prepared = prepare_params(params)

    # Input spatial size is fixed by the architecture (fc1 expects 64*7*7): 28x28, 1 ch.
    x = jax.random.normal(kx, (2, 1, 28, 28), dtype=jnp.float32)

    out = jax.block_until_ready(global_model_forward(x, prepared))
    assert out.shape == (2, 10), out.shape

    ref = jax.block_until_ready(reference_forward(x, params))
    np.testing.assert_allclose(np.asarray(out, np.float32),
                               np.asarray(ref, np.float32),
                               rtol=2e-3, atol=2e-3)

    print("KERNEL_OK")
</pallas_src>

<mosaic_0001>
module attributes {stable_mosaic.version = 11 : i64} {
  func.func @conv_pool_relu_kernel(%arg0: i32, %arg1: memref<4x256x25xbf16, #tpu.memory_space<vmem>>, %arg2: memref<25x32xbf16, #tpu.memory_space<vmem>>, %arg3: memref<1x32xf32, #tpu.memory_space<vmem>>, %arg4: memref<256x32xf32, #tpu.memory_space<vmem>>) attributes {dimension_semantics = [#tpu.dimension_semantics<parallel>], iteration_bounds = array<i64: 2>, scalar_prefetch = 0 : i64, scratch_operands = 0 : i64, tpu.core_type = #tpu.core_type<tc>, window_params = [{transform_indices = @transform_0, window_bounds = array<i64: 4, 256, 25>}, {pipeline_mode = #tpu.pipeline_mode<synchronous>, transform_indices = @transform_1, window_bounds = array<i64: 25, 32>}, {pipeline_mode = #tpu.pipeline_mode<synchronous>, transform_indices = @transform_2, window_bounds = array<i64: 1, 32>}, {transform_indices = @transform_3, window_bounds = array<i64: 256, 32>}]} {
    %c0 = arith.constant 0 : index
    %c0_0 = arith.constant 0 : index
    %c0_1 = arith.constant 0 : index
    %0 = vector.load %arg1[%c0, %c0_0, %c0_1] : memref<4x256x25xbf16, #tpu.memory_space<vmem>>, vector<4x256x25xbf16>
    %1 = vector.shape_cast %0 : vector<4x256x25xbf16> to vector<1024x25xbf16>
    %c0_2 = arith.constant 0 : index
    %c0_3 = arith.constant 0 : index
    %2 = vector.load %arg2[%c0_2, %c0_3] : memref<25x32xbf16, #tpu.memory_space<vmem>>, vector<25x32xbf16>
    %cst = arith.constant dense<0.000000e+00> : vector<1024x32xf32>
    %3 = tpu.matmul %1, %2, %cst {dimension_numbers = #tpu.dot_dimension_numbers<[1], [0], [0], [1], [0, 0, 1, 1], [], []>} : vector<1024x25xbf16>, vector<25x32xbf16>, vector<1024x32xf32> -> vector<1024x32xf32>
    %4 = vector.extract_strided_slice %3 {offsets = [0, 0], sizes = [256, 32], strides = [1, 1]} : vector<1024x32xf32> to vector<256x32xf32>
    %5 = vector.extract_strided_slice %3 {offsets = [256, 0], sizes = [256, 32], strides = [1, 1]} : vector<1024x32xf32> to vector<256x32xf32>
    %6 = arith.maximumf %4, %5 : vector<256x32xf32>
    %7 = vector.extract_strided_slice %3 {offsets = [512, 0], sizes = [256, 32], strides = [1, 1]} : vector<1024x32xf32> to vector<256x32xf32>
    %8 = vector.extract_strided_slice %3 {offsets = [768, 0], sizes = [256, 32], strides = [1, 1]} : vector<1024x32xf32> to vector<256x32xf32>
    %9 = arith.maximumf %7, %8 : vector<256x32xf32>
    %10 = arith.maximumf %6, %9 : vector<256x32xf32>
    %c0_4 = arith.constant 0 : index
    %c0_5 = arith.constant 0 : index
    %11 = vector.load %arg3[%c0_4, %c0_5] : memref<1x32xf32, #tpu.memory_space<vmem>>, vector<1x32xf32>
    %12 = vector.broadcast %11 : vector<1x32xf32> to vector<256x32xf32>
    %13 = arith.addf %10, %12 : vector<256x32xf32>
    %cst_6 = arith.constant 0.000000e+00 : f32
    %14 = vector.broadcast %cst_6 : f32 to vector<256x32xf32>
    %15 = arith.maximumf %13, %14 : vector<256x32xf32>
    %c0_7 = arith.constant 0 : index
    %c0_8 = arith.constant 0 : index
    %16 = vector.load %arg4[%c0_7, %c0_8] : memref<256x32xf32, #tpu.memory_space<vmem>>, vector<256x32xf32>
    tpu.vector_store %arg4[%c0_7, %c0_8], %15 {strides = array<i32>} : memref<256x32xf32, #tpu.memory_space<vmem>>, vector<256x32xf32>,
    return
  }
  func.func @transform_0(%arg0: i32) -> (i32, i32, i32) {
    %c0_i32 = arith.constant 0 : i32
    %c0_i32_0 = arith.constant 0 : i32
    %c0_i32_1 = arith.constant 0 : i32
    return %c0_i32, %arg0, %c0_i32_0 : i32, i32, i32
  }
  func.func @transform_1(%arg0: i32) -> (i32, i32) {
    %c0_i32 = arith.constant 0 : i32
    %c0_i32_0 = arith.constant 0 : i32
    %c0_i32_1 = arith.constant 0 : i32
    return %c0_i32, %c0_i32_0 : i32, i32
  }
  func.func @transform_2(%arg0: i32) -> (i32, i32) {
    %c0_i32 = arith.constant 0 : i32
    %c0_i32_0 = arith.constant 0 : i32
    %c0_i32_1 = arith.constant 0 : i32
    return %c0_i32, %c0_i32_0 : i32, i32
  }
  func.func @transform_3(%arg0: i32) -> (i32, i32) {
    %c0_i32 = arith.constant 0 : i32
    %c0_i32_0 = arith.constant 0 : i32
    return %arg0, %c0_i32 : i32, i32
  }
}

module attributes {stable_mosaic.version = 11 : i64} {
  func.func @conv_pool_relu_kernel(%arg0: i32, %arg1: memref<4x256x800xbf16, #tpu.memory_space<vmem>>, %arg2: memref<800x64xbf16, #tpu.memory_space<vmem>>, %arg3: memref<1x64xf32, #tpu.memory_space<vmem>>, %arg4: memref<256x64xf32, #tpu.memory_space<vmem>>) attributes {dimension_semantics = [#tpu.dimension_semantics<parallel>], iteration_bounds = array<i64: 1>, scalar_prefetch = 0 : i64, scratch_operands = 0 : i64, tpu.core_type = #tpu.core_type<tc>, window_params = [{transform_indices = @transform_0, window_bounds = array<i64: 4, 256, 800>}, {pipeline_mode = #tpu.pipeline_mode<synchronous>, transform_indices = @transform_1, window_bounds = array<i64: 800, 64>}, {pipeline_mode = #tpu.pipeline_mode<synchronous>, transform_indices = @transform_2, window_bounds = array<i64: 1, 64>}, {transform_indices = @transform_3, window_bounds = array<i64: 256, 64>}]} {
    %c0 = arith.constant 0 : index
    %c0_0 = arith.constant 0 : index
    %c0_1 = arith.constant 0 : index
    %0 = vector.load %arg1[%c0, %c0_0, %c0_1] : memref<4x256x800xbf16, #tpu.memory_space<vmem>>, vector<4x256x800xbf16>
    %1 = vector.shape_cast %0 : vector<4x256x800xbf16> to vector<1024x800xbf16>
    %c0_2 = arith.constant 0 : index
    %c0_3 = arith.constant 0 : index
    %2 = vector.load %arg2[%c0_2, %c0_3] : memref<800x64xbf16, #tpu.memory_space<vmem>>, vector<800x64xbf16>
    %cst = arith.constant dense<0.000000e+00> : vector<1024x64xf32>
    %3 = tpu.matmul %1, %2, %cst {dimension_numbers = #tpu.dot_dimension_numbers<[1], [0], [0], [1], [0, 0, 1, 1], [], []>} : vector<1024x800xbf16>, vector<800x64xbf16>, vector<1024x64xf32> -> vector<1024x64xf32>
    %4 = vector.extract_strided_slice %3 {offsets = [0, 0], sizes = [256, 64], strides = [1, 1]} : vector<1024x64xf32> to vector<256x64xf32>
    %5 = vector.extract_strided_slice %3 {offsets = [256, 0], sizes = [256, 64], strides = [1, 1]} : vector<1024x64xf32> to vector<256x64xf32>
    %6 = arith.maximumf %4, %5 : vector<256x64xf32>
    %7 = vector.extract_strided_slice %3 {offsets = [512, 0], sizes = [256, 64], strides = [1, 1]} : vector<1024x64xf32> to vector<256x64xf32>
    %8 = vector.extract_strided_slice %3 {offsets = [768, 0], sizes = [256, 64], strides = [1, 1]} : vector<1024x64xf32> to vector<256x64xf32>
    %9 = arith.maximumf %7, %8 : vector<256x64xf32>
    %10 = arith.maximumf %6, %9 : vector<256x64xf32>
    %c0_4 = arith.constant 0 : index
    %c0_5 = arith.constant 0 : index
    %11 = vector.load %arg3[%c0_4, %c0_5] : memref<1x64xf32, #tpu.memory_space<vmem>>, vector<1x64xf32>
    %12 = vector.broadcast %11 : vector<1x64xf32> to vector<256x64xf32>
    %13 = arith.addf %10, %12 : vector<256x64xf32>
    %cst_6 = arith.constant 0.000000e+00 : f32
    %14 = vector.broadcast %cst_6 : f32 to vector<256x64xf32>
    %15 = arith.maximumf %13, %14 : vector<256x64xf32>
    %c0_7 = arith.constant 0 : index
    %c0_8 = arith.constant 0 : index
    %16 = vector.load %arg4[%c0_7, %c0_8] : memref<256x64xf32, #tpu.memory_space<vmem>>, vector<256x64xf32>
    tpu.vector_store %arg4[%c0_7, %c0_8], %15 {strides = array<i32>} : memref<256x64xf32, #tpu.memory_space<vmem>>, vector<256x64xf32>,
    return
  }
  func.func @transform_0(%arg0: i32) -> (i32, i32, i32) {
    %c0_i32 = arith.constant 0 : i32
    %c0_i32_0 = arith.constant 0 : i32
    %c0_i32_1 = arith.constant 0 : i32
    return %c0_i32, %arg0, %c0_i32_0 : i32, i32, i32
  }
  func.func @transform_1(%arg0: i32) -> (i32, i32) {
    %c0_i32 = arith.constant 0 : i32
    %c0_i32_0 = arith.constant 0 : i32
    %c0_i32_1 = arith.constant 0 : i32
    return %c0_i32, %c0_i32_0 : i32, i32
  }
  func.func @transform_2(%arg0: i32) -> (i32, i32) {
    %c0_i32 = arith.constant 0 : i32
    %c0_i32_0 = arith.constant 0 : i32
    %c0_i32_1 = arith.constant 0 : i32
    return %c0_i32, %c0_i32_0 : i32, i32
  }
  func.func @transform_3(%arg0: i32) -> (i32, i32) {
    %c0_i32 = arith.constant 0 : i32
    %c0_i32_0 = arith.constant 0 : i32
    return %arg0, %c0_i32 : i32, i32
  }
}

module attributes {stable_mosaic.version = 11 : i64} {
  func.func @mlp_kernel(%arg0: i32, %arg1: memref<2x3136xbf16, #tpu.memory_space<vmem>>, %arg2: memref<3136x512xbf16, #tpu.memory_space<vmem>>, %arg3: memref<1x512xf32, #tpu.memory_space<vmem>>, %arg4: memref<512x10xbf16, #tpu.memory_space<vmem>>, %arg5: memref<1x10xf32, #tpu.memory_space<vmem>>, %arg6: memref<2x10xf32, #tpu.memory_space<vmem>>) attributes {dimension_semantics = [#tpu.dimension_semantics<parallel>], iteration_bounds = array<i64: 1>, scalar_prefetch = 0 : i64, scratch_operands = 0 : i64, tpu.core_type = #tpu.core_type<tc>, window_params = [{transform_indices = @transform_0, window_bounds = array<i64: 2, 3136>}, {pipeline_mode = #tpu.pipeline_mode<synchronous>, transform_indices = @transform_1, window_bounds = array<i64: 3136, 512>}, {pipeline_mode = #tpu.pipeline_mode<synchronous>, transform_indices = @transform_2, window_bounds = array<i64: 1, 512>}, {pipeline_mode = #tpu.pipeline_mode<synchronous>, transform_indices = @transform_3, window_bounds = array<i64: 512, 10>}, {pipeline_mode = #tpu.pipeline_mode<synchronous>, transform_indices = @transform_4, window_bounds = array<i64: 1, 10>}, {transform_indices = @transform_5, window_bounds = array<i64: 2, 10>}]} {
    %c0 = arith.constant 0 : index
    %c0_0 = arith.constant 0 : index
    %0 = vector.load %arg1[%c0, %c0_0] : memref<2x3136xbf16, #tpu.memory_space<vmem>>, vector<2x3136xbf16>
    %c0_1 = arith.constant 0 : index
    %c0_2 = arith.constant 0 : index
    %1 = vector.load %arg2[%c0_1, %c0_2] : memref<3136x512xbf16, #tpu.memory_space<vmem>>, vector<3136x512xbf16>
    %cst = arith.constant dense<0.000000e+00> : vector<2x512xf32>
    %2 = tpu.matmul %0, %1, %cst {dimension_numbers = #tpu.dot_dimension_numbers<[1], [0], [0], [1], [0, 0, 1, 1], [], []>} : vector<2x3136xbf16>, vector<3136x512xbf16>, vector<2x512xf32> -> vector<2x512xf32>
    %c0_3 = arith.constant 0 : index
    %c0_4 = arith.constant 0 : index
    %3 = vector.load %arg3[%c0_3, %c0_4] : memref<1x512xf32, #tpu.memory_space<vmem>>, vector<1x512xf32>
    %4 = vector.broadcast %3 : vector<1x512xf32> to vector<2x512xf32>
    %5 = arith.addf %2, %4 : vector<2x512xf32>
    %cst_5 = arith.constant 0.000000e+00 : f32
    %6 = vector.broadcast %cst_5 : f32 to vector<2x512xf32>
    %7 = arith.maximumf %5, %6 : vector<2x512xf32>
    %8 = arith.truncf %7 : vector<2x512xf32> to vector<2x512xbf16>
    %c0_6 = arith.constant 0 : index
    %c0_7 = arith.constant 0 : index
    %9 = vector.load %arg4[%c0_6, %c0_7] : memref<512x10xbf16, #tpu.memory_space<vmem>>, vector<512x10xbf16>
    %cst_8 = arith.constant dense<0.000000e+00> : vector<2x10xf32>
    %10 = tpu.matmul %8, %9, %cst_8 {dimension_numbers = #tpu.dot_dimension_numbers<[1], [0], [0], [1], [0, 0, 1, 1], [], []>} : vector<2x512xbf16>, vector<512x10xbf16>, vector<2x10xf32> -> vector<2x10xf32>
    %c0_9 = arith.constant 0 : index
    %c0_10 = arith.constant 0 : index
    %11 = vector.load %arg5[%c0_9, %c0_10] : memref<1x10xf32, #tpu.memory_space<vmem>>, vector<1x10xf32>
    %12 = vector.broadcast %11 : vector<1x10xf32> to vector<2x10xf32>
    %13 = arith.addf %10, %12 : vector<2x10xf32>
    %c0_11 = arith.constant 0 : index
    %c0_12 = arith.constant 0 : index
    %14 = vector.load %arg6[%c0_11, %c0_12] : memref<2x10xf32, #tpu.memory_space<vmem>>, vector<2x10xf32>
    tpu.vector_store %arg6[%c0_11, %c0_12], %13 {strides = array<i32>} : memref<2x10xf32, #tpu.memory_space<vmem>>, vector<2x10xf32>,
    return
  }
  func.func @transform_0(%arg0: i32) -> (i32, i32) {
    %c0_i32 = arith.constant 0 : i32
    %c0_i32_0 = arith.constant 0 : i32
    return %arg0, %c0_i32 : i32, i32
  }
  func.func @transform_1(%arg0: i32) -> (i32, i32) {
    %c0_i32 = arith.constant 0 : i32
    %c0_i32_0 = arith.constant 0 : i32
    %c0_i32_1 = arith.constant 0 : i32
    return %c0_i32, %c0_i32_0 : i32, i32
  }
  func.func @transform_2(%arg0: i32) -> (i32, i32) {
    %c0_i32 = arith.constant 0 : i32
    %c0_i32_0 = arith.constant 0 : i32
    %c0_i32_1 = arith.constant 0 : i32
    return %c0_i32, %c0_i32_0 : i32, i32
  }
  func.func @transform_3(%arg0: i32) -> (i32, i32) {
    %c0_i32 = arith.constant 0 : i32
    %c0_i32_0 = arith.constant 0 : i32
    %c0_i32_1 = arith.constant 0 : i32
    return %c0_i32, %c0_i32_0 : i32, i32
  }
  func.func @transform_4(%arg0: i32) -> (i32, i32) {
    %c0_i32 = arith.constant 0 : i32
    %c0_i32_0 = arith.constant 0 : i32
    %c0_i32_1 = arith.constant 0 : i32
    return %c0_i32, %c0_i32_0 : i32, i32
  }
  func.func @transform_5(%arg0: i32) -> (i32, i32) {
    %c0_i32 = arith.constant 0 : i32
    %c0_i32_0 = arith.constant 0 : i32
    return %arg0, %c0_i32 : i32, i32
  }
}

</mosaic_0001>

<bundles_post_ra>
// kernel: global_model_forward.3
= control target key start
LH: loop header
LB: loop body
LE: loop exit
PB: predicated region body
PF: predicated region fallthrough
CT: control target
= control target key end

     0   :  { %s2679_s12 = smov 0   ;;  %s2681_s13 = smov 0   ;;  %s3294_s0 = inlined_call_operand.vmem [shape: bf16[4,512,25], index: 0, kind: input, shape index: {}]   ;;  %s3295_s1 = inlined_call_operand.vmem [shape: bf16[25,32], index: 1, kind: input, shape index: {}]   ;;  %s3296_s2 = inlined_call_operand.vmem [shape: f32[1,32], index: 2, kind: input, shape index: {}]   ;;  %s3297_s3 = inlined_call_operand.vmem [shape: f32[512,32], index: 3, kind: output, shape index: {}]  }
   0x1   :  { %s2683_s14 = smov 0  }
   0x2 LB: > { %s2196_s15 = sadd.s32 4294967295, %s2656_s14   ;;  %s2696_s16 = sadd.s32 1, %s2656_s14   ;;  %s2656_s14 = sphi %s2683_s14, %s3326_s14   ;;  %s2652_s13 = sphi %s2681_s13, %s3325_s13   ;;  %s2648_s12 = sphi %s2679_s12, %s3324_s12  }
   0x3   : > { %s17_s17 = ssub.s32 %s2656_s14, %s2696_s16  ;;  %s20_s18 = sadd.s32 1, %s2652_s13 }
   0x4   : > { %p18_p0 = scmp.eq.s32.totalorder %s17_s17, 0  ;;  %p27_p1 = scmp.ne.s32.totalorder %s2652_s13, %s2648_s12 }
   0x5   : > { %p28_p2 = scmp.eq.s32.totalorder %s2656_s14, 0  ;;  %p2199_p4 = scmp.ge.s32.totalorder %s2656_s14, 2 }
   0x6   : > { %s2705_s19 = scalar_select %p18_p0, %s2652_s13, %s20_s18  }
   0x7   : > { %p29_p3 = por %p28_p2, %p27_p1  ;;  %127 = sbr.rel (%p2199_p4) target bundleno = 48 (0x30), region = 24 }
   0xc   : > { %130 = sbr.rel (!%p29_p3) target bundleno = 48 (0x30), region = 28  ;;  %s132_s20 = sand.u32 (%p29_p3), 1, %s2652_s13  }
   0xd   : > { %s2340_s21 = sshll.u32 (%p29_p3), %s2656_s14, 7  ;;  %s2200_s22 = sshll.u32 (%p29_p3), %s132_s20, 9 }
   0xe   : > { %s2713_s25 = scalar_lea.vmem (%p29_p3), %s3294_s0, %s2340_s21  ;;  %s2718_s26 = scalar_lea.vmem (%p29_p3), [#allocation2], %s2200_s22 }
   0xf   : > { %v154_v0 = vld [vmem:[%s2713_s25] sm:$0xff] (%p29_p3)   ;;  %v158_v1 = vld [vmem:[%s2713_s25 + $0x8] sm:$0xff] (%p29_p3)   ;;  %v162_v2 = vld [vmem:[%s2713_s25 + $0x10] sm:$0xff] (%p29_p3)  }
  0x10   : > { %155 = vst [vmem:[%s2718_s26] sm:$0xff] (%p29_p3), %v154_v0   ;;  %159 = vst [vmem:[%s2718_s26 + $0x8] sm:$0xff] (%p29_p3), %v158_v1   ;;  %v166_v3 = vld [vmem:[%s2713_s25 + $0x18] sm:$0xff] (%p29_p3)   ;;  %v170_v4 = vld [vmem:[%s2713_s25 + $0x20] sm:$0xff] (%p29_p3)  }
  0x11   : > { %163 = vst [vmem:[%s2718_s26 + $0x10] sm:$0xff] %v162_v2   ;;  %v174_v5 = vld [vmem:[%s2713_s25 + $0x28] sm:$0xff]   ;;  %167 = vst [vmem:[%s2718_s26 + $0x18] sm:$0xff] %v166_v3   ;;  %v178_v6 = vld [vmem:[%s2713_s25 + $0x30] sm:$0xff]  }
  0x12   : > { %171 = vst [vmem:[%s2718_s26 + $0x20] sm:$0xff] %v170_v4   ;;  %175 = vst [vmem:[%s2718_s26 + $0x28] sm:$0xff] %v174_v5   ;;  %v182_v7 = vld [vmem:[%s2713_s25 + $0x38] sm:$0xff]   ;;  %v186_v8 = vld [vmem:[%s2713_s25 + $0x40] sm:$0xff]  }
  0x13   : > { %179 = vst [vmem:[%s2718_s26 + $0x30] sm:$0xff] %v178_v6   ;;  %183 = vst [vmem:[%s2718_s26 + $0x38] sm:$0xff] %v182_v7   ;;  %v190_v9 = vld [vmem:[%s2713_s25 + $0x48] sm:$0xff]   ;;  %v194_v10 = vld [vmem:[%s2713_s25 + $0x50] sm:$0xff]  }
  0x14   : > { %187 = vst [vmem:[%s2718_s26 + $0x40] sm:$0xff] %v186_v8   ;;  %v198_v11 = vld [vmem:[%s2713_s25 + $0x58] sm:$0xff]   ;;  %191 = vst [vmem:[%s2718_s26 + $0x48] sm:$0xff] %v190_v9   ;;  %v202_v12 = vld [vmem:[%s2713_s25 + $0x60] sm:$0xff]  }
  0x15   : > { %195 = vst [vmem:[%s2718_s26 + $0x50] sm:$0xff] %v194_v10   ;;  %199 = vst [vmem:[%s2718_s26 + $0x58] sm:$0xff] %v198_v11   ;;  %v206_v13 = vld [vmem:[%s2713_s25 + $0x68] sm:$0xff]   ;;  %v210_v14 = vld [vmem:[%s2713_s25 + $0x70] sm:$0xff]  }
  0x16   : > { %203 = vst [vmem:[%s2718_s26 + $0x60] sm:$0xff] %v202_v12   ;;  %207 = vst [vmem:[%s2718_s26 + $0x68] sm:$0xff] %v206_v13   ;;  %v214_v15 = vld [vmem:[%s2713_s25 + $0x78] sm:$0xff]   ;;  %v218_v16 = vld [vmem:[%s2713_s25 + $0x100] sm:$0xff]  }
  0x17   : > { %211 = vst [vmem:[%s2718_s26 + $0x70] sm:$0xff] %v210_v14   ;;  %v222_v17 = vld [vmem:[%s2713_s25 + $0x108] sm:$0xff]   ;;  %215 = vst [vmem:[%s2718_s26 + $0x78] sm:$0xff] %v214_v15   ;;  %v226_v18 = vld [vmem:[%s2713_s25 + $0x110] sm:$0xff]  }
  0x18   : > { %219 = vst [vmem:[%s2718_s26 + $0x80] sm:$0xff] %v218_v16   ;;  %223 = vst [vmem:[%s2718_s26 + $0x88] sm:$0xff] %v222_v17   ;;  %v230_v19 = vld [vmem:[%s2713_s25 + $0x118] sm:$0xff]   ;;  %v234_v20 = vld [vmem:[%s2713_s25 + $0x120] sm:$0xff]  }
  0x19   : > { %227 = vst [vmem:[%s2718_s26 + $0x90] sm:$0xff] %v226_v18   ;;  %231 = vst [vmem:[%s2718_s26 + $0x98] sm:$0xff] %v230_v19   ;;  %v238_v21 = vld [vmem:[%s2713_s25 + $0x128] sm:$0xff]   ;;  %v242_v22 = vld [vmem:[%s2713_s25 + $0x130] sm:$0xff]  }
  0x1a   : > { %235 = vst [vmem:[%s2718_s26 + $0xa0] sm:$0xff] %v234_v20   ;;  %v246_v23 = vld [vmem:[%s2713_s25 + $0x138] sm:$0xff]   ;;  %239 = vst [vmem:[%s2718_s26 + $0xa8] sm:$0xff] %v238_v21   ;;  %v250_v24 = vld [vmem:[%s2713_s25 + $0x140] sm:$0xff]  }
  0x1b   : > { %243 = vst [vmem:[%s2718_s26 + $0xb0] sm:$0xff] %v242_v22   ;;  %247 = vst [vmem:[%s2718_s26 + $0xb8] sm:$0xff] %v246_v23   ;;  %v254_v25 = vld [vmem:[%s2713_s25 + $0x148] sm:$0xff]   ;;  %v258_v26 = vld [vmem:[%s2713_s25 + $0x150] sm:$0xff]  }
  0x1c   : > { %251 = vst [vmem:[%s2718_s26 + $0xc0] sm:$0xff] %v250_v24   ;;  %255 = vst [vmem:[%s2718_s26 + $0xc8] sm:$0xff] %v254_v25   ;;  %v262_v27 = vld [vmem:[%s2713_s25 + $0x158] sm:$0xff]   ;;  %v266_v28 = vld [vmem:[%s2713_s25 + $0x160] sm:$0xff]  }
  0x1d   : > { %259 = vst [vmem:[%s2718_s26 + $0xd0] sm:$0xff] %v258_v26   ;;  %v270_v29 = vld [vmem:[%s2713_s25 + $0x168] sm:$0xff]   ;;  %263 = vst [vmem:[%s2718_s26 + $0xd8] sm:$0xff] %v262_v27   ;;  %v274_v30 = vld [vmem:[%s2713_s25 + $0x170] sm:$0xff]  }
  0x1e   : > { %267 = vst [vmem:[%s2718_s26 + $0xe0] sm:$0xff] %v266_v28   ;;  %271 = vst [vmem:[%s2718_s26 + $0xe8] sm:$0xff] %v270_v29   ;;  %v278_v31 = vld [vmem:[%s2713_s25 + $0x178] sm:$0xff]   ;;  %v282_v32 = vld [vmem:[%s2713_s25 + $0x200] sm:$0xff]  }
  0x1f   : > { %275 = vst [vmem:[%s2718_s26 + $0xf0] sm:$0xff] %v274_v30   ;;  %279 = vst [vmem:[%s2718_s26 + $0xf8] sm:$0xff] %v278_v31   ;;  %v286_v33 = vld [vmem:[%s2713_s25 + $0x208] sm:$0xff]   ;;  %v290_v34 = vld [vmem:[%s2713_s25 + $0x210] sm:$0xff]  }
  0x20   : > { %283 = vst [vmem:[%s2718_s26 + $0x100] sm:$0xff] %v282_v32   ;;  %v294_v35 = vld [vmem:[%s2713_s25 + $0x218] sm:$0xff]   ;;  %287 = vst [vmem:[%s2718_s26 + $0x108] sm:$0xff] %v286_v33   ;;  %v298_v36 = vld [vmem:[%s2713_s25 + $0x220] sm:$0xff]  }
  0x21   : > { %291 = vst [vmem:[%s2718_s26 + $0x110] sm:$0xff] %v290_v34   ;;  %295 = vst [vmem:[%s2718_s26 + $0x118] sm:$0xff] %v294_v35   ;;  %v302_v37 = vld [vmem:[%s2713_s25 + $0x228] sm:$0xff]   ;;  %v306_v38 = vld [vmem:[%s2713_s25 + $0x230] sm:$0xff]  }
  0x22   : > { %299 = vst [vmem:[%s2718_s26 + $0x120] sm:$0xff] %v298_v36   ;;  %303 = vst [vmem:[%s2718_s26 + $0x128] sm:$0xff] %v302_v37   ;;  %v310_v39 = vld [vmem:[%s2713_s25 + $0x238] sm:$0xff]   ;;  %v314_v40 = vld [vmem:[%s2713_s25 + $0x240] sm:$0xff]  }
  0x23   : > { %307 = vst [vmem:[%s2718_s26 + $0x130] sm:$0xff] %v306_v38   ;;  %v318_v41 = vld [vmem:[%s2713_s25 + $0x248] sm:$0xff]   ;;  %311 = vst [vmem:[%s2718_s26 + $0x138] sm:$0xff] %v310_v39   ;;  %v322_v42 = vld [vmem:[%s2713_s25 + $0x250] sm:$0xff]  }
  0x24   : > { %315 = vst [vmem:[%s2718_s26 + $0x140] sm:$0xff] %v314_v40   ;;  %319 = vst [vmem:[%s2718_s26 + $0x148] sm:$0xff] %v318_v41   ;;  %v326_v43 = vld [vmem:[%s2713_s25 + $0x258] sm:$0xff]   ;;  %v330_v44 = vld [vmem:[%s2713_s25 + $0x260] sm:$0xff]  }
  0x25   : > { %323 = vst [vmem:[%s2718_s26 + $0x150] sm:$0xff] %v322_v42   ;;  %327 = vst [vmem:[%s2718_s26 + $0x158] sm:$0xff] %v326_v43   ;;  %v334_v45 = vld [vmem:[%s2713_s25 + $0x268] sm:$0xff]   ;;  %v338_v46 = vld [vmem:[%s2713_s25 + $0x270] sm:$0xff]  }
  0x26   : > { %331 = vst [vmem:[%s2718_s26 + $0x160] sm:$0xff] %v330_v44   ;;  %v342_v47 = vld [vmem:[%s2713_s25 + $0x278] sm:$0xff]   ;;  %335 = vst [vmem:[%s2718_s26 + $0x168] sm:$0xff] %v334_v45   ;;  %v346_v48 = vld [vmem:[%s2713_s25 + $0x300] sm:$0xff]  }
  0x27   : > { %339 = vst [vmem:[%s2718_s26 + $0x170] sm:$0xff] %v338_v46   ;;  %343 = vst [vmem:[%s2718_s26 + $0x178] sm:$0xff] %v342_v47   ;;  %v350_v49 = vld [vmem:[%s2713_s25 + $0x308] sm:$0xff]   ;;  %v354_v50 = vld [vmem:[%s2713_s25 + $0x310] sm:$0xff]  }
  0x28   : > { %347 = vst [vmem:[%s2718_s26 + $0x180] sm:$0xff] %v346_v48   ;;  %351 = vst [vmem:[%s2718_s26 + $0x188] sm:$0xff] %v350_v49   ;;  %v358_v51 = vld [vmem:[%s2713_s25 + $0x318] sm:$0xff]   ;;  %v362_v52 = vld [vmem:[%s2713_s25 + $0x320] sm:$0xff]  }
  0x29   : > { %355 = vst [vmem:[%s2718_s26 + $0x190] sm:$0xff] %v354_v50   ;;  %v366_v53 = vld [vmem:[%s2713_s25 + $0x328] sm:$0xff]   ;;  %359 = vst [vmem:[%s2718_s26 + $0x198] sm:$0xff] %v358_v51   ;;  %v370_v54 = vld [vmem:[%s2713_s25 + $0x330] sm:$0xff]  }
  0x2a   : > { %363 = vst [vmem:[%s2718_s26 + $0x1a0] sm:$0xff] %v362_v52   ;;  %367 = vst [vmem:[%s2718_s26 + $0x1a8] sm:$0xff] %v366_v53   ;;  %v374_v55 = vld [vmem:[%s2713_s25 + $0x338] sm:$0xff]   ;;  %v378_v56 = vld [vmem:[%s2713_s25 + $0x340] sm:$0xff]  }
  0x2b   : > { %371 = vst [vmem:[%s2718_s26 + $0x1b0] sm:$0xff] %v370_v54   ;;  %375 = vst [vmem:[%s2718_s26 + $0x1b8] sm:$0xff] %v374_v55   ;;  %v382_v57 = vld [vmem:[%s2713_s25 + $0x348] sm:$0xff]   ;;  %v386_v58 = vld [vmem:[%s2713_s25 + $0x350] sm:$0xff]  }
  0x2c   : > { %379 = vst [vmem:[%s2718_s26 + $0x1c0] sm:$0xff] %v378_v56   ;;  %v390_v59 = vld [vmem:[%s2713_s25 + $0x358] sm:$0xff]   ;;  %383 = vst [vmem:[%s2718_s26 + $0x1c8] sm:$0xff] %v382_v57   ;;  %v394_v60 = vld [vmem:[%s2713_s25 + $0x360] sm:$0xff]  }
  0x2d   : > { %387 = vst [vmem:[%s2718_s26 + $0x1d0] sm:$0xff] %v386_v58   ;;  %391 = vst [vmem:[%s2718_s26 + $0x1d8] sm:$0xff] %v390_v59   ;;  %v398_v61 = vld [vmem:[%s2713_s25 + $0x368] sm:$0xff]   ;;  %v402_v62 = vld [vmem:[%s2713_s25 + $0x370] sm:$0xff]  }
  0x2e   : > { %395 = vst [vmem:[%s2718_s26 + $0x1e0] sm:$0xff] %v394_v60   ;;  %399 = vst [vmem:[%s2718_s26 + $0x1e8] sm:$0xff] %v398_v61   ;;  %v406_v63 = vld [vmem:[%s2713_s25 + $0x378] sm:$0xff]  }
  0x2f   : > { %403 = vst [vmem:[%s2718_s26 + $0x1f0] sm:$0xff] %v402_v62   ;;  %407 = vst [vmem:[%s2718_s26 + $0x1f8] sm:$0xff] %v406_v63  }
  0x30 PF: > { %p2203_p5 = scmp.ge.s32.totalorder %s2656_s14, 1  ;;  %p688_p6 = scmp.lt.s32.totalorder %s2656_s14, 3 }
  0x32   : > { %p689_p7 = pnand %p2203_p5, %p688_p6 }
  0x34   : > { %692 = sbr.rel (%p689_p7) target bundleno = 399 (0x18f), region = 69 }
  0x39   : > { %v2568_v0 = vld [vmem:[%s3295_s1 + $0x8] sm:$0x1f]   ;;  %vm1382_vm0 = vcmask 1043456   ;;  %vm1383_vm1 = vcmask 1044480   ;;  %v2658_v1 = vmov 65535   ;;  %s695_s29 = sand.u32 1, %s2648_s12  }
  0x3a   : > { %v1384_v2 = vsel %vm1382_vm0, 4294967295, %v2658_v1  ;;  %s2204_s30 = sshll.u32 %s695_s29, 9  ;;  %v2569_v5 = vld [vmem:[%s3295_s1] sm:$0xff]   ;;  %vm1189_vm2 = vcmask 203776   ;;  %s2205_s7 = sshll.u32 %s2196_s15, 5  ;;  %vm2101_vm3 = vcmask 261120  }
  0x3b   : > { %v1385_v3 = vsel %vm1383_vm1, %v1384_v2, 0  ;;  %s2854_s6 = scalar_lea.vmem [#allocation2], %s2204_s30  ;;  %p720_p8 = scmp.lt.s32.totalorder %s2205_s7, 63 }
  0x3c   : > { %v1387_v4 = vand.u32 %v2568_v0, %v1385_v3  ;;  %v2570_v6 = vld [vmem:[%s2854_s6] sm:$0xff]   ;;  %v2572_v8 = vld [vmem:[%s2854_s6 + $0x8] sm:$0xff]   ;;  %v2574_v10 = vld [vmem:[%s2854_s6 + $0x10] sm:$0xff]  }
  0x3d   : > { %v2571_v7 = vld [vmem:[%s2854_s6 + $0x100] sm:$0xff]   ;;  %2411 = vmatprep.mubr.msk.bf16.mxu0 %vm1189_vm2, %v2570_v6  ;;  %v2573_v9 = vld [vmem:[%s2854_s6 + $0x108] sm:$0xff]   ;;  %v2575_v11 = vld [vmem:[%s2854_s6 + $0x110] sm:$0xff]   ;;  %s3328_s7 = smov (!%p720_p8, %s2205_s7), 63 }
  0x3e   : > { %2407 = vmatprep.subr.bf16.mxu0 %v1387_v4  ;;  %2539 = vmatprep.subr.bf16.mxu1 %v1387_v4  ;;  %v2576_v12 = vld [vmem:[%s2854_s6 + $0x18] sm:$0xff]   ;;  %v2578_v14 = vld [vmem:[%s2854_s6 + $0x20] sm:$0xff]   ;;  %v2580_v16 = vld [vmem:[%s2854_s6 + $0x28] sm:$0xff]   ;;  %s2206_s10 = sshll.u32 %s3328_s7, 3 }
  0x3f   : > { %2408 = vmatpush3.bf16.msra.mxu0 %v1387_v4  ;;  %2541 = vmatpush3.bf16.msra.mxu1 %v1387_v4  ;;  %v2577_v13 = vld [vmem:[%s2854_s6 + $0x118] sm:$0xff]   ;;  %v2579_v15 = vld [vmem:[%s2854_s6 + $0x120] sm:$0xff]   ;;  %v2581_v17 = vld [vmem:[%s2854_s6 + $0x128] sm:$0xff]   ;;  %s3129_s14 = scalar_lea.vmem %s3297_s3, %s2206_s10 }
  0x40   : > { %2409 = vmatprep.subr.bf16.mxu0 %v2569_v5  ;;  %2540 = vmatprep.subr.bf16.mxu1 %v2569_v5  ;;  %v2582_v18 = vld [vmem:[%s2854_s6 + $0x30] sm:$0xff]   ;;  %v2584_v20 = vld [vmem:[%s2854_s6 + $0x38] sm:$0xff]   ;;  %v2586_v22 = vld [vmem:[%s2854_s6 + $0x40] sm:$0xff]  }
  0x41   : > { %2475 = vmatprep.mubr.msk.bf16.mxu1 %vm1189_vm2, %v2571_v7  ;;  %v2583_v19 = vld [vmem:[%s2854_s6 + $0x130] sm:$0xff]   ;;  %v2585_v21 = vld [vmem:[%s2854_s6 + $0x138] sm:$0xff]   ;;  %v2587_v23 = vld [vmem:[%s2854_s6 + $0x140] sm:$0xff]  }
  0x42   : > { %v2588_v24 = vld [vmem:[%s2854_s6 + $0x48] sm:$0xff]   ;;  %v2590_v26 = vld [vmem:[%s2854_s6 + $0x50] sm:$0xff]   ;;  %v2592_v28 = vld [vmem:[%s2854_s6 + $0x58] sm:$0xff]  }
  0x43   : > { %2410 = vmatpush3.bf16.msra.mxu0 %v2569_v5  ;;  %2542 = vmatpush3.bf16.msra.mxu1 %v2569_v5  ;;  %v2589_v25 = vld [vmem:[%s2854_s6 + $0x148] sm:$0xff]   ;;  %v2591_v27 = vld [vmem:[%s2854_s6 + $0x150] sm:$0xff]   ;;  %v2593_v29 = vld [vmem:[%s2854_s6 + $0x158] sm:$0xff]  }
  0x44   : > { %v2594_v30 = vld [vmem:[%s2854_s6 + $0x60] sm:$0xff]   ;;  %v2596_v32 = vld [vmem:[%s2854_s6 + $0x68] sm:$0xff]   ;;  %v2598_v34 = vld [vmem:[%s2854_s6 + $0x70] sm:$0xff]  }
  0x45   : > { %v2595_v31 = vld [vmem:[%s2854_s6 + $0x160] sm:$0xff]   ;;  %v2597_v33 = vld [vmem:[%s2854_s6 + $0x168] sm:$0xff]   ;;  %v2599_v35 = vld [vmem:[%s2854_s6 + $0x170] sm:$0xff]  }
  0x46   : > { %2412 = vmatmul.mubr.msk.bf16.vlgmr.msra.gmra.mxu0 %vm1189_vm2, %v2572_v8  ;;  %2476 = vmatmul.mubr.msk.bf16.vlgmr.msra.gmra.mxu1 %vm1189_vm2, %v2573_v9  ;;  %v2600_v36 = vld [vmem:[%s2854_s6 + $0x78] sm:$0xff]   ;;  %v2602_v38 = vld [vmem:[%s2854_s6 + $0x80] sm:$0xff]   ;;  %v2604_v40 = vld [vmem:[%s2854_s6 + $0x88] sm:$0xff]  }
  0x47   : > { %2415 = vmatprep.mubr.msk.bf16.mxu0 %vm1189_vm2, %v2574_v10  ;;  %2479 = vmatprep.mubr.msk.bf16.mxu1 %vm1189_vm2, %v2575_v11  ;;  %v2601_v37 = vld [vmem:[%s2854_s6 + $0x178] sm:$0xff]   ;;  %v2603_v39 = vld [vmem:[%s2854_s6 + $0x180] sm:$0xff]   ;;  %v2605_v41 = vld [vmem:[%s2854_s6 + $0x188] sm:$0xff]  }
  0x48   : > { %v2606_v42 = vld [vmem:[%s2854_s6 + $0x90] sm:$0xff]   ;;  %v2608_v44 = vld [vmem:[%s2854_s6 + $0x98] sm:$0xff]   ;;  %v2610_v46 = vld [vmem:[%s2854_s6 + $0xa0] sm:$0xff]  }
  0x49   : > { %v2607_v43 = vld [vmem:[%s2854_s6 + $0x190] sm:$0xff]   ;;  %v2609_v45 = vld [vmem:[%s2854_s6 + $0x198] sm:$0xff]   ;;  %v2611_v47 = vld [vmem:[%s2854_s6 + $0x1a0] sm:$0xff]  }
  0x4a   : > { %v2612_v48 = vld [vmem:[%s2854_s6 + $0xa8] sm:$0xff]   ;;  %v2614_v50 = vld [vmem:[%s2854_s6 + $0xb0] sm:$0xff]   ;;  %v2616_v52 = vld [vmem:[%s2854_s6 + $0xb8] sm:$0xff]  }
  0x4b   : > { %v2613_v49 = vld [vmem:[%s2854_s6 + $0x1a8] sm:$0xff]   ;;  %v2615_v51 = vld [vmem:[%s2854_s6 + $0x1b0] sm:$0xff]   ;;  %v2617_v53 = vld [vmem:[%s2854_s6 + $0x1b8] sm:$0xff]  }
  0x4c   : > { %v2618_v54 = vld [vmem:[%s2854_s6 + $0xc0] sm:$0xff]   ;;  %v2620_v56 = vld [vmem:[%s2854_s6 + $0xc8] sm:$0xff]   ;;  %v2622_v58 = vld [vmem:[%s2854_s6 + $0xd0] sm:$0xff]  }
  0x4d   : > { %v2619_v55 = vld [vmem:[%s2854_s6 + $0x1c0] sm:$0xff]   ;;  %v2621_v57 = vld [vmem:[%s2854_s6 + $0x1c8] sm:$0xff]   ;;  %v2623_v59 = vld [vmem:[%s2854_s6 + $0x1d0] sm:$0xff]  }
  0x4e   : > { %2416 = vmatmul.mubr.msk.bf16.gmra.mxu0 %vm1189_vm2, %v2576_v12  ;;  %2480 = vmatmul.mubr.msk.bf16.gmra.mxu1 %vm1189_vm2, %v2577_v13  ;;  %v2624_v60 = vld [vmem:[%s2854_s6 + $0xd8] sm:$0xff]   ;;  %v2626_v62 = vld [vmem:[%s2854_s6 + $0xe0] sm:$0xff]   ;;  %v2628_v0 = vld [vmem:[%s2854_s6 + $0xe8] sm:$0xff]  }
  0x4f   : > { %2419 = vmatprep.mubr.msk.bf16.mxu0 %vm1189_vm2, %v2578_v14  ;;  %2483 = vmatprep.mubr.msk.bf16.mxu1 %vm1189_vm2, %v2579_v15  ;;  %v2625_v61 = vld [vmem:[%s2854_s6 + $0x1d8] sm:$0xff]   ;;  %v2627_v63 = vld [vmem:[%s2854_s6 + $0x1e0] sm:$0xff]   ;;  %v2629_v1 = vld [vmem:[%s2854_s6 + $0x1e8] sm:$0xff]  }
  0x50   : > { %v2630_v2 = vld [vmem:[%s2854_s6 + $0xf0] sm:$0xff]   ;;  %v2632_v4 = vld [vmem:[%s2854_s6 + $0xf8] sm:$0xff]  }
  0x51   : > { %v2631_v3 = vld [vmem:[%s2854_s6 + $0x1f0] sm:$0xff]   ;;  %v2633_v5 = vld [vmem:[%s2854_s6 + $0x1f8] sm:$0xff]  }
  0x56   : > { %2420 = vmatmul.mubr.msk.bf16.gmra.mxu0 %vm1189_vm2, %v2580_v16  ;;  %2484 = vmatmul.mubr.msk.bf16.gmra.mxu1 %vm1189_vm2, %v2581_v17 }
  0x57   : > { %2423 = vmatprep.mubr.msk.bf16.mxu0 %vm1189_vm2, %v2582_v18  ;;  %2487 = vmatprep.mubr.msk.bf16.mxu1 %vm1189_vm2, %v2583_v19 }
  0x5e   : > { %2424 = vmatmul.mubr.msk.bf16.gmra.mxu0 %vm1189_vm2, %v2584_v20  ;;  %2488 = vmatmul.mubr.msk.bf16.gmra.mxu1 %vm1189_vm2, %v2585_v21 }
  0x5f   : > { %2427 = vmatprep.mubr.msk.bf16.mxu0 %vm1189_vm2, %v2586_v22  ;;  %2491 = vmatprep.mubr.msk.bf16.mxu1 %vm1189_vm2, %v2587_v23 }
  0x66   : > { %2428 = vmatmul.mubr.msk.bf16.gmra.mxu0 %vm1189_vm2, %v2588_v24  ;;  %2492 = vmatmul.mubr.msk.bf16.gmra.mxu1 %vm1189_vm2, %v2589_v25 }
  0x67   : > { %2431 = vmatprep.mubr.msk.bf16.mxu0 %vm1189_vm2, %v2590_v26  ;;  %2495 = vmatprep.mubr.msk.bf16.mxu1 %vm1189_vm2, %v2591_v27 }
  0x6e   : > { %2432 = vmatmul.mubr.msk.bf16.gmra.mxu0 %vm1189_vm2, %v2592_v28  ;;  %2496 = vmatmul.mubr.msk.bf16.gmra.mxu1 %vm1189_vm2, %v2593_v29 }
  0x6f   : > { %2435 = vmatprep.mubr.msk.bf16.mxu0 %vm1189_vm2, %v2594_v30  ;;  %2499 = vmatprep.mubr.msk.bf16.mxu1 %vm1189_vm2, %v2595_v31 }
  0x76   : > { %2436 = vmatmul.mubr.msk.bf16.gmra.mxu0 %vm1189_vm2, %v2596_v32  ;;  %2500 = vmatmul.mubr.msk.bf16.gmra.mxu1 %vm1189_vm2, %v2597_v33 }
  0x77   : > { %2439 = vmatprep.mubr.msk.bf16.mxu0 %vm1189_vm2, %v2598_v34  ;;  %2503 = vmatprep.mubr.msk.bf16.mxu1 %vm1189_vm2, %v2599_v35 }
  0x7e   : > { %2440 = vmatmul.mubr.msk.bf16.gmra.mxu0 %vm1189_vm2, %v2600_v36  ;;  %2504 = vmatmul.mubr.msk.bf16.gmra.mxu1 %vm1189_vm2, %v2601_v37 }
  0x7f   : > { %2443 = vmatprep.mubr.msk.bf16.mxu0 %vm1189_vm2, %v2602_v38  ;;  %2507 = vmatprep.mubr.msk.bf16.mxu1 %vm1189_vm2, %v2603_v39 }
  0x86   : > { %2444 = vmatmul.mubr.msk.bf16.gmra.mxu0 %vm1189_vm2, %v2604_v40  ;;  %2508 = vmatmul.mubr.msk.bf16.gmra.mxu1 %vm1189_vm2, %v2605_v41 }
  0x87   : > { %2447 = vmatprep.mubr.msk.bf16.mxu0 %vm1189_vm2, %v2606_v42  ;;  %2511 = vmatprep.mubr.msk.bf16.mxu1 %vm1189_vm2, %v2607_v43 }
  0x8e   : > { %2448 = vmatmul.mubr.msk.bf16.gmra.mxu0 %vm1189_vm2, %v2608_v44  ;;  %2512 = vmatmul.mubr.msk.bf16.gmra.mxu1 %vm1189_vm2, %v2609_v45 }
  0x8f   : > { %2451 = vmatprep.mubr.msk.bf16.mxu0 %vm1189_vm2, %v2610_v46  ;;  %2515 = vmatprep.mubr.msk.bf16.mxu1 %vm1189_vm2, %v2611_v47 }
  0x96   : > { %2452 = vmatmul.mubr.msk.bf16.gmra.mxu0 %vm1189_vm2, %v2612_v48  ;;  %2516 = vmatmul.mubr.msk.bf16.gmra.mxu1 %vm1189_vm2, %v2613_v49 }
  0x97   : > { %2455 = vmatprep.mubr.msk.bf16.mxu0 %vm1189_vm2, %v2614_v50  ;;  %2519 = vmatprep.mubr.msk.bf16.mxu1 %vm1189_vm2, %v2615_v51 }
  0x9e   : > { %2456 = vmatmul.mubr.msk.bf16.gmra.mxu0 %vm1189_vm2, %v2616_v52  ;;  %2520 = vmatmul.mubr.msk.bf16.gmra.mxu1 %vm1189_vm2, %v2617_v53 }
  0x9f   : > { %2459 = vmatprep.mubr.msk.bf16.mxu0 %vm1189_vm2, %v2618_v54  ;;  %2523 = vmatprep.mubr.msk.bf16.mxu1 %vm1189_vm2, %v2619_v55 }
  0xa6   : > { %2460 = vmatmul.mubr.msk.bf16.gmra.mxu0 %vm1189_vm2, %v2620_v56  ;;  %2524 = vmatmul.mubr.msk.bf16.gmra.mxu1 %vm1189_vm2, %v2621_v57 }
  0xa7   : > { %2463 = vmatprep.mubr.msk.bf16.mxu0 %vm1189_vm2, %v2622_v58  ;;  %2527 = vmatprep.mubr.msk.bf16.mxu1 %vm1189_vm2, %v2623_v59 }
  0xae   : > { %2464 = vmatmul.mubr.msk.bf16.gmra.mxu0 %vm1189_vm2, %v2624_v60  ;;  %2528 = vmatmul.mubr.msk.bf16.gmra.mxu1 %vm1189_vm2, %v2625_v61 }
  0xaf   : > { %2467 = vmatprep.mubr.msk.bf16.mxu0 %vm1189_vm2, %v2626_v62  ;;  %2531 = vmatprep.mubr.msk.bf16.mxu1 %vm1189_vm2, %v2627_v63 }
  0xb6   : > { %2468 = vmatmul.mubr.msk.bf16.gmra.mxu0 %vm1189_vm2, %v2628_v0  ;;  %2532 = vmatmul.mubr.msk.bf16.gmra.mxu1 %vm1189_vm2, %v2629_v1 }
  0xb7   : > { %2471 = vmatprep.mubr.msk.bf16.mxu0 %vm1189_vm2, %v2630_v2  ;;  %2535 = vmatprep.mubr.msk.bf16.mxu1 %vm1189_vm2, %v2631_v3 }
  0xbe   : > { %2472 = vmatmul.mubr.msk.bf16.gmra.mxu0 %vm1189_vm2, %v2632_v4  ;;  %2536 = vmatmul.mubr.msk.bf16.gmra.mxu1 %vm1189_vm2, %v2633_v5 }
 0x106   : > { %v2984_v6 = vpop.f32.mrf.mxu0  ;;  %v2986_v7 = vpop.f32.mrf.mxu1 }
 0x108   : > { %v2988_v8 = vpop.f32.mrf.mxu0  ;;  %v2990_v9 = vpop.f32.mrf.mxu1 }
 0x10a   : > { %v2992_v10 = vpop.f32.mrf.mxu0  ;;  %v2994_v11 = vpop.f32.mrf.mxu1 }
 0x10c   : > { %v2996_v12 = vpop.f32.mrf.mxu0  ;;  %v2998_v13 = vpop.f32.mrf.mxu1 }
 0x10e   : > { %v3000_v14 = vpop.f32.mrf.mxu0  ;;  %v3002_v15 = vpop.f32.mrf.mxu1 }
 0x110   : > { %v3004_v16 = vpop.f32.mrf.mxu0  ;;  %v3006_v17 = vpop.f32.mrf.mxu1 }
 0x112   : > { %v3008_v18 = vpop.f32.mrf.mxu0  ;;  %v3010_v19 = vpop.f32.mrf.mxu1 }
 0x114   : > { %v3012_v20 = vpop.f32.mrf.mxu0  ;;  %v3014_v21 = vpop.f32.mrf.mxu1 }
 0x116   : > { %v3016_v22 = vpop.f32.mrf.mxu0  ;;  %v3018_v23 = vpop.f32.mrf.mxu1 }
 0x118   : > { %v3020_v24 = vpop.f32.mrf.mxu0  ;;  %v3022_v25 = vpop.f32.mrf.mxu1 }
 0x11a   : > { %v3024_v26 = vpop.f32.mrf.mxu0  ;;  %v3026_v27 = vpop.f32.mrf.mxu1 }
 0x11c   : > { %v3028_v28 = vpop.f32.mrf.mxu0  ;;  %v3030_v29 = vpop.f32.mrf.mxu1 }
 0x11e   : > { %v3032_v30 = vpop.f32.mrf.mxu0  ;;  %v3034_v31 = vpop.f32.mrf.mxu1 }
 0x120   : > { %v3036_v32 = vpop.f32.mrf.mxu0  ;;  %v3038_v33 = vpop.f32.mrf.mxu1 }
 0x122   : > { %v3040_v34 = vpop.f32.mrf.mxu0  ;;  %v3042_v35 = vpop.f32.mrf.mxu1 }
 0x124   : > { %v3044_v36 = vpop.f32.mrf.mxu0  ;;  %v3046_v37 = vpop.f32.mrf.mxu1 }
 0x126   : > { %v3048_v38 = vpop.f32.mrf.mxu0  ;;  %v3050_v39 = vpop.f32.mrf.mxu1 }
 0x128   : > { %v3052_v40 = vpop.f32.mrf.mxu0  ;;  %v3054_v41 = vpop.f32.mrf.mxu1 }
 0x12a   : > { %v3056_v42 = vpop.f32.mrf.mxu0  ;;  %v3058_v43 = vpop.f32.mrf.mxu1 }
 0x12c   : > { %v3060_v44 = vpop.f32.mrf.mxu0  ;;  %v3062_v45 = vpop.f32.mrf.mxu1 }
 0x12e   : > { %v3064_v46 = vpop.f32.mrf.mxu0  ;;  %v3066_v47 = vpop.f32.mrf.mxu1 }
 0x130   : > { %v3068_v48 = vpop.f32.mrf.mxu0  ;;  %v3070_v49 = vpop.f32.mrf.mxu1 }
 0x132   : > { %v3072_v50 = vpop.f32.mrf.mxu0  ;;  %v3074_v51 = vpop.f32.mrf.mxu1 }
 0x134   : > { %v3076_v52 = vpop.f32.mrf.mxu0  ;;  %v3078_v53 = vpop.f32.mrf.mxu1 }
 0x136   : > { %v3080_v54 = vpop.f32.mrf.mxu0  ;;  %v3082_v55 = vpop.f32.mrf.mxu1 }
 0x138   : > { %v3084_v56 = vpop.f32.mrf.mxu0  ;;  %v3086_v57 = vpop.f32.mrf.mxu1 }
 0x139   : > { %3298 = vst [vmem:[#allocation3_spill] sm:$0xff] %v3086_v57 }
 0x13a   : > { %v3088_v58 = vpop.f32.mrf.mxu0  ;;  %v3090_v59 = vpop.f32.mrf.mxu1 }
 0x13b   : > { %3299 = vst [vmem:[#allocation4_spill] sm:$0xff] %v3088_v58  ;;  %3300 = vst [vmem:[#allocation5_spill] sm:$0xff] %v3090_v59 }
 0x13c   : > { %v3092_v60 = vpop.f32.mrf.mxu0  ;;  %v3094_v61 = vpop.f32.mrf.mxu1 }
 0x13d   : > { %3301 = vst [vmem:[#allocation6_spill] sm:$0xff] %v3092_v60  ;;  %3302 = vst [vmem:[#allocation7_spill] sm:$0xff] %v3094_v61 }
 0x13e   : > { %v3096_v62 = vpop.f32.mrf.mxu0  ;;  %v3098_v63 = vpop.f32.mrf.mxu1 }
 0x13f   : > { %3303 = vst [vmem:[#allocation8_spill] sm:$0xff] %v3096_v62  ;;  %3304 = vst [vmem:[#allocation9_spill] sm:$0xff] %v3098_v63 }
 0x140   : > { %v3102_v0 = vpop.f32.mrf.mxu0  ;;  %v3104_v1 = vpop.f32.mrf.mxu1 }
 0x141   : > { %3305 = vst [vmem:[#allocation10_spill] sm:$0xff] %v3102_v0  ;;  %3306 = vst [vmem:[#allocation11_spill] sm:$0xff] %v3104_v1  ;;  %v3119_v1 = vld [vmem:[%s3296_s2] ss:$0 sm:$0xff] }
 0x142   : > { %v3106_v2 = vpop.f32.mrf.mxu0  ;;  %v3108_v3 = vpop.f32.mrf.mxu1 }
 0x143   : > { %3307 = vst [vmem:[#allocation12_spill] sm:$0xff] %v3106_v2  ;;  %3308 = vst [vmem:[#allocation13_spill] sm:$0xff] %v3108_v3 }
 0x144   : > { %v3110_v4 = vpop.f32.mrf.mxu0  ;;  %v3112_v5 = vpop.f32.mrf.mxu1 }
 0x145   : > { %3309 = vst [vmem:[#allocation14_spill] sm:$0xff] %v3110_v4  ;;  %3310 = vst [vmem:[#allocation15_spill] sm:$0xff] %v3112_v5 }
 0x146   : > { %v2445_v61 = vpop.f32.mrf.mxu0  ;;  %v2509_v62 = vpop.f32.mrf.mxu1 }
 0x147   : > { %v1936_v63 = vmax.f32 %v2984_v6, %v2445_v61  ;;  %v1968_v60 = vmax.f32 %v2986_v7, %v2509_v62 }
 0x148   : > { %v1551_v0 = vpop.f32.mrf.mxu0  ;;  %v1807_v2 = vpop.f32.mrf.mxu1 }
 0x149   : > { %v2000_v3 = vmax.f32 %v1936_v63, %v1968_v60  ;;  %v1934_v4 = vmax.f32 %v2988_v8, %v1551_v0  ;;  %v1966_v5 = vmax.f32 %v2990_v9, %v1807_v2 }
 0x14a   : > { %v2446_v59 = vpop.f32.mrf.mxu0  ;;  %v2510_v58 = vpop.f32.mrf.mxu1 }
 0x14b   : > { %v2039_v57 = vadd.f32 %v3119_v1, %v2000_v3  ;;  %v1998_v6 = vmax.f32 %v1934_v4, %v1966_v5  ;;  %v1937_v7 = vmax.f32 %v2992_v10, %v2446_v59  ;;  %v1969_v61 = vmax.f32 %v2994_v11, %v2510_v58 }
 0x14c   : > { %v1554_v60 = vpop.f32.mrf.mxu0  ;;  %v1810_v8 = vpop.f32.mrf.mxu1 }
 0x14d   : > { %v2071_v9 = vmax.f32 %v2039_v57, 0.0  ;;  %v2037_v62 = vadd.f32 %v3119_v1, %v1998_v6  ;;  %v2001_v63 = vmax.f32 %v1937_v7, %v1969_v61  ;;  %v1935_v0 = vmax.f32 %v2996_v12, %v1554_v60 }
 0x14e   : > { %v1967_v10 = vmax.f32 %v2998_v13, %v1810_v8  ;;  %v2449_v59 = vpop.f32.mrf.mxu0  ;;  %v2513_v11 = vpop.f32.mrf.mxu1 }
 0x14f   : > { %2104 = vst.msk [vmem:[%s3129_s14 + $0x10] sm:$0xff] %vm2101_vm3, %v2071_v9  ;;  %v2069_v58 = vmax.f32 %v2037_v62, 0.0  ;;  %v2040_v2 = vadd.f32 %v3119_v1, %v2001_v63  ;;  %v1940_v3 = vmax.f32 %v3000_v14, %v2449_v59  ;;  %v1972_v4 = vmax.f32 %v3002_v15, %v2513_v11 }
 0x150   : > { %v1999_v57 = vmax.f32 %v1935_v0, %v1967_v10  ;;  %v1567_v5 = vpop.f32.mrf.mxu0  ;;  %v1823_v6 = vpop.f32.mrf.mxu1 }
 0x151   : > { %2102 = vst.msk [vmem:[%s3129_s14] sm:$0xff] %vm2101_vm3, %v2069_v58  ;;  %v2072_v12 = vmax.f32 %v2040_v2, 0.0  ;;  %v2004_v7 = vmax.f32 %v1940_v3, %v1972_v4  ;;  %v1938_v13 = vmax.f32 %v3004_v16, %v1567_v5  ;;  %v1970_v61 = vmax.f32 %v3006_v17, %v1823_v6 }
 0x152   : > { %v2038_v60 = vadd.f32 %v3119_v1, %v1999_v57  ;;  %v2450_v8 = vpop.f32.mrf.mxu0  ;;  %v2514_v9 = vpop.f32.mrf.mxu1 }
 0x153   : > { %2105 = vst.msk [vmem:[%s3129_s14 + $0x18] sm:$0xff] %vm2101_vm3, %v2072_v12  ;;  %v2043_v14 = vadd.f32 %v3119_v1, %v2004_v7  ;;  %v2002_v15 = vmax.f32 %v1938_v13, %v1970_v61  ;;  %v1941_v62 = vmax.f32 %v3008_v18, %v2450_v8  ;;  %v1973_v63 = vmax.f32 %v3010_v19, %v2514_v9 }
 0x154   : > { %v2070_v0 = vmax.f32 %v2038_v60, 0.0  ;;  %v1570_v10 = vpop.f32.mrf.mxu0  ;;  %v1826_v16 = vpop.f32.mrf.mxu1 }
 0x155   : > { %v2075_v59 = vmax.f32 %v2043_v14, 0.0  ;;  %v2041_v17 = vadd.f32 %v3119_v1, %v2002_v15  ;;  %v2005_v11 = vmax.f32 %v1941_v62, %v1973_v63  ;;  %v1939_v58 = vmax.f32 %v3012_v20, %v1570_v10 }
 0x156   : > { %2103 = vst.msk [vmem:[%s3129_s14 + $0x8] sm:$0xff] %vm2101_vm3, %v2070_v0  ;;  %v1971_v2 = vmax.f32 %v3014_v21, %v1826_v16  ;;  %v2453_v3 = vpop.f32.mrf.mxu0  ;;  %v2517_v4 = vpop.f32.mrf.mxu1 }
 0x157   : > { %2108 = vst.msk [vmem:[%s3129_s14 + $0x30] sm:$0xff] %vm2101_vm3, %v2075_v59  ;;  %v2073_v18 = vmax.f32 %v2041_v17, 0.0  ;;  %v2044_v19 = vadd.f32 %v3119_v1, %v2005_v11  ;;  %v1944_v57 = vmax.f32 %v3016_v22, %v2453_v3  ;;  %v1976_v5 = vmax.f32 %v3018_v23, %v2517_v4 }
 0x158   : > { %v2003_v6 = vmax.f32 %v1939_v58, %v1971_v2  ;;  %v1583_v12 = vpop.f32.mrf.mxu0  ;;  %v1839_v7 = vpop.f32.mrf.mxu1 }
 0x159   : > { %2106 = vst.msk [vmem:[%s3129_s14 + $0x20] sm:$0xff] %vm2101_vm3, %v2073_v18  ;;  %v2076_v20 = vmax.f32 %v2044_v19, 0.0  ;;  %v2008_v13 = vmax.f32 %v1944_v57, %v1976_v5  ;;  %v1942_v21 = vmax.f32 %v3020_v24, %v1583_v12  ;;  %v1974_v61 = vmax.f32 %v3022_v25, %v1839_v7 }
 0x15a   : > { %v2042_v60 = vadd.f32 %v3119_v1, %v2003_v6  ;;  %v2454_v8 = vpop.f32.mrf.mxu0  ;;  %v2518_v9 = vpop.f32.mrf.mxu1 }
 0x15b   : > { %2109 = vst.msk [vmem:[%s3129_s14 + $0x38] sm:$0xff] %vm2101_vm3, %v2076_v20  ;;  %v2047_v22 = vadd.f32 %v3119_v1, %v2008_v13  ;;  %v2006_v23 = vmax.f32 %v1942_v21, %v1974_v61  ;;  %v1945_v14 = vmax.f32 %v3024_v26, %v2454_v8  ;;  %v1977_v15 = vmax.f32 %v3026_v27, %v2518_v9 }
 0x15c   : > { %v2074_v62 = vmax.f32 %v2042_v60, 0.0  ;;  %v1586_v63 = vpop.f32.mrf.mxu0  ;;  %v1842_v24 = vpop.f32.mrf.mxu1 }
 0x15d   : > { %v2079_v0 = vmax.f32 %v2047_v22, 0.0  ;;  %v2045_v25 = vadd.f32 %v3119_v1, %v2006_v23  ;;  %v2009_v10 = vmax.f32 %v1945_v14, %v1977_v15  ;;  %v1943_v16 = vmax.f32 %v3028_v28, %v1586_v63 }
 0x15e   : > { %2107 = vst.msk [vmem:[%s3129_s14 + $0x28] sm:$0xff] %vm2101_vm3, %v2074_v62  ;;  %v1975_v59 = vmax.f32 %v3030_v29, %v1842_v24  ;;  %v2457_v17 = vpop.f32.mrf.mxu0  ;;  %v2521_v11 = vpop.f32.mrf.mxu1 }
 0x15f   : > { %2112 = vst.msk [vmem:[%s3129_s14 + $0x50] sm:$0xff] %vm2101_vm3, %v2079_v0  ;;  %v2077_v26 = vmax.f32 %v2045_v25, 0.0  ;;  %v2048_v27 = vadd.f32 %v3119_v1, %v2009_v10  ;;  %v1948_v58 = vmax.f32 %v3032_v30, %v2457_v17  ;;  %v1980_v2 = vmax.f32 %v3034_v31, %v2521_v11 }
 0x160   : > { %v2007_v3 = vmax.f32 %v1943_v16, %v1975_v59  ;;  %v1599_v4 = vpop.f32.mrf.mxu0  ;;  %v1855_v18 = vpop.f32.mrf.mxu1 }
 0x161   : > { %2110 = vst.msk [vmem:[%s3129_s14 + $0x40] sm:$0xff] %vm2101_vm3, %v2077_v26  ;;  %v2080_v28 = vmax.f32 %v2048_v27, 0.0  ;;  %v2012_v19 = vmax.f32 %v1948_v58, %v1980_v2  ;;  %v1946_v29 = vmax.f32 %v3036_v32, %v1599_v4  ;;  %v1978_v57 = vmax.f32 %v3038_v33, %v1855_v18 }
 0x162   : > { %v2046_v5 = vadd.f32 %v3119_v1, %v2007_v3  ;;  %v2458_v6 = vpop.f32.mrf.mxu0  ;;  %v2522_v12 = vpop.f32.mrf.mxu1 }
 0x163   : > { %2113 = vst.msk [vmem:[%s3129_s14 + $0x58] sm:$0xff] %vm2101_vm3, %v2080_v28  ;;  %v2051_v30 = vadd.f32 %v3119_v1, %v2012_v19  ;;  %v2010_v31 = vmax.f32 %v1946_v29, %v1978_v57  ;;  %v1949_v7 = vmax.f32 %v3040_v34, %v2458_v6  ;;  %v1981_v20 = vmax.f32 %v3042_v35, %v2522_v12 }
 0x164   : > { %v2078_v13 = vmax.f32 %v2046_v5, 0.0  ;;  %v1602_v21 = vpop.f32.mrf.mxu0  ;;  %v1858_v32 = vpop.f32.mrf.mxu1 }
 0x165   : > { %v2083_v61 = vmax.f32 %v2051_v30, 0.0  ;;  %v2049_v33 = vadd.f32 %v3119_v1, %v2010_v31  ;;  %v2013_v60 = vmax.f32 %v1949_v7, %v1981_v20  ;;  %v1947_v8 = vmax.f32 %v3044_v36, %v1602_v21 }
 0x166   : > { %2111 = vst.msk [vmem:[%s3129_s14 + $0x48] sm:$0xff] %vm2101_vm3, %v2078_v13  ;;  %v1979_v9 = vmax.f32 %v3046_v37, %v1858_v32  ;;  %v2461_v22 = vpop.f32.mrf.mxu0  ;;  %v2525_v23 = vpop.f32.mrf.mxu1 }
 0x167   : > { %2116 = vst.msk [vmem:[%s3129_s14 + $0x70] sm:$0xff] %vm2101_vm3, %v2083_v61  ;;  %v2081_v34 = vmax.f32 %v2049_v33, 0.0  ;;  %v2052_v35 = vadd.f32 %v3119_v1, %v2013_v60  ;;  %v1952_v14 = vmax.f32 %v3048_v38, %v2461_v22  ;;  %v1984_v15 = vmax.f32 %v3050_v39, %v2525_v23 }
 0x168   : > { %v2011_v62 = vmax.f32 %v1947_v8, %v1979_v9  ;;  %v1615_v63 = vpop.f32.mrf.mxu0  ;;  %v1871_v24 = vpop.f32.mrf.mxu1 }
 0x169   : > { %2114 = vst.msk [vmem:[%s3129_s14 + $0x60] sm:$0xff] %vm2101_vm3, %v2081_v34  ;;  %v2084_v36 = vmax.f32 %v2052_v35, 0.0  ;;  %v2016_v0 = vmax.f32 %v1952_v14, %v1984_v15  ;;  %v1950_v37 = vmax.f32 %v3052_v40, %v1615_v63  ;;  %v1982_v25 = vmax.f32 %v3054_v41, %v1871_v24  ;;  %v3311_v24 = vld [vmem:[#allocation3_spill] sm:$0xff] }
 0x16a   : > { %v2050_v10 = vadd.f32 %v3119_v1, %v2011_v62  ;;  %v2462_v16 = vpop.f32.mrf.mxu0  ;;  %v2526_v59 = vpop.f32.mrf.mxu1 }
 0x16b   : > { %2117 = vst.msk [vmem:[%s3129_s14 + $0x78] sm:$0xff] %vm2101_vm3, %v2084_v36  ;;  %v2055_v38 = vadd.f32 %v3119_v1, %v2016_v0  ;;  %v2014_v39 = vmax.f32 %v1950_v37, %v1982_v25  ;;  %v1953_v17 = vmax.f32 %v3056_v42, %v2462_v16  ;;  %v1985_v11 = vmax.f32 %v3058_v43, %v2526_v59  ;;  %v3313_v59 = vld [vmem:[#allocation5_spill] sm:$0xff] }
 0x16c   : > { %v2082_v26 = vmax.f32 %v2050_v10, 0.0  ;;  %v1618_v27 = vpop.f32.mrf.mxu0  ;;  %v1874_v40 = vpop.f32.mrf.mxu1  ;;  %v3312_v10 = vld [vmem:[#allocation4_spill] sm:$0xff] }
 0x16d   : > { %v2087_v58 = vmax.f32 %v2055_v38, 0.0  ;;  %v2053_v41 = vadd.f32 %v3119_v1, %v2014_v39  ;;  %v2017_v2 = vmax.f32 %v1953_v17, %v1985_v11  ;;  %v1951_v3 = vmax.f32 %v3060_v44, %v1618_v27 }
 0x16e   : > { %2115 = vst.msk [vmem:[%s3129_s14 + $0x68] sm:$0xff] %vm2101_vm3, %v2082_v26  ;;  %v1983_v4 = vmax.f32 %v3062_v45, %v1874_v40  ;;  %v2465_v18 = vpop.f32.mrf.mxu0  ;;  %v2529_v28 = vpop.f32.mrf.mxu1  ;;  %v3314_v40 = vld [vmem:[#allocation6_spill] sm:$0xff] }
 0x16f   : > { %2120 = vst.msk [vmem:[%s3129_s14 + $0x90] sm:$0xff] %vm2101_vm3, %v2087_v58  ;;  %v2085_v42 = vmax.f32 %v2053_v41, 0.0  ;;  %v2056_v43 = vadd.f32 %v3119_v1, %v2017_v2  ;;  %v1956_v19 = vmax.f32 %v3064_v46, %v2465_v18  ;;  %v1988_v29 = vmax.f32 %v3066_v47, %v2529_v28  ;;  %v3315_v41 = vld [vmem:[#allocation7_spill] sm:$0xff] }
 0x170   : > { %v2015_v57 = vmax.f32 %v1951_v3, %v1983_v4  ;;  %v1631_v5 = vpop.f32.mrf.mxu0  ;;  %v1887_v6 = vpop.f32.mrf.mxu1 }
 0x171   : > { %2118 = vst.msk [vmem:[%s3129_s14 + $0x80] sm:$0xff] %vm2101_vm3, %v2085_v42  ;;  %v2088_v44 = vmax.f32 %v2056_v43, 0.0  ;;  %v2020_v12 = vmax.f32 %v1956_v19, %v1988_v29  ;;  %v1954_v45 = vmax.f32 %v3068_v48, %v1631_v5  ;;  %v1986_v30 = vmax.f32 %v3070_v49, %v1887_v6  ;;  %v3316_v42 = vld [vmem:[#allocation8_spill] sm:$0xff]  ;;  %v3317_v19 = vld [vmem:[#allocation9_spill] sm:$0xff] }
 0x172   : > { %v2054_v31 = vadd.f32 %v3119_v1, %v2015_v57  ;;  %v2466_v7 = vpop.f32.mrf.mxu0  ;;  %v2530_v20 = vpop.f32.mrf.mxu1 }
 0x173   : > { %2121 = vst.msk [vmem:[%s3129_s14 + $0x98] sm:$0xff] %vm2101_vm3, %v2088_v44  ;;  %v2059_v46 = vadd.f32 %v3119_v1, %v2020_v12  ;;  %v2018_v47 = vmax.f32 %v1954_v45, %v1986_v30  ;;  %v1957_v13 = vmax.f32 %v3072_v50, %v2466_v7  ;;  %v1989_v21 = vmax.f32 %v3074_v51, %v2530_v20  ;;  %v3318_v45 = vld [vmem:[#allocation10_spill] sm:$0xff] }
 0x174   : > { %v2086_v32 = vmax.f32 %v2054_v31, 0.0  ;;  %v1634_v61 = vpop.f32.mrf.mxu0  ;;  %v1890_v48 = vpop.f32.mrf.mxu1  ;;  %v3319_v31 = vld [vmem:[#allocation11_spill] sm:$0xff] }
 0x175   : > { %v2091_v33 = vmax.f32 %v2059_v46, 0.0  ;;  %v2057_v49 = vadd.f32 %v3119_v1, %v2018_v47  ;;  %v2021_v60 = vmax.f32 %v1957_v13, %v1989_v21  ;;  %v1955_v8 = vmax.f32 %v3076_v52, %v1634_v61 }
 0x176   : > { %2119 = vst.msk [vmem:[%s3129_s14 + $0x88] sm:$0xff] %vm2101_vm3, %v2086_v32  ;;  %v1987_v9 = vmax.f32 %v3078_v53, %v1890_v48  ;;  %v2469_v22 = vpop.f32.mrf.mxu0  ;;  %v2533_v23 = vpop.f32.mrf.mxu1  ;;  %v3320_v32 = vld [vmem:[#allocation12_spill] sm:$0xff]  ;;  %v3321_v48 = vld [vmem:[#allocation13_spill] sm:$0xff] }
 0x177   : > { %2124 = vst.msk [vmem:[%s3129_s14 + $0xb0] sm:$0xff] %vm2101_vm3, %v2091_v33  ;;  %v2089_v50 = vmax.f32 %v2057_v49, 0.0  ;;  %v2060_v51 = vadd.f32 %v3119_v1, %v2021_v60  ;;  %v1960_v34 = vmax.f32 %v3080_v54, %v2469_v22  ;;  %v1992_v35 = vmax.f32 %v3082_v55, %v2533_v23 }
 0x178   : > { %v2019_v14 = vmax.f32 %v1955_v8, %v1987_v9  ;;  %v1647_v15 = vpop.f32.mrf.mxu0  ;;  %v1903_v62 = vpop.f32.mrf.mxu1 }
 0x179   : > { %2122 = vst.msk [vmem:[%s3129_s14 + $0xa0] sm:$0xff] %vm2101_vm3, %v2089_v50  ;;  %v2092_v52 = vmax.f32 %v2060_v51, 0.0  ;;  %v2024_v63 = vmax.f32 %v1960_v34, %v1992_v35  ;;  %v1958_v53 = vmax.f32 %v3084_v56, %v1647_v15  ;;  %v1990_v36 = vmax.f32 %v3311_v24, %v1903_v62  ;;  %v3322_v50 = vld [vmem:[#allocation14_spill] sm:$0xff]  ;;  %v3323_v34 = vld [vmem:[#allocation15_spill] sm:$0xff] }
 0x17a   : > { %v2058_v0 = vadd.f32 %v3119_v1, %v2019_v14  ;;  %v2470_v37 = vpop.f32.mrf.mxu0  ;;  %v2534_v25 = vpop.f32.mrf.mxu1 }
 0x17b   : > { %2125 = vst.msk [vmem:[%s3129_s14 + $0xb8] sm:$0xff] %vm2101_vm3, %v2092_v52  ;;  %v2063_v54 = vadd.f32 %v3119_v1, %v2024_v63  ;;  %v2022_v55 = vmax.f32 %v1958_v53, %v1990_v36  ;;  %v1961_v16 = vmax.f32 %v3312_v10, %v2470_v37  ;;  %v1993_v38 = vmax.f32 %v3313_v59, %v2534_v25 }
 0x17c   : > { %v2090_v39 = vmax.f32 %v2058_v0, 0.0  ;;  %v1650_v17 = vpop.f32.mrf.mxu0  ;;  %v1906_v56 = vpop.f32.mrf.mxu1 }
 0x17d   : > { %v2095_v11 = vmax.f32 %v2063_v54, 0.0  ;;  %v2061_v26 = vadd.f32 %v3119_v1, %v2022_v55  ;;  %v2025_v27 = vmax.f32 %v1961_v16, %v1993_v38  ;;  %v1959_v58 = vmax.f32 %v3314_v40, %v1650_v17 }
 0x17e   : > { %2123 = vst.msk [vmem:[%s3129_s14 + $0xa8] sm:$0xff] %vm2101_vm3, %v2090_v39  ;;  %v1991_v2 = vmax.f32 %v3315_v41, %v1906_v56  ;;  %v2473_v3 = vpop.f32.mrf.mxu0  ;;  %v2537_v4 = vpop.f32.mrf.mxu1 }
 0x17f   : > { %2128 = vst.msk [vmem:[%s3129_s14 + $0xd0] sm:$0xff] %vm2101_vm3, %v2095_v11  ;;  %v2093_v18 = vmax.f32 %v2061_v26, 0.0  ;;  %v2064_v28 = vadd.f32 %v3119_v1, %v2025_v27  ;;  %v1964_v43 = vmax.f32 %v3316_v42, %v2473_v3  ;;  %v1996_v29 = vmax.f32 %v3317_v19, %v2537_v4 }
 0x180   : > { %v2023_v57 = vmax.f32 %v1959_v58, %v1991_v2  ;;  %v1663_v5 = vpop.f32.mrf.mxu0  ;;  %v1919_v6 = vpop.f32.mrf.mxu1 }
 0x181   : > { %2126 = vst.msk [vmem:[%s3129_s14 + $0xc0] sm:$0xff] %vm2101_vm3, %v2093_v18  ;;  %v2096_v44 = vmax.f32 %v2064_v28, 0.0  ;;  %v2028_v12 = vmax.f32 %v1964_v43, %v1996_v29  ;;  %v1962_v30 = vmax.f32 %v3318_v45, %v1663_v5  ;;  %v1994_v7 = vmax.f32 %v3319_v31, %v1919_v6 }
 0x182   : > { %v2062_v20 = vadd.f32 %v3119_v1, %v2023_v57  ;;  %v2474_v46 = vpop.f32.mrf.mxu0  ;;  %v2538_v47 = vpop.f32.mrf.mxu1 }
 0x183   : > { %2129 = vst.msk [vmem:[%s3129_s14 + $0xd8] sm:$0xff] %vm2101_vm3, %v2096_v44  ;;  %v2067_v13 = vadd.f32 %v3119_v1, %v2028_v12  ;;  %v2026_v21 = vmax.f32 %v1962_v30, %v1994_v7  ;;  %v1965_v61 = vmax.f32 %v3320_v32, %v2474_v46  ;;  %v1997_v33 = vmax.f32 %v3321_v48, %v2538_v47 }
 0x184   : > { %v2094_v49 = vmax.f32 %v2062_v20, 0.0  ;;  %v1666_v60 = vpop.f32.mrf.mxu0  ;;  %v1922_v8 = vpop.f32.mrf.mxu1 }
 0x185   : > { %v2099_v9 = vmax.f32 %v2067_v13, 0.0  ;;  %v2065_v22 = vadd.f32 %v3119_v1, %v2026_v21  ;;  %v2029_v23 = vmax.f32 %v1965_v61, %v1997_v33  ;;  %v1963_v51 = vmax.f32 %v3322_v50, %v1666_v60 }
 0x186   : > { %2127 = vst.msk [vmem:[%s3129_s14 + $0xc8] sm:$0xff] %vm2101_vm3, %v2094_v49  ;;  %v1995_v35 = vmax.f32 %v3323_v34, %v1922_v8 }
 0x187   : > { %2132 = vst.msk [vmem:[%s3129_s14 + $0xf0] sm:$0xff] %vm2101_vm3, %v2099_v9  ;;  %v2097_v14 = vmax.f32 %v2065_v22, 0.0  ;;  %v2068_v15 = vadd.f32 %v3119_v1, %v2029_v23 }
 0x188   : > { %v2027_v62 = vmax.f32 %v1963_v51, %v1995_v35 }
 0x189   : > { %2130 = vst.msk [vmem:[%s3129_s14 + $0xe0] sm:$0xff] %vm2101_vm3, %v2097_v14  ;;  %v2100_v52 = vmax.f32 %v2068_v15, 0.0 }
 0x18a   : > { %v2066_v63 = vadd.f32 %v3119_v1, %v2027_v62 }
 0x18b   : > { %2133 = vst.msk [vmem:[%s3129_s14 + $0xf8] sm:$0xff] %vm2101_vm3, %v2100_v52 }
 0x18c   : > { %v2098_v53 = vmax.f32 %v2066_v63, 0.0 }
 0x18e   : > { %2131 = vst.msk [vmem:[%s3129_s14 + $0xe8] sm:$0xff] %vm2101_vm3, %v2098_v53 }
 0x18f PF: > { %p10_p9 = scmp.ge.s32.totalorder %s2696_s16, 4   ;;  %s3324_s12 = smov %s2652_s13 }
 0x190   : > { %s3325_s13 = smov %s2705_s19  ;;  %s3326_s14 = smov %s2696_s16 }
 0x191   :  { %12 = sbr.rel (!%p10_p9) target bundleno = 2 (0x2), region = 108 }

// kernel: global_model_forward.4
= control target key start
LH: loop header
LB: loop body
LE: loop exit
PB: predicated region body
PF: predicated region fallthrough
CT: control target
= control target key end

     0   :  { %v7228_v0 = vmov 0   ;;  %vm3167_vm0 = vcmask 261120   ;;  %vm5707_vm1 = vcmask 523264   ;;  %s10558_s1 = inlined_call_operand.vmem [shape: bf16[800,64], index: 1, kind: input, shape index: {}]   ;;  %s10559_s0 = inlined_call_operand.vmem [shape: bf16[4,256,800], index: 0, kind: input, shape index: {}]   ;;  %s10560_s2 = inlined_call_operand.vmem [shape: f32[1,64], index: 2, kind: input, shape index: {}]   ;;  %s10561_s3 = inlined_call_operand.vmem [shape: f32[256,64], index: 3, kind: output, shape index: {}]  }
   0x1   :  { %3360 = vmatprep.subr.bf16.mxu0 %v7228_v0  ;;  %6505 = vmatprep.subr.bf16.mxu1 %v7228_v0  ;;  %v6538_v1 = vld [vmem:[%s10558_s1 + $0x38] sm:$0xff]   ;;  %v6539_v2 = vld [vmem:[%s10558_s1 + $0x30] sm:$0xff]   ;;  %v6540_v3 = vld [vmem:[%s10558_s1 + $0x28] sm:$0xff]  }
   0x2   :  { %3361 = vmatpush1.bf16.msra.mxu0 %v6538_v1  ;;  %6521 = vmatpush1.bf16.msra.mxu1 %v6538_v1  ;;  %v6541_v4 = vld [vmem:[%s10558_s1 + $0x20] sm:$0xff]   ;;  %v6542_v5 = vld [vmem:[%s10558_s1 + $0x18] sm:$0xff]   ;;  %v6543_v7 = vld [vmem:[%s10558_s1 + $0x10] sm:$0xff]  }
   0x3   :  { %3362 = vmatprep.subr.bf16.mxu0 %v7228_v0  ;;  %6506 = vmatprep.subr.bf16.mxu1 %v7228_v0  ;;  %v6556_v6 = vld [vmem:[%s10559_s0 + $0x4] ss:$28 sps:$4 sm:$0xff]   ;;  %v6544_v9 = vld [vmem:[%s10558_s1 + $0x8] sm:$0xff]   ;;  %v6546_v11 = vld [vmem:[%s10558_s1 + $0x78] sm:$0xff]  }
   0x4   :  { %v6559_v8 = vld [vmem:[%s10559_s0 + $0xa84] ss:$28 sps:$4 sm:$0xff]   ;;  %3392 = vmatprep.mubr.bf16.mxu0 %v6556_v6  ;;  %v6547_v12 = vld [vmem:[%s10558_s1 + $0x70] sm:$0xff]   ;;  %v6548_v13 = vld [vmem:[%s10558_s1 + $0x68] sm:$0xff]  }
   0x5   :  { %3776 = vmatprep.mubr.bf16.mxu1 %v6559_v8  ;;  %v6545_v10 = vld [vmem:[%s10558_s1] sm:$0xff]   ;;  %v6550_v15 = vld [vmem:[%s10558_s1 + $0x58] sm:$0xff]   ;;  %v6551_v16 = vld [vmem:[%s10558_s1 + $0x50] sm:$0xff]  }
   0x6   :  { %3363 = vmatpush1.bf16.msra.mxu0 %v6539_v2  ;;  %6522 = vmatpush1.bf16.msra.mxu1 %v6539_v2  ;;  %v6549_v14 = vld [vmem:[%s10558_s1 + $0x60] sm:$0xff]   ;;  %v6552_v17 = vld [vmem:[%s10558_s1 + $0x48] sm:$0xff]   ;;  %v6560_v21 = vld [vmem:[%s10558_s1 + $0xb8] sm:$0xff]  }
   0x7   :  { %3364 = vmatprep.subr.bf16.mxu0 %v7228_v0  ;;  %6507 = vmatprep.subr.bf16.mxu1 %v7228_v0  ;;  %v6553_v18 = vld [vmem:[%s10558_s1 + $0x40] sm:$0xff]   ;;  %v6561_v22 = vld [vmem:[%s10558_s1 + $0x138] sm:$0xff]   ;;  %v6568_v25 = vld [vmem:[%s10558_s1 + $0xb0] sm:$0xff]  }
   0x8   :  { %v6554_v19 = vld [vmem:[%s10559_s0] ss:$28 sps:$4 sm:$0xff]   ;;  %v6583_v26 = vld [vmem:[%s10558_s1 + $0x130] sm:$0xff]   ;;  %v6575_v31 = vld [vmem:[%s10558_s1 + $0xa8] sm:$0xff]  }
   0x9   :  { %v6557_v20 = vld [vmem:[%s10559_s0 + $0xa80] ss:$28 sps:$4 sm:$0xff]   ;;  %v6566_v27 = vld [vmem:[%s10559_s0 + $0x38] ss:$28 sps:$4 sm:$0xff]   ;;  %v6605_v32 = vld [vmem:[%s10558_s1 + $0x128] sm:$0xff]  }
   0xa   :  { %3365 = vmatpush1.bf16.msra.mxu0 %v6540_v3  ;;  %6523 = vmatpush1.bf16.msra.mxu1 %v6540_v3  ;;  %v6562_v23 = vld [vmem:[%s10559_s0 + $0x3c] ss:$28 sps:$4 sm:$0xff]   ;;  %v6569_v29 = vld [vmem:[%s10559_s0 + $0x74] ss:$28 sps:$4 sm:$0xff]   ;;  %v6582_v33 = vld [vmem:[%s10558_s1 + $0xa0] sm:$0xff]  }
   0xb   :  { %3366 = vmatprep.subr.bf16.mxu0 %v7228_v0  ;;  %6508 = vmatprep.subr.bf16.mxu1 %v7228_v0  ;;  %v6564_v24 = vld [vmem:[%s10559_s0 + $0xabc] ss:$28 sps:$4 sm:$0xff]   ;;  %v6571_v30 = vld [vmem:[%s10559_s0 + $0xaf4] ss:$28 sps:$4 sm:$0xff]   ;;  %v6627_v35 = vld [vmem:[%s10558_s1 + $0x120] sm:$0xff]  }
   0xc   :  { %v6567_v28 = vld [vmem:[%s10559_s0 + $0xab8] ss:$28 sps:$4 sm:$0xff]   ;;  %v6573_v34 = vld [vmem:[%s10559_s0 + $0x70] ss:$28 sps:$4 sm:$0xff]   ;;  %v6580_v43 = vld [vmem:[%s10559_s0 + $0xa8] ss:$28 sps:$4 sm:$0xff]  }
   0xd   :  { %v6574_v36 = vld [vmem:[%s10559_s0 + $0xaf0] ss:$28 sps:$4 sm:$0xff]   ;;  %v6590_v39 = vld [vmem:[%s10558_s1 + $0x98] sm:$0xff]   ;;  %v6581_v44 = vld [vmem:[%s10559_s0 + $0xb28] ss:$28 sps:$4 sm:$0xff]  }
   0xe   :  { %3367 = vmatpush1.bf16.msra.mxu0 %v6541_v4  ;;  %6524 = vmatpush1.bf16.msra.mxu1 %v6541_v4  ;;  %v6576_v37 = vld [vmem:[%s10559_s0 + $0xac] ss:$28 sps:$4 sm:$0xff]   ;;  %v6649_v40 = vld [vmem:[%s10558_s1 + $0x118] sm:$0xff]   ;;  %v6597_v41 = vld [vmem:[%s10558_s1 + $0x90] sm:$0xff]  }
   0xf   :  { %3368 = vmatprep.subr.bf16.mxu0 %v7228_v0  ;;  %6509 = vmatprep.subr.bf16.mxu1 %v7228_v0  ;;  %v6578_v38 = vld [vmem:[%s10559_s0 + $0xb2c] ss:$28 sps:$4 sm:$0xff]   ;;  %v6671_v42 = vld [vmem:[%s10558_s1 + $0x110] sm:$0xff]   ;;  %v6584_v45 = vld [vmem:[%s10559_s0 + $0xe4] ss:$28 sps:$4 sm:$0xff]  }
  0x10   :  { %v6586_v46 = vld [vmem:[%s10559_s0 + $0xb64] ss:$28 sps:$4 sm:$0xff]   ;;  %v6604_v47 = vld [vmem:[%s10558_s1 + $0x88] sm:$0xff]   ;;  %v6591_v52 = vld [vmem:[%s10559_s0 + $0x11c] ss:$28 sps:$4 sm:$0xff]  }
  0x11   :  { %v6691_v48 = vld [vmem:[%s10558_s1 + $0x108] sm:$0xff]   ;;  %v6612_v49 = vld [vmem:[%s10558_s1 + $0x80] sm:$0xff]   ;;  %v6593_v53 = vld [vmem:[%s10559_s0 + $0xb9c] ss:$28 sps:$4 sm:$0xff]  }
  0x12   :  { %3369 = vmatpush1.bf16.msra.mxu0 %v6542_v5  ;;  %6525 = vmatpush1.bf16.msra.mxu1 %v6542_v5  ;;  %v6588_v50 = vld [vmem:[%s10559_s0 + $0xe0] ss:$28 sps:$4 sm:$0xff]   ;;  %v6626_v55 = vld [vmem:[%s10558_s1 + $0xf0] sm:$0xff]   ;;  %v6634_v60 = vld [vmem:[%s10558_s1 + $0xe8] sm:$0xff]  }
  0x13   :  { %3370 = vmatprep.subr.bf16.mxu0 %v7228_v0  ;;  %6510 = vmatprep.subr.bf16.mxu1 %v7228_v0  ;;  %v6589_v51 = vld [vmem:[%s10559_s0 + $0xb60] ss:$28 sps:$4 sm:$0xff]   ;;  %v6595_v56 = vld [vmem:[%s10559_s0 + $0x118] ss:$28 sps:$4 sm:$0xff]   ;;  %v6602_v63 = vld [vmem:[%s10559_s0 + $0x150] ss:$28 sps:$4 sm:$0xff]  }
  0x14   :  { %v6619_v54 = vld [vmem:[%s10558_s1 + $0xf8] sm:$0xff]   ;;  %v6598_v58 = vld [vmem:[%s10559_s0 + $0x154] ss:$28 sps:$4 sm:$0xff]   ;;  %v6710_v61 = vld [vmem:[%s10558_s1 + $0x100] sm:$0xff]  }
  0x15   :  { %v6596_v57 = vld [vmem:[%s10559_s0 + $0xb98] ss:$28 sps:$4 sm:$0xff]   ;;  %v6641_v62 = vld [vmem:[%s10558_s1 + $0xe0] sm:$0xff]   ;;  %v6603_v1 = vld [vmem:[%s10559_s0 + $0xbd0] ss:$28 sps:$4 sm:$0xff]  }
  0x16   :  { %3371 = vmatpush1.bf16.msra.mxu0 %v6543_v7  ;;  %6526 = vmatpush1.bf16.msra.mxu1 %v6543_v7  ;;  %v6600_v59 = vld [vmem:[%s10559_s0 + $0xbd4] ss:$28 sps:$4 sm:$0xff]   ;;  %v6606_v2 = vld [vmem:[%s10559_s0 + $0x18c] ss:$28 sps:$4 sm:$0xff]   ;;  %v6648_v4 = vld [vmem:[%s10558_s1 + $0xd8] sm:$0xff]  }
  0x17   :  { %3372 = vmatprep.subr.bf16.mxu0 %v7228_v0  ;;  %6511 = vmatprep.subr.bf16.mxu1 %v7228_v0  ;;  %v6608_v3 = vld [vmem:[%s10559_s0 + $0xc0c] ss:$28 sps:$4 sm:$0xff]   ;;  %v6656_v5 = vld [vmem:[%s10558_s1 + $0xd0] sm:$0xff]   ;;  %v6613_v8 = vld [vmem:[%s10559_s0 + $0x1c4] ss:$28 sps:$4 sm:$0xff]  }
  0x18   :  { %v6610_v6 = vld [vmem:[%s10559_s0 + $0x188] ss:$28 sps:$4 sm:$0xff]  }
  0x19   :  { %v6611_v7 = vld [vmem:[%s10559_s0 + $0xc08] ss:$28 sps:$4 sm:$0xff]  }
  0x1a   :  { %3373 = vmatpush1.bf16.msra.mxu0 %v6544_v9  ;;  %6527 = vmatpush1.bf16.msra.mxu1 %v6544_v9  ;;  %v6615_v9 = vld [vmem:[%s10559_s0 + $0xc44] ss:$28 sps:$4 sm:$0xff]  }
  0x1b   :  { %3374 = vmatprep.subr.bf16.mxu0 %v7228_v0  ;;  %6512 = vmatprep.subr.bf16.mxu1 %v7228_v0 }
  0x1e   :  { %3375 = vmatpush1.bf16.msra.mxu0 %v6545_v10  ;;  %6528 = vmatpush1.bf16.msra.mxu1 %v6545_v10  ;;  %v6663_v10 = vld [vmem:[%s10558_s1 + $0xc8] sm:$0xff]  }
  0x1f   :  { %3376 = vmatprep.subr.bf16.mxu0 %v7228_v0  ;;  %6513 = vmatprep.subr.bf16.mxu1 %v7228_v0 }
  0x22   :  { %3377 = vmatpush2.bf16.msra.mxu0 %v6546_v11  ;;  %6529 = vmatpush2.bf16.msra.mxu1 %v6546_v11  ;;  %v6670_v11 = vld [vmem:[%s10558_s1 + $0xc0] sm:$0xff]  }
  0x23   :  { %3378 = vmatprep.subr.bf16.mxu0 %v7228_v0  ;;  %6514 = vmatprep.subr.bf16.mxu1 %v7228_v0 }
  0x26   :  { %3379 = vmatpush2.bf16.msra.mxu0 %v6547_v12  ;;  %6530 = vmatpush2.bf16.msra.mxu1 %v6547_v12  ;;  %v7530_v12 = vld [vmem:[%s10558_s1 + $0x188] sm:$0xff]  }
  0x27   :  { %3380 = vmatprep.subr.bf16.mxu0 %v7228_v0  ;;  %6515 = vmatprep.subr.bf16.mxu1 %v7228_v0 }
  0x2a   :  { %3381 = vmatpush2.bf16.msra.mxu0 %v6548_v13  ;;  %6531 = vmatpush2.bf16.msra.mxu1 %v6548_v13  ;;  %v6617_v13 = vld [vmem:[%s10559_s0 + $0x1c0] ss:$28 sps:$4 sm:$0xff]  }
  0x2b   :  { %3382 = vmatprep.subr.bf16.mxu0 %v7228_v0  ;;  %6516 = vmatprep.subr.bf16.mxu1 %v7228_v0 }
  0x2e   :  { %3383 = vmatpush2.bf16.msra.mxu0 %v6549_v14  ;;  %6532 = vmatpush2.bf16.msra.mxu1 %v6549_v14  ;;  %v6618_v14 = vld [vmem:[%s10559_s0 + $0xc40] ss:$28 sps:$4 sm:$0xff]  }
  0x2f   :  { %3384 = vmatprep.subr.bf16.mxu0 %v7228_v0  ;;  %6517 = vmatprep.subr.bf16.mxu1 %v7228_v0 }
  0x32   :  { %3385 = vmatpush2.bf16.msra.mxu0 %v6550_v15  ;;  %6533 = vmatpush2.bf16.msra.mxu1 %v6550_v15  ;;  %v6620_v15 = vld [vmem:[%s10559_s0 + $0x1fc] ss:$28 sps:$4 sm:$0xff]  }
  0x33   :  { %3386 = vmatprep.subr.bf16.mxu0 %v7228_v0  ;;  %6518 = vmatprep.subr.bf16.mxu1 %v7228_v0 }
  0x36   :  { %3387 = vmatpush2.bf16.msra.mxu0 %v6551_v16  ;;  %6534 = vmatpush2.bf16.msra.mxu1 %v6551_v16  ;;  %v6622_v16 = vld [vmem:[%s10559_s0 + $0xc7c] ss:$28 sps:$4 sm:$0xff]  }
  0x37   :  { %3388 = vmatprep.subr.bf16.mxu0 %v7228_v0  ;;  %6519 = vmatprep.subr.bf16.mxu1 %v7228_v0 }
  0x3a   :  { %3389 = vmatpush2.bf16.msra.mxu0 %v6552_v17  ;;  %6535 = vmatpush2.bf16.msra.mxu1 %v6552_v17  ;;  %v6729_v17 = vld [vmem:[%s10558_s1 + $0x178] sm:$0xff]  }
  0x3b   :  { %3390 = vmatprep.subr.bf16.mxu0 %v7228_v0  ;;  %6520 = vmatprep.subr.bf16.mxu1 %v7228_v0 }
  0x3e   :  { %3391 = vmatpush2.bf16.msra.mxu0 %v6553_v18  ;;  %6536 = vmatpush2.bf16.msra.mxu1 %v6553_v18  ;;  %v6624_v18 = vld [vmem:[%s10559_s0 + $0x1f8] ss:$28 sps:$4 sm:$0xff]  }
  0x3f   :  { %3905 = vmatprep.subr.bf16.mxu1 %v7228_v0  ;;  %4450 = vmatprep.subr.bf16.mxu0 %v7228_v0 }
  0x41   :  { %3393 = vmatmul.mubr.bf16.vlgmr.msra.gmra.mxu0 %v6554_v19  ;;  %3777 = vmatmul.mubr.bf16.vlgmr.msra.gmra.mxu1 %v6557_v20  ;;  %v6625_v19 = vld [vmem:[%s10559_s0 + $0xc78] ss:$28 sps:$4 sm:$0xff]  }
  0x42   :  { %3906 = vmatpush1.bf16.msra.mxu1 %v6560_v21  ;;  %4451 = vmatpush1.bf16.msra.mxu0 %v6561_v22  ;;  %v6628_v20 = vld [vmem:[%s10559_s0 + $0x234] ss:$28 sps:$4 sm:$0xff]  }
  0x43   :  { %3400 = vmatprep.mubr.bf16.mxu0 %v6562_v23  ;;  %3784 = vmatprep.mubr.bf16.mxu1 %v6564_v24  ;;  %v6630_v21 = vld [vmem:[%s10559_s0 + $0xcb4] ss:$28 sps:$4 sm:$0xff]   ;;  %v6635_v24 = vld [vmem:[%s10559_s0 + $0x26c] ss:$28 sps:$4 sm:$0xff]  }
  0x44   :  { %3907 = vmatprep.subr.bf16.mxu1 %v7228_v0  ;;  %4452 = vmatprep.subr.bf16.mxu0 %v7228_v0  ;;  %v6632_v22 = vld [vmem:[%s10559_s0 + $0x230] ss:$28 sps:$4 sm:$0xff]  }
  0x45   :  { %v6633_v23 = vld [vmem:[%s10559_s0 + $0xcb0] ss:$28 sps:$4 sm:$0xff]  }
  0x46   :  { %3908 = vmatpush1.bf16.msra.mxu1 %v6568_v25  ;;  %4453 = vmatpush1.bf16.msra.mxu0 %v6583_v26  ;;  %v6637_v25 = vld [vmem:[%s10559_s0 + $0xcec] ss:$28 sps:$4 sm:$0xff]  }
  0x47   :  { %3909 = vmatprep.subr.bf16.mxu1 %v7228_v0  ;;  %4454 = vmatprep.subr.bf16.mxu0 %v7228_v0  ;;  %v6639_v26 = vld [vmem:[%s10559_s0 + $0x268] ss:$28 sps:$4 sm:$0xff]  }
  0x49   :  { %3401 = vmatmul.mubr.bf16.gmra.mxu0 %v6566_v27  ;;  %3785 = vmatmul.mubr.bf16.gmra.mxu1 %v6567_v28  ;;  %v6640_v27 = vld [vmem:[%s10559_s0 + $0xce8] ss:$28 sps:$4 sm:$0xff]  }
  0x4a   :  { %3408 = vmatprep.mubr.bf16.mxu0 %v6569_v29  ;;  %3792 = vmatprep.mubr.bf16.mxu1 %v6571_v30  ;;  %v6642_v28 = vld [vmem:[%s10559_s0 + $0x2a4] ss:$28 sps:$4 sm:$0xff]   ;;  %v6748_v30 = vld [vmem:[%s10558_s1 + $0x170] sm:$0xff]  }
  0x4b   :  { %3910 = vmatpush1.bf16.msra.mxu1 %v6575_v31  ;;  %4455 = vmatpush1.bf16.msra.mxu0 %v6605_v32  ;;  %v6644_v29 = vld [vmem:[%s10559_s0 + $0xd24] ss:$28 sps:$4 sm:$0xff]  }
  0x4c   :  { %3911 = vmatprep.subr.bf16.mxu1 %v7228_v0  ;;  %4456 = vmatprep.subr.bf16.mxu0 %v7228_v0  ;;  %v6646_v31 = vld [vmem:[%s10559_s0 + $0x2a0] ss:$28 sps:$4 sm:$0xff]  }
  0x4d   :  { %v6647_v32 = vld [vmem:[%s10559_s0 + $0xd20] ss:$28 sps:$4 sm:$0xff]  }
  0x4f   :  { %3912 = vmatpush1.bf16.msra.mxu1 %v6582_v33  ;;  %4457 = vmatpush1.bf16.msra.mxu0 %v6627_v35  ;;  %v6650_v33 = vld [vmem:[%s10559_s0 + $0x2dc] ss:$28 sps:$4 sm:$0xff]  }
  0x50   :  { %3913 = vmatprep.subr.bf16.mxu1 %v7228_v0  ;;  %4458 = vmatprep.subr.bf16.mxu0 %v7228_v0  ;;  %v6654_v35 = vld [vmem:[%s10559_s0 + $0x2d8] ss:$28 sps:$4 sm:$0xff]  }
  0x51   :  { %3409 = vmatmul.mubr.bf16.gmra.mxu0 %v6573_v34  ;;  %3793 = vmatmul.mubr.bf16.gmra.mxu1 %v6574_v36  ;;  %v6652_v34 = vld [vmem:[%s10559_s0 + $0xd5c] ss:$28 sps:$4 sm:$0xff]  }
  0x52   :  { %3416 = vmatprep.mubr.bf16.mxu0 %v6576_v37  ;;  %3800 = vmatprep.mubr.bf16.mxu1 %v6578_v38  ;;  %v6655_v36 = vld [vmem:[%s10559_s0 + $0xd58] ss:$28 sps:$4 sm:$0xff]  }
  0x53   :  { %3914 = vmatpush1.bf16.msra.mxu1 %v6590_v39  ;;  %4459 = vmatpush1.bf16.msra.mxu0 %v6649_v40  ;;  %v6657_v37 = vld [vmem:[%s10559_s0 + $0x314] ss:$28 sps:$4 sm:$0xff]  }
  0x54   :  { %3915 = vmatprep.subr.bf16.mxu1 %v7228_v0  ;;  %4460 = vmatprep.subr.bf16.mxu0 %v7228_v0  ;;  %v6659_v38 = vld [vmem:[%s10559_s0 + $0xd94] ss:$28 sps:$4 sm:$0xff]  }
  0x55   :  { %v6661_v39 = vld [vmem:[%s10559_s0 + $0x310] ss:$28 sps:$4 sm:$0xff]  }
  0x56   :  { %v6662_v40 = vld [vmem:[%s10559_s0 + $0xd90] ss:$28 sps:$4 sm:$0xff]  }
  0x57   :  { %3916 = vmatpush1.bf16.msra.mxu1 %v6597_v41  ;;  %4461 = vmatpush1.bf16.msra.mxu0 %v6671_v42  ;;  %v6664_v41 = vld [vmem:[%s10559_s0 + $0x34c] ss:$28 sps:$4 sm:$0xff]  }
  0x58   :  { %3917 = vmatprep.subr.bf16.mxu1 %v7228_v0  ;;  %4462 = vmatprep.subr.bf16.mxu0 %v7228_v0  ;;  %v6666_v42 = vld [vmem:[%s10559_s0 + $0xdcc] ss:$28 sps:$4 sm:$0xff]  }
  0x59   :  { %3417 = vmatmul.mubr.bf16.gmra.mxu0 %v6580_v43  ;;  %3801 = vmatmul.mubr.bf16.gmra.mxu1 %v6581_v44  ;;  %v6767_v43 = vld [vmem:[%s10558_s1 + $0x168] sm:$0xff]  }
  0x5a   :  { %3424 = vmatprep.mubr.bf16.mxu0 %v6584_v45  ;;  %3808 = vmatprep.mubr.bf16.mxu1 %v6586_v46  ;;  %v6668_v44 = vld [vmem:[%s10559_s0 + $0x348] ss:$28 sps:$4 sm:$0xff]  }
  0x5b   :  { %3918 = vmatpush1.bf16.msra.mxu1 %v6604_v47  ;;  %4463 = vmatpush1.bf16.msra.mxu0 %v6691_v48  ;;  %v6669_v45 = vld [vmem:[%s10559_s0 + $0xdc8] ss:$28 sps:$4 sm:$0xff]  }
  0x5c   :  { %3919 = vmatprep.subr.bf16.mxu1 %v7228_v0  ;;  %4464 = vmatprep.subr.bf16.mxu0 %v7228_v0  ;;  %v6672_v46 = vld [vmem:[%s10559_s0 + $0x384] ss:$28 sps:$4 sm:$0xff]   ;;  %v6676_v47 = vld [vmem:[%s10559_s0 + $0xc] ss:$28 sps:$4 sm:$0xff]  }
  0x5d   :  { %v6674_v48 = vld [vmem:[%s10559_s0 + $0x8] ss:$28 sps:$4 sm:$0xff]  }
  0x5f   :  { %3920 = vmatpush1.bf16.msra.mxu1 %v6612_v49  ;;  %4465 = vmatpush1.bf16.msra.mxu0 %v6710_v61  ;;  %v6677_v49 = vld [vmem:[%s10559_s0 + $0x380] ss:$28 sps:$4 sm:$0xff]   ;;  %v6696_v61 = vld [vmem:[%s10559_s0 + $0x428] ss:$28 sps:$4 sm:$0xff]  }
  0x60   :  { %3921 = vmatprep.subr.bf16.mxu1 %v7228_v0  ;;  %4466 = vmatprep.subr.bf16.mxu0 %v7228_v0 }
  0x61   :  { %3425 = vmatmul.mubr.bf16.gmra.mxu0 %v6588_v50  ;;  %3809 = vmatmul.mubr.bf16.gmra.mxu1 %v6589_v51  ;;  %v6679_v50 = vld [vmem:[%s10559_s0 + $0x3bc] ss:$28 sps:$4 sm:$0xff]   ;;  %v6681_v51 = vld [vmem:[%s10559_s0 + $0x44] ss:$28 sps:$4 sm:$0xff]  }
  0x62   :  { %3432 = vmatprep.mubr.bf16.mxu0 %v6591_v52  ;;  %3816 = vmatprep.mubr.bf16.mxu1 %v6593_v53  ;;  %v6683_v52 = vld [vmem:[%s10559_s0 + $0x3b8] ss:$28 sps:$4 sm:$0xff]   ;;  %v6684_v53 = vld [vmem:[%s10559_s0 + $0x40] ss:$28 sps:$4 sm:$0xff]  }
  0x63   :  { %3922 = vmatpush2.bf16.msra.mxu1 %v6619_v54  ;;  %4467 = vmatpush2.bf16.msra.mxu0 %v6729_v17  ;;  %v6685_v54 = vld [vmem:[%s10559_s0 + $0x3f4] ss:$28 sps:$4 sm:$0xff]   ;;  %v6723_v17 = vld [vmem:[%s10559_s0 + $0x544] ss:$28 sps:$4 sm:$0xff]  }
  0x64   :  { %3923 = vmatprep.subr.bf16.mxu1 %v7228_v0  ;;  %4468 = vmatprep.subr.bf16.mxu0 %v7228_v0 }
  0x67   :  { %3924 = vmatpush2.bf16.msra.mxu1 %v6626_v55  ;;  %4469 = vmatpush2.bf16.msra.mxu0 %v6748_v30  ;;  %v6687_v55 = vld [vmem:[%s10559_s0 + $0x7c] ss:$28 sps:$4 sm:$0xff]  }
  0x68   :  { %3925 = vmatprep.subr.bf16.mxu1 %v7228_v0  ;;  %4470 = vmatprep.subr.bf16.mxu0 %v7228_v0 }
  0x69   :  { %3433 = vmatmul.mubr.bf16.gmra.mxu0 %v6595_v56  ;;  %3817 = vmatmul.mubr.bf16.gmra.mxu1 %v6596_v57  ;;  %v6786_v56 = vld [vmem:[%s10558_s1 + $0x160] sm:$0xff]   ;;  %v6689_v57 = vld [vmem:[%s10559_s0 + $0x3f0] ss:$28 sps:$4 sm:$0xff]  }
  0x6a   :  { %3440 = vmatprep.mubr.bf16.mxu0 %v6598_v58  ;;  %3824 = vmatprep.mubr.bf16.mxu1 %v6600_v59  ;;  %v6690_v58 = vld [vmem:[%s10559_s0 + $0x78] ss:$28 sps:$4 sm:$0xff]   ;;  %v6692_v59 = vld [vmem:[%s10559_s0 + $0x42c] ss:$28 sps:$4 sm:$0xff]  }
  0x6b   :  { %3926 = vmatpush2.bf16.msra.mxu1 %v6634_v60  ;;  %4471 = vmatpush2.bf16.msra.mxu0 %v6767_v43  ;;  %v6694_v60 = vld [vmem:[%s10559_s0 + $0xb4] ss:$28 sps:$4 sm:$0xff]  }
  0x6c   :  { %3927 = vmatprep.subr.bf16.mxu1 %v7228_v0  ;;  %4472 = vmatprep.subr.bf16.mxu0 %v7228_v0 }
  0x6f   :  { %3928 = vmatpush2.bf16.msra.mxu1 %v6641_v62  ;;  %4473 = vmatpush2.bf16.msra.mxu0 %v6786_v56  ;;  %v6697_v62 = vld [vmem:[%s10559_s0 + $0xb0] ss:$28 sps:$4 sm:$0xff]  }
  0x70   :  { %3929 = vmatprep.subr.bf16.mxu1 %v7228_v0  ;;  %4474 = vmatprep.subr.bf16.mxu0 %v7228_v0  ;;  %v6747_v56 = vld [vmem:[%s10559_s0 + $0x270] ss:$28 sps:$4 sm:$0xff]  }
  0x71   :  { %3441 = vmatmul.mubr.bf16.gmra.mxu0 %v6602_v63  ;;  %3825 = vmatmul.mubr.bf16.gmra.mxu1 %v6603_v1  ;;  %v6698_v63 = vld [vmem:[%s10559_s0 + $0x464] ss:$28 sps:$4 sm:$0xff]   ;;  %v6700_v1 = vld [vmem:[%s10559_s0 + $0xec] ss:$28 sps:$4 sm:$0xff]  }
  0x72   :  { %3448 = vmatprep.mubr.bf16.mxu0 %v6606_v2  ;;  %3832 = vmatprep.mubr.bf16.mxu1 %v6608_v3  ;;  %v6702_v2 = vld [vmem:[%s10559_s0 + $0x460] ss:$28 sps:$4 sm:$0xff]   ;;  %v6703_v3 = vld [vmem:[%s10559_s0 + $0xe8] ss:$28 sps:$4 sm:$0xff]  }
  0x73   :  { %3930 = vmatpush2.bf16.msra.mxu1 %v6648_v4  ;;  %v6704_v4 = vld [vmem:[%s10559_s0 + $0x49c] ss:$28 sps:$4 sm:$0xff]  }
  0x74   :  { %3931 = vmatprep.subr.bf16.mxu1 %v7228_v0 }
  0x77   :  { %3932 = vmatpush2.bf16.msra.mxu1 %v6656_v5  ;;  %v6706_v5 = vld [vmem:[%s10559_s0 + $0x124] ss:$28 sps:$4 sm:$0xff]  }
  0x78   :  { %3933 = vmatprep.subr.bf16.mxu1 %v7228_v0 }
  0x79   :  { %3449 = vmatmul.mubr.bf16.gmra.mxu0 %v6610_v6  ;;  %3833 = vmatmul.mubr.bf16.gmra.mxu1 %v6611_v7  ;;  %v6805_v6 = vld [vmem:[%s10558_s1 + $0x158] sm:$0xff]  }
  0x7a   :  { %3456 = vmatprep.mubr.bf16.mxu0 %v6613_v8  ;;  %3840 = vmatprep.mubr.bf16.mxu1 %v6615_v9  ;;  %v6708_v7 = vld [vmem:[%s10559_s0 + $0x498] ss:$28 sps:$4 sm:$0xff]   ;;  %v6709_v8 = vld [vmem:[%s10559_s0 + $0x120] ss:$28 sps:$4 sm:$0xff]  }
  0x7b   :  { %3934 = vmatpush2.bf16.msra.mxu1 %v6663_v10  ;;  %4475 = vmatpush2.bf16.msra.mxu0 %v6805_v6  ;;  %v6711_v9 = vld [vmem:[%s10559_s0 + $0x4d4] ss:$28 sps:$4 sm:$0xff]   ;;  %v6713_v10 = vld [vmem:[%s10559_s0 + $0x15c] ss:$28 sps:$4 sm:$0xff]   ;;  %v6760_v6 = vld [vmem:[%s10559_s0 + $0x2e4] ss:$28 sps:$4 sm:$0xff]  }
  0x7c   :  { %3935 = vmatprep.subr.bf16.mxu1 %v7228_v0  ;;  %4476 = vmatprep.subr.bf16.mxu0 %v7228_v0 }
  0x7f   :  { %3936 = vmatpush2.bf16.msra.mxu1 %v6670_v11  ;;  %v6715_v11 = vld [vmem:[%s10559_s0 + $0x4d0] ss:$28 sps:$4 sm:$0xff]  }
  0x80   :  { %6373 = vmatprep.subr.bf16.mxu1 %v7530_v12 }
  0x81   :  { %3457 = vmatmul.mubr.bf16.gmra.mxu0 %v6617_v13  ;;  %3841 = vmatmul.mubr.bf16.gmra.mxu1 %v6618_v14  ;;  %v6717_v13 = vld [vmem:[%s10559_s0 + $0x50c] ss:$28 sps:$4 sm:$0xff]   ;;  %v6719_v14 = vld [vmem:[%s10559_s0 + $0x194] ss:$28 sps:$4 sm:$0xff]  }
  0x82   :  { %3464 = vmatprep.mubr.bf16.mxu0 %v6620_v15  ;;  %3848 = vmatprep.mubr.bf16.mxu1 %v6622_v16  ;;  %v6721_v15 = vld [vmem:[%s10559_s0 + $0x508] ss:$28 sps:$4 sm:$0xff]   ;;  %v6722_v16 = vld [vmem:[%s10559_s0 + $0x190] ss:$28 sps:$4 sm:$0xff]  }
  0x89   :  { %3465 = vmatmul.mubr.bf16.gmra.mxu0 %v6624_v18  ;;  %3849 = vmatmul.mubr.bf16.gmra.mxu1 %v6625_v19  ;;  %v6725_v18 = vld [vmem:[%s10559_s0 + $0x1cc] ss:$28 sps:$4 sm:$0xff]   ;;  %v6824_v19 = vld [vmem:[%s10558_s1 + $0x150] sm:$0xff]  }
  0x8a   :  { %3472 = vmatprep.mubr.bf16.mxu0 %v6628_v20  ;;  %3856 = vmatprep.mubr.bf16.mxu1 %v6630_v21  ;;  %v6727_v20 = vld [vmem:[%s10559_s0 + $0x540] ss:$28 sps:$4 sm:$0xff]   ;;  %v6728_v21 = vld [vmem:[%s10559_s0 + $0x1c8] ss:$28 sps:$4 sm:$0xff]  }
  0x8b   :  { %4477 = vmatpush2.bf16.msra.mxu0 %v6824_v19 }
  0x8c   :  { %4478 = vmatprep.subr.bf16.mxu0 %v7228_v0 }
  0x91   :  { %3473 = vmatmul.mubr.bf16.gmra.mxu0 %v6632_v22  ;;  %3857 = vmatmul.mubr.bf16.gmra.mxu1 %v6633_v23  ;;  %v6730_v22 = vld [vmem:[%s10559_s0 + $0x57c] ss:$28 sps:$4 sm:$0xff]   ;;  %v6732_v23 = vld [vmem:[%s10559_s0 + $0x204] ss:$28 sps:$4 sm:$0xff]  }
  0x92   :  { %3480 = vmatprep.mubr.bf16.mxu0 %v6635_v24  ;;  %3864 = vmatprep.mubr.bf16.mxu1 %v6637_v25 }
  0x99   :  { %3481 = vmatmul.mubr.bf16.gmra.mxu0 %v6639_v26  ;;  %3865 = vmatmul.mubr.bf16.gmra.mxu1 %v6640_v27 }
  0x9a   :  { %3488 = vmatprep.mubr.bf16.mxu0 %v6642_v28  ;;  %3872 = vmatprep.mubr.bf16.mxu1 %v6644_v29  ;;  %v6734_v28 = vld [vmem:[%s10559_s0 + $0x578] ss:$28 sps:$4 sm:$0xff]   ;;  %v6735_v29 = vld [vmem:[%s10559_s0 + $0x200] ss:$28 sps:$4 sm:$0xff]  }
  0xa1   :  { %3489 = vmatmul.mubr.bf16.gmra.mxu0 %v6646_v31  ;;  %3873 = vmatmul.mubr.bf16.gmra.mxu1 %v6647_v32  ;;  %v6736_v32 = vld [vmem:[%s10559_s0 + $0x5b4] ss:$28 sps:$4 sm:$0xff]  }
  0xa2   :  { %3496 = vmatprep.mubr.bf16.mxu0 %v6650_v33  ;;  %3880 = vmatprep.mubr.bf16.mxu1 %v6652_v34  ;;  %v6738_v33 = vld [vmem:[%s10559_s0 + $0x23c] ss:$28 sps:$4 sm:$0xff]  }
  0xa9   :  { %3497 = vmatmul.mubr.bf16.gmra.mxu0 %v6654_v35  ;;  %3881 = vmatmul.mubr.bf16.gmra.mxu1 %v6655_v36 }
  0xaa   :  { %3504 = vmatprep.mubr.bf16.mxu0 %v6657_v37  ;;  %3888 = vmatprep.mubr.bf16.mxu1 %v6659_v38 }
  0xb1   :  { %3505 = vmatmul.mubr.bf16.gmra.mxu0 %v6661_v39  ;;  %3889 = vmatmul.mubr.bf16.gmra.mxu1 %v6662_v40  ;;  %v6740_v40 = vld [vmem:[%s10559_s0 + $0x5b0] ss:$28 sps:$4 sm:$0xff]  }
  0xb2   :  { %3512 = vmatprep.mubr.bf16.mxu0 %v6664_v41  ;;  %3896 = vmatprep.mubr.bf16.mxu1 %v6666_v42  ;;  %v6741_v41 = vld [vmem:[%s10559_s0 + $0x238] ss:$28 sps:$4 sm:$0xff]  }
  0xb9   :  { %3513 = vmatmul.mubr.bf16.gmra.mxu0 %v6668_v44  ;;  %3897 = vmatmul.mubr.bf16.gmra.mxu1 %v6669_v45  ;;  %v6742_v44 = vld [vmem:[%s10559_s0 + $0x5ec] ss:$28 sps:$4 sm:$0xff]   ;;  %v6744_v45 = vld [vmem:[%s10559_s0 + $0x274] ss:$28 sps:$4 sm:$0xff]  }
  0xba   :  { %3520 = vmatprep.mubr.bf16.mxu0 %v6672_v46  ;;  %3937 = vmatprep.mubr.bf16.mxu1 %v6676_v47 }
  0xc1   :  { %3521 = vmatmul.mubr.bf16.gmra.mxu0 %v6677_v49  ;;  %3938 = vmatmul.mubr.bf16.vlgmr.msra.gmra.mxu1 %v6674_v48 }
  0xc2   :  { %6374 = vmatpush3.bf16.msra.mxu1 %v7530_v12  ;;  %3528 = vmatprep.mubr.bf16.mxu0 %v6679_v50  ;;  %v6716_v12 = vld [vmem:[%s10559_s0 + $0x158] ss:$28 sps:$4 sm:$0xff]   ;;  %v6843_v50 = vld [vmem:[%s10558_s1 + $0x148] sm:$0xff]  }
  0xc3   :  { %3945 = vmatprep.mubr.bf16.mxu1 %v6681_v51  ;;  %4479 = vmatpush2.bf16.msra.mxu0 %v6843_v50  ;;  %v6768_v50 = vld [vmem:[%s10559_s0 + $0x6c8] ss:$28 sps:$4 sm:$0xff]  }
  0xc4   :  { %4480 = vmatprep.subr.bf16.mxu0 %v7228_v0 }
  0xc9   :  { %3529 = vmatmul.mubr.bf16.gmra.mxu0 %v6683_v52  ;;  %3946 = vmatmul.mubr.bf16.gmra.mxu1 %v6684_v53 }
  0xca   :  { %3536 = vmatprep.mubr.bf16.mxu0 %v6685_v54  ;;  %3953 = vmatprep.mubr.bf16.mxu1 %v6687_v55  ;;  %v6746_v55 = vld [vmem:[%s10559_s0 + $0x5e8] ss:$28 sps:$4 sm:$0xff]  }
  0xd1   :  { %3537 = vmatmul.mubr.bf16.gmra.mxu0 %v6689_v57  ;;  %3954 = vmatmul.mubr.bf16.gmra.mxu1 %v6690_v58  ;;  %v6751_v57 = vld [vmem:[%s10559_s0 + $0x624] ss:$28 sps:$4 sm:$0xff]   ;;  %v6754_v58 = vld [vmem:[%s10559_s0 + $0x2ac] ss:$28 sps:$4 sm:$0xff]  }
  0xd2   :  { %3544 = vmatprep.mubr.bf16.mxu0 %v6692_v59  ;;  %3961 = vmatprep.mubr.bf16.mxu1 %v6694_v60 }
  0xd9   :  { %3545 = vmatmul.mubr.bf16.gmra.mxu0 %v6696_v61  ;;  %3962 = vmatmul.mubr.bf16.gmra.mxu1 %v6697_v62 }
  0xda   :  { %3552 = vmatprep.mubr.bf16.mxu0 %v6698_v63  ;;  %3969 = vmatprep.mubr.bf16.mxu1 %v6700_v1 }
  0xe1   :  { %3553 = vmatmul.mubr.bf16.gmra.mxu0 %v6702_v2  ;;  %3970 = vmatmul.mubr.bf16.gmra.mxu1 %v6703_v3  ;;  %v6749_v3 = vld [vmem:[%s10559_s0 + $0x620] ss:$28 sps:$4 sm:$0xff]  }
  0xe2   :  { %3560 = vmatprep.mubr.bf16.mxu0 %v6704_v4  ;;  %3977 = vmatprep.mubr.bf16.mxu1 %v6706_v5  ;;  %v6752_v4 = vld [vmem:[%s10559_s0 + $0x2a8] ss:$28 sps:$4 sm:$0xff]   ;;  %v6757_v5 = vld [vmem:[%s10559_s0 + $0x65c] ss:$28 sps:$4 sm:$0xff]  }
  0xe9   :  { %3561 = vmatmul.mubr.bf16.gmra.mxu0 %v6708_v7  ;;  %3978 = vmatmul.mubr.bf16.gmra.mxu1 %v6709_v8 }
  0xea   :  { %3568 = vmatprep.mubr.bf16.mxu0 %v6711_v9  ;;  %3985 = vmatprep.mubr.bf16.mxu1 %v6713_v10 }
  0xf1   :  { %3569 = vmatmul.mubr.bf16.gmra.mxu0 %v6715_v11  ;;  %3986 = vmatmul.mubr.bf16.gmra.mxu1 %v6716_v12 }
  0xf2   :  { %3576 = vmatprep.mubr.bf16.mxu0 %v6717_v13  ;;  %3993 = vmatprep.mubr.bf16.mxu1 %v6719_v14 }
  0xf9   :  { %3577 = vmatmul.mubr.bf16.gmra.mxu0 %v6721_v15  ;;  %3994 = vmatmul.mubr.bf16.gmra.mxu1 %v6722_v16  ;;  %v6755_v15 = vld [vmem:[%s10559_s0 + $0x658] ss:$28 sps:$4 sm:$0xff]   ;;  %v6758_v16 = vld [vmem:[%s10559_s0 + $0x2e0] ss:$28 sps:$4 sm:$0xff]  }
  0xfa   :  { %3584 = vmatprep.mubr.bf16.mxu0 %v6723_v17  ;;  %4001 = vmatprep.mubr.bf16.mxu1 %v6725_v18  ;;  %v6763_v17 = vld [vmem:[%s10559_s0 + $0x694] ss:$28 sps:$4 sm:$0xff]   ;;  %v6766_v18 = vld [vmem:[%s10559_s0 + $0x31c] ss:$28 sps:$4 sm:$0xff]  }
 0x101   :  { %v7763_v24 = vpop.f32.mrf.mxu0  ;;  %3585 = vmatmul.mubr.bf16.gmra.mxu0 %v6727_v20  ;;  %v7765_v25 = vpop.f32.mrf.mxu1  ;;  %4002 = vmatmul.mubr.bf16.gmra.mxu1 %v6728_v21 }
 0x102   :  { %10617 = vst [vmem:[#allocation2_spill] sm:$0xff] %v7765_v25  ;;  %3592 = vmatprep.mubr.bf16.mxu0 %v6730_v22  ;;  %4009 = vmatprep.mubr.bf16.mxu1 %v6732_v23  ;;  %v6862_v23 = vld [vmem:[%s10558_s1 + $0x140] sm:$0xff]  }
 0x103   :  { %v3396_v26 = vpop.f32.mrf.mxu0  ;;  %v3780_v27 = vpop.f32.mrf.mxu1  ;;  %4481 = vmatpush2.bf16.msra.mxu0 %v6862_v23  ;;  %v6780_v23 = vld [vmem:[%s10559_s0 + $0x738] ss:$28 sps:$4 sm:$0xff]  }
 0x105   :  { %v7773_v30 = vpop.f32.mrf.mxu0  ;;  %v7775_v31 = vpop.f32.mrf.mxu1 }
 0x106   :  { %10618 = vst [vmem:[#allocation3_spill] sm:$0xff] %v7775_v31 }
 0x107   :  { %v3399_v34 = vpop.f32.mrf.mxu0  ;;  %v3783_v35 = vpop.f32.mrf.mxu1 }
 0x108   :  { %v6770_v34 = vld [vmem:[%s10559_s0 + $0x6cc] ss:$28 sps:$4 sm:$0xff]   ;;  %v6773_v35 = vld [vmem:[%s10559_s0 + $0x354] ss:$28 sps:$4 sm:$0xff]  }
 0x109   :  { %v7783_v36 = vpop.f32.mrf.mxu0  ;;  %3593 = vmatmul.mubr.bf16.gmra.mxu0 %v6734_v28  ;;  %v7785_v37 = vpop.f32.mrf.mxu1  ;;  %4010 = vmatmul.mubr.bf16.gmra.mxu1 %v6735_v29 }
 0x10a   :  { %10619 = vst [vmem:[#allocation4_spill] sm:$0xff] %v7785_v37  ;;  %3600 = vmatprep.mubr.bf16.mxu0 %v6736_v32  ;;  %4017 = vmatprep.mubr.bf16.mxu1 %v6738_v33  ;;  %v6761_v32 = vld [vmem:[%s10559_s0 + $0x690] ss:$28 sps:$4 sm:$0xff]   ;;  %v6764_v33 = vld [vmem:[%s10559_s0 + $0x318] ss:$28 sps:$4 sm:$0xff]  }
 0x10b   :  { %v3404_v38 = vpop.f32.mrf.mxu0  ;;  %v3788_v39 = vpop.f32.mrf.mxu1 }
 0x10d   :  { %v7793_v42 = vpop.f32.mrf.mxu0  ;;  %v7795_v43 = vpop.f32.mrf.mxu1 }
 0x10e   :  { %10620 = vst [vmem:[#allocation5_spill] sm:$0xff] %v7795_v43  ;;  %v6856_v43 = vld [vmem:[%s10559_s0 + $0x9d8] ss:$28 sps:$4 sm:$0xff]  }
 0x10f   :  { %v3407_v46 = vpop.f32.mrf.mxu0  ;;  %v3791_v47 = vpop.f32.mrf.mxu1 }
 0x111   :  { %v7803_v48 = vpop.f32.mrf.mxu0  ;;  %3601 = vmatmul.mubr.bf16.gmra.mxu0 %v6740_v40  ;;  %v7805_v49 = vpop.f32.mrf.mxu1  ;;  %4018 = vmatmul.mubr.bf16.gmra.mxu1 %v6741_v41 }
 0x112   :  { %10621 = vst [vmem:[#allocation6_spill] sm:$0xff] %v7805_v49  ;;  %3608 = vmatprep.mubr.bf16.mxu0 %v6742_v44  ;;  %4025 = vmatprep.mubr.bf16.mxu1 %v6744_v45 }
 0x113   :  { %v3412_v51 = vpop.f32.mrf.mxu0  ;;  %v3796_v52 = vpop.f32.mrf.mxu1 }
 0x114   :  { %v6771_v51 = vld [vmem:[%s10559_s0 + $0x350] ss:$28 sps:$4 sm:$0xff]   ;;  %v6776_v52 = vld [vmem:[%s10559_s0 + $0x704] ss:$28 sps:$4 sm:$0xff]  }
 0x115   :  { %v7810_v53 = vpop.f32.mrf.mxu0  ;;  %v7812_v54 = vpop.f32.mrf.mxu1 }
 0x116   :  { %10622 = vst [vmem:[#allocation7_spill] sm:$0xff] %v7812_v54 }
 0x117   :  { %v3415_v59 = vpop.f32.mrf.mxu0  ;;  %v3799_v60 = vpop.f32.mrf.mxu1 }
 0x119   :  { %v7827_v61 = vpop.f32.mrf.mxu0  ;;  %3609 = vmatmul.mubr.bf16.gmra.mxu0 %v6746_v55  ;;  %v7829_v62 = vpop.f32.mrf.mxu1  ;;  %4026 = vmatmul.mubr.bf16.gmra.mxu1 %v6747_v56  ;;  %v6779_v55 = vld [vmem:[%s10559_s0 + $0x38c] ss:$28 sps:$4 sm:$0xff]  }
 0x11a   :  { %10623 = vst [vmem:[#allocation8_spill] sm:$0xff] %v7829_v62  ;;  %3616 = vmatprep.mubr.bf16.mxu0 %v6751_v57  ;;  %4033 = vmatprep.mubr.bf16.mxu1 %v6754_v58 }
 0x11b   :  { %v3420_v63 = vpop.f32.mrf.mxu0  ;;  %v3804_v0 = vpop.f32.mrf.mxu1 }
 0x11d   :  { %v7831_v1 = vpop.f32.mrf.mxu0  ;;  %v7833_v2 = vpop.f32.mrf.mxu1 }
 0x11e   :  { %10624 = vst [vmem:[#allocation9_spill] sm:$0xff] %v7833_v2  ;;  %v6850_v2 = vld [vmem:[%s10559_s0 + $0x9a0] ss:$28 sps:$4 sm:$0xff]  }
 0x11f   :  { %v3423_v7 = vpop.f32.mrf.mxu0  ;;  %v3807_v8 = vpop.f32.mrf.mxu1 }
 0x120   :  { %v6785_v7 = vld [vmem:[%s10559_s0 + $0x3c4] ss:$28 sps:$4 sm:$0xff]  }
 0x121   :  { %v7847_v9 = vpop.f32.mrf.mxu0  ;;  %3617 = vmatmul.mubr.bf16.gmra.mxu0 %v6749_v3  ;;  %v7849_v10 = vpop.f32.mrf.mxu1  ;;  %4034 = vmatmul.mubr.bf16.gmra.mxu1 %v6752_v4  ;;  %v6774_v4 = vld [vmem:[%s10559_s0 + $0x700] ss:$28 sps:$4 sm:$0xff]  }
 0x122   :  { %10625 = vst [vmem:[#allocation10_spill] sm:$0xff] %v7849_v10  ;;  %3624 = vmatprep.mubr.bf16.mxu0 %v6757_v5  ;;  %4041 = vmatprep.mubr.bf16.mxu1 %v6760_v6  ;;  %v6777_v5 = vld [vmem:[%s10559_s0 + $0x388] ss:$28 sps:$4 sm:$0xff]   ;;  %v6782_v6 = vld [vmem:[%s10559_s0 + $0x73c] ss:$28 sps:$4 sm:$0xff]  }
 0x123   :  { %v3428_v11 = vpop.f32.mrf.mxu0  ;;  %v3812_v12 = vpop.f32.mrf.mxu1 }
 0x125   :  { %v7851_v13 = vpop.f32.mrf.mxu0  ;;  %v7853_v14 = vpop.f32.mrf.mxu1 }
 0x126   :  { %10626 = vst [vmem:[#allocation11_spill] sm:$0xff] %v7853_v14 }
 0x127   :  { %v3431_v19 = vpop.f32.mrf.mxu0  ;;  %v3815_v20 = vpop.f32.mrf.mxu1 }
 0x129   :  { %v7867_v21 = vpop.f32.mrf.mxu0  ;;  %3625 = vmatmul.mubr.bf16.gmra.mxu0 %v6755_v15  ;;  %v7869_v22 = vpop.f32.mrf.mxu1  ;;  %4042 = vmatmul.mubr.bf16.gmra.mxu1 %v6758_v16  ;;  %v6881_v16 = vld [vmem:[%s10558_s1 + $0x180] sm:$0xff]  }
 0x12a   :  { %10627 = vst [vmem:[#allocation12_spill] sm:$0xff] %v7869_v22  ;;  %3632 = vmatprep.mubr.bf16.mxu0 %v6763_v17  ;;  %4049 = vmatprep.mubr.bf16.mxu1 %v6766_v18 }
 0x12b   :  { %v3436_v26 = vpop.f32.mrf.mxu0  ;;  %v3820_v27 = vpop.f32.mrf.mxu1  ;;  %6375 = vmatprep.subr.bf16.mxu1 %v6881_v16 }
 0x12c   :  { %v6783_v26 = vld [vmem:[%s10559_s0 + $0x3c0] ss:$28 sps:$4 sm:$0xff]   ;;  %6376 = vmatpush3.bf16.msra.mxu1 %v6881_v16  ;;  %v6789_v27 = vld [vmem:[%s10559_s0 + $0x774] ss:$28 sps:$4 sm:$0xff]  }
 0x12d   :  { %v7874_v28 = vpop.f32.mrf.mxu0  ;;  %v7876_v29 = vpop.f32.mrf.mxu1  ;;  %v6796_v16 = vld [vmem:[%s10559_s0 + $0x430] ss:$28 sps:$4 sm:$0xff]  }
 0x12e   :  { %10628 = vst [vmem:[#allocation13_spill] sm:$0xff] %v7876_v29  ;;  %v6844_v29 = vld [vmem:[%s10559_s0 + $0x968] ss:$28 sps:$4 sm:$0xff]  }
 0x12f   :  { %v3439_v38 = vpop.f32.mrf.mxu0  ;;  %v3823_v39 = vpop.f32.mrf.mxu1 }
 0x131   :  { %v7890_v40 = vpop.f32.mrf.mxu0  ;;  %3633 = vmatmul.mubr.bf16.gmra.mxu0 %v6761_v32  ;;  %v7892_v41 = vpop.f32.mrf.mxu1  ;;  %4050 = vmatmul.mubr.bf16.gmra.mxu1 %v6764_v33  ;;  %v6792_v32 = vld [vmem:[%s10559_s0 + $0x3fc] ss:$28 sps:$4 sm:$0xff]  }
 0x132   :  { %10629 = vst [vmem:[#allocation14_spill] sm:$0xff] %v7892_v41  ;;  %3640 = vmatprep.mubr.bf16.mxu0 %v6770_v34  ;;  %4057 = vmatprep.mubr.bf16.mxu1 %v6773_v35 }
 0x133   :  { %v3444_v44 = vpop.f32.mrf.mxu0  ;;  %v3828_v45 = vpop.f32.mrf.mxu1 }
 0x135   :  { %v7894_v46 = vpop.f32.mrf.mxu0  ;;  %v7896_v47 = vpop.f32.mrf.mxu1 }
 0x136   :  { %10630 = vst [vmem:[#allocation15_spill] sm:$0xff] %v7896_v47  ;;  %v6837_v47 = vld [vmem:[%s10559_s0 + $0x930] ss:$28 sps:$4 sm:$0xff]  }
 0x137   :  { %v3447_v56 = vpop.f32.mrf.mxu0  ;;  %v3831_v57 = vpop.f32.mrf.mxu1 }
 0x138   :  { %v6798_v56 = vld [vmem:[%s10559_s0 + $0x434] ss:$28 sps:$4 sm:$0xff]  }
 0x139   :  { %v7910_v58 = vpop.f32.mrf.mxu0  ;;  %3641 = vmatmul.mubr.bf16.gmra.mxu0 %v6768_v50  ;;  %v7912_v59 = vpop.f32.mrf.mxu1  ;;  %4058 = vmatmul.mubr.bf16.gmra.mxu1 %v6771_v51  ;;  %v6787_v51 = vld [vmem:[%s10559_s0 + $0x770] ss:$28 sps:$4 sm:$0xff]  }
 0x13a   :  { %10631 = vst [vmem:[#allocation16_spill] sm:$0xff] %v7912_v59  ;;  %3648 = vmatprep.mubr.bf16.mxu0 %v6776_v52  ;;  %4065 = vmatprep.mubr.bf16.mxu1 %v6779_v55  ;;  %v6790_v52 = vld [vmem:[%s10559_s0 + $0x3f8] ss:$28 sps:$4 sm:$0xff]   ;;  %v6795_v55 = vld [vmem:[%s10559_s0 + $0x7ac] ss:$28 sps:$4 sm:$0xff]  }
 0x13b   :  { %v3452_v60 = vpop.f32.mrf.mxu0  ;;  %v3836_v63 = vpop.f32.mrf.mxu1 }
 0x13d   :  { %v7914_v0 = vpop.f32.mrf.mxu0  ;;  %v7916_v3 = vpop.f32.mrf.mxu1 }
 0x13e   :  { %10632 = vst [vmem:[#allocation17_spill] sm:$0xff] %v7916_v3 }
 0x13f   :  { %v3455_v8 = vpop.f32.mrf.mxu0  ;;  %v3839_v11 = vpop.f32.mrf.mxu1 }
 0x140   :  { %v6793_v11 = vld [vmem:[%s10559_s0 + $0x7a8] ss:$28 sps:$4 sm:$0xff]  }
 0x141   :  { %v7930_v12 = vpop.f32.mrf.mxu0  ;;  %3649 = vmatmul.mubr.bf16.gmra.mxu0 %v6774_v4  ;;  %v7932_v15 = vpop.f32.mrf.mxu1  ;;  %4066 = vmatmul.mubr.bf16.gmra.mxu1 %v6777_v5 }
 0x142   :  { %10633 = vst [vmem:[#allocation18_spill] sm:$0xff] %v7932_v15  ;;  %3656 = vmatprep.mubr.bf16.mxu0 %v6782_v6  ;;  %4073 = vmatprep.mubr.bf16.mxu1 %v6785_v7 }
 0x143   :  { %v3460_v17 = vpop.f32.mrf.mxu0  ;;  %v3844_v18 = vpop.f32.mrf.mxu1 }
 0x144   :  { %v6801_v17 = vld [vmem:[%s10559_s0 + $0x7e4] ss:$28 sps:$4 sm:$0xff]   ;;  %v6804_v18 = vld [vmem:[%s10559_s0 + $0x46c] ss:$28 sps:$4 sm:$0xff]  }
 0x145   :  { %v7937_v19 = vpop.f32.mrf.mxu0  ;;  %v7939_v20 = vpop.f32.mrf.mxu1 }
 0x146   :  { %10634 = vst [vmem:[#allocation19_spill] sm:$0xff] %v7939_v20 }
 0x147   :  { %v3463_v33 = vpop.f32.mrf.mxu0  ;;  %v3847_v34 = vpop.f32.mrf.mxu1 }
 0x149   :  { %v7953_v35 = vpop.f32.mrf.mxu0  ;;  %3657 = vmatmul.mubr.bf16.gmra.mxu0 %v6780_v23  ;;  %v7955_v38 = vpop.f32.mrf.mxu1  ;;  %4074 = vmatmul.mubr.bf16.gmra.mxu1 %v6783_v26 }
 0x14a   :  { %10635 = vst [vmem:[#allocation20_spill] sm:$0xff] %v7955_v38  ;;  %3664 = vmatprep.mubr.bf16.mxu0 %v6789_v27  ;;  %4081 = vmatprep.mubr.bf16.mxu1 %v6792_v32 }
 0x14b   :  { %v3468_v39 = vpop.f32.mrf.mxu0  ;;  %v3852_v44 = vpop.f32.mrf.mxu1 }
 0x14d   :  { %v7957_v45 = vpop.f32.mrf.mxu0  ;;  %v7959_v50 = vpop.f32.mrf.mxu1 }
 0x14e   :  { %10636 = vst [vmem:[#allocation21_spill] sm:$0xff] %v7959_v50  ;;  %v6831_v50 = vld [vmem:[%s10559_s0 + $0x8f8] ss:$28 sps:$4 sm:$0xff]  }
 0x14f   :  { %v3471_v57 = vpop.f32.mrf.mxu0  ;;  %v3855_v60 = vpop.f32.mrf.mxu1 }
 0x151   :  { %v7973_v63 = vpop.f32.mrf.mxu0  ;;  %3665 = vmatmul.mubr.bf16.gmra.mxu0 %v6787_v51  ;;  %v7975_v4 = vpop.f32.mrf.mxu1  ;;  %4082 = vmatmul.mubr.bf16.gmra.mxu1 %v6790_v52  ;;  %v6799_v51 = vld [vmem:[%s10559_s0 + $0x7e0] ss:$28 sps:$4 sm:$0xff]   ;;  %v6802_v52 = vld [vmem:[%s10559_s0 + $0x468] ss:$28 sps:$4 sm:$0xff]  }
 0x152   :  { %10637 = vst [vmem:[#allocation22_spill] sm:$0xff] %v7975_v4  ;;  %3672 = vmatprep.mubr.bf16.mxu0 %v6795_v55  ;;  %4089 = vmatprep.mubr.bf16.mxu1 %v6798_v56  ;;  %v6808_v55 = vld [vmem:[%s10559_s0 + $0x81c] ss:$28 sps:$4 sm:$0xff]   ;;  %v6811_v56 = vld [vmem:[%s10559_s0 + $0x4a4] ss:$28 sps:$4 sm:$0xff]  }
 0x153   :  { %v3476_v5 = vpop.f32.mrf.mxu0  ;;  %v3860_v6 = vpop.f32.mrf.mxu1  ;;  %v6825_v4 = vld [vmem:[%s10559_s0 + $0x8c0] ss:$28 sps:$4 sm:$0xff]  }
 0x155   :  { %v7977_v7 = vpop.f32.mrf.mxu0  ;;  %v7979_v8 = vpop.f32.mrf.mxu1 }
 0x156   :  { %10638 = vst [vmem:[#allocation23_spill] sm:$0xff] %v7979_v8 }
 0x157   :  { %v3479_v23 = vpop.f32.mrf.mxu0  ;;  %v3863_v26 = vpop.f32.mrf.mxu1 }
 0x158   :  { %v6806_v23 = vld [vmem:[%s10559_s0 + $0x818] ss:$28 sps:$4 sm:$0xff]   ;;  %v6809_v26 = vld [vmem:[%s10559_s0 + $0x4a0] ss:$28 sps:$4 sm:$0xff]  }
 0x159   :  { %v7993_v27 = vpop.f32.mrf.mxu0  ;;  %3673 = vmatmul.mubr.bf16.gmra.mxu0 %v6793_v11  ;;  %v7995_v32 = vpop.f32.mrf.mxu1  ;;  %4090 = vmatmul.mubr.bf16.gmra.mxu1 %v6796_v16 }
 0x15a   :  { %10639 = vst [vmem:[#allocation24_spill] sm:$0xff] %v7995_v32  ;;  %3680 = vmatprep.mubr.bf16.mxu0 %v6801_v17  ;;  %4097 = vmatprep.mubr.bf16.mxu1 %v6804_v18 }
 0x15b   :  { %v3484_v33 = vpop.f32.mrf.mxu0  ;;  %v3868_v34 = vpop.f32.mrf.mxu1 }
 0x15c   :  { %v6814_v33 = vld [vmem:[%s10559_s0 + $0x854] ss:$28 sps:$4 sm:$0xff]   ;;  %v6817_v34 = vld [vmem:[%s10559_s0 + $0x4dc] ss:$28 sps:$4 sm:$0xff]  }
 0x15d   :  { %v7997_v39 = vpop.f32.mrf.mxu0  ;;  %v7999_v44 = vpop.f32.mrf.mxu1 }
 0x15e   :  { %10640 = vst [vmem:[#allocation25_spill] sm:$0xff] %v7999_v44  ;;  %v6818_v44 = vld [vmem:[%s10559_s0 + $0x888] ss:$28 sps:$4 sm:$0xff]  }
 0x15f   :  { %v3487_v57 = vpop.f32.mrf.mxu0  ;;  %v3871_v60 = vpop.f32.mrf.mxu1 }
 0x161   :  { %v8013_v5 = vpop.f32.mrf.mxu0  ;;  %3681 = vmatmul.mubr.bf16.gmra.mxu0 %v6799_v51  ;;  %v8015_v6 = vpop.f32.mrf.mxu1  ;;  %4098 = vmatmul.mubr.bf16.gmra.mxu1 %v6802_v52 }
 0x162   :  { %10641 = vst [vmem:[#allocation26_spill] sm:$0xff] %v8015_v6  ;;  %3688 = vmatprep.mubr.bf16.mxu0 %v6808_v55  ;;  %4105 = vmatprep.mubr.bf16.mxu1 %v6811_v56 }
 0x163   :  { %v3492_v11 = vpop.f32.mrf.mxu0  ;;  %v3876_v16 = vpop.f32.mrf.mxu1 }
 0x165   :  { %v8017_v17 = vpop.f32.mrf.mxu0  ;;  %v8019_v18 = vpop.f32.mrf.mxu1 }
 0x166   :  { %10642 = vst [vmem:[#allocation27_spill] sm:$0xff] %v8017_v17  ;;  %10643 = vst [vmem:[#allocation28_spill] sm:$0xff] %v8019_v18  ;;  %v6812_v18 = vld [vmem:[%s10559_s0 + $0x850] ss:$28 sps:$4 sm:$0xff]  }
 0x167   :  { %v3495_v51 = vpop.f32.mrf.mxu0  ;;  %v3879_v52 = vpop.f32.mrf.mxu1 }
 0x168   :  { %v6815_v51 = vld [vmem:[%s10559_s0 + $0x4d8] ss:$28 sps:$4 sm:$0xff]  }
 0x169   :  { %v8033_v55 = vpop.f32.mrf.mxu0  ;;  %3689 = vmatmul.mubr.bf16.gmra.mxu0 %v6806_v23  ;;  %v8035_v56 = vpop.f32.mrf.mxu1  ;;  %4106 = vmatmul.mubr.bf16.gmra.mxu1 %v6809_v26  ;;  %v6820_v23 = vld [vmem:[%s10559_s0 + $0x88c] ss:$28 sps:$4 sm:$0xff]   ;;  %v6823_v26 = vld [vmem:[%s10559_s0 + $0x514] ss:$28 sps:$4 sm:$0xff]  }
 0x16a   :  { %10644 = vst [vmem:[#allocation29_spill] sm:$0xff] %v8033_v55  ;;  %10645 = vst [vmem:[#allocation30_spill] sm:$0xff] %v8035_v56  ;;  %3696 = vmatprep.mubr.bf16.mxu0 %v6814_v33  ;;  %4113 = vmatprep.mubr.bf16.mxu1 %v6817_v34 }
 0x16b   :  { %v3500_v57 = vpop.f32.mrf.mxu0  ;;  %v3884_v60 = vpop.f32.mrf.mxu1 }
 0x16d   :  { %v8037_v11 = vpop.f32.mrf.mxu0  ;;  %v8039_v16 = vpop.f32.mrf.mxu1 }
 0x16e   :  { %10646 = vst [vmem:[#allocation31_spill] sm:$0xff] %v8037_v11  ;;  %10647 = vst [vmem:[#allocation32_spill] sm:$0xff] %v8039_v16  ;;  %v6906_v11 = vld [vmem:[%s10559_s0 + $0x820] ss:$28 sps:$4 sm:$0xff]  }
 0x16f   :  { %v3503_v33 = vpop.f32.mrf.mxu0  ;;  %v3887_v34 = vpop.f32.mrf.mxu1 }
 0x170   :  { %v6821_v33 = vld [vmem:[%s10559_s0 + $0x510] ss:$28 sps:$4 sm:$0xff]  }
 0x171   :  { %v8053_v52 = vpop.f32.mrf.mxu0  ;;  %3697 = vmatmul.mubr.bf16.gmra.mxu0 %v6812_v18  ;;  %v8055_v57 = vpop.f32.mrf.mxu1  ;;  %4114 = vmatmul.mubr.bf16.gmra.mxu1 %v6815_v51  ;;  %v6827_v18 = vld [vmem:[%s10559_s0 + $0x8c4] ss:$28 sps:$4 sm:$0xff]  }
 0x172   :  { %10648 = vst [vmem:[#allocation33_spill] sm:$0xff] %v8053_v52  ;;  %10649 = vst [vmem:[#allocation34_spill] sm:$0xff] %v8055_v57  ;;  %3704 = vmatprep.mubr.bf16.mxu0 %v6820_v23  ;;  %4121 = vmatprep.mubr.bf16.mxu1 %v6823_v26 }
 0x173   :  { %v3508_v60 = vpop.f32.mrf.mxu0  ;;  %v3892_v16 = vpop.f32.mrf.mxu1 }
 0x174   :  { %v6830_v16 = vld [vmem:[%s10559_s0 + $0x54c] ss:$28 sps:$4 sm:$0xff]  }
 0x175   :  { %v8057_v56 = vpop.f32.mrf.mxu0  ;;  %v8059_v6 = vpop.f32.mrf.mxu1 }
 0x176   :  { %10650 = vst [vmem:[#allocation35_spill] sm:$0xff] %v8057_v56  ;;  %10651 = vst [vmem:[#allocation36_spill] sm:$0xff] %v8059_v6  ;;  %v6900_v56 = vld [vmem:[%s10559_s0 + $0x7e8] ss:$28 sps:$4 sm:$0xff]  }
 0x177   :  { %v3511_v51 = vpop.f32.mrf.mxu0  ;;  %v3895_v23 = vpop.f32.mrf.mxu1 }
 0x178   :  { %v6828_v51 = vld [vmem:[%s10559_s0 + $0x548] ss:$28 sps:$4 sm:$0xff]  }
 0x179   :  { %v8073_v26 = vpop.f32.mrf.mxu0  ;;  %3705 = vmatmul.mubr.bf16.gmra.mxu0 %v6818_v44  ;;  %v8075_v34 = vpop.f32.mrf.mxu1  ;;  %4122 = vmatmul.mubr.bf16.gmra.mxu1 %v6821_v33  ;;  %v6833_v44 = vld [vmem:[%s10559_s0 + $0x8fc] ss:$28 sps:$4 sm:$0xff]  }
 0x17a   :  { %10652 = vst [vmem:[#allocation37_spill] sm:$0xff] %v8073_v26  ;;  %10653 = vst [vmem:[#allocation38_spill] sm:$0xff] %v8075_v34  ;;  %3712 = vmatprep.mubr.bf16.mxu0 %v6827_v18  ;;  %4129 = vmatprep.mubr.bf16.mxu1 %v6830_v16 }
 0x17b   :  { %v3516_v60 = vpop.f32.mrf.mxu0  ;;  %v3900_v6 = vpop.f32.mrf.mxu1 }
 0x17c   :  { %v6836_v6 = vld [vmem:[%s10559_s0 + $0x584] ss:$28 sps:$4 sm:$0xff]  }
 0x17d   :  { %v8077_v57 = vpop.f32.mrf.mxu0  ;;  %v8079_v8 = vpop.f32.mrf.mxu1 }
 0x17e   :  { %10654 = vst [vmem:[#allocation39_spill] sm:$0xff] %v8077_v57  ;;  %10655 = vst [vmem:[#allocation40_spill] sm:$0xff] %v8079_v8  ;;  %v6894_v57 = vld [vmem:[%s10559_s0 + $0x7b0] ss:$28 sps:$4 sm:$0xff]  }
 0x17f   :  { %v3519_v33 = vpop.f32.mrf.mxu0  ;;  %v3903_v18 = vpop.f32.mrf.mxu1 }
 0x180   :  { %v6834_v33 = vld [vmem:[%s10559_s0 + $0x580] ss:$28 sps:$4 sm:$0xff]  }
 0x181   :  { %v8093_v16 = vpop.f32.mrf.mxu0  ;;  %3713 = vmatmul.mubr.bf16.gmra.mxu0 %v6825_v4  ;;  %v8095_v23 = vpop.f32.mrf.mxu1  ;;  %4130 = vmatmul.mubr.bf16.gmra.mxu1 %v6828_v51  ;;  %v6839_v4 = vld [vmem:[%s10559_s0 + $0x934] ss:$28 sps:$4 sm:$0xff]  }
 0x182   :  { %10656 = vst [vmem:[#allocation41_spill] sm:$0xff] %v8093_v16  ;;  %3720 = vmatprep.mubr.bf16.mxu0 %v6833_v44  ;;  %4137 = vmatprep.mubr.bf16.mxu1 %v6836_v6 }
 0x183   :  { %v3524_v60 = vpop.f32.mrf.mxu0  ;;  %v3941_v8 = vpop.f32.mrf.mxu1 }
 0x184   :  { %v6842_v8 = vld [vmem:[%s10559_s0 + $0x5bc] ss:$28 sps:$4 sm:$0xff]  }
 0x185   :  { %v8097_v34 = vpop.f32.mrf.mxu0  ;;  %v8099_v32 = vpop.f32.mrf.mxu1 }
 0x186   :  { %10657 = vst [vmem:[#allocation42_spill] sm:$0xff] %v8097_v34  ;;  %v6888_v34 = vld [vmem:[%s10559_s0 + $0x778] ss:$28 sps:$4 sm:$0xff]  }
 0x187   :  { %v3527_v51 = vpop.f32.mrf.mxu0  ;;  %v3944_v44 = vpop.f32.mrf.mxu1 }
 0x188   :  { %v6840_v51 = vld [vmem:[%s10559_s0 + $0x5b8] ss:$28 sps:$4 sm:$0xff]  }
 0x189   :  { %v8113_v6 = vpop.f32.mrf.mxu0  ;;  %3721 = vmatmul.mubr.bf16.gmra.mxu0 %v6831_v50  ;;  %v8115_v18 = vpop.f32.mrf.mxu1  ;;  %4138 = vmatmul.mubr.bf16.gmra.mxu1 %v6834_v33  ;;  %v6846_v50 = vld [vmem:[%s10559_s0 + $0x96c] ss:$28 sps:$4 sm:$0xff]  }
 0x18a   :  { %10658 = vst [vmem:[#allocation43_spill] sm:$0xff] %v8113_v6  ;;  %3728 = vmatprep.mubr.bf16.mxu0 %v6839_v4  ;;  %4145 = vmatprep.mubr.bf16.mxu1 %v6842_v8 }
 0x18b   :  { %v3532_v60 = vpop.f32.mrf.mxu0  ;;  %v3949_v20 = vpop.f32.mrf.mxu1 }
 0x18c   :  { %v6849_v20 = vld [vmem:[%s10559_s0 + $0x5f4] ss:$28 sps:$4 sm:$0xff]  }
 0x18d   :  { %v8117_v38 = vpop.f32.mrf.mxu0  ;;  %v8119_v15 = vpop.f32.mrf.mxu1 }
 0x18e   :  { %10659 = vst [vmem:[#allocation44_spill] sm:$0xff] %v8117_v38  ;;  %v6882_v38 = vld [vmem:[%s10559_s0 + $0x740] ss:$28 sps:$4 sm:$0xff]  }
 0x18f   :  { %v3535_v33 = vpop.f32.mrf.mxu0  ;;  %v3952_v4 = vpop.f32.mrf.mxu1 }
 0x190   :  { %v6847_v33 = vld [vmem:[%s10559_s0 + $0x5f0] ss:$28 sps:$4 sm:$0xff]  }
 0x191   :  { %v8133_v8 = vpop.f32.mrf.mxu0  ;;  %3729 = vmatmul.mubr.bf16.gmra.mxu0 %v6837_v47  ;;  %v8135_v44 = vpop.f32.mrf.mxu1  ;;  %4146 = vmatmul.mubr.bf16.gmra.mxu1 %v6840_v51  ;;  %v6852_v47 = vld [vmem:[%s10559_s0 + $0x9a4] ss:$28 sps:$4 sm:$0xff]  }
 0x192   :  { %10660 = vst [vmem:[#allocation45_spill] sm:$0xff] %v8133_v8  ;;  %3736 = vmatprep.mubr.bf16.mxu0 %v6846_v50  ;;  %4153 = vmatprep.mubr.bf16.mxu1 %v6849_v20 }
 0x193   :  { %v3540_v60 = vpop.f32.mrf.mxu0  ;;  %v3957_v3 = vpop.f32.mrf.mxu1 }
 0x194   :  { %v6855_v3 = vld [vmem:[%s10559_s0 + $0x62c] ss:$28 sps:$4 sm:$0xff]  }
 0x195   :  { %v8137_v59 = vpop.f32.mrf.mxu0  ;;  %v8139_v41 = vpop.f32.mrf.mxu1 }
 0x196   :  { %10661 = vst [vmem:[#allocation46_spill] sm:$0xff] %v8137_v59  ;;  %v6875_v59 = vld [vmem:[%s10559_s0 + $0x708] ss:$28 sps:$4 sm:$0xff]  }
 0x197   :  { %v3543_v51 = vpop.f32.mrf.mxu0  ;;  %v3960_v50 = vpop.f32.mrf.mxu1 }
 0x198   :  { %v6853_v51 = vld [vmem:[%s10559_s0 + $0x628] ss:$28 sps:$4 sm:$0xff]  }
 0x199   :  { %v8153_v20 = vpop.f32.mrf.mxu0  ;;  %3737 = vmatmul.mubr.bf16.gmra.mxu0 %v6844_v29  ;;  %v8155_v4 = vpop.f32.mrf.mxu1  ;;  %4154 = vmatmul.mubr.bf16.gmra.mxu1 %v6847_v33  ;;  %v6858_v29 = vld [vmem:[%s10559_s0 + $0x9dc] ss:$28 sps:$4 sm:$0xff]  }
 0x19a   :  { %10662 = vst [vmem:[#allocation47_spill] sm:$0xff] %v8153_v20  ;;  %3744 = vmatprep.mubr.bf16.mxu0 %v6852_v47  ;;  %4161 = vmatprep.mubr.bf16.mxu1 %v6855_v3 }
 0x19b   :  { %v3548_v60 = vpop.f32.mrf.mxu0  ;;  %v3965_v14 = vpop.f32.mrf.mxu1 }
 0x19c   :  { %v6861_v14 = vld [vmem:[%s10559_s0 + $0x664] ss:$28 sps:$4 sm:$0xff]  }
 0x19d   :  { %v8157_v10 = vpop.f32.mrf.mxu0  ;;  %v8159_v22 = vpop.f32.mrf.mxu1 }
 0x19e   :  { %10663 = vst [vmem:[#allocation48_spill] sm:$0xff] %v8157_v10  ;;  %v6869_v10 = vld [vmem:[%s10559_s0 + $0xa48] ss:$28 sps:$4 sm:$0xff]  }
 0x19f   :  { %v3551_v33 = vpop.f32.mrf.mxu0  ;;  %v3968_v47 = vpop.f32.mrf.mxu1 }
 0x1a0   :  { %v6859_v33 = vld [vmem:[%s10559_s0 + $0x660] ss:$28 sps:$4 sm:$0xff]  }
 0x1a1   :  { %v8173_v3 = vpop.f32.mrf.mxu0  ;;  %3745 = vmatmul.mubr.bf16.gmra.mxu0 %v6850_v2  ;;  %v8175_v50 = vpop.f32.mrf.mxu1  ;;  %4162 = vmatmul.mubr.bf16.gmra.mxu1 %v6853_v51  ;;  %v6865_v2 = vld [vmem:[%s10559_s0 + $0xa14] ss:$28 sps:$4 sm:$0xff]  }
 0x1a2   :  { %10664 = vst [vmem:[#allocation49_spill] sm:$0xff] %v8173_v3  ;;  %3752 = vmatprep.mubr.bf16.mxu0 %v6858_v29  ;;  %4169 = vmatprep.mubr.bf16.mxu1 %v6861_v14 }
 0x1a3   :  { %v3556_v60 = vpop.f32.mrf.mxu0  ;;  %v3973_v54 = vpop.f32.mrf.mxu1 }
 0x1a4   :  { %v6868_v54 = vld [vmem:[%s10559_s0 + $0x69c] ss:$28 sps:$4 sm:$0xff]  }
 0x1a5   :  { %v8177_v62 = vpop.f32.mrf.mxu0  ;;  %v8179_v49 = vpop.f32.mrf.mxu1 }
 0x1a6   :  { %10665 = vst [vmem:[#allocation50_spill] sm:$0xff] %v8177_v62  ;;  %v6863_v62 = vld [vmem:[%s10559_s0 + $0xa10] ss:$28 sps:$4 sm:$0xff]  }
 0x1a7   :  { %v3559_v51 = vpop.f32.mrf.mxu0  ;;  %v3976_v29 = vpop.f32.mrf.mxu1 }
 0x1a8   :  { %v6866_v51 = vld [vmem:[%s10559_s0 + $0x698] ss:$28 sps:$4 sm:$0xff]  }
 0x1a9   :  { %v8193_v14 = vpop.f32.mrf.mxu0  ;;  %3753 = vmatmul.mubr.bf16.gmra.mxu0 %v6856_v43  ;;  %v8195_v47 = vpop.f32.mrf.mxu1  ;;  %4170 = vmatmul.mubr.bf16.gmra.mxu1 %v6859_v33  ;;  %v6871_v43 = vld [vmem:[%s10559_s0 + $0xa4c] ss:$28 sps:$4 sm:$0xff]  }
 0x1aa   :  { %10666 = vst [vmem:[#allocation51_spill] sm:$0xff] %v8193_v14  ;;  %3760 = vmatprep.mubr.bf16.mxu0 %v6865_v2  ;;  %4177 = vmatprep.mubr.bf16.mxu1 %v6868_v54 }
 0x1ab   :  { %v3564_v60 = vpop.f32.mrf.mxu0  ;;  %v3981_v37 = vpop.f32.mrf.mxu1 }
 0x1ac   :  { %v6874_v37 = vld [vmem:[%s10559_s0 + $0x6d4] ss:$28 sps:$4 sm:$0xff]  }
 0x1ad   :  { %v8197_v31 = vpop.f32.mrf.mxu0  ;;  %v8199_v25 = vpop.f32.mrf.mxu1 }
 0x1ae   :  { %10667 = vst [vmem:[#allocation52_spill] sm:$0xff] %v8197_v31 }
 0x1af   :  { %v3567_v33 = vpop.f32.mrf.mxu0  ;;  %v3984_v2 = vpop.f32.mrf.mxu1 }
 0x1b0   :  { %v6872_v33 = vld [vmem:[%s10559_s0 + $0x6d0] ss:$28 sps:$4 sm:$0xff]  }
 0x1b1   :  { %v8213_v54 = vpop.f32.mrf.mxu0  ;;  %3761 = vmatmul.mubr.bf16.gmra.mxu0 %v6863_v62  ;;  %v8215_v29 = vpop.f32.mrf.mxu1  ;;  %4178 = vmatmul.mubr.bf16.gmra.mxu1 %v6866_v51  ;;  %v6877_v62 = vld [vmem:[%s10559_s0 + $0x70c] ss:$28 sps:$4 sm:$0xff]  }
 0x1b2   :  { %10668 = vst [vmem:[#allocation53_spill] sm:$0xff] %v8213_v54  ;;  %3768 = vmatprep.mubr.bf16.mxu0 %v6871_v43  ;;  %4185 = vmatprep.mubr.bf16.mxu1 %v6874_v37 }
 0x1b3   :  { %v3572_v60 = vpop.f32.mrf.mxu0  ;;  %v3989_v31 = vpop.f32.mrf.mxu1 }
 0x1b4   :  { %v6880_v31 = vld [vmem:[%s10559_s0 + $0x14] ss:$28 sps:$4 sm:$0xff]  }
 0x1b5   :  { %v8217_v14 = vpop.f32.mrf.mxu0  ;;  %v8219_v3 = vpop.f32.mrf.mxu1 }
 0x1b6   :  { %10669 = vst [vmem:[#allocation54_spill] sm:$0xff] %v8217_v14 }
 0x1b7   :  { %v3575_v51 = vpop.f32.mrf.mxu0  ;;  %v3992_v43 = vpop.f32.mrf.mxu1 }
 0x1b8   :  { %v6878_v51 = vld [vmem:[%s10559_s0 + $0x10] ss:$28 sps:$4 sm:$0xff]  }
 0x1b9   :  { %v8233_v37 = vpop.f32.mrf.mxu0  ;;  %3769 = vmatmul.mubr.bf16.gmra.mxu0 %v6869_v10  ;;  %v8235_v2 = vpop.f32.mrf.mxu1  ;;  %4186 = vmatmul.mubr.bf16.gmra.mxu1 %v6872_v33  ;;  %v6884_v10 = vld [vmem:[%s10559_s0 + $0x744] ss:$28 sps:$4 sm:$0xff]  }
 0x1ba   :  { %10670 = vst [vmem:[#allocation55_spill] sm:$0xff] %v8233_v37  ;;  %4193 = vmatprep.mubr.bf16.mxu1 %v6877_v62  ;;  %4482 = vmatprep.mubr.bf16.mxu0 %v6880_v31 }
 0x1bb   :  { %v3580_v60 = vpop.f32.mrf.mxu0  ;;  %v3997_v14 = vpop.f32.mrf.mxu1 }
 0x1bc   :  { %v6887_v14 = vld [vmem:[%s10559_s0 + $0x4c] ss:$28 sps:$4 sm:$0xff]  }
 0x1bd   :  { %v8237_v54 = vpop.f32.mrf.mxu0  ;;  %v8239_v20 = vpop.f32.mrf.mxu1 }
 0x1be   :  { %10671 = vst [vmem:[#allocation56_spill] sm:$0xff] %v8237_v54 }
 0x1bf   :  { %v3583_v33 = vpop.f32.mrf.mxu0  ;;  %v4000_v62 = vpop.f32.mrf.mxu1 }
 0x1c0   :  { %v6885_v33 = vld [vmem:[%s10559_s0 + $0x48] ss:$28 sps:$4 sm:$0xff]  }
 0x1c1   :  { %v8253_v31 = vpop.f32.mrf.mxu0  ;;  %v8255_v43 = vpop.f32.mrf.mxu1  ;;  %4194 = vmatmul.mubr.bf16.gmra.mxu1 %v6875_v59  ;;  %4483 = vmatmul.mubr.bf16.vlgmr.msra.gmra.mxu0 %v6878_v51  ;;  %v6890_v59 = vld [vmem:[%s10559_s0 + $0x77c] ss:$28 sps:$4 sm:$0xff]  }
 0x1c2   :  { %10672 = vst [vmem:[#allocation57_spill] sm:$0xff] %v8253_v31  ;;  %4201 = vmatprep.mubr.bf16.mxu1 %v6884_v10  ;;  %4490 = vmatprep.mubr.bf16.mxu0 %v6887_v14 }
 0x1c3   :  { %v3588_v60 = vpop.f32.mrf.mxu0  ;;  %v4005_v54 = vpop.f32.mrf.mxu1 }
 0x1c4   :  { %v6893_v54 = vld [vmem:[%s10559_s0 + $0x84] ss:$28 sps:$4 sm:$0xff]  }
 0x1c5   :  { %v8257_v37 = vpop.f32.mrf.mxu0  ;;  %v8259_v8 = vpop.f32.mrf.mxu1 }
 0x1c6   :  { %10673 = vst [vmem:[#allocation58_spill] sm:$0xff] %v8257_v37 }
 0x1c7   :  { %v3591_v51 = vpop.f32.mrf.mxu0  ;;  %v4008_v10 = vpop.f32.mrf.mxu1 }
 0x1c8   :  { %v6891_v51 = vld [vmem:[%s10559_s0 + $0x80] ss:$28 sps:$4 sm:$0xff]  }
 0x1c9   :  { %v8273_v14 = vpop.f32.mrf.mxu0  ;;  %v8275_v62 = vpop.f32.mrf.mxu1  ;;  %4202 = vmatmul.mubr.bf16.gmra.mxu1 %v6882_v38  ;;  %4491 = vmatmul.mubr.bf16.gmra.mxu0 %v6885_v33  ;;  %v6896_v38 = vld [vmem:[%s10559_s0 + $0x7b4] ss:$28 sps:$4 sm:$0xff]  }
 0x1ca   :  { %10674 = vst [vmem:[#allocation59_spill] sm:$0xff] %v8273_v14  ;;  %4209 = vmatprep.mubr.bf16.mxu1 %v6890_v59  ;;  %4498 = vmatprep.mubr.bf16.mxu0 %v6893_v54 }
 0x1cb   :  { %v3596_v60 = vpop.f32.mrf.mxu0  ;;  %v4013_v37 = vpop.f32.mrf.mxu1 }
 0x1cc   :  { %v6899_v37 = vld [vmem:[%s10559_s0 + $0xbc] ss:$28 sps:$4 sm:$0xff]  }
 0x1cd   :  { %v8277_v31 = vpop.f32.mrf.mxu0  ;;  %v8279_v6 = vpop.f32.mrf.mxu1 }
 0x1ce   :  { %10675 = vst [vmem:[#allocation60_spill] sm:$0xff] %v8277_v31 }
 0x1cf   :  { %v3599_v33 = vpop.f32.mrf.mxu0  ;;  %v4016_v59 = vpop.f32.mrf.mxu1 }
 0x1d0   :  { %v6897_v33 = vld [vmem:[%s10559_s0 + $0xb8] ss:$28 sps:$4 sm:$0xff]  }
 0x1d1   :  { %v8293_v54 = vpop.f32.mrf.mxu0  ;;  %v8295_v10 = vpop.f32.mrf.mxu1  ;;  %4210 = vmatmul.mubr.bf16.gmra.mxu1 %v6888_v34  ;;  %4499 = vmatmul.mubr.bf16.gmra.mxu0 %v6891_v51  ;;  %v6902_v34 = vld [vmem:[%s10559_s0 + $0x7ec] ss:$28 sps:$4 sm:$0xff]  }
 0x1d2   :  { %10676 = vst [vmem:[#allocation61_spill] sm:$0xff] %v8293_v54  ;;  %4217 = vmatprep.mubr.bf16.mxu1 %v6896_v38  ;;  %4506 = vmatprep.mubr.bf16.mxu0 %v6899_v37 }
 0x1d3   :  { %v3604_v60 = vpop.f32.mrf.mxu0  ;;  %v4021_v31 = vpop.f32.mrf.mxu1 }
 0x1d4   :  { %v6905_v31 = vld [vmem:[%s10559_s0 + $0xf4] ss:$28 sps:$4 sm:$0xff]  }
 0x1d5   :  { %v8297_v14 = vpop.f32.mrf.mxu0  ;;  %v8299_v16 = vpop.f32.mrf.mxu1 }
 0x1d6   :  { %10677 = vst [vmem:[#allocation62_spill] sm:$0xff] %v8297_v14 }
 0x1d7   :  { %v3607_v51 = vpop.f32.mrf.mxu0  ;;  %v4024_v38 = vpop.f32.mrf.mxu1 }
 0x1d8   :  { %v6903_v51 = vld [vmem:[%s10559_s0 + $0xf0] ss:$28 sps:$4 sm:$0xff]  }
 0x1d9   :  { %v8313_v37 = vpop.f32.mrf.mxu0  ;;  %v8315_v59 = vpop.f32.mrf.mxu1  ;;  %4218 = vmatmul.mubr.bf16.gmra.mxu1 %v6894_v57  ;;  %4507 = vmatmul.mubr.bf16.gmra.mxu0 %v6897_v33  ;;  %v6908_v57 = vld [vmem:[%s10559_s0 + $0x824] ss:$28 sps:$4 sm:$0xff]  }
 0x1da   :  { %10678 = vst [vmem:[#allocation63_spill] sm:$0xff] %v8313_v37  ;;  %4225 = vmatprep.mubr.bf16.mxu1 %v6902_v34  ;;  %4514 = vmatprep.mubr.bf16.mxu0 %v6905_v31 }
 0x1db   :  { %v3612_v60 = vpop.f32.mrf.mxu0  ;;  %v4029_v14 = vpop.f32.mrf.mxu1 }
 0x1dc   :  { %v6911_v14 = vld [vmem:[%s10559_s0 + $0x12c] ss:$28 sps:$4 sm:$0xff]  }
 0x1dd   :  { %v8317_v54 = vpop.f32.mrf.mxu0  ;;  %v8319_v26 = vpop.f32.mrf.mxu1 }
 0x1de   :  { %10679 = vst [vmem:[#allocation64_spill] sm:$0xff] %v8317_v54 }
 0x1df   :  { %v3615_v33 = vpop.f32.mrf.mxu0  ;;  %v4032_v34 = vpop.f32.mrf.mxu1 }
 0x1e0   :  { %v6909_v33 = vld [vmem:[%s10559_s0 + $0x128] ss:$28 sps:$4 sm:$0xff]  }
 0x1e1   :  { %v8333_v31 = vpop.f32.mrf.mxu0  ;;  %v8335_v38 = vpop.f32.mrf.mxu1  ;;  %4226 = vmatmul.mubr.bf16.gmra.mxu1 %v6900_v56  ;;  %4515 = vmatmul.mubr.bf16.gmra.mxu0 %v6903_v51  ;;  %v6914_v56 = vld [vmem:[%s10559_s0 + $0x85c] ss:$28 sps:$4 sm:$0xff]  }
 0x1e2   :  { %10680 = vst [vmem:[#allocation65_spill] sm:$0xff] %v8333_v31  ;;  %4233 = vmatprep.mubr.bf16.mxu1 %v6908_v57  ;;  %4522 = vmatprep.mubr.bf16.mxu0 %v6911_v14 }
 0x1e3   :  { %v3620_v60 = vpop.f32.mrf.mxu0  ;;  %v4037_v54 = vpop.f32.mrf.mxu1 }
 0x1e4   :  { %v6917_v54 = vld [vmem:[%s10559_s0 + $0x164] ss:$28 sps:$4 sm:$0xff]  }
 0x1e5   :  { %v8337_v37 = vpop.f32.mrf.mxu0  ;;  %v8339_v52 = vpop.f32.mrf.mxu1 }
 0x1e6   :  { %10681 = vst [vmem:[#allocation66_spill] sm:$0xff] %v8337_v37  ;;  %10682 = vst [vmem:[#allocation67_spill] sm:$0xff] %v8339_v52  ;;  %v6912_v52 = vld [vmem:[%s10559_s0 + $0x858] ss:$28 sps:$4 sm:$0xff]  }
 0x1e7   :  { %v3623_v51 = vpop.f32.mrf.mxu0  ;;  %v4040_v57 = vpop.f32.mrf.mxu1 }
 0x1e8   :  { %v6915_v51 = vld [vmem:[%s10559_s0 + $0x160] ss:$28 sps:$4 sm:$0xff]  }
 0x1e9   :  { %v8353_v14 = vpop.f32.mrf.mxu0  ;;  %v8355_v34 = vpop.f32.mrf.mxu1  ;;  %4234 = vmatmul.mubr.bf16.gmra.mxu1 %v6906_v11  ;;  %4523 = vmatmul.mubr.bf16.gmra.mxu0 %v6909_v33  ;;  %v6920_v11 = vld [vmem:[%s10559_s0 + $0x894] ss:$28 sps:$4 sm:$0xff]  }
 0x1ea   :  { %10683 = vst [vmem:[#allocation68_spill] sm:$0xff] %v8353_v14  ;;  %10684 = vst [vmem:[#allocation69_spill] sm:$0xff] %v8355_v34  ;;  %4241 = vmatprep.mubr.bf16.mxu1 %v6914_v56  ;;  %4530 = vmatprep.mubr.bf16.mxu0 %v6917_v54  ;;  %v6918_v34 = vld [vmem:[%s10559_s0 + $0x890] ss:$28 sps:$4 sm:$0xff]  }
 0x1eb   :  { %v3628_v60 = vpop.f32.mrf.mxu0  ;;  %v4045_v37 = vpop.f32.mrf.mxu1 }
 0x1ec   :  { %v6923_v37 = vld [vmem:[%s10559_s0 + $0x19c] ss:$28 sps:$4 sm:$0xff]  }
 0x1ed   :  { %v8357_v31 = vpop.f32.mrf.mxu0  ;;  %v8359_v55 = vpop.f32.mrf.mxu1 }
 0x1ee   :  { %10685 = vst [vmem:[#allocation70_spill] sm:$0xff] %v8357_v31  ;;  %10686 = vst [vmem:[#allocation71_spill] sm:$0xff] %v8359_v55 }
 0x1ef   :  { %v3631_v33 = vpop.f32.mrf.mxu0  ;;  %v4048_v56 = vpop.f32.mrf.mxu1 }
 0x1f0   :  { %v6921_v33 = vld [vmem:[%s10559_s0 + $0x198] ss:$28 sps:$4 sm:$0xff]  }
 0x1f1   :  { %v8373_v54 = vpop.f32.mrf.mxu0  ;;  %v8375_v57 = vpop.f32.mrf.mxu1  ;;  %4242 = vmatmul.mubr.bf16.gmra.mxu1 %v6912_v52  ;;  %4531 = vmatmul.mubr.bf16.gmra.mxu0 %v6915_v51  ;;  %v6926_v52 = vld [vmem:[%s10559_s0 + $0x8cc] ss:$28 sps:$4 sm:$0xff]  }
 0x1f2   :  { %10687 = vst [vmem:[#allocation72_spill] sm:$0xff] %v8373_v54  ;;  %10688 = vst [vmem:[#allocation73_spill] sm:$0xff] %v8375_v57  ;;  %4249 = vmatprep.mubr.bf16.mxu1 %v6920_v11  ;;  %4538 = vmatprep.mubr.bf16.mxu0 %v6923_v37  ;;  %v6924_v57 = vld [vmem:[%s10559_s0 + $0x8c8] ss:$28 sps:$4 sm:$0xff]  }
 0x1f3   :  { %v3636_v60 = vpop.f32.mrf.mxu0  ;;  %v4053_v31 = vpop.f32.mrf.mxu1 }
 0x1f4   :  { %v6929_v31 = vld [vmem:[%s10559_s0 + $0x1d4] ss:$28 sps:$4 sm:$0xff]  }
 0x1f5   :  { %v8377_v14 = vpop.f32.mrf.mxu0  ;;  %v8379_v55 = vpop.f32.mrf.mxu1 }
 0x1f6   :  { %10689 = vst [vmem:[#allocation74_spill] sm:$0xff] %v8377_v14  ;;  %10690 = vst [vmem:[#allocation75_spill] sm:$0xff] %v8379_v55 }
 0x1f7   :  { %v3639_v51 = vpop.f32.mrf.mxu0  ;;  %v4056_v11 = vpop.f32.mrf.mxu1 }
 0x1f8   :  { %v6927_v51 = vld [vmem:[%s10559_s0 + $0x1d0] ss:$28 sps:$4 sm:$0xff]  }
 0x1f9   :  { %v8393_v37 = vpop.f32.mrf.mxu0  ;;  %v8395_v56 = vpop.f32.mrf.mxu1  ;;  %4250 = vmatmul.mubr.bf16.gmra.mxu1 %v6918_v34  ;;  %4539 = vmatmul.mubr.bf16.gmra.mxu0 %v6921_v33  ;;  %v6932_v34 = vld [vmem:[%s10559_s0 + $0x904] ss:$28 sps:$4 sm:$0xff]  }
 0x1fa   :  { %10691 = vst [vmem:[#allocation76_spill] sm:$0xff] %v8393_v37  ;;  %10692 = vst [vmem:[#allocation77_spill] sm:$0xff] %v8395_v56  ;;  %4257 = vmatprep.mubr.bf16.mxu1 %v6926_v52  ;;  %4546 = vmatprep.mubr.bf16.mxu0 %v6929_v31  ;;  %v6930_v56 = vld [vmem:[%s10559_s0 + $0x900] ss:$28 sps:$4 sm:$0xff]  }
 0x1fb   :  { %v3644_v60 = vpop.f32.mrf.mxu0  ;;  %v4061_v14 = vpop.f32.mrf.mxu1 }
 0x1fc   :  { %v6935_v14 = vld [vmem:[%s10559_s0 + $0x20c] ss:$28 sps:$4 sm:$0xff]  }
 0x1fd   :  { %v8397_v54 = vpop.f32.mrf.mxu0  ;;  %v8399_v55 = vpop.f32.mrf.mxu1 }
 0x1fe   :  { %10693 = vst [vmem:[#allocation78_spill] sm:$0xff] %v8397_v54  ;;  %10694 = vst [vmem:[#allocation79_spill] sm:$0xff] %v8399_v55 }
 0x1ff   :  { %v3647_v33 = vpop.f32.mrf.mxu0  ;;  %v4064_v52 = vpop.f32.mrf.mxu1 }
 0x200   :  { %v6933_v33 = vld [vmem:[%s10559_s0 + $0x208] ss:$28 sps:$4 sm:$0xff]  }
 0x201   :  { %v8413_v31 = vpop.f32.mrf.mxu0  ;;  %v8415_v11 = vpop.f32.mrf.mxu1  ;;  %4258 = vmatmul.mubr.bf16.gmra.mxu1 %v6924_v57  ;;  %4547 = vmatmul.mubr.bf16.gmra.mxu0 %v6927_v51  ;;  %v6938_v57 = vld [vmem:[%s10559_s0 + $0x93c] ss:$28 sps:$4 sm:$0xff]  }
 0x202   :  { %10695 = vst [vmem:[#allocation80_spill] sm:$0xff] %v8413_v31  ;;  %10696 = vst [vmem:[#allocation81_spill] sm:$0xff] %v8415_v11  ;;  %4265 = vmatprep.mubr.bf16.mxu1 %v6932_v34  ;;  %4554 = vmatprep.mubr.bf16.mxu0 %v6935_v14  ;;  %v6936_v11 = vld [vmem:[%s10559_s0 + $0x938] ss:$28 sps:$4 sm:$0xff]  }
 0x203   :  { %v3652_v60 = vpop.f32.mrf.mxu0  ;;  %v4069_v54 = vpop.f32.mrf.mxu1 }
 0x204   :  { %v6941_v54 = vld [vmem:[%s10559_s0 + $0x244] ss:$28 sps:$4 sm:$0xff]  }
 0x205   :  { %v8417_v37 = vpop.f32.mrf.mxu0  ;;  %v8419_v55 = vpop.f32.mrf.mxu1 }
 0x206   :  { %10697 = vst [vmem:[#allocation82_spill] sm:$0xff] %v8417_v37  ;;  %10698 = vst [vmem:[#allocation83_spill] sm:$0xff] %v8419_v55 }
 0x207   :  { %v3655_v51 = vpop.f32.mrf.mxu0  ;;  %v4072_v34 = vpop.f32.mrf.mxu1 }
 0x208   :  { %v6939_v51 = vld [vmem:[%s10559_s0 + $0x240] ss:$28 sps:$4 sm:$0xff]  }
 0x209   :  { %v8433_v14 = vpop.f32.mrf.mxu0  ;;  %v8435_v52 = vpop.f32.mrf.mxu1  ;;  %4266 = vmatmul.mubr.bf16.gmra.mxu1 %v6930_v56  ;;  %4555 = vmatmul.mubr.bf16.gmra.mxu0 %v6933_v33  ;;  %v6944_v56 = vld [vmem:[%s10559_s0 + $0x974] ss:$28 sps:$4 sm:$0xff]  }
 0x20a   :  { %10699 = vst [vmem:[#allocation84_spill] sm:$0xff] %v8433_v14  ;;  %10700 = vst [vmem:[#allocation85_spill] sm:$0xff] %v8435_v52  ;;  %4273 = vmatprep.mubr.bf16.mxu1 %v6938_v57  ;;  %4562 = vmatprep.mubr.bf16.mxu0 %v6941_v54  ;;  %v6942_v52 = vld [vmem:[%s10559_s0 + $0x970] ss:$28 sps:$4 sm:$0xff]  }
 0x20b   :  { %v3660_v60 = vpop.f32.mrf.mxu0  ;;  %v4077_v37 = vpop.f32.mrf.mxu1 }
 0x20c   :  { %v6947_v37 = vld [vmem:[%s10559_s0 + $0x27c] ss:$28 sps:$4 sm:$0xff]  }
 0x20d   :  { %v8437_v31 = vpop.f32.mrf.mxu0  ;;  %v8439_v55 = vpop.f32.mrf.mxu1 }
 0x20e   :  { %10701 = vst [vmem:[#allocation86_spill] sm:$0xff] %v8437_v31  ;;  %10702 = vst [vmem:[#allocation87_spill] sm:$0xff] %v8439_v55 }
 0x20f   :  { %v3663_v33 = vpop.f32.mrf.mxu0  ;;  %v4080_v57 = vpop.f32.mrf.mxu1 }
 0x210   :  { %v6945_v33 = vld [vmem:[%s10559_s0 + $0x278] ss:$28 sps:$4 sm:$0xff]  }
 0x211   :  { %v8453_v54 = vpop.f32.mrf.mxu0  ;;  %v8455_v34 = vpop.f32.mrf.mxu1  ;;  %4274 = vmatmul.mubr.bf16.gmra.mxu1 %v6936_v11  ;;  %4563 = vmatmul.mubr.bf16.gmra.mxu0 %v6939_v51  ;;  %v6950_v11 = vld [vmem:[%s10559_s0 + $0x9ac] ss:$28 sps:$4 sm:$0xff]  }
 0x212   :  { %10703 = vst [vmem:[#allocation88_spill] sm:$0xff] %v8453_v54  ;;  %10704 = vst [vmem:[#allocation89_spill] sm:$0xff] %v8455_v34  ;;  %4281 = vmatprep.mubr.bf16.mxu1 %v6944_v56  ;;  %4570 = vmatprep.mubr.bf16.mxu0 %v6947_v37  ;;  %v6948_v34 = vld [vmem:[%s10559_s0 + $0x9a8] ss:$28 sps:$4 sm:$0xff]  }
 0x213   :  { %v3668_v60 = vpop.f32.mrf.mxu0  ;;  %v4085_v31 = vpop.f32.mrf.mxu1 }
 0x214   :  { %v6953_v31 = vld [vmem:[%s10559_s0 + $0x2b4] ss:$28 sps:$4 sm:$0xff]  }
 0x215   :  { %v8457_v14 = vpop.f32.mrf.mxu0  ;;  %v8459_v55 = vpop.f32.mrf.mxu1 }
 0x216   :  { %10705 = vst [vmem:[#allocation90_spill] sm:$0xff] %v8457_v14  ;;  %10706 = vst [vmem:[#allocation91_spill] sm:$0xff] %v8459_v55 }
 0x217   :  { %v3671_v51 = vpop.f32.mrf.mxu0  ;;  %v4088_v56 = vpop.f32.mrf.mxu1 }
 0x218   :  { %v6951_v51 = vld [vmem:[%s10559_s0 + $0x2b0] ss:$28 sps:$4 sm:$0xff]  }
 0x219   :  { %v8473_v37 = vpop.f32.mrf.mxu0  ;;  %v8475_v57 = vpop.f32.mrf.mxu1  ;;  %4282 = vmatmul.mubr.bf16.gmra.mxu1 %v6942_v52  ;;  %4571 = vmatmul.mubr.bf16.gmra.mxu0 %v6945_v33  ;;  %v6956_v52 = vld [vmem:[%s10559_s0 + $0x9e4] ss:$28 sps:$4 sm:$0xff]  }
 0x21a   :  { %10707 = vst [vmem:[#allocation92_spill] sm:$0xff] %v8473_v37  ;;  %10708 = vst [vmem:[#allocation93_spill] sm:$0xff] %v8475_v57  ;;  %4289 = vmatprep.mubr.bf16.mxu1 %v6950_v11  ;;  %4578 = vmatprep.mubr.bf16.mxu0 %v6953_v31  ;;  %v6954_v57 = vld [vmem:[%s10559_s0 + $0x9e0] ss:$28 sps:$4 sm:$0xff]  }
 0x21b   :  { %v3676_v60 = vpop.f32.mrf.mxu0  ;;  %v4093_v14 = vpop.f32.mrf.mxu1 }
 0x21c   :  { %v6959_v14 = vld [vmem:[%s10559_s0 + $0x2ec] ss:$28 sps:$4 sm:$0xff]  }
 0x21d   :  { %v8477_v54 = vpop.f32.mrf.mxu0  ;;  %v8479_v55 = vpop.f32.mrf.mxu1 }
 0x21e   :  { %10709 = vst [vmem:[#allocation94_spill] sm:$0xff] %v8477_v54  ;;  %10710 = vst [vmem:[#allocation95_spill] sm:$0xff] %v8479_v55 }
 0x21f   :  { %v3679_v33 = vpop.f32.mrf.mxu0  ;;  %v4096_v11 = vpop.f32.mrf.mxu1 }
 0x220   :  { %v6957_v33 = vld [vmem:[%s10559_s0 + $0x2e8] ss:$28 sps:$4 sm:$0xff]  }
 0x221   :  { %v8493_v31 = vpop.f32.mrf.mxu0  ;;  %v8495_v56 = vpop.f32.mrf.mxu1  ;;  %4290 = vmatmul.mubr.bf16.gmra.mxu1 %v6948_v34  ;;  %4579 = vmatmul.mubr.bf16.gmra.mxu0 %v6951_v51  ;;  %v6962_v34 = vld [vmem:[%s10559_s0 + $0xa1c] ss:$28 sps:$4 sm:$0xff]  }
 0x222   :  { %10711 = vst [vmem:[#allocation96_spill] sm:$0xff] %v8493_v31  ;;  %10712 = vst [vmem:[#allocation97_spill] sm:$0xff] %v8495_v56  ;;  %4297 = vmatprep.mubr.bf16.mxu1 %v6956_v52  ;;  %4586 = vmatprep.mubr.bf16.mxu0 %v6959_v14  ;;  %v6960_v56 = vld [vmem:[%s10559_s0 + $0xa18] ss:$28 sps:$4 sm:$0xff]  }
 0x223   :  { %v3684_v60 = vpop.f32.mrf.mxu0  ;;  %v4101_v54 = vpop.f32.mrf.mxu1 }
 0x224   :  { %v6965_v54 = vld [vmem:[%s10559_s0 + $0x324] ss:$28 sps:$4 sm:$0xff]  }
 0x225   :  { %v8497_v37 = vpop.f32.mrf.mxu0  ;;  %v8499_v55 = vpop.f32.mrf.mxu1 }
 0x226   :  { %10713 = vst [vmem:[#allocation98_spill] sm:$0xff] %v8497_v37  ;;  %10714 = vst [vmem:[#allocation99_spill] sm:$0xff] %v8499_v55 }
 0x227   :  { %v3687_v51 = vpop.f32.mrf.mxu0  ;;  %v4104_v52 = vpop.f32.mrf.mxu1 }
 0x228   :  { %v6963_v51 = vld [vmem:[%s10559_s0 + $0x320] ss:$28 sps:$4 sm:$0xff]  }
 0x229   :  { %v8513_v14 = vpop.f32.mrf.mxu0  ;;  %v8515_v11 = vpop.f32.mrf.mxu1  ;;  %4298 = vmatmul.mubr.bf16.gmra.mxu1 %v6954_v57  ;;  %4587 = vmatmul.mubr.bf16.gmra.mxu0 %v6957_v33  ;;  %v6968_v57 = vld [vmem:[%s10559_s0 + $0xa54] ss:$28 sps:$4 sm:$0xff]  }
 0x22a   :  { %10715 = vst [vmem:[#allocation100_spill] sm:$0xff] %v8513_v14  ;;  %10716 = vst [vmem:[#allocation101_spill] sm:$0xff] %v8515_v11  ;;  %4305 = vmatprep.mubr.bf16.mxu1 %v6962_v34  ;;  %4594 = vmatprep.mubr.bf16.mxu0 %v6965_v54  ;;  %v6966_v11 = vld [vmem:[%s10559_s0 + $0xa50] ss:$28 sps:$4 sm:$0xff]  }
 0x22b   :  { %v3692_v60 = vpop.f32.mrf.mxu0  ;;  %v4109_v37 = vpop.f32.mrf.mxu1 }
 0x22c   :  { %v6971_v37 = vld [vmem:[%s10559_s0 + $0x35c] ss:$28 sps:$4 sm:$0xff]  }
 0x22d   :  { %v8517_v31 = vpop.f32.mrf.mxu0  ;;  %v8519_v55 = vpop.f32.mrf.mxu1 }
 0x22e   :  { %10717 = vst [vmem:[#allocation102_spill] sm:$0xff] %v8517_v31  ;;  %10718 = vst [vmem:[#allocation103_spill] sm:$0xff] %v8519_v55 }
 0x22f   :  { %v3695_v33 = vpop.f32.mrf.mxu0  ;;  %v4112_v34 = vpop.f32.mrf.mxu1 }
 0x230   :  { %v6969_v33 = vld [vmem:[%s10559_s0 + $0x358] ss:$28 sps:$4 sm:$0xff]  }
 0x231   :  { %v8533_v54 = vpop.f32.mrf.mxu0  ;;  %v8535_v52 = vpop.f32.mrf.mxu1  ;;  %4306 = vmatmul.mubr.bf16.gmra.mxu1 %v6960_v56  ;;  %4595 = vmatmul.mubr.bf16.gmra.mxu0 %v6963_v51  ;;  %v6974_v56 = vld [vmem:[%s10559_s0 + $0xa8c] ss:$28 sps:$4 sm:$0xff]  }
 0x232   :  { %10719 = vst [vmem:[#allocation104_spill] sm:$0xff] %v8533_v54  ;;  %10720 = vst [vmem:[#allocation105_spill] sm:$0xff] %v8535_v52  ;;  %4313 = vmatprep.mubr.bf16.mxu1 %v6968_v57  ;;  %4602 = vmatprep.mubr.bf16.mxu0 %v6971_v37  ;;  %v6972_v52 = vld [vmem:[%s10559_s0 + $0xa88] ss:$28 sps:$4 sm:$0xff]  }
 0x233   :  { %v3700_v60 = vpop.f32.mrf.mxu0  ;;  %v4117_v31 = vpop.f32.mrf.mxu1 }
 0x234   :  { %v6977_v31 = vld [vmem:[%s10559_s0 + $0x394] ss:$28 sps:$4 sm:$0xff]  }
 0x235   :  { %v8537_v14 = vpop.f32.mrf.mxu0  ;;  %v8539_v55 = vpop.f32.mrf.mxu1 }
 0x236   :  { %10721 = vst [vmem:[#allocation106_spill] sm:$0xff] %v8537_v14  ;;  %10722 = vst [vmem:[#allocation107_spill] sm:$0xff] %v8539_v55 }
 0x237   :  { %v3703_v51 = vpop.f32.mrf.mxu0  ;;  %v4120_v57 = vpop.f32.mrf.mxu1 }
 0x238   :  { %v6975_v51 = vld [vmem:[%s10559_s0 + $0x390] ss:$28 sps:$4 sm:$0xff]  }
 0x239   :  { %v8553_v37 = vpop.f32.mrf.mxu0  ;;  %v8555_v34 = vpop.f32.mrf.mxu1  ;;  %4314 = vmatmul.mubr.bf16.gmra.mxu1 %v6966_v11  ;;  %4603 = vmatmul.mubr.bf16.gmra.mxu0 %v6969_v33  ;;  %v6980_v11 = vld [vmem:[%s10559_s0 + $0xac4] ss:$28 sps:$4 sm:$0xff]  }
 0x23a   :  { %10723 = vst [vmem:[#allocation108_spill] sm:$0xff] %v8553_v37  ;;  %10724 = vst [vmem:[#allocation109_spill] sm:$0xff] %v8555_v34  ;;  %4321 = vmatprep.mubr.bf16.mxu1 %v6974_v56  ;;  %4610 = vmatprep.mubr.bf16.mxu0 %v6977_v31  ;;  %v6978_v34 = vld [vmem:[%s10559_s0 + $0xac0] ss:$28 sps:$4 sm:$0xff]  }
 0x23b   :  { %v3708_v60 = vpop.f32.mrf.mxu0  ;;  %v4125_v14 = vpop.f32.mrf.mxu1 }
 0x23c   :  { %v6983_v14 = vld [vmem:[%s10559_s0 + $0x3cc] ss:$28 sps:$4 sm:$0xff]  }
 0x23d   :  { %v8557_v54 = vpop.f32.mrf.mxu0  ;;  %v8559_v55 = vpop.f32.mrf.mxu1 }
 0x23e   :  { %10725 = vst [vmem:[#allocation110_spill] sm:$0xff] %v8557_v54  ;;  %10726 = vst [vmem:[#allocation111_spill] sm:$0xff] %v8559_v55 }
 0x23f   :  { %v3711_v33 = vpop.f32.mrf.mxu0  ;;  %v4128_v56 = vpop.f32.mrf.mxu1 }
 0x240   :  { %v6981_v33 = vld [vmem:[%s10559_s0 + $0x3c8] ss:$28 sps:$4 sm:$0xff]  }
 0x241   :  { %v8573_v31 = vpop.f32.mrf.mxu0  ;;  %v8575_v57 = vpop.f32.mrf.mxu1  ;;  %4322 = vmatmul.mubr.bf16.gmra.mxu1 %v6972_v52  ;;  %4611 = vmatmul.mubr.bf16.gmra.mxu0 %v6975_v51  ;;  %v6986_v52 = vld [vmem:[%s10559_s0 + $0xafc] ss:$28 sps:$4 sm:$0xff]  }
 0x242   :  { %10727 = vst [vmem:[#allocation112_spill] sm:$0xff] %v8573_v31  ;;  %10728 = vst [vmem:[#allocation113_spill] sm:$0xff] %v8575_v57  ;;  %4329 = vmatprep.mubr.bf16.mxu1 %v6980_v11  ;;  %4618 = vmatprep.mubr.bf16.mxu0 %v6983_v14  ;;  %v6984_v57 = vld [vmem:[%s10559_s0 + $0xaf8] ss:$28 sps:$4 sm:$0xff]  }
 0x243   :  { %v3716_v60 = vpop.f32.mrf.mxu0  ;;  %v4133_v54 = vpop.f32.mrf.mxu1 }
 0x244   :  { %v6989_v54 = vld [vmem:[%s10559_s0 + $0x404] ss:$28 sps:$4 sm:$0xff]  }
 0x245   :  { %v8577_v37 = vpop.f32.mrf.mxu0  ;;  %v8579_v55 = vpop.f32.mrf.mxu1 }
 0x246   :  { %10729 = vst [vmem:[#allocation114_spill] sm:$0xff] %v8577_v37  ;;  %10730 = vst [vmem:[#allocation115_spill] sm:$0xff] %v8579_v55 }
 0x247   :  { %v3719_v51 = vpop.f32.mrf.mxu0  ;;  %v4136_v11 = vpop.f32.mrf.mxu1 }
 0x248   :  { %v6987_v51 = vld [vmem:[%s10559_s0 + $0x400] ss:$28 sps:$4 sm:$0xff]  }
 0x249   :  { %v8593_v14 = vpop.f32.mrf.mxu0  ;;  %v8595_v56 = vpop.f32.mrf.mxu1  ;;  %4330 = vmatmul.mubr.bf16.gmra.mxu1 %v6978_v34  ;;  %4619 = vmatmul.mubr.bf16.gmra.mxu0 %v6981_v33  ;;  %v6992_v34 = vld [vmem:[%s10559_s0 + $0xb34] ss:$28 sps:$4 sm:$0xff]  }
 0x24a   :  { %10731 = vst [vmem:[#allocation116_spill] sm:$0xff] %v8593_v14  ;;  %10732 = vst [vmem:[#allocation117_spill] sm:$0xff] %v8595_v56  ;;  %4337 = vmatprep.mubr.bf16.mxu1 %v6986_v52  ;;  %4626 = vmatprep.mubr.bf16.mxu0 %v6989_v54  ;;  %v6990_v56 = vld [vmem:[%s10559_s0 + $0xb30] ss:$28 sps:$4 sm:$0xff]  }
 0x24b   :  { %v3724_v60 = vpop.f32.mrf.mxu0  ;;  %v4141_v37 = vpop.f32.mrf.mxu1 }
 0x24c   :  { %v6995_v37 = vld [vmem:[%s10559_s0 + $0x43c] ss:$28 sps:$4 sm:$0xff]  }
 0x24d   :  { %v8597_v31 = vpop.f32.mrf.mxu0  ;;  %v8599_v55 = vpop.f32.mrf.mxu1 }
 0x24e   :  { %10733 = vst [vmem:[#allocation118_spill] sm:$0xff] %v8597_v31  ;;  %10734 = vst [vmem:[#allocation119_spill] sm:$0xff] %v8599_v55 }
 0x24f   :  { %v3727_v33 = vpop.f32.mrf.mxu0  ;;  %v4144_v52 = vpop.f32.mrf.mxu1 }
 0x250   :  { %v6993_v33 = vld [vmem:[%s10559_s0 + $0x438] ss:$28 sps:$4 sm:$0xff]  }
 0x251   :  { %v8613_v54 = vpop.f32.mrf.mxu0  ;;  %v8615_v11 = vpop.f32.mrf.mxu1  ;;  %4338 = vmatmul.mubr.bf16.gmra.mxu1 %v6984_v57  ;;  %4627 = vmatmul.mubr.bf16.gmra.mxu0 %v6987_v51  ;;  %v6998_v57 = vld [vmem:[%s10559_s0 + $0xb6c] ss:$28 sps:$4 sm:$0xff]  }
 0x252   :  { %10735 = vst [vmem:[#allocation120_spill] sm:$0xff] %v8613_v54  ;;  %10736 = vst [vmem:[#allocation121_spill] sm:$0xff] %v8615_v11  ;;  %4345 = vmatprep.mubr.bf16.mxu1 %v6992_v34  ;;  %4634 = vmatprep.mubr.bf16.mxu0 %v6995_v37  ;;  %v6996_v11 = vld [vmem:[%s10559_s0 + $0xb68] ss:$28 sps:$4 sm:$0xff]  }
 0x253   :  { %v3732_v60 = vpop.f32.mrf.mxu0  ;;  %v4149_v31 = vpop.f32.mrf.mxu1 }
 0x254   :  { %v7001_v31 = vld [vmem:[%s10559_s0 + $0x474] ss:$28 sps:$4 sm:$0xff]  }
 0x255   :  { %v8617_v14 = vpop.f32.mrf.mxu0  ;;  %v8619_v55 = vpop.f32.mrf.mxu1 }
 0x256   :  { %10737 = vst [vmem:[#allocation122_spill] sm:$0xff] %v8617_v14  ;;  %10738 = vst [vmem:[#allocation123_spill] sm:$0xff] %v8619_v55 }
 0x257   :  { %v3735_v51 = vpop.f32.mrf.mxu0  ;;  %v4152_v34 = vpop.f32.mrf.mxu1 }
 0x258   :  { %v6999_v51 = vld [vmem:[%s10559_s0 + $0x470] ss:$28 sps:$4 sm:$0xff]  }
 0x259   :  { %v8633_v37 = vpop.f32.mrf.mxu0  ;;  %v8635_v52 = vpop.f32.mrf.mxu1  ;;  %4346 = vmatmul.mubr.bf16.gmra.mxu1 %v6990_v56  ;;  %4635 = vmatmul.mubr.bf16.gmra.mxu0 %v6993_v33  ;;  %v7004_v56 = vld [vmem:[%s10559_s0 + $0xba4] ss:$28 sps:$4 sm:$0xff]  }
 0x25a   :  { %10739 = vst [vmem:[#allocation124_spill] sm:$0xff] %v8633_v37  ;;  %10740 = vst [vmem:[#allocation125_spill] sm:$0xff] %v8635_v52  ;;  %4353 = vmatprep.mubr.bf16.mxu1 %v6998_v57  ;;  %4642 = vmatprep.mubr.bf16.mxu0 %v7001_v31  ;;  %v7002_v52 = vld [vmem:[%s10559_s0 + $0xba0] ss:$28 sps:$4 sm:$0xff]  }
 0x25b   :  { %v3740_v60 = vpop.f32.mrf.mxu0  ;;  %v4157_v14 = vpop.f32.mrf.mxu1 }
 0x25c   :  { %v7007_v14 = vld [vmem:[%s10559_s0 + $0x4ac] ss:$28 sps:$4 sm:$0xff]  }
 0x25d   :  { %v8637_v54 = vpop.f32.mrf.mxu0  ;;  %v8639_v55 = vpop.f32.mrf.mxu1 }
 0x25e   :  { %10741 = vst [vmem:[#allocation126_spill] sm:$0xff] %v8637_v54  ;;  %10742 = vst [vmem:[#allocation127_spill] sm:$0xff] %v8639_v55 }
 0x25f   :  { %v3743_v33 = vpop.f32.mrf.mxu0  ;;  %v4160_v57 = vpop.f32.mrf.mxu1 }
 0x260   :  { %v7005_v33 = vld [vmem:[%s10559_s0 + $0x4a8] ss:$28 sps:$4 sm:$0xff]  }
 0x261   :  { %v8653_v31 = vpop.f32.mrf.mxu0  ;;  %v8655_v34 = vpop.f32.mrf.mxu1  ;;  %4354 = vmatmul.mubr.bf16.gmra.mxu1 %v6996_v11  ;;  %4643 = vmatmul.mubr.bf16.gmra.mxu0 %v6999_v51  ;;  %v7010_v11 = vld [vmem:[%s10559_s0 + $0xbdc] ss:$28 sps:$4 sm:$0xff]  }
 0x262   :  { %10743 = vst [vmem:[#allocation128_spill] sm:$0xff] %v8653_v31  ;;  %10744 = vst [vmem:[#allocation129_spill] sm:$0xff] %v8655_v34  ;;  %4361 = vmatprep.mubr.bf16.mxu1 %v7004_v56  ;;  %4650 = vmatprep.mubr.bf16.mxu0 %v7007_v14  ;;  %v7008_v34 = vld [vmem:[%s10559_s0 + $0xbd8] ss:$28 sps:$4 sm:$0xff]  }
 0x263   :  { %v3748_v60 = vpop.f32.mrf.mxu0  ;;  %v4165_v54 = vpop.f32.mrf.mxu1 }
 0x264   :  { %v7013_v54 = vld [vmem:[%s10559_s0 + $0x4e4] ss:$28 sps:$4 sm:$0xff]  }
 0x265   :  { %v8657_v37 = vpop.f32.mrf.mxu0  ;;  %v8659_v55 = vpop.f32.mrf.mxu1 }
 0x266   :  { %10745 = vst [vmem:[#allocation130_spill] sm:$0xff] %v8657_v37  ;;  %10746 = vst [vmem:[#allocation131_spill] sm:$0xff] %v8659_v55 }
 0x267   :  { %v3751_v51 = vpop.f32.mrf.mxu0  ;;  %v4168_v56 = vpop.f32.mrf.mxu1 }
 0x268   :  { %v7011_v51 = vld [vmem:[%s10559_s0 + $0x4e0] ss:$28 sps:$4 sm:$0xff]  }
 0x269   :  { %v8673_v14 = vpop.f32.mrf.mxu0  ;;  %v8675_v57 = vpop.f32.mrf.mxu1  ;;  %4362 = vmatmul.mubr.bf16.gmra.mxu1 %v7002_v52  ;;  %4651 = vmatmul.mubr.bf16.gmra.mxu0 %v7005_v33  ;;  %v7016_v52 = vld [vmem:[%s10559_s0 + $0xc14] ss:$28 sps:$4 sm:$0xff]  }
 0x26a   :  { %10747 = vst [vmem:[#allocation132_spill] sm:$0xff] %v8673_v14  ;;  %10748 = vst [vmem:[#allocation133_spill] sm:$0xff] %v8675_v57  ;;  %4369 = vmatprep.mubr.bf16.mxu1 %v7010_v11  ;;  %4658 = vmatprep.mubr.bf16.mxu0 %v7013_v54  ;;  %v7014_v57 = vld [vmem:[%s10559_s0 + $0xc10] ss:$28 sps:$4 sm:$0xff]  }
 0x26b   :  { %v3756_v60 = vpop.f32.mrf.mxu0  ;;  %v4173_v37 = vpop.f32.mrf.mxu1 }
 0x26c   :  { %v7019_v37 = vld [vmem:[%s10559_s0 + $0x51c] ss:$28 sps:$4 sm:$0xff]  }
 0x26d   :  { %v8677_v31 = vpop.f32.mrf.mxu0  ;;  %v8679_v55 = vpop.f32.mrf.mxu1 }
 0x26e   :  { %10749 = vst [vmem:[#allocation134_spill] sm:$0xff] %v8677_v31  ;;  %10750 = vst [vmem:[#allocation135_spill] sm:$0xff] %v8679_v55 }
 0x26f   :  { %v3759_v33 = vpop.f32.mrf.mxu0  ;;  %v4176_v11 = vpop.f32.mrf.mxu1 }
 0x270   :  { %v7017_v33 = vld [vmem:[%s10559_s0 + $0x518] ss:$28 sps:$4 sm:$0xff]  }
 0x271   :  { %v8693_v54 = vpop.f32.mrf.mxu0  ;;  %v8695_v56 = vpop.f32.mrf.mxu1  ;;  %4370 = vmatmul.mubr.bf16.gmra.mxu1 %v7008_v34  ;;  %4659 = vmatmul.mubr.bf16.gmra.mxu0 %v7011_v51  ;;  %v7022_v34 = vld [vmem:[%s10559_s0 + $0xc4c] ss:$28 sps:$4 sm:$0xff]  }
 0x272   :  { %10751 = vst [vmem:[#allocation136_spill] sm:$0xff] %v8693_v54  ;;  %10752 = vst [vmem:[#allocation137_spill] sm:$0xff] %v8695_v56  ;;  %4377 = vmatprep.mubr.bf16.mxu1 %v7016_v52  ;;  %4666 = vmatprep.mubr.bf16.mxu0 %v7019_v37  ;;  %v7020_v56 = vld [vmem:[%s10559_s0 + $0xc48] ss:$28 sps:$4 sm:$0xff]  }
 0x273   :  { %v3764_v60 = vpop.f32.mrf.mxu0  ;;  %v4181_v31 = vpop.f32.mrf.mxu1 }
 0x274   :  { %v7025_v31 = vld [vmem:[%s10559_s0 + $0x554] ss:$28 sps:$4 sm:$0xff]  }
 0x275   :  { %v8697_v14 = vpop.f32.mrf.mxu0  ;;  %v8699_v55 = vpop.f32.mrf.mxu1 }
 0x276   :  { %10753 = vst [vmem:[#allocation138_spill] sm:$0xff] %v8697_v14  ;;  %10754 = vst [vmem:[#allocation139_spill] sm:$0xff] %v8699_v55 }
 0x277   :  { %v3767_v51 = vpop.f32.mrf.mxu0  ;;  %v4184_v52 = vpop.f32.mrf.mxu1 }
 0x278   :  { %v7023_v51 = vld [vmem:[%s10559_s0 + $0x550] ss:$28 sps:$4 sm:$0xff]  }
 0x279   :  { %v8713_v37 = vpop.f32.mrf.mxu0  ;;  %v8715_v11 = vpop.f32.mrf.mxu1  ;;  %4378 = vmatmul.mubr.bf16.gmra.mxu1 %v7014_v57  ;;  %4667 = vmatmul.mubr.bf16.gmra.mxu0 %v7017_v33  ;;  %v7028_v57 = vld [vmem:[%s10559_s0 + $0xc84] ss:$28 sps:$4 sm:$0xff]  }
 0x27a   :  { %10755 = vst [vmem:[#allocation140_spill] sm:$0xff] %v8713_v37  ;;  %10756 = vst [vmem:[#allocation141_spill] sm:$0xff] %v8715_v11  ;;  %4385 = vmatprep.mubr.bf16.mxu1 %v7022_v34  ;;  %4674 = vmatprep.mubr.bf16.mxu0 %v7025_v31  ;;  %v3940_v31 = vadd.f32 %v8095_v23, %v7763_v24  ;;  %v3943_v11 = vadd.f32 %v8099_v32, %v7773_v30  ;;  %v7026_v24 = vld [vmem:[%s10559_s0 + $0xc80] ss:$28 sps:$4 sm:$0xff]   ;;  %v7029_v23 = vld [vmem:[%s10559_s0 + $0x588] ss:$28 sps:$4 sm:$0xff]  }
 0x27b   :  { %v3772_v60 = vpop.f32.mrf.mxu0  ;;  %v4189_v14 = vpop.f32.mrf.mxu1  ;;  %v7037_v30 = vld [vmem:[%s10559_s0 + $0x5c4] ss:$28 sps:$4 sm:$0xff]  }
 0x27c   :  { %v7031_v14 = vld [vmem:[%s10559_s0 + $0x58c] ss:$28 sps:$4 sm:$0xff]  }
 0x27d   :  { %v8717_v54 = vpop.f32.mrf.mxu0  ;;  %v8719_v55 = vpop.f32.mrf.mxu1 }
 0x27e   :  { %10757 = vst [vmem:[#allocation142_spill] sm:$0xff] %v8717_v54  ;;  %10758 = vst [vmem:[#allocation143_spill] sm:$0xff] %v8719_v55 }
 0x27f   :  { %v3775_v33 = vpop.f32.mrf.mxu0  ;;  %v4192_v34 = vpop.f32.mrf.mxu1 }
 0x281   :  { %v8735_v52 = vpop.f32.mrf.mxu1  ;;  %4386 = vmatmul.mubr.bf16.gmra.mxu1 %v7020_v56  ;;  %v4484_v60 = vpop.f32.mrf.mxu0  ;;  %4675 = vmatmul.mubr.bf16.gmra.mxu0 %v7023_v51  ;;  %v3948_v51 = vadd.f32 %v8115_v18, %v7783_v36  ;;  %v7032_v36 = vld [vmem:[%s10559_s0 + $0xcb8] ss:$28 sps:$4 sm:$0xff]   ;;  %v7035_v18 = vld [vmem:[%s10559_s0 + $0x5c0] ss:$28 sps:$4 sm:$0xff]  }
 0x282   :  { %v8737_v54 = vadd.f32 %v4484_v60, %v3940_v31  ;;  %4393 = vmatprep.mubr.bf16.mxu1 %v7028_v57  ;;  %4682 = vmatprep.mubr.bf16.mxu0 %v7031_v14  ;;  %v3951_v60 = vadd.f32 %v8119_v15, %v7793_v42  ;;  %v7043_v42 = vld [vmem:[%s10559_s0 + $0x5fc] ss:$28 sps:$4 sm:$0xff]  }
 0x283   :  { %v4197_v37 = vpop.f32.mrf.mxu1  ;;  %v4486_v55 = vpop.f32.mrf.mxu0 }
 0x284   :  { %v7034_v55 = vld [vmem:[%s10559_s0 + $0xcbc] ss:$28 sps:$4 sm:$0xff]  }
 0x285   :  { %v8741_v17 = vpop.f32.mrf.mxu1  ;;  %v4487_v33 = vpop.f32.mrf.mxu0 }
 0x286   :  { %v8749_v56 = vadd.f32 %v4487_v33, %v3943_v11 }
 0x287   :  { %v4200_v32 = vpop.f32.mrf.mxu1  ;;  %v4489_v37 = vpop.f32.mrf.mxu0 }
 0x289   :  { %v8759_v57 = vpop.f32.mrf.mxu1  ;;  %4394 = vmatmul.mubr.bf16.gmra.mxu1 %v7026_v24  ;;  %v4492_v14 = vpop.f32.mrf.mxu0  ;;  %4683 = vmatmul.mubr.bf16.gmra.mxu0 %v7029_v23  ;;  %v7040_v23 = vld [vmem:[%s10559_s0 + $0xcf4] ss:$28 sps:$4 sm:$0xff]  }
 0x28a   :  { %v8761_v11 = vadd.f32 %v4492_v14, %v3948_v51  ;;  %4401 = vmatprep.mubr.bf16.mxu1 %v7034_v55  ;;  %4690 = vmatprep.mubr.bf16.mxu0 %v7037_v30  ;;  %v3956_v30 = vadd.f32 %v8135_v44, %v7803_v48  ;;  %v7038_v48 = vld [vmem:[%s10559_s0 + $0xcf0] ss:$28 sps:$4 sm:$0xff]   ;;  %v7041_v44 = vld [vmem:[%s10559_s0 + $0x5f8] ss:$28 sps:$4 sm:$0xff]  }
 0x28b   :  { %v4205_v34 = vpop.f32.mrf.mxu1  ;;  %v4494_v31 = vpop.f32.mrf.mxu0 }
 0x28d   :  { %v8765_v33 = vpop.f32.mrf.mxu1  ;;  %v4495_v32 = vpop.f32.mrf.mxu0 }
 0x28e   :  { %v8773_v24 = vadd.f32 %v4495_v32, %v3951_v60  ;;  %v3959_v60 = vadd.f32 %v8139_v41, %v7810_v53  ;;  %v7049_v53 = vld [vmem:[%s10559_s0 + $0x634] ss:$28 sps:$4 sm:$0xff]  }
 0x28f   :  { %v4208_v15 = vpop.f32.mrf.mxu1  ;;  %v4497_v55 = vpop.f32.mrf.mxu0 }
 0x291   :  { %v8783_v37 = vpop.f32.mrf.mxu1  ;;  %4402 = vmatmul.mubr.bf16.gmra.mxu1 %v7032_v36  ;;  %v4500_v51 = vpop.f32.mrf.mxu0  ;;  %4691 = vmatmul.mubr.bf16.gmra.mxu0 %v7035_v18  ;;  %v7046_v18 = vld [vmem:[%s10559_s0 + $0xd2c] ss:$28 sps:$4 sm:$0xff]  }
 0x292   :  { %v8785_v14 = vadd.f32 %v4500_v51, %v3956_v30  ;;  %4409 = vmatprep.mubr.bf16.mxu1 %v7040_v23  ;;  %4698 = vmatprep.mubr.bf16.mxu0 %v7043_v42  ;;  %v3964_v42 = vadd.f32 %v8155_v4, %v7827_v61  ;;  %v7044_v61 = vld [vmem:[%s10559_s0 + $0xd28] ss:$28 sps:$4 sm:$0xff]   ;;  %v7047_v4 = vld [vmem:[%s10559_s0 + $0x630] ss:$28 sps:$4 sm:$0xff]  }
 0x293   :  { %v4213_v34 = vpop.f32.mrf.mxu1  ;;  %v4502_v31 = vpop.f32.mrf.mxu0 }
 0x295   :  { %v8789_v32 = vpop.f32.mrf.mxu1  ;;  %v4503_v15 = vpop.f32.mrf.mxu0 }
 0x296   :  { %v8797_v36 = vadd.f32 %v4503_v15, %v3959_v60  ;;  %v3967_v60 = vadd.f32 %v8159_v22, %v7831_v1  ;;  %v7055_v1 = vld [vmem:[%s10559_s0 + $0x66c] ss:$28 sps:$4 sm:$0xff]  }
 0x297   :  { %v4216_v41 = vpop.f32.mrf.mxu1  ;;  %v4505_v23 = vpop.f32.mrf.mxu0 }
 0x299   :  { %v8807_v55 = vpop.f32.mrf.mxu1  ;;  %4410 = vmatmul.mubr.bf16.gmra.mxu1 %v7038_v48  ;;  %v4508_v30 = vpop.f32.mrf.mxu0  ;;  %4699 = vmatmul.mubr.bf16.gmra.mxu0 %v7041_v44  ;;  %v7052_v44 = vld [vmem:[%s10559_s0 + $0xd64] ss:$28 sps:$4 sm:$0xff]  }
 0x29a   :  { %v8809_v51 = vadd.f32 %v4508_v30, %v3964_v42  ;;  %4417 = vmatprep.mubr.bf16.mxu1 %v7046_v18  ;;  %4706 = vmatprep.mubr.bf16.mxu0 %v7049_v53  ;;  %v3972_v53 = vadd.f32 %v8175_v50, %v7847_v9  ;;  %v7050_v9 = vld [vmem:[%s10559_s0 + $0xd60] ss:$28 sps:$4 sm:$0xff]   ;;  %v7053_v50 = vld [vmem:[%s10559_s0 + $0x668] ss:$28 sps:$4 sm:$0xff]  }
 0x29b   :  { %v4221_v34 = vpop.f32.mrf.mxu1  ;;  %v4510_v31 = vpop.f32.mrf.mxu0 }
 0x29d   :  { %v8813_v15 = vpop.f32.mrf.mxu1  ;;  %v4511_v41 = vpop.f32.mrf.mxu0 }
 0x29e   :  { %v8821_v48 = vadd.f32 %v4511_v41, %v3967_v60  ;;  %v3975_v60 = vadd.f32 %v8179_v49, %v7851_v13  ;;  %v7061_v49 = vld [vmem:[%s10559_s0 + $0x6a4] ss:$28 sps:$4 sm:$0xff]  }
 0x29f   :  { %v4224_v22 = vpop.f32.mrf.mxu1  ;;  %v4513_v18 = vpop.f32.mrf.mxu0 }
 0x2a1   :  { %v8831_v23 = vpop.f32.mrf.mxu1  ;;  %4418 = vmatmul.mubr.bf16.gmra.mxu1 %v7044_v61  ;;  %v4516_v42 = vpop.f32.mrf.mxu0  ;;  %4707 = vmatmul.mubr.bf16.gmra.mxu0 %v7047_v4  ;;  %v7058_v4 = vld [vmem:[%s10559_s0 + $0xd9c] ss:$28 sps:$4 sm:$0xff]  }
 0x2a2   :  { %v8833_v30 = vadd.f32 %v4516_v42, %v3972_v53  ;;  %4425 = vmatprep.mubr.bf16.mxu1 %v7052_v44  ;;  %4714 = vmatprep.mubr.bf16.mxu0 %v7055_v1  ;;  %v3980_v1 = vadd.f32 %v8195_v47, %v7867_v21  ;;  %v7056_v21 = vld [vmem:[%s10559_s0 + $0xd98] ss:$28 sps:$4 sm:$0xff]   ;;  %v7059_v47 = vld [vmem:[%s10559_s0 + $0x6a0] ss:$28 sps:$4 sm:$0xff]  }
 0x2a3   :  { %v4229_v34 = vpop.f32.mrf.mxu1  ;;  %v4518_v31 = vpop.f32.mrf.mxu0 }
 0x2a5   :  { %v8837_v41 = vpop.f32.mrf.mxu1  ;;  %v4519_v22 = vpop.f32.mrf.mxu0 }
 0x2a6   :  { %v8845_v61 = vadd.f32 %v4519_v22, %v3975_v60  ;;  %v3983_v60 = vadd.f32 %v8199_v25, %v7874_v28  ;;  %v7067_v25 = vld [vmem:[%s10559_s0 + $0x6dc] ss:$28 sps:$4 sm:$0xff]  }
 0x2a7   :  { %v4232_v13 = vpop.f32.mrf.mxu1  ;;  %v4521_v44 = vpop.f32.mrf.mxu0 }
 0x2a9   :  { %v8855_v18 = vpop.f32.mrf.mxu1  ;;  %4426 = vmatmul.mubr.bf16.gmra.mxu1 %v7050_v9  ;;  %v4524_v53 = vpop.f32.mrf.mxu0  ;;  %4715 = vmatmul.mubr.bf16.gmra.mxu0 %v7053_v50  ;;  %v7064_v50 = vld [vmem:[%s10559_s0 + $0xdd4] ss:$28 sps:$4 sm:$0xff]  }
 0x2aa   :  { %v8857_v42 = vadd.f32 %v4524_v53, %v3980_v1  ;;  %4433 = vmatprep.mubr.bf16.mxu1 %v7058_v4  ;;  %4722 = vmatprep.mubr.bf16.mxu0 %v7061_v49  ;;  %v3988_v49 = vadd.f32 %v8215_v29, %v7890_v40  ;;  %v7062_v40 = vld [vmem:[%s10559_s0 + $0xdd0] ss:$28 sps:$4 sm:$0xff]   ;;  %v7065_v29 = vld [vmem:[%s10559_s0 + $0x6d8] ss:$28 sps:$4 sm:$0xff]  }
 0x2ab   :  { %v4237_v34 = vpop.f32.mrf.mxu1  ;;  %v4526_v31 = vpop.f32.mrf.mxu0 }
 0x2ad   :  { %v8861_v22 = vpop.f32.mrf.mxu1  ;;  %v4527_v13 = vpop.f32.mrf.mxu0 }
 0x2ae   :  { %v8869_v9 = vadd.f32 %v4527_v13, %v3983_v60  ;;  %v3991_v60 = vadd.f32 %v8219_v3, %v7894_v46  ;;  %v7071_v46 = vld [vmem:[%s10559_s0 + $0x18] ss:$28 sps:$4 sm:$0xff]  }
 0x2af   :  { %v4240_v28 = vpop.f32.mrf.mxu1  ;;  %v4529_v4 = vpop.f32.mrf.mxu0 }
 0x2b1   :  { %v8879_v44 = vpop.f32.mrf.mxu1  ;;  %4434 = vmatmul.mubr.bf16.gmra.mxu1 %v7056_v21  ;;  %v4532_v1 = vpop.f32.mrf.mxu0  ;;  %4723 = vmatmul.mubr.bf16.gmra.mxu0 %v7059_v47  ;;  %v7070_v47 = vld [vmem:[%s10559_s0 + $0x714] ss:$28 sps:$4 sm:$0xff]  }
 0x2b2   :  { %v8881_v53 = vadd.f32 %v4532_v1, %v3988_v49  ;;  %4441 = vmatprep.mubr.bf16.mxu1 %v7064_v50  ;;  %4730 = vmatprep.mubr.bf16.mxu0 %v7067_v25  ;;  %v3996_v25 = vadd.f32 %v8235_v2, %v7910_v58  ;;  %v7068_v58 = vld [vmem:[%s10559_s0 + $0x710] ss:$28 sps:$4 sm:$0xff]  }
 0x2b3   :  { %v4245_v34 = vpop.f32.mrf.mxu1  ;;  %v4534_v31 = vpop.f32.mrf.mxu0  ;;  %v7072_v2 = vld [vmem:[%s10559_s0 + $0x50] ss:$28 sps:$4 sm:$0xff]  }
 0x2b5   :  { %v8885_v13 = vpop.f32.mrf.mxu1  ;;  %v4535_v28 = vpop.f32.mrf.mxu0 }
 0x2b6   :  { %v8893_v21 = vadd.f32 %v4535_v28, %v3991_v60  ;;  %v3999_v60 = vadd.f32 %v8239_v20, %v7914_v0  ;;  %v7076_v0 = vld [vmem:[%s10559_s0 + $0x88] ss:$28 sps:$4 sm:$0xff]  }
 0x2b7   :  { %v4248_v3 = vpop.f32.mrf.mxu1  ;;  %v4537_v50 = vpop.f32.mrf.mxu0 }
 0x2b9   :  { %v8903_v4 = vpop.f32.mrf.mxu1  ;;  %4442 = vmatmul.mubr.bf16.gmra.mxu1 %v7062_v40  ;;  %v4540_v49 = vpop.f32.mrf.mxu0  ;;  %4731 = vmatmul.mubr.bf16.gmra.mxu0 %v7065_v29  ;;  %v7075_v29 = vld [vmem:[%s10559_s0 + $0x74c] ss:$28 sps:$4 sm:$0xff]  }
 0x2ba   :  { %v8905_v1 = vadd.f32 %v4540_v49, %v3996_v25  ;;  %4738 = vmatprep.mubr.bf16.mxu0 %v7070_v47  ;;  %6377 = vmatprep.mubr.msk.bf16.mxu1 %vm3167_vm0, %v7071_v46  ;;  %v4004_v46 = vadd.f32 %v8255_v43, %v7930_v12  ;;  %v7073_v12 = vld [vmem:[%s10559_s0 + $0x748] ss:$28 sps:$4 sm:$0xff]   ;;  %v7077_v43 = vld [vmem:[%s10559_s0 + $0xc0] ss:$28 sps:$4 sm:$0xff]  }
 0x2bb   :  { %v4253_v34 = vpop.f32.mrf.mxu1  ;;  %v4542_v31 = vpop.f32.mrf.mxu0 }
 0x2bd   :  { %v8910_v28 = vpop.f32.mrf.mxu1  ;;  %v4543_v3 = vpop.f32.mrf.mxu0 }
 0x2be   :  { %v8918_v40 = vadd.f32 %v4543_v3, %v3999_v60  ;;  %v4007_v60 = vadd.f32 %v8259_v8, %v7937_v19  ;;  %v7081_v19 = vld [vmem:[%s10559_s0 + $0xf8] ss:$28 sps:$4 sm:$0xff]  }
 0x2bf   :  { %v4256_v20 = vpop.f32.mrf.mxu1  ;;  %v4545_v47 = vpop.f32.mrf.mxu0 }
 0x2c1   :  { %v8928_v50 = vpop.f32.mrf.mxu1  ;;  %v4548_v25 = vpop.f32.mrf.mxu0  ;;  %4739 = vmatmul.mubr.bf16.gmra.mxu0 %v7068_v58  ;;  %6378 = vmatmul.mubr.msk.bf16.vlgmr.msra.gmra.mxu1 %vm3167_vm0, %v7072_v2  ;;  %v7080_v2 = vld [vmem:[%s10559_s0 + $0x784] ss:$28 sps:$4 sm:$0xff]  }
 0x2c2   :  { %10759 = vst [vmem:[#allocation144_spill] sm:$0xff] %v8928_v50  ;;  %v8931_v49 = vadd.f32 %v4548_v25, %v4004_v46  ;;  %4746 = vmatprep.mubr.bf16.mxu0 %v7075_v29  ;;  %6381 = vmatprep.mubr.msk.bf16.mxu1 %vm3167_vm0, %v7076_v0  ;;  %v4012_v0 = vadd.f32 %v8275_v62, %v7953_v35  ;;  %v7078_v35 = vld [vmem:[%s10559_s0 + $0x780] ss:$28 sps:$4 sm:$0xff]   ;;  %v7082_v62 = vld [vmem:[%s10559_s0 + $0x130] ss:$28 sps:$4 sm:$0xff]  }
 0x2c3   :  { %v4261_v34 = vpop.f32.mrf.mxu1  ;;  %v4550_v31 = vpop.f32.mrf.mxu0 }
 0x2c5   :  { %v8936_v3 = vpop.f32.mrf.mxu1  ;;  %v4551_v20 = vpop.f32.mrf.mxu0 }
 0x2c6   :  { %10760 = vst [vmem:[#allocation145_spill] sm:$0xff] %v8936_v3  ;;  %v8944_v58 = vadd.f32 %v4551_v20, %v4007_v60  ;;  %v4015_v60 = vadd.f32 %v8279_v6, %v7957_v45  ;;  %v7086_v45 = vld [vmem:[%s10559_s0 + $0x168] ss:$28 sps:$4 sm:$0xff]  }
 0x2c7   :  { %v4264_v8 = vpop.f32.mrf.mxu1  ;;  %v4553_v29 = vpop.f32.mrf.mxu0 }
 0x2c9   :  { %v8954_v47 = vpop.f32.mrf.mxu1  ;;  %v4556_v46 = vpop.f32.mrf.mxu0  ;;  %4747 = vmatmul.mubr.bf16.gmra.mxu0 %v7073_v12  ;;  %6382 = vmatmul.mubr.msk.bf16.gmra.mxu1 %vm3167_vm0, %v7077_v43  ;;  %v7085_v43 = vld [vmem:[%s10559_s0 + $0x7bc] ss:$28 sps:$4 sm:$0xff]  }
 0x2ca   :  { %10761 = vst [vmem:[#allocation146_spill] sm:$0xff] %v8954_v47  ;;  %v8957_v25 = vadd.f32 %v4556_v46, %v4012_v0  ;;  %4754 = vmatprep.mubr.bf16.mxu0 %v7080_v2  ;;  %6385 = vmatprep.mubr.msk.bf16.mxu1 %vm3167_vm0, %v7081_v19  ;;  %v4020_v19 = vadd.f32 %v8295_v10, %v7973_v63  ;;  %v7083_v63 = vld [vmem:[%s10559_s0 + $0x7b8] ss:$28 sps:$4 sm:$0xff]   ;;  %v7087_v10 = vld [vmem:[%s10559_s0 + $0x1a0] ss:$28 sps:$4 sm:$0xff]   ;;  %v10788_v47 = vld [vmem:[#allocation79_spill] sm:$0xff] }
 0x2cb   :  { %v4269_v34 = vpop.f32.mrf.mxu1  ;;  %v4558_v31 = vpop.f32.mrf.mxu0 }
 0x2cd   :  { %v8962_v20 = vpop.f32.mrf.mxu1  ;;  %v4559_v8 = vpop.f32.mrf.mxu0 }
 0x2ce   :  { %10762 = vst [vmem:[#allocation147_spill] sm:$0xff] %v8962_v20  ;;  %v8970_v12 = vadd.f32 %v4559_v8, %v4015_v60  ;;  %v4023_v60 = vadd.f32 %v8299_v16, %v7977_v7  ;;  %v7091_v7 = vld [vmem:[%s10559_s0 + $0x1d8] ss:$28 sps:$4 sm:$0xff]  }
 0x2cf   :  { %v4272_v6 = vpop.f32.mrf.mxu1  ;;  %v4561_v2 = vpop.f32.mrf.mxu0 }
 0x2d1   :  { %v8980_v29 = vpop.f32.mrf.mxu1  ;;  %v4564_v0 = vpop.f32.mrf.mxu0  ;;  %4755 = vmatmul.mubr.bf16.gmra.mxu0 %v7078_v35  ;;  %6386 = vmatmul.mubr.msk.bf16.gmra.mxu1 %vm3167_vm0, %v7082_v62  ;;  %v7090_v62 = vld [vmem:[%s10559_s0 + $0x7f4] ss:$28 sps:$4 sm:$0xff]  }
 0x2d2   :  { %10763 = vst [vmem:[#allocation148_spill] sm:$0xff] %v8980_v29  ;;  %v8983_v46 = vadd.f32 %v4564_v0, %v4020_v19  ;;  %4762 = vmatprep.mubr.bf16.mxu0 %v7085_v43  ;;  %6389 = vmatprep.mubr.msk.bf16.mxu1 %vm3167_vm0, %v7086_v45  ;;  %v4028_v45 = vadd.f32 %v8315_v59, %v7993_v27  ;;  %v7088_v27 = vld [vmem:[%s10559_s0 + $0x7f0] ss:$28 sps:$4 sm:$0xff]  }
 0x2d3   :  { %v4277_v34 = vpop.f32.mrf.mxu1  ;;  %v4566_v31 = vpop.f32.mrf.mxu0  ;;  %v7092_v59 = vld [vmem:[%s10559_s0 + $0x210] ss:$28 sps:$4 sm:$0xff]  }
 0x2d4   :  { %v10781_v29 = vld [vmem:[#allocation75_spill] sm:$0xff] }
 0x2d5   :  { %v8988_v8 = vpop.f32.mrf.mxu1  ;;  %v4567_v6 = vpop.f32.mrf.mxu0 }
 0x2d6   :  { %10764 = vst [vmem:[#allocation149_spill] sm:$0xff] %v8988_v8  ;;  %v8996_v35 = vadd.f32 %v4567_v6, %v4023_v60  ;;  %v4031_v60 = vadd.f32 %v8319_v26, %v7997_v39  ;;  %v7096_v39 = vld [vmem:[%s10559_s0 + $0x248] ss:$28 sps:$4 sm:$0xff]  }
 0x2d7   :  { %v4280_v16 = vpop.f32.mrf.mxu1  ;;  %v4569_v43 = vpop.f32.mrf.mxu0 }
 0x2d9   :  { %v9006_v2 = vpop.f32.mrf.mxu1  ;;  %v4572_v19 = vpop.f32.mrf.mxu0  ;;  %4763 = vmatmul.mubr.bf16.gmra.mxu0 %v7083_v63  ;;  %6390 = vmatmul.mubr.msk.bf16.gmra.mxu1 %vm3167_vm0, %v7087_v10  ;;  %v7095_v10 = vld [vmem:[%s10559_s0 + $0x82c] ss:$28 sps:$4 sm:$0xff]  }
 0x2da   :  { %10765 = vst [vmem:[#allocation150_spill] sm:$0xff] %v9006_v2  ;;  %v9009_v0 = vadd.f32 %v4572_v19, %v4028_v45  ;;  %4770 = vmatprep.mubr.bf16.mxu0 %v7090_v62  ;;  %6393 = vmatprep.mubr.msk.bf16.mxu1 %vm3167_vm0, %v7091_v7  ;;  %v4036_v7 = vadd.f32 %v8335_v38, %v8013_v5  ;;  %v7093_v5 = vld [vmem:[%s10559_s0 + $0x828] ss:$28 sps:$4 sm:$0xff]   ;;  %v7097_v38 = vld [vmem:[%s10559_s0 + $0x280] ss:$28 sps:$4 sm:$0xff]  }
 0x2db   :  { %v4285_v34 = vpop.f32.mrf.mxu1  ;;  %v4574_v31 = vpop.f32.mrf.mxu0  ;;  %v10775_v2 = vld [vmem:[#allocation71_spill] sm:$0xff] }
 0x2dd   :  { %v9014_v6 = vpop.f32.mrf.mxu1  ;;  %v4575_v16 = vpop.f32.mrf.mxu0 }
 0x2de   :  { %10766 = vst [vmem:[#allocation151_spill] sm:$0xff] %v9014_v6  ;;  %v9022_v63 = vadd.f32 %v4575_v16, %v4031_v60  ;;  %v10768_v60 = vld [vmem:[#allocation27_spill] sm:$0xff] }
 0x2df   :  { %v4288_v26 = vpop.f32.mrf.mxu1  ;;  %v4577_v62 = vpop.f32.mrf.mxu0  ;;  %v10769_v16 = vld [vmem:[#allocation67_spill] sm:$0xff] }
 0x2e0   :  { %v4039_v26 = vadd.f32 %v10769_v16, %v10768_v60 }
 0x2e1   :  { %v9032_v43 = vpop.f32.mrf.mxu1  ;;  %v4580_v45 = vpop.f32.mrf.mxu0  ;;  %4771 = vmatmul.mubr.bf16.gmra.mxu0 %v7088_v27  ;;  %6394 = vmatmul.mubr.msk.bf16.gmra.mxu1 %vm3167_vm0, %v7092_v59  ;;  %v7100_v59 = vld [vmem:[%s10559_s0 + $0x864] ss:$28 sps:$4 sm:$0xff]  }
 0x2e2   :  { %10767 = vst [vmem:[#allocation152_spill] sm:$0xff] %v9032_v43  ;;  %v9035_v19 = vadd.f32 %v4580_v45, %v4036_v7  ;;  %4778 = vmatprep.mubr.bf16.mxu0 %v7095_v10  ;;  %6397 = vmatprep.mubr.msk.bf16.mxu1 %vm3167_vm0, %v7096_v39  ;;  %v7101_v10 = vld [vmem:[%s10559_s0 + $0x2b8] ss:$28 sps:$4 sm:$0xff]   ;;  %v10774_v43 = vld [vmem:[#allocation31_spill] sm:$0xff] }
 0x2e3   :  { %v4293_v34 = vpop.f32.mrf.mxu1  ;;  %v4582_v31 = vpop.f32.mrf.mxu0  ;;  %v10771_v45 = vld [vmem:[#allocation29_spill] sm:$0xff] }
 0x2e4   :  { %v10772_v34 = vld [vmem:[#allocation69_spill] sm:$0xff] }
 0x2e5   :  { %v9040_v62 = vpop.f32.mrf.mxu1  ;;  %v4583_v6 = vpop.f32.mrf.mxu0  ;;  %v4044_v31 = vadd.f32 %v10772_v34, %v10771_v45  ;;  %v7098_v45 = vld [vmem:[%s10559_s0 + $0x860] ss:$28 sps:$4 sm:$0xff]  }
 0x2e6   :  { %10770 = vst [vmem:[#allocation27_spill] sm:$0xff] %v9040_v62  ;;  %v9048_v27 = vadd.f32 %v4583_v6, %v4039_v26  ;;  %v10778_v34 = vld [vmem:[#allocation73_spill] sm:$0xff] }
 0x2e7   :  { %v4296_v39 = vpop.f32.mrf.mxu1  ;;  %v4585_v7 = vpop.f32.mrf.mxu0 }
 0x2e8   :  { %v4047_v39 = vadd.f32 %v10775_v2, %v10774_v43  ;;  %v7106_v2 = vld [vmem:[%s10559_s0 + $0x328] ss:$28 sps:$4 sm:$0xff]  }
 0x2e9   :  { %v9058_v60 = vpop.f32.mrf.mxu1  ;;  %v4588_v16 = vpop.f32.mrf.mxu0  ;;  %4779 = vmatmul.mubr.bf16.gmra.mxu0 %v7093_v5  ;;  %6398 = vmatmul.mubr.msk.bf16.gmra.mxu1 %vm3167_vm0, %v7097_v38  ;;  %v7102_v5 = vld [vmem:[%s10559_s0 + $0x2f0] ss:$28 sps:$4 sm:$0xff]  }
 0x2ea   :  { %10773 = vst [vmem:[#allocation67_spill] sm:$0xff] %v9058_v60  ;;  %v9061_v6 = vadd.f32 %v4588_v16, %v4044_v31  ;;  %4786 = vmatprep.mubr.bf16.mxu0 %v7100_v59  ;;  %6401 = vmatprep.mubr.msk.bf16.mxu1 %vm3167_vm0, %v7101_v10  ;;  %v10777_v10 = vld [vmem:[#allocation33_spill] sm:$0xff]  ;;  %v10780_v60 = vld [vmem:[#allocation35_spill] sm:$0xff] }
 0x2eb   :  { %v4301_v26 = vpop.f32.mrf.mxu1  ;;  %v4590_v62 = vpop.f32.mrf.mxu0  ;;  %v4052_v31 = vadd.f32 %v10778_v34, %v10777_v10  ;;  %v7103_v10 = vld [vmem:[%s10559_s0 + $0x898] ss:$28 sps:$4 sm:$0xff]  }
 0x2ec   :  { %v7105_v62 = vld [vmem:[%s10559_s0 + $0x89c] ss:$28 sps:$4 sm:$0xff]  }
 0x2ed   :  { %v9066_v7 = vpop.f32.mrf.mxu1  ;;  %v4591_v8 = vpop.f32.mrf.mxu0  ;;  %v10785_v34 = vld [vmem:[#allocation77_spill] sm:$0xff] }
 0x2ee   :  { %10776 = vst [vmem:[#allocation29_spill] sm:$0xff] %v9066_v7  ;;  %v9074_v38 = vadd.f32 %v4591_v8, %v4047_v39 }
 0x2ef   :  { %v4304_v43 = vpop.f32.mrf.mxu1  ;;  %v4593_v59 = vpop.f32.mrf.mxu0 }
 0x2f0   :  { %v4055_v43 = vadd.f32 %v10781_v29, %v10780_v60  ;;  %v7111_v29 = vld [vmem:[%s10559_s0 + $0x398] ss:$28 sps:$4 sm:$0xff]  }
 0x2f1   :  { %v9084_v16 = vpop.f32.mrf.mxu1  ;;  %v4596_v26 = vpop.f32.mrf.mxu0  ;;  %4787 = vmatmul.mubr.bf16.gmra.mxu0 %v7098_v45  ;;  %6402 = vmatmul.mubr.msk.bf16.gmra.mxu1 %vm3167_vm0, %v7102_v5  ;;  %v7107_v45 = vld [vmem:[%s10559_s0 + $0x360] ss:$28 sps:$4 sm:$0xff]  }
 0x2f2   :  { %10779 = vst [vmem:[#allocation69_spill] sm:$0xff] %v9084_v16  ;;  %v9087_v8 = vadd.f32 %v4596_v26, %v4052_v31  ;;  %4794 = vmatprep.mubr.bf16.mxu0 %v7105_v62  ;;  %6405 = vmatprep.mubr.msk.bf16.mxu1 %vm3167_vm0, %v7106_v2  ;;  %v10784_v2 = vld [vmem:[#allocation37_spill] sm:$0xff]  ;;  %v10787_v16 = vld [vmem:[#allocation39_spill] sm:$0xff] }
 0x2f3   :  { %v4309_v39 = vpop.f32.mrf.mxu1  ;;  %v4598_v7 = vpop.f32.mrf.mxu0  ;;  %v4060_v31 = vadd.f32 %v10785_v34, %v10784_v2  ;;  %v7108_v2 = vld [vmem:[%s10559_s0 + $0x8d0] ss:$28 sps:$4 sm:$0xff]   ;;  %v10791_v34 = vld [vmem:[#allocation81_spill] sm:$0xff] }
 0x2f4   :  { %v7110_v7 = vld [vmem:[%s10559_s0 + $0x8d4] ss:$28 sps:$4 sm:$0xff]  }
 0x2f5   :  { %v9092_v59 = vpop.f32.mrf.mxu1  ;;  %v4599_v20 = vpop.f32.mrf.mxu0 }
 0x2f6   :  { %10782 = vst [vmem:[#allocation31_spill] sm:$0xff] %v9092_v59  ;;  %v9100_v5 = vadd.f32 %v4599_v20, %v4055_v43 }
 0x2f7   :  { %v4312_v60 = vpop.f32.mrf.mxu1  ;;  %v4601_v62 = vpop.f32.mrf.mxu0 }
 0x2f8   :  { %10783 = vst [vmem:[#allocation71_spill] sm:$0xff] %v9100_v5  ;;  %v4063_v60 = vadd.f32 %v10788_v47, %v10787_v16  ;;  %v7116_v47 = vld [vmem:[%s10559_s0 + $0x408] ss:$28 sps:$4 sm:$0xff]  }
 0x2f9   :  { %v9110_v26 = vpop.f32.mrf.mxu1  ;;  %v4604_v39 = vpop.f32.mrf.mxu0  ;;  %4795 = vmatmul.mubr.bf16.gmra.mxu0 %v7103_v10  ;;  %6406 = vmatmul.mubr.msk.bf16.gmra.mxu1 %vm3167_vm0, %v7107_v45  ;;  %v7112_v10 = vld [vmem:[%s10559_s0 + $0x3d0] ss:$28 sps:$4 sm:$0xff]  }
 0x2fa   :  { %10786 = vst [vmem:[#allocation33_spill] sm:$0xff] %v9110_v26  ;;  %v9113_v20 = vadd.f32 %v4604_v39, %v4060_v31  ;;  %4802 = vmatprep.mubr.bf16.mxu0 %v7110_v7  ;;  %6409 = vmatprep.mubr.msk.bf16.mxu1 %vm3167_vm0, %v7111_v29  ;;  %v10790_v29 = vld [vmem:[#allocation41_spill] sm:$0xff]  ;;  %v10794_v26 = vld [vmem:[#allocation42_spill] sm:$0xff]  ;;  %v10795_v5 = vld [vmem:[#allocation83_spill] sm:$0xff] }
 0x2fb   :  { %v4317_v43 = vpop.f32.mrf.mxu1  ;;  %v4606_v59 = vpop.f32.mrf.mxu0  ;;  %v4068_v31 = vadd.f32 %v10791_v34, %v10790_v29  ;;  %v7113_v29 = vld [vmem:[%s10559_s0 + $0x908] ss:$28 sps:$4 sm:$0xff]   ;;  %v10799_v34 = vld [vmem:[#allocation85_spill] sm:$0xff] }
 0x2fc   :  { %v7115_v59 = vld [vmem:[%s10559_s0 + $0x90c] ss:$28 sps:$4 sm:$0xff]  }
 0x2fd   :  { %v9118_v62 = vpop.f32.mrf.mxu1  ;;  %v4607_v3 = vpop.f32.mrf.mxu0 }
 0x2fe   :  { %10789 = vst [vmem:[#allocation73_spill] sm:$0xff] %v9118_v62  ;;  %v9126_v45 = vadd.f32 %v4607_v3, %v4063_v60 }
 0x2ff   :  { %v4320_v16 = vpop.f32.mrf.mxu1  ;;  %v4609_v7 = vpop.f32.mrf.mxu0 }
 0x300   :  { %v4071_v16 = vadd.f32 %v10795_v5, %v10794_v26  ;;  %v7121_v5 = vld [vmem:[%s10559_s0 + $0x478] ss:$28 sps:$4 sm:$0xff]  }
 0x301   :  { %v9136_v39 = vpop.f32.mrf.mxu1  ;;  %v4612_v43 = vpop.f32.mrf.mxu0  ;;  %4803 = vmatmul.mubr.bf16.gmra.mxu0 %v7108_v2  ;;  %6410 = vmatmul.mubr.msk.bf16.gmra.mxu1 %vm3167_vm0, %v7112_v10  ;;  %v7117_v2 = vld [vmem:[%s10559_s0 + $0x440] ss:$28 sps:$4 sm:$0xff]  }
 0x302   :  { %10792 = vst [vmem:[#allocation35_spill] sm:$0xff] %v9136_v39  ;;  %v9139_v3 = vadd.f32 %v4612_v43, %v4068_v31  ;;  %4810 = vmatprep.mubr.bf16.mxu0 %v7115_v59  ;;  %6413 = vmatprep.mubr.msk.bf16.mxu1 %vm3167_vm0, %v7116_v47  ;;  %v10798_v47 = vld [vmem:[#allocation43_spill] sm:$0xff]  ;;  %v10802_v39 = vld [vmem:[#allocation44_spill] sm:$0xff] }
 0x303   :  { %v4325_v60 = vpop.f32.mrf.mxu1  ;;  %v4614_v62 = vpop.f32.mrf.mxu0  ;;  %v4076_v31 = vadd.f32 %v10799_v34, %v10798_v47  ;;  %v7118_v47 = vld [vmem:[%s10559_s0 + $0x940] ss:$28 sps:$4 sm:$0xff]  }
 0x304   :  { %10793 = vst [vmem:[#allocation75_spill] sm:$0xff] %v9139_v3  ;;  %v7120_v62 = vld [vmem:[%s10559_s0 + $0x944] ss:$28 sps:$4 sm:$0xff]   ;;  %v10807_v34 = vld [vmem:[#allocation89_spill] sm:$0xff] }
 0x305   :  { %v9144_v7 = vpop.f32.mrf.mxu1  ;;  %v4615_v50 = vpop.f32.mrf.mxu0 }
 0x306   :  { %10796 = vst [vmem:[#allocation37_spill] sm:$0xff] %v9144_v7  ;;  %v9152_v10 = vadd.f32 %v4615_v50, %v4071_v16 }
 0x307   :  { %v4328_v26 = vpop.f32.mrf.mxu1  ;;  %v4617_v59 = vpop.f32.mrf.mxu0 }
 0x308   :  { %10797 = vst [vmem:[#allocation77_spill] sm:$0xff] %v9152_v10  ;;  %v10803_v10 = vld [vmem:[#allocation87_spill] sm:$0xff] }
 0x309   :  { %v9162_v43 = vpop.f32.mrf.mxu1  ;;  %v4620_v60 = vpop.f32.mrf.mxu0  ;;  %4811 = vmatmul.mubr.bf16.gmra.mxu0 %v7113_v29  ;;  %6414 = vmatmul.mubr.msk.bf16.gmra.mxu1 %vm3167_vm0, %v7117_v2  ;;  %v4079_v26 = vadd.f32 %v10803_v10, %v10802_v39  ;;  %v7122_v29 = vld [vmem:[%s10559_s0 + $0x4b0] ss:$28 sps:$4 sm:$0xff]   ;;  %v7126_v39 = vld [vmem:[%s10559_s0 + $0x4e8] ss:$28 sps:$4 sm:$0xff]  }
 0x30a   :  { %10800 = vst [vmem:[#allocation39_spill] sm:$0xff] %v9162_v43  ;;  %v9165_v50 = vadd.f32 %v4620_v60, %v4076_v31  ;;  %4818 = vmatprep.mubr.bf16.mxu0 %v7120_v62  ;;  %6417 = vmatprep.mubr.msk.bf16.mxu1 %vm3167_vm0, %v7121_v5  ;;  %v10806_v5 = vld [vmem:[#allocation45_spill] sm:$0xff]  ;;  %v10810_v43 = vld [vmem:[#allocation46_spill] sm:$0xff] }
 0x30b   :  { %v4333_v16 = vpop.f32.mrf.mxu1  ;;  %v4622_v7 = vpop.f32.mrf.mxu0  ;;  %v4084_v31 = vadd.f32 %v10807_v34, %v10806_v5  ;;  %v7123_v5 = vld [vmem:[%s10559_s0 + $0x978] ss:$28 sps:$4 sm:$0xff]  }
 0x30c   :  { %10801 = vst [vmem:[#allocation79_spill] sm:$0xff] %v9165_v50  ;;  %v7125_v7 = vld [vmem:[%s10559_s0 + $0x97c] ss:$28 sps:$4 sm:$0xff]  }
 0x30d   :  { %v9170_v59 = vpop.f32.mrf.mxu1  ;;  %v4623_v3 = vpop.f32.mrf.mxu0  ;;  %v10815_v34 = vld [vmem:[#allocation93_spill] sm:$0xff] }
 0x30e   :  { %10804 = vst [vmem:[#allocation41_spill] sm:$0xff] %v9170_v59  ;;  %v9178_v2 = vadd.f32 %v4623_v3, %v4079_v26 }
 0x30f   :  { %v4336_v10 = vpop.f32.mrf.mxu1  ;;  %v4625_v62 = vpop.f32.mrf.mxu0 }
 0x310   :  { %10805 = vst [vmem:[#allocation81_spill] sm:$0xff] %v9178_v2  ;;  %v10811_v2 = vld [vmem:[#allocation91_spill] sm:$0xff] }
 0x311   :  { %v9188_v60 = vpop.f32.mrf.mxu1  ;;  %v4628_v16 = vpop.f32.mrf.mxu0  ;;  %4819 = vmatmul.mubr.bf16.gmra.mxu0 %v7118_v47  ;;  %6418 = vmatmul.mubr.msk.bf16.gmra.mxu1 %vm3167_vm0, %v7122_v29  ;;  %v4087_v10 = vadd.f32 %v10811_v2, %v10810_v43  ;;  %v7127_v47 = vld [vmem:[%s10559_s0 + $0x520] ss:$28 sps:$4 sm:$0xff]   ;;  %v7131_v43 = vld [vmem:[%s10559_s0 + $0x558] ss:$28 sps:$4 sm:$0xff]  }
 0x312   :  { %10808 = vst [vmem:[#allocation42_spill] sm:$0xff] %v9188_v60  ;;  %v9191_v3 = vadd.f32 %v4628_v16, %v4084_v31  ;;  %4826 = vmatprep.mubr.bf16.mxu0 %v7125_v7  ;;  %6421 = vmatprep.mubr.msk.bf16.mxu1 %vm3167_vm0, %v7126_v39  ;;  %v10814_v39 = vld [vmem:[#allocation47_spill] sm:$0xff]  ;;  %v10818_v60 = vld [vmem:[#allocation48_spill] sm:$0xff] }
 0x313   :  { %v4341_v26 = vpop.f32.mrf.mxu1  ;;  %v4630_v59 = vpop.f32.mrf.mxu0  ;;  %v4092_v31 = vadd.f32 %v10815_v34, %v10814_v39  ;;  %v7128_v39 = vld [vmem:[%s10559_s0 + $0x9b0] ss:$28 sps:$4 sm:$0xff]   ;;  %v10823_v34 = vld [vmem:[#allocation97_spill] sm:$0xff] }
 0x314   :  { %10809 = vst [vmem:[#allocation83_spill] sm:$0xff] %v9191_v3  ;;  %v7130_v59 = vld [vmem:[%s10559_s0 + $0x9b4] ss:$28 sps:$4 sm:$0xff]  }
 0x315   :  { %v9196_v62 = vpop.f32.mrf.mxu1  ;;  %v4631_v50 = vpop.f32.mrf.mxu0 }
 0x316   :  { %10812 = vst [vmem:[#allocation43_spill] sm:$0xff] %v9196_v62  ;;  %v9204_v29 = vadd.f32 %v4631_v50, %v4087_v10 }
 0x317   :  { %v4344_v2 = vpop.f32.mrf.mxu1  ;;  %v4633_v7 = vpop.f32.mrf.mxu0 }
 0x318   :  { %10813 = vst [vmem:[#allocation85_spill] sm:$0xff] %v9204_v29  ;;  %v10819_v29 = vld [vmem:[#allocation95_spill] sm:$0xff] }
 0x319   :  { %v9214_v16 = vpop.f32.mrf.mxu1  ;;  %v4636_v26 = vpop.f32.mrf.mxu0  ;;  %4827 = vmatmul.mubr.bf16.gmra.mxu0 %v7123_v5  ;;  %6422 = vmatmul.mubr.msk.bf16.gmra.mxu1 %vm3167_vm0, %v7127_v47  ;;  %v4095_v2 = vadd.f32 %v10819_v29, %v10818_v60  ;;  %v7132_v5 = vld [vmem:[%s10559_s0 + $0x590] ss:$28 sps:$4 sm:$0xff]   ;;  %v7136_v60 = vld [vmem:[%s10559_s0 + $0x5c8] ss:$28 sps:$4 sm:$0xff]  }
 0x31a   :  { %10816 = vst [vmem:[#allocation44_spill] sm:$0xff] %v9214_v16  ;;  %v9217_v50 = vadd.f32 %v4636_v26, %v4092_v31  ;;  %4834 = vmatprep.mubr.bf16.mxu0 %v7130_v59  ;;  %6425 = vmatprep.mubr.msk.bf16.mxu1 %vm3167_vm0, %v7131_v43  ;;  %v10822_v43 = vld [vmem:[#allocation49_spill] sm:$0xff]  ;;  %v10826_v16 = vld [vmem:[#allocation50_spill] sm:$0xff] }
 0x31b   :  { %v4349_v10 = vpop.f32.mrf.mxu1  ;;  %v4638_v62 = vpop.f32.mrf.mxu0  ;;  %v4100_v31 = vadd.f32 %v10823_v34, %v10822_v43  ;;  %v7133_v43 = vld [vmem:[%s10559_s0 + $0x9e8] ss:$28 sps:$4 sm:$0xff]   ;;  %v10831_v34 = vld [vmem:[#allocation101_spill] sm:$0xff] }
 0x31c   :  { %10817 = vst [vmem:[#allocation87_spill] sm:$0xff] %v9217_v50  ;;  %v7135_v62 = vld [vmem:[%s10559_s0 + $0x9ec] ss:$28 sps:$4 sm:$0xff]  }
 0x31d   :  { %v9222_v7 = vpop.f32.mrf.mxu1  ;;  %v4639_v3 = vpop.f32.mrf.mxu0 }
 0x31e   :  { %10820 = vst [vmem:[#allocation45_spill] sm:$0xff] %v9222_v7  ;;  %v9230_v47 = vadd.f32 %v4639_v3, %v4095_v2 }
 0x31f   :  { %v4352_v29 = vpop.f32.mrf.mxu1  ;;  %v4641_v59 = vpop.f32.mrf.mxu0 }
 0x320   :  { %10821 = vst [vmem:[#allocation89_spill] sm:$0xff] %v9230_v47  ;;  %v10827_v47 = vld [vmem:[#allocation99_spill] sm:$0xff] }
 0x321   :  { %v9240_v26 = vpop.f32.mrf.mxu1  ;;  %v4644_v10 = vpop.f32.mrf.mxu0  ;;  %4835 = vmatmul.mubr.bf16.gmra.mxu0 %v7128_v39  ;;  %6426 = vmatmul.mubr.msk.bf16.gmra.mxu1 %vm3167_vm0, %v7132_v5  ;;  %v4103_v29 = vadd.f32 %v10827_v47, %v10826_v16  ;;  %v7137_v39 = vld [vmem:[%s10559_s0 + $0x600] ss:$28 sps:$4 sm:$0xff]   ;;  %v7141_v16 = vld [vmem:[%s10559_s0 + $0x638] ss:$28 sps:$4 sm:$0xff]  }
 0x322   :  { %10824 = vst [vmem:[#allocation46_spill] sm:$0xff] %v9240_v26  ;;  %v9243_v3 = vadd.f32 %v4644_v10, %v4100_v31  ;;  %4842 = vmatprep.mubr.bf16.mxu0 %v7135_v62  ;;  %6429 = vmatprep.mubr.msk.bf16.mxu1 %vm3167_vm0, %v7136_v60  ;;  %v10830_v60 = vld [vmem:[#allocation51_spill] sm:$0xff]  ;;  %v10834_v26 = vld [vmem:[#allocation52_spill] sm:$0xff] }
 0x323   :  { %v4357_v2 = vpop.f32.mrf.mxu1  ;;  %v4646_v7 = vpop.f32.mrf.mxu0  ;;  %v4108_v31 = vadd.f32 %v10831_v34, %v10830_v60  ;;  %v7138_v60 = vld [vmem:[%s10559_s0 + $0xa20] ss:$28 sps:$4 sm:$0xff]  }
 0x324   :  { %10825 = vst [vmem:[#allocation91_spill] sm:$0xff] %v9243_v3  ;;  %v7140_v7 = vld [vmem:[%s10559_s0 + $0xa24] ss:$28 sps:$4 sm:$0xff]   ;;  %v10839_v34 = vld [vmem:[#allocation105_spill] sm:$0xff] }
 0x325   :  { %v9248_v59 = vpop.f32.mrf.mxu1  ;;  %v4647_v50 = vpop.f32.mrf.mxu0 }
 0x326   :  { %10828 = vst [vmem:[#allocation47_spill] sm:$0xff] %v9248_v59  ;;  %v9256_v5 = vadd.f32 %v4647_v50, %v4103_v29 }
 0x327   :  { %v4360_v47 = vpop.f32.mrf.mxu1  ;;  %v4649_v62 = vpop.f32.mrf.mxu0 }
 0x328   :  { %10829 = vst [vmem:[#allocation93_spill] sm:$0xff] %v9256_v5  ;;  %v10835_v5 = vld [vmem:[#allocation103_spill] sm:$0xff] }
 0x329   :  { %v9266_v10 = vpop.f32.mrf.mxu1  ;;  %v4652_v2 = vpop.f32.mrf.mxu0  ;;  %4843 = vmatmul.mubr.bf16.gmra.mxu0 %v7133_v43  ;;  %6430 = vmatmul.mubr.msk.bf16.gmra.mxu1 %vm3167_vm0, %v7137_v39  ;;  %v4111_v47 = vadd.f32 %v10835_v5, %v10834_v26  ;;  %v7142_v43 = vld [vmem:[%s10559_s0 + $0x670] ss:$28 sps:$4 sm:$0xff]   ;;  %v7146_v26 = vld [vmem:[%s10559_s0 + $0x6a8] ss:$28 sps:$4 sm:$0xff]  }
 0x32a   :  { %10832 = vst [vmem:[#allocation48_spill] sm:$0xff] %v9266_v10  ;;  %v9269_v50 = vadd.f32 %v4652_v2, %v4108_v31  ;;  %4850 = vmatprep.mubr.bf16.mxu0 %v7140_v7  ;;  %6433 = vmatprep.mubr.msk.bf16.mxu1 %vm3167_vm0, %v7141_v16  ;;  %v10838_v16 = vld [vmem:[#allocation53_spill] sm:$0xff]  ;;  %v10842_v10 = vld [vmem:[#allocation54_spill] sm:$0xff] }
 0x32b   :  { %v4365_v29 = vpop.f32.mrf.mxu1  ;;  %v4654_v59 = vpop.f32.mrf.mxu0  ;;  %v4116_v31 = vadd.f32 %v10839_v34, %v10838_v16  ;;  %v7143_v16 = vld [vmem:[%s10559_s0 + $0xa58] ss:$28 sps:$4 sm:$0xff]  }
 0x32c   :  { %10833 = vst [vmem:[#allocation95_spill] sm:$0xff] %v9269_v50  ;;  %v7145_v59 = vld [vmem:[%s10559_s0 + $0xa5c] ss:$28 sps:$4 sm:$0xff]  }
 0x32d   :  { %v9274_v62 = vpop.f32.mrf.mxu1  ;;  %v4655_v3 = vpop.f32.mrf.mxu0  ;;  %v10847_v34 = vld [vmem:[#allocation109_spill] sm:$0xff] }
 0x32e   :  { %10836 = vst [vmem:[#allocation49_spill] sm:$0xff] %v9274_v62  ;;  %v9282_v39 = vadd.f32 %v4655_v3, %v4111_v47 }
 0x32f   :  { %v4368_v5 = vpop.f32.mrf.mxu1  ;;  %v4657_v7 = vpop.f32.mrf.mxu0 }
 0x330   :  { %10837 = vst [vmem:[#allocation97_spill] sm:$0xff] %v9282_v39  ;;  %v10843_v39 = vld [vmem:[#allocation107_spill] sm:$0xff] }
 0x331   :  { %v9292_v2 = vpop.f32.mrf.mxu1  ;;  %v4660_v29 = vpop.f32.mrf.mxu0  ;;  %4851 = vmatmul.mubr.bf16.gmra.mxu0 %v7138_v60  ;;  %6434 = vmatmul.mubr.msk.bf16.gmra.mxu1 %vm3167_vm0, %v7142_v43  ;;  %v4119_v5 = vadd.f32 %v10843_v39, %v10842_v10  ;;  %v7147_v60 = vld [vmem:[%s10559_s0 + $0x6e0] ss:$28 sps:$4 sm:$0xff]   ;;  %v7151_v10 = vld [vmem:[%s10559_s0 + $0x718] ss:$28 sps:$4 sm:$0xff]  }
 0x332   :  { %10840 = vst [vmem:[#allocation50_spill] sm:$0xff] %v9292_v2  ;;  %v9295_v3 = vadd.f32 %v4660_v29, %v4116_v31  ;;  %4858 = vmatprep.mubr.bf16.mxu0 %v7145_v59  ;;  %6437 = vmatprep.mubr.msk.bf16.mxu1 %vm3167_vm0, %v7146_v26  ;;  %v10846_v26 = vld [vmem:[#allocation55_spill] sm:$0xff]  ;;  %v10850_v2 = vld [vmem:[#allocation56_spill] sm:$0xff] }
 0x333   :  { %v4373_v47 = vpop.f32.mrf.mxu1  ;;  %v4662_v62 = vpop.f32.mrf.mxu0  ;;  %v4124_v31 = vadd.f32 %v10847_v34, %v10846_v26  ;;  %v7148_v26 = vld [vmem:[%s10559_s0 + $0xa90] ss:$28 sps:$4 sm:$0xff]   ;;  %v10855_v34 = vld [vmem:[#allocation113_spill] sm:$0xff] }
 0x334   :  { %10841 = vst [vmem:[#allocation99_spill] sm:$0xff] %v9295_v3  ;;  %v7150_v62 = vld [vmem:[%s10559_s0 + $0xa94] ss:$28 sps:$4 sm:$0xff]  }
 0x335   :  { %v9300_v7 = vpop.f32.mrf.mxu1  ;;  %v4663_v50 = vpop.f32.mrf.mxu0 }
 0x336   :  { %10844 = vst [vmem:[#allocation51_spill] sm:$0xff] %v9300_v7  ;;  %v9308_v43 = vadd.f32 %v4663_v50, %v4119_v5 }
 0x337   :  { %v4376_v39 = vpop.f32.mrf.mxu1  ;;  %v4665_v59 = vpop.f32.mrf.mxu0 }
 0x338   :  { %10845 = vst [vmem:[#allocation101_spill] sm:$0xff] %v9308_v43  ;;  %v10851_v43 = vld [vmem:[#allocation111_spill] sm:$0xff] }
 0x339   :  { %v9318_v29 = vpop.f32.mrf.mxu1  ;;  %v4668_v47 = vpop.f32.mrf.mxu0  ;;  %4859 = vmatmul.mubr.bf16.gmra.mxu0 %v7143_v16  ;;  %6438 = vmatmul.mubr.msk.bf16.gmra.mxu1 %vm3167_vm0, %v7147_v60  ;;  %v4127_v39 = vadd.f32 %v10851_v43, %v10850_v2  ;;  %v7152_v16 = vld [vmem:[%s10559_s0 + $0x750] ss:$28 sps:$4 sm:$0xff]   ;;  %v7156_v2 = vld [vmem:[%s10559_s0 + $0x788] ss:$28 sps:$4 sm:$0xff]  }
 0x33a   :  { %10848 = vst [vmem:[#allocation52_spill] sm:$0xff] %v9318_v29  ;;  %v9321_v50 = vadd.f32 %v4668_v47, %v4124_v31  ;;  %4866 = vmatprep.mubr.bf16.mxu0 %v7150_v62  ;;  %6441 = vmatprep.mubr.msk.bf16.mxu1 %vm3167_vm0, %v7151_v10  ;;  %v10854_v10 = vld [vmem:[#allocation57_spill] sm:$0xff]  ;;  %v10858_v29 = vld [vmem:[#allocation58_spill] sm:$0xff] }
 0x33b   :  { %v4381_v5 = vpop.f32.mrf.mxu1  ;;  %v4670_v7 = vpop.f32.mrf.mxu0  ;;  %v4132_v31 = vadd.f32 %v10855_v34, %v10854_v10  ;;  %v7153_v10 = vld [vmem:[%s10559_s0 + $0xac8] ss:$28 sps:$4 sm:$0xff]   ;;  %v10863_v34 = vld [vmem:[#allocation117_spill] sm:$0xff] }
 0x33c   :  { %10849 = vst [vmem:[#allocation103_spill] sm:$0xff] %v9321_v50  ;;  %v7155_v7 = vld [vmem:[%s10559_s0 + $0xacc] ss:$28 sps:$4 sm:$0xff]  }
 0x33d   :  { %v9326_v59 = vpop.f32.mrf.mxu1  ;;  %v4671_v3 = vpop.f32.mrf.mxu0 }
 0x33e   :  { %10852 = vst [vmem:[#allocation53_spill] sm:$0xff] %v9326_v59  ;;  %v9334_v60 = vadd.f32 %v4671_v3, %v4127_v39 }
 0x33f   :  { %v4384_v43 = vpop.f32.mrf.mxu1  ;;  %v4673_v62 = vpop.f32.mrf.mxu0 }
 0x340   :  { %10853 = vst [vmem:[#allocation105_spill] sm:$0xff] %v9334_v60  ;;  %v10859_v60 = vld [vmem:[#allocation115_spill] sm:$0xff] }
 0x341   :  { %v9344_v47 = vpop.f32.mrf.mxu1  ;;  %v4676_v5 = vpop.f32.mrf.mxu0  ;;  %4867 = vmatmul.mubr.bf16.gmra.mxu0 %v7148_v26  ;;  %6442 = vmatmul.mubr.msk.bf16.gmra.mxu1 %vm3167_vm0, %v7152_v16  ;;  %v4135_v43 = vadd.f32 %v10859_v60, %v10858_v29  ;;  %v7157_v26 = vld [vmem:[%s10559_s0 + $0x7c0] ss:$28 sps:$4 sm:$0xff]   ;;  %v7161_v29 = vld [vmem:[%s10559_s0 + $0x7f8] ss:$28 sps:$4 sm:$0xff]  }
 0x342   :  { %10856 = vst [vmem:[#allocation54_spill] sm:$0xff] %v9344_v47  ;;  %v9347_v3 = vadd.f32 %v4676_v5, %v4132_v31  ;;  %4874 = vmatprep.mubr.bf16.mxu0 %v7155_v7  ;;  %6445 = vmatprep.mubr.msk.bf16.mxu1 %vm3167_vm0, %v7156_v2  ;;  %v10862_v2 = vld [vmem:[#allocation59_spill] sm:$0xff]  ;;  %v10866_v47 = vld [vmem:[#allocation60_spill] sm:$0xff] }
 0x343   :  { %v4389_v39 = vpop.f32.mrf.mxu1  ;;  %v4678_v59 = vpop.f32.mrf.mxu0  ;;  %v4140_v31 = vadd.f32 %v10863_v34, %v10862_v2  ;;  %v7158_v2 = vld [vmem:[%s10559_s0 + $0xb00] ss:$28 sps:$4 sm:$0xff]  }
 0x344   :  { %10857 = vst [vmem:[#allocation107_spill] sm:$0xff] %v9347_v3  ;;  %v7160_v59 = vld [vmem:[%s10559_s0 + $0xb04] ss:$28 sps:$4 sm:$0xff]   ;;  %v10871_v34 = vld [vmem:[#allocation121_spill] sm:$0xff] }
 0x345   :  { %v9352_v62 = vpop.f32.mrf.mxu1  ;;  %v4679_v50 = vpop.f32.mrf.mxu0 }
 0x346   :  { %10860 = vst [vmem:[#allocation55_spill] sm:$0xff] %v9352_v62  ;;  %v9360_v16 = vadd.f32 %v4679_v50, %v4135_v43 }
 0x347   :  { %v4392_v60 = vpop.f32.mrf.mxu1  ;;  %v4681_v7 = vpop.f32.mrf.mxu0 }
 0x348   :  { %10861 = vst [vmem:[#allocation109_spill] sm:$0xff] %v9360_v16  ;;  %v10867_v16 = vld [vmem:[#allocation119_spill] sm:$0xff] }
 0x349   :  { %v9370_v5 = vpop.f32.mrf.mxu1  ;;  %v4684_v39 = vpop.f32.mrf.mxu0  ;;  %4875 = vmatmul.mubr.bf16.gmra.mxu0 %v7153_v10  ;;  %6446 = vmatmul.mubr.msk.bf16.gmra.mxu1 %vm3167_vm0, %v7157_v26  ;;  %v4143_v60 = vadd.f32 %v10867_v16, %v10866_v47  ;;  %v7162_v10 = vld [vmem:[%s10559_s0 + $0x830] ss:$28 sps:$4 sm:$0xff]   ;;  %v7166_v47 = vld [vmem:[%s10559_s0 + $0x868] ss:$28 sps:$4 sm:$0xff]  }
 0x34a   :  { %10864 = vst [vmem:[#allocation56_spill] sm:$0xff] %v9370_v5  ;;  %v9373_v50 = vadd.f32 %v4684_v39, %v4140_v31  ;;  %4882 = vmatprep.mubr.bf16.mxu0 %v7160_v59  ;;  %6449 = vmatprep.mubr.msk.bf16.mxu1 %vm3167_vm0, %v7161_v29  ;;  %v10870_v29 = vld [vmem:[#allocation61_spill] sm:$0xff]  ;;  %v10874_v5 = vld [vmem:[#allocation62_spill] sm:$0xff] }
 0x34b   :  { %v4397_v43 = vpop.f32.mrf.mxu1  ;;  %v4686_v62 = vpop.f32.mrf.mxu0  ;;  %v4148_v31 = vadd.f32 %v10871_v34, %v10870_v29  ;;  %v7163_v29 = vld [vmem:[%s10559_s0 + $0xb38] ss:$28 sps:$4 sm:$0xff]  }
 0x34c   :  { %10865 = vst [vmem:[#allocation111_spill] sm:$0xff] %v9373_v50  ;;  %v7165_v62 = vld [vmem:[%s10559_s0 + $0xb3c] ss:$28 sps:$4 sm:$0xff]  }
 0x34d   :  { %v9378_v7 = vpop.f32.mrf.mxu1  ;;  %v4687_v3 = vpop.f32.mrf.mxu0  ;;  %v10879_v34 = vld [vmem:[#allocation125_spill] sm:$0xff] }
 0x34e   :  { %10868 = vst [vmem:[#allocation57_spill] sm:$0xff] %v9378_v7  ;;  %v9386_v26 = vadd.f32 %v4687_v3, %v4143_v60 }
 0x34f   :  { %v4400_v16 = vpop.f32.mrf.mxu1  ;;  %v4689_v59 = vpop.f32.mrf.mxu0 }
 0x350   :  { %10869 = vst [vmem:[#allocation113_spill] sm:$0xff] %v9386_v26  ;;  %v10875_v26 = vld [vmem:[#allocation123_spill] sm:$0xff] }
 0x351   :  { %v9396_v39 = vpop.f32.mrf.mxu1  ;;  %v4692_v43 = vpop.f32.mrf.mxu0  ;;  %4883 = vmatmul.mubr.bf16.gmra.mxu0 %v7158_v2  ;;  %6450 = vmatmul.mubr.msk.bf16.gmra.mxu1 %vm3167_vm0, %v7162_v10  ;;  %v4151_v16 = vadd.f32 %v10875_v26, %v10874_v5  ;;  %v7167_v2 = vld [vmem:[%s10559_s0 + $0x8a0] ss:$28 sps:$4 sm:$0xff]   ;;  %v7171_v5 = vld [vmem:[%s10559_s0 + $0x8d8] ss:$28 sps:$4 sm:$0xff]  }
 0x352   :  { %10872 = vst [vmem:[#allocation58_spill] sm:$0xff] %v9396_v39  ;;  %v9399_v3 = vadd.f32 %v4692_v43, %v4148_v31  ;;  %4890 = vmatprep.mubr.bf16.mxu0 %v7165_v62  ;;  %6453 = vmatprep.mubr.msk.bf16.mxu1 %vm3167_vm0, %v7166_v47  ;;  %v10878_v47 = vld [vmem:[#allocation63_spill] sm:$0xff]  ;;  %v10882_v39 = vld [vmem:[#allocation64_spill] sm:$0xff] }
 0x353   :  { %v4405_v60 = vpop.f32.mrf.mxu1  ;;  %v4694_v7 = vpop.f32.mrf.mxu0  ;;  %v4156_v31 = vadd.f32 %v10879_v34, %v10878_v47  ;;  %v7168_v47 = vld [vmem:[%s10559_s0 + $0xb70] ss:$28 sps:$4 sm:$0xff]   ;;  %v10887_v34 = vld [vmem:[#allocation129_spill] sm:$0xff] }
 0x354   :  { %10873 = vst [vmem:[#allocation115_spill] sm:$0xff] %v9399_v3  ;;  %v7170_v7 = vld [vmem:[%s10559_s0 + $0xb74] ss:$28 sps:$4 sm:$0xff]  }
 0x355   :  { %v9404_v59 = vpop.f32.mrf.mxu1  ;;  %v4695_v50 = vpop.f32.mrf.mxu0 }
 0x356   :  { %10876 = vst [vmem:[#allocation59_spill] sm:$0xff] %v9404_v59  ;;  %v9412_v10 = vadd.f32 %v4695_v50, %v4151_v16 }
 0x357   :  { %v4408_v26 = vpop.f32.mrf.mxu1  ;;  %v4697_v62 = vpop.f32.mrf.mxu0 }
 0x358   :  { %10877 = vst [vmem:[#allocation117_spill] sm:$0xff] %v9412_v10  ;;  %v10883_v10 = vld [vmem:[#allocation127_spill] sm:$0xff] }
 0x359   :  { %v9422_v43 = vpop.f32.mrf.mxu1  ;;  %v4700_v60 = vpop.f32.mrf.mxu0  ;;  %4891 = vmatmul.mubr.bf16.gmra.mxu0 %v7163_v29  ;;  %6454 = vmatmul.mubr.msk.bf16.gmra.mxu1 %vm3167_vm0, %v7167_v2  ;;  %v4159_v26 = vadd.f32 %v10883_v10, %v10882_v39  ;;  %v7172_v29 = vld [vmem:[%s10559_s0 + $0x910] ss:$28 sps:$4 sm:$0xff]   ;;  %v7176_v39 = vld [vmem:[%s10559_s0 + $0x948] ss:$28 sps:$4 sm:$0xff]  }
 0x35a   :  { %10880 = vst [vmem:[#allocation60_spill] sm:$0xff] %v9422_v43  ;;  %v9425_v50 = vadd.f32 %v4700_v60, %v4156_v31  ;;  %4898 = vmatprep.mubr.bf16.mxu0 %v7170_v7  ;;  %6457 = vmatprep.mubr.msk.bf16.mxu1 %vm3167_vm0, %v7171_v5  ;;  %v10886_v5 = vld [vmem:[#allocation65_spill] sm:$0xff]  ;;  %v10890_v43 = vld [vmem:[#allocation66_spill] sm:$0xff] }
 0x35b   :  { %v4413_v16 = vpop.f32.mrf.mxu1  ;;  %v4702_v59 = vpop.f32.mrf.mxu0  ;;  %v4164_v31 = vadd.f32 %v10887_v34, %v10886_v5  ;;  %v7173_v5 = vld [vmem:[%s10559_s0 + $0xba8] ss:$28 sps:$4 sm:$0xff]   ;;  %v10895_v34 = vld [vmem:[#allocation133_spill] sm:$0xff] }
 0x35c   :  { %10881 = vst [vmem:[#allocation119_spill] sm:$0xff] %v9425_v50  ;;  %v7175_v59 = vld [vmem:[%s10559_s0 + $0xbac] ss:$28 sps:$4 sm:$0xff]  }
 0x35d   :  { %v9430_v62 = vpop.f32.mrf.mxu1  ;;  %v4703_v3 = vpop.f32.mrf.mxu0 }
 0x35e   :  { %10884 = vst [vmem:[#allocation61_spill] sm:$0xff] %v9430_v62  ;;  %v9438_v2 = vadd.f32 %v4703_v3, %v4159_v26 }
 0x35f   :  { %v4416_v10 = vpop.f32.mrf.mxu1  ;;  %v4705_v7 = vpop.f32.mrf.mxu0 }
 0x360   :  { %10885 = vst [vmem:[#allocation121_spill] sm:$0xff] %v9438_v2  ;;  %v10891_v2 = vld [vmem:[#allocation131_spill] sm:$0xff] }
 0x361   :  { %v9448_v60 = vpop.f32.mrf.mxu1  ;;  %v4708_v16 = vpop.f32.mrf.mxu0  ;;  %4899 = vmatmul.mubr.bf16.gmra.mxu0 %v7168_v47  ;;  %6458 = vmatmul.mubr.msk.bf16.gmra.mxu1 %vm3167_vm0, %v7172_v29  ;;  %v4167_v10 = vadd.f32 %v10891_v2, %v10890_v43  ;;  %v7177_v47 = vld [vmem:[%s10559_s0 + $0x980] ss:$28 sps:$4 sm:$0xff]   ;;  %v7181_v43 = vld [vmem:[%s10559_s0 + $0x9b8] ss:$28 sps:$4 sm:$0xff]  }
 0x362   :  { %10888 = vst [vmem:[#allocation62_spill] sm:$0xff] %v9448_v60  ;;  %v9451_v3 = vadd.f32 %v4708_v16, %v4164_v31  ;;  %4906 = vmatprep.mubr.bf16.mxu0 %v7175_v59  ;;  %6461 = vmatprep.mubr.msk.bf16.mxu1 %vm3167_vm0, %v7176_v39  ;;  %v10894_v39 = vld [vmem:[#allocation68_spill] sm:$0xff]  ;;  %v10898_v60 = vld [vmem:[#allocation70_spill] sm:$0xff] }
 0x363   :  { %v4421_v26 = vpop.f32.mrf.mxu1  ;;  %v4710_v62 = vpop.f32.mrf.mxu0  ;;  %v4172_v31 = vadd.f32 %v10895_v34, %v10894_v39  ;;  %v7178_v39 = vld [vmem:[%s10559_s0 + $0xbe0] ss:$28 sps:$4 sm:$0xff]  }
 0x364   :  { %10889 = vst [vmem:[#allocation123_spill] sm:$0xff] %v9451_v3  ;;  %v7180_v62 = vld [vmem:[%s10559_s0 + $0xbe4] ss:$28 sps:$4 sm:$0xff]   ;;  %v10903_v34 = vld [vmem:[#allocation137_spill] sm:$0xff] }
 0x365   :  { %v9456_v7 = vpop.f32.mrf.mxu1  ;;  %v4711_v50 = vpop.f32.mrf.mxu0 }
 0x366   :  { %10892 = vst [vmem:[#allocation63_spill] sm:$0xff] %v9456_v7  ;;  %v9464_v29 = vadd.f32 %v4711_v50, %v4167_v10 }
 0x367   :  { %v4424_v2 = vpop.f32.mrf.mxu1  ;;  %v4713_v59 = vpop.f32.mrf.mxu0 }
 0x368   :  { %10893 = vst [vmem:[#allocation125_spill] sm:$0xff] %v9464_v29  ;;  %v10899_v29 = vld [vmem:[#allocation135_spill] sm:$0xff] }
 0x369   :  { %v9474_v16 = vpop.f32.mrf.mxu1  ;;  %v4716_v26 = vpop.f32.mrf.mxu0  ;;  %4907 = vmatmul.mubr.bf16.gmra.mxu0 %v7173_v5  ;;  %6462 = vmatmul.mubr.msk.bf16.gmra.mxu1 %vm3167_vm0, %v7177_v47  ;;  %v4175_v2 = vadd.f32 %v10899_v29, %v10898_v60  ;;  %v7182_v5 = vld [vmem:[%s10559_s0 + $0x9f0] ss:$28 sps:$4 sm:$0xff]   ;;  %v7186_v60 = vld [vmem:[%s10559_s0 + $0xa28] ss:$28 sps:$4 sm:$0xff]  }
 0x36a   :  { %10896 = vst [vmem:[#allocation64_spill] sm:$0xff] %v9474_v16  ;;  %v9477_v50 = vadd.f32 %v4716_v26, %v4172_v31  ;;  %4914 = vmatprep.mubr.bf16.mxu0 %v7180_v62  ;;  %6465 = vmatprep.mubr.msk.bf16.mxu1 %vm3167_vm0, %v7181_v43  ;;  %v10902_v43 = vld [vmem:[#allocation72_spill] sm:$0xff]  ;;  %v10906_v16 = vld [vmem:[#allocation74_spill] sm:$0xff] }
 0x36b   :  { %v4429_v10 = vpop.f32.mrf.mxu1  ;;  %v4718_v7 = vpop.f32.mrf.mxu0  ;;  %v4180_v31 = vadd.f32 %v10903_v34, %v10902_v43  ;;  %v7183_v43 = vld [vmem:[%s10559_s0 + $0xc18] ss:$28 sps:$4 sm:$0xff]  }
 0x36c   :  { %10897 = vst [vmem:[#allocation127_spill] sm:$0xff] %v9477_v50  ;;  %v7185_v7 = vld [vmem:[%s10559_s0 + $0xc1c] ss:$28 sps:$4 sm:$0xff]  }
 0x36d   :  { %v9482_v59 = vpop.f32.mrf.mxu1  ;;  %v4719_v3 = vpop.f32.mrf.mxu0  ;;  %v10911_v34 = vld [vmem:[#allocation141_spill] sm:$0xff] }
 0x36e   :  { %10900 = vst [vmem:[#allocation65_spill] sm:$0xff] %v9482_v59  ;;  %v9490_v47 = vadd.f32 %v4719_v3, %v4175_v2 }
 0x36f   :  { %v4432_v29 = vpop.f32.mrf.mxu1  ;;  %v4721_v62 = vpop.f32.mrf.mxu0 }
 0x370   :  { %10901 = vst [vmem:[#allocation129_spill] sm:$0xff] %v9490_v47  ;;  %v10907_v47 = vld [vmem:[#allocation139_spill] sm:$0xff] }
 0x371   :  { %v9500_v26 = vpop.f32.mrf.mxu1  ;;  %v4724_v10 = vpop.f32.mrf.mxu0  ;;  %4915 = vmatmul.mubr.bf16.gmra.mxu0 %v7178_v39  ;;  %6466 = vmatmul.mubr.msk.bf16.gmra.mxu1 %vm3167_vm0, %v7182_v5  ;;  %v4183_v29 = vadd.f32 %v10907_v47, %v10906_v16  ;;  %v7187_v39 = vld [vmem:[%s10559_s0 + $0xa60] ss:$28 sps:$4 sm:$0xff]   ;;  %v7191_v16 = vld [vmem:[%s10559_s0 + $0xa98] ss:$28 sps:$4 sm:$0xff]  }
 0x372   :  { %10904 = vst [vmem:[#allocation66_spill] sm:$0xff] %v9500_v26  ;;  %v9503_v3 = vadd.f32 %v4724_v10, %v4180_v31  ;;  %4922 = vmatprep.mubr.bf16.mxu0 %v7185_v7  ;;  %6469 = vmatprep.mubr.msk.bf16.mxu1 %vm3167_vm0, %v7186_v60  ;;  %v10910_v60 = vld [vmem:[#allocation76_spill] sm:$0xff]  ;;  %v10913_v26 = vld [vmem:[#allocation78_spill] sm:$0xff] }
 0x373   :  { %v4437_v2 = vpop.f32.mrf.mxu1  ;;  %v4726_v59 = vpop.f32.mrf.mxu0  ;;  %v4188_v31 = vadd.f32 %v10911_v34, %v10910_v60  ;;  %v7188_v60 = vld [vmem:[%s10559_s0 + $0xc50] ss:$28 sps:$4 sm:$0xff]  }
 0x374   :  { %10905 = vst [vmem:[#allocation131_spill] sm:$0xff] %v9503_v3  ;;  %v7190_v59 = vld [vmem:[%s10559_s0 + $0xc54] ss:$28 sps:$4 sm:$0xff]  }
 0x375   :  { %v9508_v62 = vpop.f32.mrf.mxu1  ;;  %v4727_v50 = vpop.f32.mrf.mxu0 }
 0x376   :  { %10908 = vst [vmem:[#allocation68_spill] sm:$0xff] %v9508_v62  ;;  %v9516_v5 = vadd.f32 %v4727_v50, %v4183_v29 }
 0x377   :  { %v4440_v47 = vpop.f32.mrf.mxu1  ;;  %v4729_v7 = vpop.f32.mrf.mxu0 }
 0x378   :  { %10909 = vst [vmem:[#allocation133_spill] sm:$0xff] %v9516_v5  ;;  %v10914_v5 = vld [vmem:[#allocation143_spill] sm:$0xff] }
 0x379   :  { %v9526_v10 = vpop.f32.mrf.mxu1  ;;  %v4732_v2 = vpop.f32.mrf.mxu0  ;;  %4923 = vmatmul.mubr.bf16.gmra.mxu0 %v7183_v43  ;;  %6470 = vmatmul.mubr.msk.bf16.gmra.mxu1 %vm3167_vm0, %v7187_v39  ;;  %v4191_v47 = vadd.f32 %v10914_v5, %v10913_v26  ;;  %v7192_v43 = vld [vmem:[%s10559_s0 + $0xad0] ss:$28 sps:$4 sm:$0xff]   ;;  %v7196_v26 = vld [vmem:[%s10559_s0 + $0xb08] ss:$28 sps:$4 sm:$0xff]  }
 0x37a   :  { %10912 = vst [vmem:[#allocation70_spill] sm:$0xff] %v9526_v10  ;;  %v9529_v50 = vadd.f32 %v4732_v2, %v4188_v31  ;;  %4930 = vmatprep.mubr.bf16.mxu0 %v7190_v59  ;;  %6473 = vmatprep.mubr.msk.bf16.mxu1 %vm3167_vm0, %v7191_v16  ;;  %v10916_v16 = vld [vmem:[#allocation80_spill] sm:$0xff]  ;;  %v10922_v10 = vld [vmem:[#allocation86_spill] sm:$0xff] }
 0x37b   :  { %v4445_v29 = vpop.f32.mrf.mxu1  ;;  %v4734_v62 = vpop.f32.mrf.mxu0  ;;  %v4196_v34 = vadd.f32 %v8735_v52, %v10916_v16 }
 0x37c   :  { %v7195_v62 = vld [vmem:[%s10559_s0 + $0xc8c] ss:$28 sps:$4 sm:$0xff]  }
 0x37d   :  { %v9534_v7 = vpop.f32.mrf.mxu1  ;;  %v4735_v3 = vpop.f32.mrf.mxu0 }
 0x37e   :  { %10915 = vst [vmem:[#allocation135_spill] sm:$0xff] %v9534_v7  ;;  %v9542_v39 = vadd.f32 %v4735_v3, %v4191_v47 }
 0x37f   :  { %v4448_v5 = vpop.f32.mrf.mxu1  ;;  %v4737_v59 = vpop.f32.mrf.mxu0 }
 0x380   :  { %v10918_v5 = vld [vmem:[#allocation82_spill] sm:$0xff] }
 0x381   :  { %v4740_v31 = vpop.f32.mrf.mxu0  ;;  %4931 = vmatmul.mubr.bf16.gmra.mxu0 %v7188_v60  ;;  %v6379_v2 = vpop.f32.mrf.mxu1  ;;  %6474 = vmatmul.mubr.msk.bf16.gmra.mxu1 %vm3167_vm0, %v7192_v43  ;;  %v4199_v59 = vadd.f32 %v8741_v17, %v10918_v5  ;;  %v7193_v43 = vld [vmem:[%s10559_s0 + $0xc88] ss:$28 sps:$4 sm:$0xff]  }
 0x382   :  { %v9553_v3 = vadd.f32 %v4740_v31, %v4196_v34  ;;  %v9556_v29 = vadd.f32 %v6379_v2, %v8761_v11  ;;  %4938 = vmatprep.mubr.bf16.mxu0 %v7195_v62  ;;  %6477 = vmatprep.mubr.msk.bf16.mxu1 %vm3167_vm0, %v7196_v26  ;;  %v7197_v11 = vld [vmem:[%s10559_s0 + $0xb40] ss:$28 sps:$4 sm:$0xff]   ;;  %v10920_v31 = vld [vmem:[#allocation84_spill] sm:$0xff] }
 0x383   :  { %v4742_v47 = vpop.f32.mrf.mxu0  ;;  %v5029_v7 = vpop.f32.mrf.mxu1  ;;  %v7200_v17 = vld [vmem:[%s10559_s0 + $0xcc4] ss:$28 sps:$4 sm:$0xff]   ;;  %v4204_v2 = vadd.f32 %v8759_v57, %v10920_v31  ;;  %v4207_v57 = vadd.f32 %v8765_v33, %v10922_v10  ;;  %v7205_v33 = vld [vmem:[%s10559_s0 + $0xcfc] ss:$28 sps:$4 sm:$0xff]  }
 0x384   :  { %10917 = vst [vmem:[#allocation72_spill] sm:$0xff] %v9556_v29  ;;  %v9562_v52 = vadd.f32 %v5029_v7, %v8737_v54  ;;  %v7201_v54 = vld [vmem:[%s10559_s0 + $0xb78] ss:$28 sps:$4 sm:$0xff]  }
 0x385   :  { %v4743_v60 = vpop.f32.mrf.mxu0  ;;  %v6380_v16 = vpop.f32.mrf.mxu1 }
 0x386   :  { %v9570_v62 = vadd.f32 %v4743_v60, %v4199_v59  ;;  %v9573_v26 = vadd.f32 %v6380_v16, %v8773_v24 }
 0x387   :  { %v4745_v7 = vpop.f32.mrf.mxu0  ;;  %v5032_v34 = vpop.f32.mrf.mxu1 }
 0x388   :  { %10919 = vst [vmem:[#allocation137_spill] sm:$0xff] %v9573_v26  ;;  %v9584_v47 = vadd.f32 %v5032_v34, %v8749_v56 }
 0x389   :  { %v4748_v5 = vpop.f32.mrf.mxu0  ;;  %4939 = vmatmul.mubr.bf16.gmra.mxu0 %v7193_v43  ;;  %v6383_v24 = vpop.f32.mrf.mxu1  ;;  %6478 = vmatmul.mubr.msk.bf16.gmra.mxu1 %vm3167_vm0, %v7197_v11  ;;  %v7198_v11 = vld [vmem:[%s10559_s0 + $0xcc0] ss:$28 sps:$4 sm:$0xff]  }
 0x38a   :  { %v9587_v59 = vadd.f32 %v4748_v5, %v4204_v2  ;;  %v9590_v60 = vadd.f32 %v6383_v24, %v8809_v51  ;;  %4946 = vmatprep.mubr.bf16.mxu0 %v7200_v17  ;;  %6481 = vmatprep.mubr.msk.bf16.mxu1 %vm3167_vm0, %v7201_v54  ;;  %v7202_v51 = vld [vmem:[%s10559_s0 + $0xbb0] ss:$28 sps:$4 sm:$0xff]  }
 0x38b   :  { %v4750_v16 = vpop.f32.mrf.mxu0  ;;  %v5045_v7 = vpop.f32.mrf.mxu1  ;;  %v10924_v2 = vld [vmem:[#allocation88_spill] sm:$0xff] }
 0x38c   :  { %10921 = vst [vmem:[#allocation74_spill] sm:$0xff] %v9590_v60  ;;  %v9596_v56 = vadd.f32 %v5045_v7, %v8785_v14  ;;  %v7206_v14 = vld [vmem:[%s10559_s0 + $0xbe8] ss:$28 sps:$4 sm:$0xff]   ;;  %v4212_v5 = vadd.f32 %v8783_v37, %v10924_v2 }
 0x38d   :  { %v4751_v43 = vpop.f32.mrf.mxu0  ;;  %v6384_v34 = vpop.f32.mrf.mxu1 }
 0x38e   :  { %v9604_v17 = vadd.f32 %v4751_v43, %v4207_v57  ;;  %v9607_v54 = vadd.f32 %v6384_v34, %v8821_v48 }
 0x38f   :  { %v4753_v10 = vpop.f32.mrf.mxu0  ;;  %v5048_v31 = vpop.f32.mrf.mxu1 }
 0x390   :  { %10923 = vst [vmem:[#allocation139_spill] sm:$0xff] %v9607_v54  ;;  %v9618_v24 = vadd.f32 %v5048_v31, %v8797_v36  ;;  %v10926_v10 = vld [vmem:[#allocation90_spill] sm:$0xff] }
 0x391   :  { %v4756_v16 = vpop.f32.mrf.mxu0  ;;  %4947 = vmatmul.mubr.bf16.gmra.mxu0 %v7198_v11  ;;  %v6387_v48 = vpop.f32.mrf.mxu1  ;;  %6482 = vmatmul.mubr.msk.bf16.gmra.mxu1 %vm3167_vm0, %v7202_v51  ;;  %v4215_v37 = vadd.f32 %v8789_v32, %v10926_v10  ;;  %v7203_v51 = vld [vmem:[%s10559_s0 + $0xcf8] ss:$28 sps:$4 sm:$0xff]  }
 0x392   :  { %v9621_v7 = vadd.f32 %v4756_v16, %v4212_v5  ;;  %v9624_v57 = vadd.f32 %v6387_v48, %v8857_v42  ;;  %4954 = vmatprep.mubr.bf16.mxu0 %v7205_v33  ;;  %6485 = vmatprep.mubr.msk.bf16.mxu1 %vm3167_vm0, %v7206_v14  ;;  %v7207_v42 = vld [vmem:[%s10559_s0 + $0xc20] ss:$28 sps:$4 sm:$0xff]   ;;  %v7210_v32 = vld [vmem:[%s10559_s0 + $0xd34] ss:$28 sps:$4 sm:$0xff]  }
 0x393   :  { %v4758_v43 = vpop.f32.mrf.mxu0  ;;  %v5061_v34 = vpop.f32.mrf.mxu1  ;;  %v10928_v16 = vld [vmem:[#allocation92_spill] sm:$0xff] }
 0x394   :  { %10925 = vst [vmem:[#allocation76_spill] sm:$0xff] %v9624_v57  ;;  %v9630_v36 = vadd.f32 %v5061_v34, %v8833_v30  ;;  %v7211_v30 = vld [vmem:[%s10559_s0 + $0xc58] ss:$28 sps:$4 sm:$0xff]   ;;  %v4220_v48 = vadd.f32 %v8807_v55, %v10928_v16 }
 0x395   :  { %v4759_v11 = vpop.f32.mrf.mxu0  ;;  %v6388_v31 = vpop.f32.mrf.mxu1 }
 0x396   :  { %v9638_v33 = vadd.f32 %v4759_v11, %v4215_v37  ;;  %v9641_v14 = vadd.f32 %v6388_v31, %v8869_v9 }
 0x397   :  { %v4761_v2 = vpop.f32.mrf.mxu0  ;;  %v5064_v5 = vpop.f32.mrf.mxu1 }
 0x398   :  { %10927 = vst [vmem:[#allocation141_spill] sm:$0xff] %v9641_v14  ;;  %v9652_v43 = vadd.f32 %v5064_v5, %v8845_v61  ;;  %v10930_v2 = vld [vmem:[#allocation94_spill] sm:$0xff] }
 0x399   :  { %v4764_v34 = vpop.f32.mrf.mxu0  ;;  %4955 = vmatmul.mubr.bf16.gmra.mxu0 %v7203_v51  ;;  %v6391_v9 = vpop.f32.mrf.mxu1  ;;  %6486 = vmatmul.mubr.msk.bf16.gmra.mxu1 %vm3167_vm0, %v7207_v42  ;;  %v4223_v55 = vadd.f32 %v8813_v15, %v10930_v2  ;;  %v7208_v42 = vld [vmem:[%s10559_s0 + $0xd30] ss:$28 sps:$4 sm:$0xff]  }
 0x39a   :  { %v9655_v10 = vadd.f32 %v4764_v34, %v4220_v48  ;;  %v9658_v37 = vadd.f32 %v6391_v9, %v8905_v1  ;;  %4962 = vmatprep.mubr.bf16.mxu0 %v7210_v32  ;;  %6489 = vmatprep.mubr.msk.bf16.mxu1 %vm3167_vm0, %v7211_v30  ;;  %v7212_v1 = vld [vmem:[%s10559_s0 + $0xc90] ss:$28 sps:$4 sm:$0xff]  }
 0x39b   :  { %v4766_v11 = vpop.f32.mrf.mxu0  ;;  %v5077_v31 = vpop.f32.mrf.mxu1  ;;  %v7215_v15 = vld [vmem:[%s10559_s0 + $0xd6c] ss:$28 sps:$4 sm:$0xff]   ;;  %v10932_v34 = vld [vmem:[#allocation96_spill] sm:$0xff] }
 0x39c   :  { %10929 = vst [vmem:[#allocation78_spill] sm:$0xff] %v9658_v37  ;;  %v9664_v61 = vadd.f32 %v5077_v31, %v8881_v53  ;;  %v7216_v53 = vld [vmem:[%s10559_s0 + $0xcc8] ss:$28 sps:$4 sm:$0xff]   ;;  %v4228_v9 = vadd.f32 %v8831_v23, %v10932_v34 }
 0x39d   :  { %v4767_v51 = vpop.f32.mrf.mxu0  ;;  %v6392_v5 = vpop.f32.mrf.mxu1 }
 0x39e   :  { %v9672_v32 = vadd.f32 %v4767_v51, %v4223_v55  ;;  %v9675_v30 = vadd.f32 %v6392_v5, %v8918_v40 }
 0x39f   :  { %v4769_v16 = vpop.f32.mrf.mxu0  ;;  %v5080_v48 = vpop.f32.mrf.mxu1 }
 0x3a0   :  { %10931 = vst [vmem:[#allocation143_spill] sm:$0xff] %v9675_v30  ;;  %v9686_v11 = vadd.f32 %v5080_v48, %v8893_v21  ;;  %v10934_v16 = vld [vmem:[#allocation98_spill] sm:$0xff] }
 0x3a1   :  { %v4772_v31 = vpop.f32.mrf.mxu0  ;;  %4963 = vmatmul.mubr.bf16.gmra.mxu0 %v7208_v42  ;;  %v6395_v40 = vpop.f32.mrf.mxu1  ;;  %6490 = vmatmul.mubr.msk.bf16.gmra.mxu1 %vm3167_vm0, %v7212_v1  ;;  %v4231_v23 = vadd.f32 %v8837_v41, %v10934_v16  ;;  %v7213_v1 = vld [vmem:[%s10559_s0 + $0xd68] ss:$28 sps:$4 sm:$0xff]  }
 0x3a2   :  { %v9689_v2 = vadd.f32 %v4772_v31, %v4228_v9  ;;  %v9692_v55 = vadd.f32 %v6395_v40, %v8957_v25  ;;  %4970 = vmatprep.mubr.bf16.mxu0 %v7215_v15  ;;  %6493 = vmatprep.mubr.msk.bf16.mxu1 %vm3167_vm0, %v7216_v53  ;;  %v7217_v25 = vld [vmem:[%s10559_s0 + $0xd00] ss:$28 sps:$4 sm:$0xff]   ;;  %v10936_v31 = vld [vmem:[#allocation100_spill] sm:$0xff] }
 0x3a3   :  { %v4774_v51 = vpop.f32.mrf.mxu0  ;;  %v5093_v5 = vpop.f32.mrf.mxu1  ;;  %v7220_v41 = vld [vmem:[%s10559_s0 + $0xda4] ss:$28 sps:$4 sm:$0xff]   ;;  %v4236_v40 = vadd.f32 %v8855_v18, %v10936_v31 }
 0x3a4   :  { %10933 = vst [vmem:[#allocation80_spill] sm:$0xff] %v9692_v55  ;;  %v9698_v21 = vadd.f32 %v5093_v5, %v8931_v49  ;;  %v7221_v49 = vld [vmem:[%s10559_s0 + $0xd38] ss:$28 sps:$4 sm:$0xff]  }
 0x3a5   :  { %v4775_v42 = vpop.f32.mrf.mxu0  ;;  %v6396_v48 = vpop.f32.mrf.mxu1 }
 0x3a6   :  { %v9706_v15 = vadd.f32 %v4775_v42, %v4231_v23  ;;  %v9709_v53 = vadd.f32 %v6396_v48, %v8970_v12 }
 0x3a7   :  { %v4777_v34 = vpop.f32.mrf.mxu0  ;;  %v5096_v9 = vpop.f32.mrf.mxu1 }
 0x3a8   :  { %10935 = vst [vmem:[#allocation82_spill] sm:$0xff] %v9709_v53  ;;  %v9720_v51 = vadd.f32 %v5096_v9, %v8944_v58  ;;  %v10939_v34 = vld [vmem:[#allocation102_spill] sm:$0xff] }
 0x3a9   :  { %v4780_v5 = vpop.f32.mrf.mxu0  ;;  %4971 = vmatmul.mubr.bf16.gmra.mxu0 %v7213_v1  ;;  %v6399_v12 = vpop.f32.mrf.mxu1  ;;  %6494 = vmatmul.mubr.msk.bf16.gmra.mxu1 %vm3167_vm0, %v7217_v25  ;;  %v4239_v18 = vadd.f32 %v8861_v22, %v10939_v34  ;;  %v7218_v25 = vld [vmem:[%s10559_s0 + $0xda0] ss:$28 sps:$4 sm:$0xff]  }
 0x3aa   :  { %10937 = vst [vmem:[#allocation84_spill] sm:$0xff] %v9720_v51  ;;  %v9723_v16 = vadd.f32 %v4780_v5, %v4236_v40  ;;  %v9726_v23 = vadd.f32 %v6399_v12, %v9009_v0  ;;  %4978 = vmatprep.mubr.bf16.mxu0 %v7220_v41  ;;  %6497 = vmatprep.mubr.msk.bf16.mxu1 %vm3167_vm0, %v7221_v49  ;;  %v7222_v0 = vld [vmem:[%s10559_s0 + $0xd70] ss:$28 sps:$4 sm:$0xff]   ;;  %v7225_v22 = vld [vmem:[%s10559_s0 + $0xddc] ss:$28 sps:$4 sm:$0xff]  }
 0x3ab   :  { %v4782_v42 = vpop.f32.mrf.mxu0  ;;  %v5109_v48 = vpop.f32.mrf.mxu1  ;;  %v10942_v5 = vld [vmem:[#allocation104_spill] sm:$0xff] }
 0x3ac   :  { %10938 = vst [vmem:[#allocation86_spill] sm:$0xff] %v9726_v23  ;;  %v9732_v58 = vadd.f32 %v5109_v48, %v8983_v46  ;;  %v7226_v46 = vld [vmem:[%s10559_s0 + $0xda8] ss:$28 sps:$4 sm:$0xff]   ;;  %v4244_v12 = vadd.f32 %v8879_v44, %v10942_v5 }
 0x3ad   :  { %v4783_v1 = vpop.f32.mrf.mxu0  ;;  %v6400_v9 = vpop.f32.mrf.mxu1 }
 0x3ae   :  { %10940 = vst [vmem:[#allocation88_spill] sm:$0xff] %v9732_v58  ;;  %v9740_v41 = vadd.f32 %v4783_v1, %v4239_v18  ;;  %v9743_v49 = vadd.f32 %v6400_v9, %v9022_v63 }
 0x3af   :  { %v4785_v31 = vpop.f32.mrf.mxu0  ;;  %v5112_v40 = vpop.f32.mrf.mxu1 }
 0x3b0   :  { %10941 = vst [vmem:[#allocation90_spill] sm:$0xff] %v9743_v49  ;;  %v9754_v42 = vadd.f32 %v5112_v40, %v8996_v35  ;;  %v10946_v31 = vld [vmem:[#allocation106_spill] sm:$0xff] }
 0x3b1   :  { %v4788_v48 = vpop.f32.mrf.mxu0  ;;  %4979 = vmatmul.mubr.bf16.gmra.mxu0 %v7218_v25  ;;  %v6403_v63 = vpop.f32.mrf.mxu1  ;;  %6498 = vmatmul.mubr.msk.bf16.gmra.mxu1 %vm3167_vm0, %v7222_v0  ;;  %v4247_v44 = vadd.f32 %v8885_v13, %v10946_v31  ;;  %v7223_v0 = vld [vmem:[%s10559_s0 + $0xdd8] ss:$28 sps:$4 sm:$0xff]  }
 0x3b2   :  { %10943 = vst [vmem:[#allocation92_spill] sm:$0xff] %v9754_v42  ;;  %v9757_v34 = vadd.f32 %v4788_v48, %v4244_v12  ;;  %v9760_v18 = vadd.f32 %v6403_v63, %v9061_v6  ;;  %4986 = vmatprep.mubr.bf16.mxu0 %v7225_v22  ;;  %6501 = vmatprep.mubr.msk.bf16.mxu1 %vm3167_vm0, %v7226_v46  ;;  %v7227_v6 = vld [vmem:[%s10559_s0 + $0xde0] ss:$28 sps:$4 sm:$0xff]   ;;  %v10950_v12 = vld [vmem:[#allocation108_spill] sm:$0xff] }
 0x3b3   :  { %v4790_v1 = vpop.f32.mrf.mxu0  ;;  %v5125_v9 = vpop.f32.mrf.mxu1 }
 0x3b4   :  { %10944 = vst [vmem:[#allocation94_spill] sm:$0xff] %v9757_v34  ;;  %10945 = vst [vmem:[#allocation96_spill] sm:$0xff] %v9760_v18  ;;  %v9766_v35 = vadd.f32 %v5125_v9, %v9035_v19  ;;  %v4252_v19 = vadd.f32 %v8903_v4, %v10950_v12  ;;  %v10966_v34 = vld [vmem:[#allocation75_spill] sm:$0xff] }
 0x3b5   :  { %v4791_v25 = vpop.f32.mrf.mxu0  ;;  %v6404_v40 = vpop.f32.mrf.mxu1 }
 0x3b6   :  { %10947 = vst [vmem:[#allocation98_spill] sm:$0xff] %v9766_v35  ;;  %v9774_v22 = vadd.f32 %v4791_v25, %v4247_v44  ;;  %v9777_v46 = vadd.f32 %v6404_v40, %v9074_v38  ;;  %v10953_v25 = vld [vmem:[#allocation110_spill] sm:$0xff] }
 0x3b7   :  { %v4793_v5 = vpop.f32.mrf.mxu0  ;;  %v5128_v13 = vpop.f32.mrf.mxu1  ;;  %v4255_v40 = vadd.f32 %v8910_v28, %v10953_v25 }
 0x3b8   :  { %10948 = vst [vmem:[#allocation100_spill] sm:$0xff] %v9774_v22  ;;  %10949 = vst [vmem:[#allocation102_spill] sm:$0xff] %v9777_v46  ;;  %v9782_v48 = vadd.f32 %v5128_v13, %v9048_v27 }
 0x3b9   :  { %v4796_v63 = vpop.f32.mrf.mxu0  ;;  %4987 = vmatmul.mubr.bf16.gmra.mxu0 %v7223_v0  ;;  %v6407_v1 = vpop.f32.mrf.mxu1  ;;  %6502 = vmatmul.mubr.msk.bf16.gmra.mxu1 %vm3167_vm0, %v7227_v6 }
 0x3ba   :  { %10951 = vst [vmem:[#allocation104_spill] sm:$0xff] %v9782_v48  ;;  %v9785_v9 = vadd.f32 %v4796_v63, %v4252_v19  ;;  %v9788_v31 = vadd.f32 %v6407_v1, %v9113_v20  ;;  %v10957_v19 = vld [vmem:[#allocation112_spill] sm:$0xff]  ;;  %v10959_v1 = vld [vmem:[#allocation71_spill] sm:$0xff] }
 0x3bb   :  { %v4798_v38 = vpop.f32.mrf.mxu0  ;;  %v5141_v44 = vpop.f32.mrf.mxu1  ;;  %v10958_v20 = vld [vmem:[#allocation144_spill] sm:$0xff] }
 0x3bc   :  { %10952 = vst [vmem:[#allocation106_spill] sm:$0xff] %v9788_v31  ;;  %v9793_v4 = vadd.f32 %v5141_v44, %v9087_v8  ;;  %v4260_v63 = vadd.f32 %v10958_v20, %v10957_v19  ;;  %v10962_v8 = vld [vmem:[#allocation79_spill] sm:$0xff] }
 0x3bd   :  { %v4799_v27 = vpop.f32.mrf.mxu0  ;;  %v6408_v5 = vpop.f32.mrf.mxu1 }
 0x3be   :  { %10954 = vst [vmem:[#allocation108_spill] sm:$0xff] %v9793_v4  ;;  %v9795_v13 = vadd.f32 %v4799_v27, %v4255_v40  ;;  %v9798_v0 = vadd.f32 %v6408_v5, %v9126_v45  ;;  %v10965_v45 = vld [vmem:[#allocation145_spill] sm:$0xff] }
 0x3bf   :  { %v4801_v6 = vpop.f32.mrf.mxu0  ;;  %v5144_v12 = vpop.f32.mrf.mxu1 }
 0x3c0   :  { %10955 = vst [vmem:[#allocation110_spill] sm:$0xff] %v9795_v13  ;;  %10956 = vst [vmem:[#allocation153_spill] sm:$0xff] %v9798_v0  ;;  %v9803_v38 = vadd.f32 %v5144_v12, %v10959_v1  ;;  %v10964_v13 = vld [vmem:[#allocation114_spill] sm:$0xff]  ;;  %v10968_v1 = vld [vmem:[#allocation81_spill] sm:$0xff] }
 0x3c1   :  { %v4804_v22 = vpop.f32.mrf.mxu0  ;;  %v6411_v28 = vpop.f32.mrf.mxu1  ;;  %v4263_v5 = vadd.f32 %v10965_v45, %v10964_v13  ;;  %v10971_v13 = vld [vmem:[#allocation146_spill] sm:$0xff] }
 0x3c2   :  { %10960 = vst [vmem:[#allocation112_spill] sm:$0xff] %v9803_v38  ;;  %v9805_v25 = vadd.f32 %v4804_v22, %v4260_v63  ;;  %v9808_v44 = vadd.f32 %v6411_v28, %v10962_v8 }
 0x3c3   :  { %v4806_v40 = vpop.f32.mrf.mxu0  ;;  %v5157_v27 = vpop.f32.mrf.mxu1 }
 0x3c4   :  { %10961 = vst [vmem:[#allocation144_spill] sm:$0xff] %v9805_v25  ;;  %10963 = vst [vmem:[#allocation71_spill] sm:$0xff] %v9808_v44  ;;  %v9815_v19 = vadd.f32 %v5157_v27, %v10966_v34  ;;  %v10970_v25 = vld [vmem:[#allocation116_spill] sm:$0xff]  ;;  %v10972_v34 = vld [vmem:[#allocation77_spill] sm:$0xff] }
 0x3c5   :  { %v4807_v12 = vpop.f32.mrf.mxu0  ;;  %v6412_v20 = vpop.f32.mrf.mxu1  ;;  %v4268_v45 = vadd.f32 %v10971_v13, %v10970_v25  ;;  %v10977_v25 = vld [vmem:[#allocation147_spill] sm:$0xff] }
 0x3c6   :  { %10967 = vst [vmem:[#allocation79_spill] sm:$0xff] %v9815_v19  ;;  %v9819_v63 = vadd.f32 %v4807_v12, %v4263_v5  ;;  %v9822_v28 = vadd.f32 %v6412_v20, %v10968_v1  ;;  %v10974_v20 = vld [vmem:[#allocation87_spill] sm:$0xff]  ;;  %v10976_v19 = vld [vmem:[#allocation118_spill] sm:$0xff] }
 0x3c7   :  { %v4809_v8 = vpop.f32.mrf.mxu0  ;;  %v5160_v40 = vpop.f32.mrf.mxu1  ;;  %v4271_v13 = vadd.f32 %v10977_v25, %v10976_v19  ;;  %v10983_v19 = vld [vmem:[#allocation148_spill] sm:$0xff] }
 0x3c8   :  { %10969 = vst [vmem:[#allocation114_spill] sm:$0xff] %v9822_v28  ;;  %v9829_v27 = vadd.f32 %v5160_v40, %v10972_v34  ;;  %v10978_v40 = vld [vmem:[#allocation83_spill] sm:$0xff] }
 0x3c9   :  { %v4812_v44 = vpop.f32.mrf.mxu0  ;;  %v6415_v29 = vpop.f32.mrf.mxu1 }
 0x3ca   :  { %10973 = vst [vmem:[#allocation145_spill] sm:$0xff] %v9829_v27  ;;  %v9833_v12 = vadd.f32 %v4812_v44, %v4268_v45  ;;  %v9836_v1 = vadd.f32 %v6415_v29, %v10974_v20  ;;  %v10980_v29 = vld [vmem:[#allocation89_spill] sm:$0xff]  ;;  %v10982_v27 = vld [vmem:[#allocation120_spill] sm:$0xff] }
 0x3cb   :  { %v4814_v8 = vpop.f32.mrf.mxu0  ;;  %v5173_v22 = vpop.f32.mrf.mxu1  ;;  %v4276_v25 = vadd.f32 %v10983_v19, %v10982_v27  ;;  %v10989_v27 = vld [vmem:[#allocation149_spill] sm:$0xff] }
 0x3cc   :  { %10975 = vst [vmem:[#allocation75_spill] sm:$0xff] %v9836_v1  ;;  %v9843_v34 = vadd.f32 %v5173_v22, %v10978_v40  ;;  %v10984_v22 = vld [vmem:[#allocation85_spill] sm:$0xff] }
 0x3cd   :  { %v4815_v28 = vpop.f32.mrf.mxu0  ;;  %v6416_v26 = vpop.f32.mrf.mxu1 }
 0x3ce   :  { %10979 = vst [vmem:[#allocation81_spill] sm:$0xff] %v9843_v34  ;;  %v9847_v45 = vadd.f32 %v4815_v28, %v4271_v13  ;;  %v9850_v20 = vadd.f32 %v6416_v26, %v10980_v29  ;;  %v10986_v26 = vld [vmem:[#allocation95_spill] sm:$0xff]  ;;  %v10988_v34 = vld [vmem:[#allocation122_spill] sm:$0xff] }
 0x3cf   :  { %v4817_v8 = vpop.f32.mrf.mxu0  ;;  %v5176_v5 = vpop.f32.mrf.mxu1  ;;  %v4279_v19 = vadd.f32 %v10989_v27, %v10988_v34  ;;  %v10995_v34 = vld [vmem:[#allocation150_spill] sm:$0xff] }
 0x3d0   :  { %10981 = vst [vmem:[#allocation116_spill] sm:$0xff] %v9850_v20  ;;  %v9857_v40 = vadd.f32 %v5176_v5, %v10984_v22  ;;  %v10990_v5 = vld [vmem:[#allocation91_spill] sm:$0xff] }
 0x3d1   :  { %v4820_v1 = vpop.f32.mrf.mxu0  ;;  %v6419_v60 = vpop.f32.mrf.mxu1 }
 0x3d2   :  { %10985 = vst [vmem:[#allocation146_spill] sm:$0xff] %v9857_v40  ;;  %v9861_v13 = vadd.f32 %v4820_v1, %v4276_v25  ;;  %v9864_v29 = vadd.f32 %v6419_v60, %v10986_v26  ;;  %v10992_v60 = vld [vmem:[#allocation97_spill] sm:$0xff]  ;;  %v10994_v40 = vld [vmem:[#allocation124_spill] sm:$0xff] }
 0x3d3   :  { %v4822_v8 = vpop.f32.mrf.mxu0  ;;  %v5189_v44 = vpop.f32.mrf.mxu1  ;;  %v4284_v27 = vadd.f32 %v10995_v34, %v10994_v40  ;;  %v11001_v40 = vld [vmem:[#allocation151_spill] sm:$0xff] }
 0x3d4   :  { %10987 = vst [vmem:[#allocation77_spill] sm:$0xff] %v9864_v29  ;;  %v9871_v22 = vadd.f32 %v5189_v44, %v10990_v5  ;;  %v10996_v44 = vld [vmem:[#allocation93_spill] sm:$0xff] }
 0x3d5   :  { %v4823_v20 = vpop.f32.mrf.mxu0  ;;  %v6420_v54 = vpop.f32.mrf.mxu1 }
 0x3d6   :  { %10991 = vst [vmem:[#allocation87_spill] sm:$0xff] %v9871_v22  ;;  %v9875_v25 = vadd.f32 %v4823_v20, %v4279_v19  ;;  %v9878_v26 = vadd.f32 %v6420_v54, %v10992_v60  ;;  %v10998_v54 = vld [vmem:[#allocation103_spill] sm:$0xff]  ;;  %v11000_v22 = vld [vmem:[#allocation126_spill] sm:$0xff] }
 0x3d7   :  { %v4825_v8 = vpop.f32.mrf.mxu0  ;;  %v5192_v28 = vpop.f32.mrf.mxu1  ;;  %v4287_v34 = vadd.f32 %v11001_v40, %v11000_v22  ;;  %v11007_v22 = vld [vmem:[#allocation152_spill] sm:$0xff] }
 0x3d8   :  { %10993 = vst [vmem:[#allocation118_spill] sm:$0xff] %v9878_v26  ;;  %v9885_v5 = vadd.f32 %v5192_v28, %v10996_v44  ;;  %v11002_v28 = vld [vmem:[#allocation99_spill] sm:$0xff] }
 0x3d9   :  { %v4828_v29 = vpop.f32.mrf.mxu0  ;;  %v6423_v57 = vpop.f32.mrf.mxu1 }
 0x3da   :  { %10997 = vst [vmem:[#allocation147_spill] sm:$0xff] %v9885_v5  ;;  %v9889_v19 = vadd.f32 %v4828_v29, %v4284_v27  ;;  %v9892_v60 = vadd.f32 %v6423_v57, %v10998_v54  ;;  %v11004_v57 = vld [vmem:[#allocation105_spill] sm:$0xff]  ;;  %v11006_v5 = vld [vmem:[#allocation128_spill] sm:$0xff] }
 0x3db   :  { %v4830_v8 = vpop.f32.mrf.mxu0  ;;  %v5205_v1 = vpop.f32.mrf.mxu1  ;;  %v4292_v40 = vadd.f32 %v11007_v22, %v11006_v5  ;;  %v11013_v5 = vld [vmem:[#allocation27_spill] sm:$0xff] }
 0x3dc   :  { %10999 = vst [vmem:[#allocation83_spill] sm:$0xff] %v9892_v60  ;;  %v9899_v44 = vadd.f32 %v5205_v1, %v11002_v28  ;;  %v11008_v1 = vld [vmem:[#allocation101_spill] sm:$0xff] }
 0x3dd   :  { %v4831_v26 = vpop.f32.mrf.mxu0  ;;  %v6424_v14 = vpop.f32.mrf.mxu1 }
 0x3de   :  { %11003 = vst [vmem:[#allocation89_spill] sm:$0xff] %v9899_v44  ;;  %v9903_v27 = vadd.f32 %v4831_v26, %v4287_v34  ;;  %v9906_v54 = vadd.f32 %v6424_v14, %v11004_v57  ;;  %v11010_v14 = vld [vmem:[#allocation111_spill] sm:$0xff]  ;;  %v11012_v44 = vld [vmem:[#allocation130_spill] sm:$0xff] }
 0x3df   :  { %v4833_v8 = vpop.f32.mrf.mxu0  ;;  %v5208_v20 = vpop.f32.mrf.mxu1  ;;  %v4295_v22 = vadd.f32 %v11013_v5, %v11012_v44  ;;  %v11019_v44 = vld [vmem:[#allocation67_spill] sm:$0xff] }
 0x3e0   :  { %11005 = vst [vmem:[#allocation120_spill] sm:$0xff] %v9906_v54  ;;  %v9913_v28 = vadd.f32 %v5208_v20, %v11008_v1  ;;  %v11014_v20 = vld [vmem:[#allocation107_spill] sm:$0xff] }
 0x3e1   :  { %v4836_v60 = vpop.f32.mrf.mxu0  ;;  %v6427_v37 = vpop.f32.mrf.mxu1 }
 0x3e2   :  { %11009 = vst [vmem:[#allocation148_spill] sm:$0xff] %v9913_v28  ;;  %v9917_v34 = vadd.f32 %v4836_v60, %v4292_v40  ;;  %v9920_v57 = vadd.f32 %v6427_v37, %v11010_v14  ;;  %v11016_v37 = vld [vmem:[#allocation113_spill] sm:$0xff]  ;;  %v11018_v28 = vld [vmem:[#allocation132_spill] sm:$0xff] }
 0x3e3   :  { %v4838_v8 = vpop.f32.mrf.mxu0  ;;  %v5221_v29 = vpop.f32.mrf.mxu1  ;;  %v4300_v5 = vadd.f32 %v11019_v44, %v11018_v28  ;;  %v11025_v28 = vld [vmem:[#allocation29_spill] sm:$0xff] }
 0x3e4   :  { %11011 = vst [vmem:[#allocation85_spill] sm:$0xff] %v9920_v57  ;;  %v9927_v1 = vadd.f32 %v5221_v29, %v11014_v20  ;;  %v11020_v29 = vld [vmem:[#allocation109_spill] sm:$0xff] }
 0x3e5   :  { %v4839_v54 = vpop.f32.mrf.mxu0  ;;  %v6428_v30 = vpop.f32.mrf.mxu1 }
 0x3e6   :  { %11015 = vst [vmem:[#allocation95_spill] sm:$0xff] %v9927_v1  ;;  %v9931_v40 = vadd.f32 %v4839_v54, %v4295_v22  ;;  %v9934_v14 = vadd.f32 %v6428_v30, %v11016_v37  ;;  %v11022_v30 = vld [vmem:[#allocation119_spill] sm:$0xff]  ;;  %v11024_v1 = vld [vmem:[#allocation134_spill] sm:$0xff] }
 0x3e7   :  { %v4841_v8 = vpop.f32.mrf.mxu0  ;;  %v5224_v26 = vpop.f32.mrf.mxu1  ;;  %v4303_v44 = vadd.f32 %v11025_v28, %v11024_v1  ;;  %v11031_v1 = vld [vmem:[#allocation69_spill] sm:$0xff] }
 0x3e8   :  { %11017 = vst [vmem:[#allocation122_spill] sm:$0xff] %v9934_v14  ;;  %v9941_v20 = vadd.f32 %v5224_v26, %v11020_v29  ;;  %v11026_v26 = vld [vmem:[#allocation115_spill] sm:$0xff] }
 0x3e9   :  { %v4844_v57 = vpop.f32.mrf.mxu0  ;;  %v6431_v55 = vpop.f32.mrf.mxu1 }
 0x3ea   :  { %11021 = vst [vmem:[#allocation149_spill] sm:$0xff] %v9941_v20  ;;  %v9945_v22 = vadd.f32 %v4844_v57, %v4300_v5  ;;  %v9948_v37 = vadd.f32 %v6431_v55, %v11022_v30  ;;  %v11028_v55 = vld [vmem:[#allocation121_spill] sm:$0xff]  ;;  %v11030_v20 = vld [vmem:[#allocation136_spill] sm:$0xff] }
 0x3eb   :  { %v4846_v8 = vpop.f32.mrf.mxu0  ;;  %v5237_v60 = vpop.f32.mrf.mxu1  ;;  %v4308_v28 = vadd.f32 %v11031_v1, %v11030_v20  ;;  %v11037_v20 = vld [vmem:[#allocation31_spill] sm:$0xff] }
 0x3ec   :  { %11023 = vst [vmem:[#allocation91_spill] sm:$0xff] %v9948_v37  ;;  %v9955_v29 = vadd.f32 %v5237_v60, %v11026_v26  ;;  %v11032_v60 = vld [vmem:[#allocation117_spill] sm:$0xff] }
 0x3ed   :  { %v4847_v14 = vpop.f32.mrf.mxu0  ;;  %v6432_v53 = vpop.f32.mrf.mxu1 }
 0x3ee   :  { %11027 = vst [vmem:[#allocation97_spill] sm:$0xff] %v9955_v29  ;;  %v9959_v5 = vadd.f32 %v4847_v14, %v4303_v44  ;;  %v9962_v30 = vadd.f32 %v6432_v53, %v11028_v55  ;;  %v11034_v53 = vld [vmem:[#allocation127_spill] sm:$0xff]  ;;  %v11036_v29 = vld [vmem:[#allocation138_spill] sm:$0xff] }
 0x3ef   :  { %v4849_v8 = vpop.f32.mrf.mxu0  ;;  %v5240_v54 = vpop.f32.mrf.mxu1  ;;  %v4311_v1 = vadd.f32 %v11037_v20, %v11036_v29  ;;  %v11043_v29 = vld [vmem:[#allocation33_spill] sm:$0xff] }
 0x3f0   :  { %11029 = vst [vmem:[#allocation124_spill] sm:$0xff] %v9962_v30  ;;  %v9969_v26 = vadd.f32 %v5240_v54, %v11032_v60  ;;  %v11038_v54 = vld [vmem:[#allocation123_spill] sm:$0xff] }
 0x3f1   :  { %v4852_v37 = vpop.f32.mrf.mxu0  ;;  %v6435_v23 = vpop.f32.mrf.mxu1 }
 0x3f2   :  { %11033 = vst [vmem:[#allocation150_spill] sm:$0xff] %v9969_v26  ;;  %v9973_v44 = vadd.f32 %v4852_v37, %v4308_v28  ;;  %v9976_v55 = vadd.f32 %v6435_v23, %v11034_v53  ;;  %v11040_v23 = vld [vmem:[#allocation129_spill] sm:$0xff]  ;;  %v11042_v26 = vld [vmem:[#allocation140_spill] sm:$0xff]  ;;  %v11047_v37 = vld [vmem:[#allocation142_spill] sm:$0xff] }
 0x3f3   :  { %v4854_v8 = vpop.f32.mrf.mxu0  ;;  %v5253_v57 = vpop.f32.mrf.mxu1  ;;  %v4316_v20 = vadd.f32 %v11043_v29, %v11042_v26  ;;  %v11048_v26 = vld [vmem:[#allocation73_spill] sm:$0xff] }
 0x3f4   :  { %11035 = vst [vmem:[#allocation93_spill] sm:$0xff] %v9976_v55  ;;  %v9983_v60 = vadd.f32 %v5253_v57, %v11038_v54  ;;  %v11044_v57 = vld [vmem:[#allocation125_spill] sm:$0xff]  ;;  %v4319_v29 = vadd.f32 %v11048_v26, %v11047_v37  ;;  %v11053_v37 = vld [vmem:[#allocation35_spill] sm:$0xff] }
 0x3f5   :  { %v4855_v30 = vpop.f32.mrf.mxu0  ;;  %v6436_v49 = vpop.f32.mrf.mxu1 }
 0x3f6   :  { %11039 = vst [vmem:[#allocation103_spill] sm:$0xff] %v9983_v60  ;;  %v9987_v28 = vadd.f32 %v4855_v30, %v4311_v1  ;;  %v9990_v53 = vadd.f32 %v6436_v49, %v11040_v23  ;;  %v11052_v30 = vld [vmem:[#allocation2_spill] sm:$0xff] }
 0x3f7   :  { %v4857_v8 = vpop.f32.mrf.mxu0  ;;  %v5256_v14 = vpop.f32.mrf.mxu1  ;;  %v4324_v26 = vadd.f32 %v11053_v37, %v11052_v30  ;;  %v11057_v30 = vld [vmem:[#allocation37_spill] sm:$0xff] }
 0x3f8   :  { %11041 = vst [vmem:[#allocation126_spill] sm:$0xff] %v9990_v53  ;;  %v9997_v54 = vadd.f32 %v5256_v14, %v11044_v57  ;;  %v11049_v14 = vld [vmem:[#allocation131_spill] sm:$0xff] }
 0x3f9   :  { %v4860_v55 = vpop.f32.mrf.mxu0  ;;  %v6439_v18 = vpop.f32.mrf.mxu1 }
 0x3fa   :  { %11045 = vst [vmem:[#allocation151_spill] sm:$0xff] %v9997_v54  ;;  %v10001_v1 = vadd.f32 %v4860_v55, %v4316_v20  ;;  %v10004_v49 = vadd.f32 %v6439_v18, %v9529_v50  ;;  %v11056_v55 = vld [vmem:[#allocation3_spill] sm:$0xff] }
 0x3fb   :  { %v4862_v23 = vpop.f32.mrf.mxu0  ;;  %v5269_v8 = vpop.f32.mrf.mxu1  ;;  %v4327_v37 = vadd.f32 %v11057_v30, %v11056_v55 }
 0x3fc   :  { %11046 = vst [vmem:[#allocation99_spill] sm:$0xff] %v10004_v49  ;;  %v10011_v57 = vadd.f32 %v5269_v8, %v11049_v14  ;;  %v11054_v8 = vld [vmem:[#allocation133_spill] sm:$0xff] }
 0x3fd   :  { %v4863_v53 = vpop.f32.mrf.mxu0  ;;  %v6440_v46 = vpop.f32.mrf.mxu1 }
 0x3fe   :  { %11050 = vst [vmem:[#allocation105_spill] sm:$0xff] %v10011_v57  ;;  %v10015_v20 = vadd.f32 %v4863_v53, %v4319_v29  ;;  %v10018_v50 = vadd.f32 %v6440_v46, %v9542_v39 }
 0x3ff   :  { %v4865_v18 = vpop.f32.mrf.mxu0  ;;  %v5272_v23 = vpop.f32.mrf.mxu1 }
 0x400   :  { %11051 = vst [vmem:[#allocation128_spill] sm:$0xff] %v10018_v50  ;;  %v10025_v14 = vadd.f32 %v5272_v23, %v11054_v8 }
 0x401   :  { %v4868_v49 = vpop.f32.mrf.mxu0  ;;  %v6443_v31 = vpop.f32.mrf.mxu1 }
 0x402   :  { %11055 = vst [vmem:[#allocation152_spill] sm:$0xff] %v10025_v14  ;;  %v10029_v29 = vadd.f32 %v4868_v49, %v4324_v26  ;;  %v10032_v39 = vadd.f32 %v6443_v31, %v9587_v59 }
 0x403   :  { %v4870_v46 = vpop.f32.mrf.mxu0  ;;  %v5285_v18 = vpop.f32.mrf.mxu1 }
 0x404   :  { %v10037_v6 = vadd.f32 %v5285_v18, %v9553_v3 }
 0x405   :  { %v4871_v23 = vpop.f32.mrf.mxu0  ;;  %v6444_v8 = vpop.f32.mrf.mxu1 }
 0x406   :  { %v10039_v50 = vadd.f32 %v4871_v23, %v4327_v37  ;;  %v10042_v0 = vadd.f32 %v6444_v8, %v9604_v17 }
 0x407   :  { %v4873_v49 = vpop.f32.mrf.mxu0  ;;  %v5288_v26 = vpop.f32.mrf.mxu1 }
 0x408   :  { %v10045_v59 = vadd.f32 %v5288_v26, %v9570_v62 }
 0x409   :  { %v10047_v31 = vpop.f32.mrf.mxu0  ;;  %v6447_v46 = vpop.f32.mrf.mxu1 }
 0x40a   :  { %v10050_v55 = vadd.f32 %v6447_v46, %v9655_v10 }
 0x40b   :  { %v4878_v3 = vpop.f32.mrf.mxu0  ;;  %v5301_v18 = vpop.f32.mrf.mxu1 }
 0x40c   :  { %v10053_v30 = vadd.f32 %v5301_v18, %v9621_v7 }
 0x40d   :  { %v10055_v37 = vpop.f32.mrf.mxu0  ;;  %v6448_v17 = vpop.f32.mrf.mxu1 }
 0x40e   :  { %v10058_v23 = vadd.f32 %v6448_v17, %v9672_v32 }
 0x40f   :  { %v4881_v8 = vpop.f32.mrf.mxu0  ;;  %v5304_v62 = vpop.f32.mrf.mxu1 }
 0x410   :  { %v10061_v49 = vadd.f32 %v5304_v62, %v9638_v33 }
 0x411   :  { %v10063_v26 = vpop.f32.mrf.mxu0  ;;  %v6451_v10 = vpop.f32.mrf.mxu1 }
 0x412   :  { %v10066_v46 = vadd.f32 %v6451_v10, %v9723_v16 }
 0x413   :  { %v4886_v3 = vpop.f32.mrf.mxu0  ;;  %v5317_v7 = vpop.f32.mrf.mxu1 }
 0x414   :  { %v10069_v18 = vadd.f32 %v5317_v7, %v9689_v2  ;;  %v11058_v7 = vld [vmem:[#allocation94_spill] sm:$0xff] }
 0x415   :  { %v10071_v53 = vpop.f32.mrf.mxu0  ;;  %v6452_v32 = vpop.f32.mrf.mxu1 }
 0x416   :  { %v10074_v17 = vadd.f32 %v6452_v32, %v9740_v41  ;;  %v11059_v32 = vld [vmem:[#allocation110_spill] sm:$0xff] }
 0x417   :  { %v4889_v8 = vpop.f32.mrf.mxu0  ;;  %v5320_v33 = vpop.f32.mrf.mxu1 }
 0x418   :  { %v10077_v62 = vadd.f32 %v5320_v33, %v9706_v15  ;;  %v11060_v33 = vld [vmem:[#allocation100_spill] sm:$0xff] }
 0x419   :  { %v10079_v14 = vpop.f32.mrf.mxu0  ;;  %v6455_v16 = vpop.f32.mrf.mxu1 }
 0x41a   :  { %v10082_v10 = vadd.f32 %v6455_v16, %v9785_v9 }
 0x41b   :  { %v4894_v3 = vpop.f32.mrf.mxu0  ;;  %v5333_v2 = vpop.f32.mrf.mxu1 }
 0x41c   :  { %v10085_v38 = vadd.f32 %v5333_v2, %v11058_v7  ;;  %v11061_v7 = vld [vmem:[#allocation144_spill] sm:$0xff] }
 0x41d   :  { %v10087_v57 = vpop.f32.mrf.mxu0  ;;  %v6456_v41 = vpop.f32.mrf.mxu1 }
 0x41e   :  { %v10090_v8 = vadd.f32 %v6456_v41, %v11059_v32 }
 0x41f   :  { %v4897_v4 = vpop.f32.mrf.mxu0  ;;  %v5336_v15 = vpop.f32.mrf.mxu1 }
 0x420   :  { %v10093_v54 = vadd.f32 %v5336_v15, %v11060_v33 }
 0x421   :  { %v10095_v48 = vpop.f32.mrf.mxu0  ;;  %v6459_v9 = vpop.f32.mrf.mxu1 }
 0x422   :  { %v10098_v16 = vadd.f32 %v6459_v9, %v9833_v12 }
 0x423   :  { %v4902_v3 = vpop.f32.mrf.mxu0  ;;  %v5349_v2 = vpop.f32.mrf.mxu1 }
 0x424   :  { %v10101_v60 = vadd.f32 %v5349_v2, %v11061_v7 }
 0x425   :  { %v10103_v35 = vpop.f32.mrf.mxu0  ;;  %v6460_v41 = vpop.f32.mrf.mxu1 }
 0x426   :  { %v10106_v4 = vadd.f32 %v6460_v41, %v9847_v45 }
 0x427   :  { %v4905_v32 = vpop.f32.mrf.mxu0  ;;  %v5352_v15 = vpop.f32.mrf.mxu1 }
 0x428   :  { %11062 = vst [vmem:[#allocation101_spill] sm:$0xff] %v10106_v4  ;;  %v10109_v33 = vadd.f32 %v5352_v15, %v9819_v63 }
 0x429   :  { %v10111_v42 = vpop.f32.mrf.mxu0  ;;  %v6463_v12 = vpop.f32.mrf.mxu1 }
 0x42a   :  { %11063 = vst [vmem:[#allocation111_spill] sm:$0xff] %v10109_v33  ;;  %v10114_v9 = vadd.f32 %v6463_v12, %v9889_v19 }
 0x42b   :  { %v4910_v3 = vpop.f32.mrf.mxu0  ;;  %v5365_v2 = vpop.f32.mrf.mxu1 }
 0x42c   :  { %11064 = vst [vmem:[#allocation130_spill] sm:$0xff] %v10114_v9  ;;  %v10117_v7 = vadd.f32 %v5365_v2, %v9861_v13 }
 0x42d   :  { %v10119_v58 = vpop.f32.mrf.mxu0  ;;  %v6464_v45 = vpop.f32.mrf.mxu1 }
 0x42e   :  { %11065 = vst [vmem:[#allocation27_spill] sm:$0xff] %v10117_v7  ;;  %v10122_v41 = vadd.f32 %v6464_v45, %v9903_v27 }
 0x42f   :  { %v4913_v32 = vpop.f32.mrf.mxu0  ;;  %v5368_v63 = vpop.f32.mrf.mxu1 }
 0x430   :  { %11066 = vst [vmem:[#allocation107_spill] sm:$0xff] %v10122_v41  ;;  %v10125_v15 = vadd.f32 %v5368_v63, %v9875_v25 }
 0x431   :  { %v10127_v51 = vpop.f32.mrf.mxu0  ;;  %v6467_v19 = vpop.f32.mrf.mxu1 }
 0x432   :  { %11067 = vst [vmem:[#allocation113_spill] sm:$0xff] %v10125_v15  ;;  %v10130_v12 = vadd.f32 %v6467_v19, %v9945_v22 }
 0x433   :  { %v4918_v3 = vpop.f32.mrf.mxu0  ;;  %v5381_v13 = vpop.f32.mrf.mxu1 }
 0x434   :  { %11068 = vst [vmem:[#allocation132_spill] sm:$0xff] %v10130_v12  ;;  %v10133_v2 = vadd.f32 %v5381_v13, %v9917_v34 }
 0x435   :  { %v10135_v7 = vpop.f32.mrf.mxu0  ;;  %v6468_v27 = vpop.f32.mrf.mxu1 }
 0x436   :  { %11069 = vst [vmem:[#allocation67_spill] sm:$0xff] %v10133_v2  ;;  %v10138_v45 = vadd.f32 %v6468_v27, %v9959_v5  ;;  %v11074_v27 = vld [vmem:[#allocation4_spill] sm:$0xff] }
 0x437   :  { %v4921_v32 = vpop.f32.mrf.mxu0  ;;  %v5384_v25 = vpop.f32.mrf.mxu1 }
 0x438   :  { %11070 = vst [vmem:[#allocation109_spill] sm:$0xff] %v10138_v45  ;;  %v10141_v63 = vadd.f32 %v5384_v25, %v9931_v40  ;;  %v11075_v32 = vld [vmem:[#allocation39_spill] sm:$0xff] }
 0x439   :  { %v10143_v15 = vpop.f32.mrf.mxu0  ;;  %v6471_v22 = vpop.f32.mrf.mxu1  ;;  %v4332_v45 = vadd.f32 %v11075_v32, %v11074_v27  ;;  %v11081_v32 = vld [vmem:[#allocation71_spill] sm:$0xff] }
 0x43a   :  { %11071 = vst [vmem:[#allocation119_spill] sm:$0xff] %v10141_v63  ;;  %v10146_v19 = vadd.f32 %v6471_v22, %v10001_v1 }
 0x43b   :  { %v4926_v3 = vpop.f32.mrf.mxu0  ;;  %v5397_v34 = vpop.f32.mrf.mxu1  ;;  %v4877_v12 = vadd.f32 %v10047_v31, %v4332_v45 }
 0x43c   :  { %11072 = vst [vmem:[#allocation134_spill] sm:$0xff] %v10146_v19  ;;  %v10149_v13 = vadd.f32 %v5397_v34, %v9973_v44  ;;  %v11078_v3 = vld [vmem:[#allocation5_spill] sm:$0xff] }
 0x43d   :  { %v10151_v2 = vpop.f32.mrf.mxu0  ;;  %v6472_v5 = vpop.f32.mrf.mxu1  ;;  %v11079_v34 = vld [vmem:[#allocation41_spill] sm:$0xff] }
 0x43e   :  { %11073 = vst [vmem:[#allocation29_spill] sm:$0xff] %v10149_v13  ;;  %v10156_v40 = vadd.f32 %v6472_v5, %v10015_v20  ;;  %v4335_v13 = vadd.f32 %v11079_v34, %v11078_v3 }
 0x43f   :  { %v4929_v25 = vpop.f32.mrf.mxu0  ;;  %v5400_v63 = vpop.f32.mrf.mxu1 }
 0x440   :  { %11076 = vst [vmem:[#allocation115_spill] sm:$0xff] %v10156_v40  ;;  %v10160_v1 = vadd.f32 %v5400_v63, %v9987_v28  ;;  %v4880_v27 = vadd.f32 %v10055_v37, %v4335_v13  ;;  %v10172_v28 = vld [vmem:[%s10560_s2] ss:$0 sm:$0xff]  ;;  %v11080_v63 = vld [vmem:[#allocation72_spill] sm:$0xff]  ;;  %v11087_v40 = vld [vmem:[#allocation79_spill] sm:$0xff] }
 0x441   :  { %v10162_v22 = vpop.f32.mrf.mxu0  ;;  %v6475_v44 = vpop.f32.mrf.mxu1  ;;  %v11082_v25 = vmax.f32 %v11080_v63, %v11081_v32  ;;  %v11083_v37 = vld [vmem:[#allocation6_spill] sm:$0xff]  ;;  %v11088_v33 = vmax.f32 %v9562_v52, %v11087_v40  ;;  %v11093_v40 = vld [vmem:[#allocation43_spill] sm:$0xff] }
 0x442   :  { %11077 = vst [vmem:[#allocation121_spill] sm:$0xff] %v10160_v1  ;;  %v5422_v19 = vadd.f32 %v6475_v44, %v4877_v12  ;;  %v11084_v13 = vld [vmem:[#allocation42_spill] sm:$0xff] }
 0x443   :  { %v4934_v41 = vpop.f32.mrf.mxu0  ;;  %v5413_v9 = vpop.f32.mrf.mxu1 }
 0x444   :  { %v5574_v20 = vmax.f32 %v10032_v39, %v5422_v19  ;;  %v5414_v5 = vadd.f32 %v5413_v9, %v10029_v29  ;;  %v4340_v39 = vadd.f32 %v11084_v13, %v11083_v37  ;;  %v11085_v19 = vld [vmem:[#allocation8_spill] sm:$0xff]  ;;  %v11090_v37 = vld [vmem:[#allocation114_spill] sm:$0xff] }
 0x445   :  { %v10174_v31 = vpop.f32.mrf.mxu0  ;;  %v6476_v45 = vpop.f32.mrf.mxu1  ;;  %v11086_v29 = vld [vmem:[#allocation44_spill] sm:$0xff] }
 0x446   :  { %v5606_v12 = vmax.f32 %v11082_v25, %v5574_v20  ;;  %v5572_v41 = vmax.f32 %v10037_v6, %v5414_v5  ;;  %v5425_v44 = vadd.f32 %v6476_v45, %v4880_v27  ;;  %v4348_v9 = vadd.f32 %v11086_v29, %v11085_v19  ;;  %v11096_v29 = vld [vmem:[#allocation145_spill] sm:$0xff] }
 0x447   :  { %v4937_v3 = vpop.f32.mrf.mxu0  ;;  %v5416_v34 = vpop.f32.mrf.mxu1  ;;  %v4885_v6 = vadd.f32 %v10063_v26, %v4340_v39  ;;  %v11095_v26 = vld [vmem:[#allocation45_spill] sm:$0xff] }
 0x448   :  { %v5645_v1 = vadd.f32 %v10172_v28, %v5606_v12  ;;  %v5604_v4 = vmax.f32 %v11088_v33, %v5572_v41  ;;  %v5575_v63 = vmax.f32 %v10042_v0, %v5425_v44  ;;  %v5417_v20 = vadd.f32 %v5416_v34, %v10039_v50  ;;  %v11089_v12 = vld [vmem:[#allocation137_spill] sm:$0xff]  ;;  %v11092_v0 = vld [vmem:[#allocation7_spill] sm:$0xff]  ;;  %v11098_v34 = vld [vmem:[#allocation12_spill] sm:$0xff] }
 0x449   :  { %v4893_v27 = vadd.f32 %v10079_v14, %v4348_v9  ;;  %v10192_v5 = vpop.f32.mrf.mxu0  ;;  %v6479_v45 = vpop.f32.mrf.mxu1  ;;  %v11091_v13 = vmax.f32 %v11089_v12, %v11090_v37  ;;  %v4343_v50 = vadd.f32 %v11093_v40, %v11092_v0  ;;  %v11094_v41 = vld [vmem:[#allocation9_spill] sm:$0xff] }
 0x44a   :  { %v5677_v32 = vmax.f32 %v5645_v1, 0.0  ;;  %v5643_v25 = vadd.f32 %v10172_v28, %v5604_v4  ;;  %v5573_v33 = vmax.f32 %v10045_v59, %v5417_v20  ;;  %v4351_v44 = vadd.f32 %v11095_v26, %v11094_v41 }
 0x44b   :  { %v5607_v52 = vmax.f32 %v11091_v13, %v5575_v63  ;;  %v5438_v14 = vadd.f32 %v6479_v45, %v4893_v27  ;;  %v4942_v39 = vpop.f32.mrf.mxu0  ;;  %v5429_v19 = vpop.f32.mrf.mxu1  ;;  %v11097_v59 = vmax.f32 %v9584_v47, %v11096_v29  ;;  %v11099_v63 = vld [vmem:[#allocation48_spill] sm:$0xff]  ;;  %v11100_v13 = vld [vmem:[#allocation10_spill] sm:$0xff] }
 0x44c   :  { %5710 = vst.msk [vmem:[%s10561_s3 + $0x10] sm:$0xff] %vm5707_vm1, %v5677_v32  ;;  %v5675_v4 = vmax.f32 %v5643_v25, 0.0  ;;  %v5430_v3 = vadd.f32 %v5429_v19, %v4885_v6  ;;  %v4364_v20 = vadd.f32 %v11099_v63, %v11098_v34  ;;  %v4896_v27 = vadd.f32 %v10087_v57, %v4351_v44  ;;  %v11107_v34 = vld [vmem:[#allocation11_spill] sm:$0xff] }
 0x44d   :  { %v5646_v1 = vadd.f32 %v10172_v28, %v5607_v52  ;;  %v5605_v9 = vmax.f32 %v11097_v59, %v5573_v33  ;;  %v5578_v45 = vmax.f32 %v10050_v55, %v5438_v14  ;;  %v10215_v12 = vpop.f32.mrf.mxu0  ;;  %v6480_v37 = vpop.f32.mrf.mxu1  ;;  %v4888_v32 = vadd.f32 %v10071_v53, %v4343_v50  ;;  %v11101_v52 = vld [vmem:[#allocation46_spill] sm:$0xff]  ;;  %v11103_v55 = vld [vmem:[#allocation75_spill] sm:$0xff] }
 0x44e   :  { %5708 = vst.msk [vmem:[%s10561_s3] sm:$0xff] %vm5707_vm1, %v5675_v4  ;;  %v5576_v25 = vmax.f32 %v10053_v30, %v5430_v3  ;;  %v4356_v57 = vadd.f32 %v11101_v52, %v11100_v13  ;;  %v11102_v33 = vld [vmem:[#allocation74_spill] sm:$0xff]  ;;  %v5441_v41 = vadd.f32 %v6480_v37, %v4896_v27  ;;  %v4909_v50 = vadd.f32 %v10111_v42, %v4364_v20  ;;  %v11105_v30 = vld [vmem:[#allocation81_spill] sm:$0xff]  ;;  %v11108_v63 = vld [vmem:[#allocation47_spill] sm:$0xff] }
 0x44f   :  { %v5678_v47 = vmax.f32 %v5646_v1, 0.0  ;;  %v5644_v6 = vadd.f32 %v10172_v28, %v5605_v9  ;;  %v11104_v0 = vmax.f32 %v11102_v33, %v11103_v55  ;;  %v4945_v26 = vpop.f32.mrf.mxu0  ;;  %v5432_v53 = vpop.f32.mrf.mxu1  ;;  %v11106_v14 = vmax.f32 %v9596_v56, %v11105_v30  ;;  %v11109_v27 = vld [vmem:[#allocation13_spill] sm:$0xff] }
 0x450   :  { %v5433_v19 = vadd.f32 %v5432_v53, %v4888_v32  ;;  %v5579_v1 = vmax.f32 %v10058_v23, %v5441_v41  ;;  %v4901_v42 = vadd.f32 %v10095_v48, %v4356_v57  ;;  %v4359_v20 = vadd.f32 %v11108_v63, %v11107_v34  ;;  %v11110_v23 = vld [vmem:[#allocation49_spill] sm:$0xff]  ;;  %v11111_v32 = vld [vmem:[#allocation139_spill] sm:$0xff]  ;;  %v11114_v57 = vld [vmem:[#allocation146_spill] sm:$0xff] }
 0x451   :  { %v5610_v40 = vmax.f32 %v11104_v0, %v5578_v45  ;;  %5711 = vst.msk [vmem:[%s10561_s3 + $0x18] sm:$0xff] %vm5707_vm1, %v5678_v47  ;;  %v5676_v44 = vmax.f32 %v5644_v6, 0.0  ;;  %v5608_v39 = vmax.f32 %v11106_v14, %v5576_v25  ;;  %v10239_v29 = vpop.f32.mrf.mxu0  ;;  %v6483_v59 = vpop.f32.mrf.mxu1  ;;  %v4367_v45 = vadd.f32 %v11110_v23, %v11109_v27  ;;  %v11112_v47 = vld [vmem:[#allocation116_spill] sm:$0xff] }
 0x452   :  { %v5577_v56 = vmax.f32 %v10061_v49, %v5433_v19  ;;  %v5454_v3 = vadd.f32 %v6483_v59, %v4909_v50  ;;  %v11113_v48 = vmax.f32 %v11111_v32, %v11112_v47  ;;  %v11115_v33 = vmax.f32 %v9618_v24, %v11114_v57  ;;  %v11120_v19 = vld [vmem:[#allocation50_spill] sm:$0xff]  ;;  %v11122_v59 = vld [vmem:[#allocation52_spill] sm:$0xff]  ;;  %v11127_v57 = vld [vmem:[#allocation15_spill] sm:$0xff] }
 0x453   :  { %v5649_v4 = vadd.f32 %v10172_v28, %v5610_v40  ;;  %5709 = vst.msk [vmem:[%s10561_s3 + $0x8] sm:$0xff] %vm5707_vm1, %v5676_v44  ;;  %v5647_v9 = vadd.f32 %v10172_v28, %v5608_v39  ;;  %v4950_v25 = vpop.f32.mrf.mxu0  ;;  %v5445_v13 = vpop.f32.mrf.mxu1  ;;  %v4912_v40 = vadd.f32 %v10119_v58, %v4367_v45  ;;  %v4904_v50 = vadd.f32 %v10103_v35, %v4359_v20  ;;  %v11116_v58 = vld [vmem:[#allocation76_spill] sm:$0xff]  ;;  %v11119_v39 = vld [vmem:[#allocation14_spill] sm:$0xff]  ;;  %v11123_v20 = vld [vmem:[#allocation87_spill] sm:$0xff] }
 0x454   :  { %v5611_v6 = vmax.f32 %v11113_v48, %v5579_v1  ;;  %v5609_v55 = vmax.f32 %v11115_v33, %v5577_v56  ;;  %v5582_v49 = vmax.f32 %v10066_v46, %v5454_v3  ;;  %v5446_v0 = vadd.f32 %v5445_v13, %v4901_v42  ;;  %v11117_v46 = vld [vmem:[#allocation77_spill] sm:$0xff]  ;;  %v11121_v1 = vld [vmem:[#allocation16_spill] sm:$0xff]  ;;  %v11128_v33 = vld [vmem:[#allocation51_spill] sm:$0xff] }
 0x455   :  { %v5681_v37 = vmax.f32 %v5649_v4, 0.0  ;;  %v5679_v52 = vmax.f32 %v5647_v9, 0.0  ;;  %v10265_v26 = vpop.f32.mrf.mxu0  ;;  %v6484_v53 = vpop.f32.mrf.mxu1  ;;  %v11118_v44 = vmax.f32 %v11116_v58, %v11117_v46  ;;  %v4372_v4 = vadd.f32 %v11120_v19, %v11119_v39 }
 0x456   :  { %v5650_v41 = vadd.f32 %v10172_v28, %v5611_v6  ;;  %v5648_v24 = vadd.f32 %v10172_v28, %v5609_v55  ;;  %v5580_v14 = vmax.f32 %v10069_v18, %v5446_v0  ;;  %v4380_v42 = vadd.f32 %v11122_v59, %v11121_v1  ;;  %v11126_v18 = vld [vmem:[#allocation53_spill] sm:$0xff]  ;;  %v11134_v59 = vld [vmem:[#allocation18_spill] sm:$0xff] }
 0x457   :  { %5714 = vst.msk [vmem:[%s10561_s3 + $0x30] sm:$0xff] %vm5707_vm1, %v5681_v37  ;;  %5712 = vst.msk [vmem:[%s10561_s3 + $0x20] sm:$0xff] %vm5707_vm1, %v5679_v52  ;;  %v5614_v30 = vmax.f32 %v11118_v44, %v5582_v49  ;;  %v5457_v9 = vadd.f32 %v6484_v53, %v4912_v40  ;;  %v4953_v56 = vpop.f32.mrf.mxu0  ;;  %v5448_v3 = vpop.f32.mrf.mxu1  ;;  %v11124_v27 = vmax.f32 %v9630_v36, %v11123_v20  ;;  %v11125_v37 = vld [vmem:[#allocation17_spill] sm:$0xff] }
 0x458   :  { %v5682_v35 = vmax.f32 %v5650_v41, 0.0  ;;  %v5680_v34 = vmax.f32 %v5648_v24, 0.0  ;;  %v5449_v45 = vadd.f32 %v5448_v3, %v4904_v50  ;;  %v4383_v32 = vadd.f32 %v11126_v18, %v11125_v37  ;;  %v11129_v49 = vld [vmem:[#allocation141_spill] sm:$0xff] }
 0x459   :  { %v5653_v63 = vadd.f32 %v10172_v28, %v5614_v30  ;;  %v5612_v23 = vmax.f32 %v11124_v27, %v5580_v14  ;;  %v4925_v47 = vadd.f32 %v10143_v15, %v4380_v42  ;;  %v5583_v48 = vmax.f32 %v10074_v17, %v5457_v9  ;;  %v10293_v6 = vpop.f32.mrf.mxu0  ;;  %v6487_v25 = vpop.f32.mrf.mxu1  ;;  %v11130_v17 = vld [vmem:[#allocation118_spill] sm:$0xff]  ;;  %v11136_v9 = vld [vmem:[#allocation20_spill] sm:$0xff]  ;;  %v11141_v37 = vld [vmem:[#allocation89_spill] sm:$0xff] }
 0x45a   :  { %5715 = vst.msk [vmem:[%s10561_s3 + $0x38] sm:$0xff] %vm5707_vm1, %v5682_v35  ;;  %v4917_v13 = vadd.f32 %v10127_v51, %v4372_v4  ;;  %5713 = vst.msk [vmem:[%s10561_s3 + $0x28] sm:$0xff] %vm5707_vm1, %v5680_v34  ;;  %v5581_v52 = vmax.f32 %v10077_v62, %v5449_v45  ;;  %v4375_v55 = vadd.f32 %v11128_v33, %v11127_v57  ;;  %v11132_v62 = vld [vmem:[#allocation147_spill] sm:$0xff]  ;;  %v11135_v42 = vld [vmem:[#allocation54_spill] sm:$0xff] }
 0x45b   :  { %v5685_v36 = vmax.f32 %v5653_v63, 0.0  ;;  %v5651_v15 = vadd.f32 %v10172_v28, %v5612_v23  ;;  %v11131_v0 = vmax.f32 %v11129_v49, %v11130_v17  ;;  %v5470_v41 = vadd.f32 %v6487_v25, %v4925_v47  ;;  %v4958_v53 = vpop.f32.mrf.mxu0  ;;  %v5461_v51 = vpop.f32.mrf.mxu1  ;;  %v11138_v34 = vld [vmem:[#allocation78_spill] sm:$0xff]  ;;  %v11139_v63 = vld [vmem:[#allocation83_spill] sm:$0xff] }
 0x45c   :  { %v4928_v50 = vadd.f32 %v10151_v2, %v4383_v32  ;;  %v11133_v58 = vmax.f32 %v9652_v43, %v11132_v62  ;;  %v5462_v44 = vadd.f32 %v5461_v51, %v4917_v13  ;;  %v4920_v2 = vadd.f32 %v10135_v7, %v4375_v55  ;;  %v11146_v55 = vld [vmem:[#allocation19_spill] sm:$0xff] }
 0x45d   :  { %v5615_v40 = vmax.f32 %v11131_v0, %v5583_v48  ;;  %5718 = vst.msk [vmem:[%s10561_s3 + $0x50] sm:$0xff] %vm5707_vm1, %v5685_v36  ;;  %v5683_v24 = vmax.f32 %v5651_v15, 0.0  ;;  %v5586_v14 = vmax.f32 %v10082_v10, %v5470_v41  ;;  %v10317_v39 = vpop.f32.mrf.mxu0  ;;  %v6488_v19 = vpop.f32.mrf.mxu1  ;;  %v4388_v35 = vadd.f32 %v11135_v42, %v11134_v59  ;;  %v11137_v10 = vld [vmem:[#allocation56_spill] sm:$0xff]  ;;  %v11147_v49 = vld [vmem:[#allocation55_spill] sm:$0xff]  ;;  %v11148_v0 = vld [vmem:[#allocation21_spill] sm:$0xff] }
 0x45e   :  { %v5613_v46 = vmax.f32 %v11133_v58, %v5581_v52  ;;  %v5584_v43 = vmax.f32 %v10085_v38, %v5462_v44  ;;  %v5473_v1 = vadd.f32 %v6488_v19, %v4928_v50  ;;  %v4396_v56 = vadd.f32 %v11137_v10, %v11136_v9  ;;  %v11150_v58 = vld [vmem:[#allocation148_spill] sm:$0xff]  ;;  %v11155_v9 = vld [vmem:[#allocation58_spill] sm:$0xff] }
 0x45f   :  { %v5654_v30 = vadd.f32 %v10172_v28, %v5615_v40  ;;  %5716 = vst.msk [vmem:[%s10561_s3 + $0x40] sm:$0xff] %vm5707_vm1, %v5683_v24  ;;  %v11140_v7 = vmax.f32 %v11138_v34, %v11139_v63  ;;  %v4961_v27 = vpop.f32.mrf.mxu0  ;;  %v5464_v23 = vpop.f32.mrf.mxu1  ;;  %v11142_v18 = vmax.f32 %v9664_v61, %v11141_v37  ;;  %v4933_v15 = vadd.f32 %v10162_v22, %v4388_v35  ;;  %v11149_v40 = vld [vmem:[#allocation57_spill] sm:$0xff]  ;;  %v11154_v35 = vld [vmem:[#allocation22_spill] sm:$0xff] }
 0x460   :  { %v5652_v4 = vadd.f32 %v10172_v28, %v5613_v46  ;;  %v5587_v38 = vmax.f32 %v10090_v8, %v5473_v1  ;;  %v5465_v47 = vadd.f32 %v5464_v23, %v4920_v2  ;;  %v4941_v48 = vadd.f32 %v10192_v5, %v4396_v56  ;;  %v11143_v8 = vld [vmem:[#allocation143_spill] sm:$0xff]  ;;  %v11144_v5 = vld [vmem:[#allocation120_spill] sm:$0xff] }
 0x461   :  { %v5686_v3 = vmax.f32 %v5654_v30, 0.0  ;;  %v5618_v20 = vmax.f32 %v11140_v7, %v5586_v14  ;;  %v5616_v32 = vmax.f32 %v11142_v18, %v5584_v43  ;;  %v10343_v13 = vpop.f32.mrf.mxu0  ;;  %v6491_v36 = vpop.f32.mrf.mxu1  ;;  %v11145_v52 = vmax.f32 %v11143_v8, %v11144_v5  ;;  %v11152_v14 = vld [vmem:[#allocation24_spill] sm:$0xff]  ;;  %v11164_v8 = vld [vmem:[#allocation59_spill] sm:$0xff] }
 0x462   :  { %v5684_v45 = vmax.f32 %v5652_v4, 0.0  ;;  %v5585_v33 = vmax.f32 %v10093_v54, %v5465_v47  ;;  %v4391_v17 = vadd.f32 %v11147_v49, %v11146_v55  ;;  %v4399_v41 = vadd.f32 %v11149_v40, %v11148_v0  ;;  %v11153_v54 = vld [vmem:[#allocation60_spill] sm:$0xff]  ;;  %v11167_v49 = vld [vmem:[#allocation82_spill] sm:$0xff] }
 0x463   :  { %5719 = vst.msk [vmem:[%s10561_s3 + $0x58] sm:$0xff] %vm5707_vm1, %v5686_v3  ;;  %v5657_v25 = vadd.f32 %v10172_v28, %v5618_v20  ;;  %v5655_v61 = vadd.f32 %v10172_v28, %v5616_v32  ;;  %v5619_v57 = vmax.f32 %v11145_v52, %v5587_v38  ;;  %v5486_v53 = vadd.f32 %v6491_v36, %v4941_v48  ;;  %v4966_v51 = vpop.f32.mrf.mxu0  ;;  %v5477_v50 = vpop.f32.mrf.mxu1  ;;  %v11156_v56 = vld [vmem:[#allocation80_spill] sm:$0xff]  ;;  %v11161_v32 = vld [vmem:[#allocation101_spill] sm:$0xff]  ;;  %v11162_v36 = vld [vmem:[#allocation111_spill] sm:$0xff] }
 0x464   :  { %5717 = vst.msk [vmem:[%s10561_s3 + $0x48] sm:$0xff] %vm5707_vm1, %v5684_v45  ;;  %v11151_v46 = vmax.f32 %v9686_v11, %v11150_v58  ;;  %v5478_v30 = vadd.f32 %v5477_v50, %v4933_v15  ;;  %v4412_v19 = vadd.f32 %v11153_v54, %v11152_v14  ;;  %v4944_v2 = vadd.f32 %v10215_v12, %v4399_v41  ;;  %v11165_v52 = vld [vmem:[#allocation25_spill] sm:$0xff] }
 0x465   :  { %v5689_v22 = vmax.f32 %v5657_v25, 0.0  ;;  %v5687_v24 = vmax.f32 %v5655_v61, 0.0  ;;  %v5658_v62 = vadd.f32 %v10172_v28, %v5619_v57  ;;  %v5590_v4 = vmax.f32 %v10098_v16, %v5486_v53  ;;  %v10371_v43 = vpop.f32.mrf.mxu0  ;;  %v6492_v1 = vpop.f32.mrf.mxu1  ;;  %v11157_v16 = vld [vmem:[#allocation85_spill] sm:$0xff]  ;;  %v11163_v61 = vld [vmem:[#allocation23_spill] sm:$0xff]  ;;  %v11170_v53 = vld [vmem:[#allocation84_spill] sm:$0xff] }
 0x466   :  { %v5617_v44 = vmax.f32 %v11151_v46, %v5585_v33  ;;  %v4936_v59 = vadd.f32 %v10174_v31, %v4391_v17  ;;  %v5588_v42 = vmax.f32 %v10101_v60, %v5478_v30  ;;  %v4404_v10 = vadd.f32 %v11155_v9, %v11154_v35  ;;  %v11159_v60 = vld [vmem:[#allocation95_spill] sm:$0xff]  ;;  %v11166_v57 = vld [vmem:[#allocation61_spill] sm:$0xff]  ;;  %v11168_v17 = vld [vmem:[#allocation122_spill] sm:$0xff] }
 0x467   :  { %5722 = vst.msk [vmem:[%s10561_s3 + $0x70] sm:$0xff] %vm5707_vm1, %v5689_v22  ;;  %5720 = vst.msk [vmem:[%s10561_s3 + $0x60] sm:$0xff] %vm5707_vm1, %v5687_v24  ;;  %v5690_v11 = vmax.f32 %v5658_v62, 0.0  ;;  %v11158_v3 = vmax.f32 %v11156_v56, %v11157_v16  ;;  %v5489_v63 = vadd.f32 %v6492_v1, %v4944_v2  ;;  %v4969_v7 = vpop.f32.mrf.mxu0  ;;  %v5480_v31 = vpop.f32.mrf.mxu1  ;;  %v4957_v20 = vadd.f32 %v10293_v6, %v4412_v19  ;;  %v11171_v51 = vld [vmem:[#allocation149_spill] sm:$0xff]  ;;  %v11173_v62 = vld [vmem:[#allocation130_spill] sm:$0xff] }
 0x468   :  { %v5656_v12 = vadd.f32 %v10172_v28, %v5617_v44  ;;  %v11160_v23 = vmax.f32 %v9698_v21, %v11159_v60  ;;  %v5481_v37 = vadd.f32 %v5480_v31, %v4936_v59  ;;  %v4949_v25 = vadd.f32 %v10239_v29, %v4404_v10  ;;  %v11179_v35 = vld [vmem:[#allocation62_spill] sm:$0xff]  ;;  %v11181_v56 = vld [vmem:[#allocation64_spill] sm:$0xff] }
 0x469   :  { %v5622_v34 = vmax.f32 %v11158_v3, %v5590_v4  ;;  %5723 = vst.msk [vmem:[%s10561_s3 + $0x78] sm:$0xff] %vm5707_vm1, %v5690_v11  ;;  %v5591_v38 = vmax.f32 %v11161_v32, %v5489_v63  ;;  %v4972_v47 = vpop.f32.mrf.mxu0  ;;  %v6495_v48 = vpop.f32.mrf.mxu1  ;;  %v4407_v5 = vadd.f32 %v11164_v8, %v11163_v61  ;;  %v4415_v33 = vadd.f32 %v11166_v57, %v11165_v52  ;;  %v11174_v4 = vld [vmem:[#allocation86_spill] sm:$0xff]  ;;  %v11177_v11 = vld [vmem:[#allocation27_spill] sm:$0xff]  ;;  %v11188_v8 = vld [vmem:[#allocation113_spill] sm:$0xff] }
 0x46a   :  { %v5688_v27 = vmax.f32 %v5656_v12, 0.0  ;;  %v5620_v45 = vmax.f32 %v11160_v23, %v5588_v42  ;;  %v5589_v15 = vmax.f32 %v11162_v36, %v5481_v37  ;;  %v5502_v21 = vadd.f32 %v6495_v48, %v4957_v20  ;;  %v11178_v42 = vld [vmem:[#allocation26_spill] sm:$0xff]  ;;  %v11182_v20 = vld [vmem:[#allocation88_spill] sm:$0xff]  ;;  %v11187_v48 = vld [vmem:[#allocation107_spill] sm:$0xff] }
 0x46b   :  { %v5661_v18 = vadd.f32 %v10172_v28, %v5622_v34  ;;  %v11169_v29 = vmax.f32 %v11167_v49, %v11168_v17  ;;  %v4974_v40 = vpop.f32.mrf.mxu0  ;;  %v5493_v41 = vpop.f32.mrf.mxu1  ;;  %v11172_v50 = vmax.f32 %v11170_v53, %v11171_v51  ;;  %v4960_v44 = vadd.f32 %v10317_v39, %v4415_v33  ;;  %v11175_v39 = vld [vmem:[#allocation91_spill] sm:$0xff]  ;;  %v11180_v10 = vld [vmem:[#allocation30_spill] sm:$0xff]  ;;  %v11185_v37 = vld [vmem:[#allocation32_spill] sm:$0xff] }
 0x46c   :  { %5721 = vst.msk [vmem:[%s10561_s3 + $0x68] sm:$0xff] %vm5707_vm1, %v5688_v27  ;;  %v5659_v6 = vadd.f32 %v10172_v28, %v5620_v45  ;;  %v5594_v58 = vmax.f32 %v11173_v62, %v5502_v21  ;;  %v5494_v46 = vadd.f32 %v5493_v41, %v4949_v25  ;;  %v4952_v19 = vadd.f32 %v10265_v26, %v4407_v5  ;;  %v11183_v27 = vld [vmem:[#allocation97_spill] sm:$0xff]  ;;  %v11189_v52 = vld [vmem:[#allocation28_spill] sm:$0xff]  ;;  %v11190_v57 = vld [vmem:[#allocation63_spill] sm:$0xff] }
 0x46d   :  { %v5693_v55 = vmax.f32 %v5661_v18, 0.0  ;;  %v5623_v0 = vmax.f32 %v11169_v29, %v5591_v38  ;;  %v5621_v24 = vmax.f32 %v11172_v50, %v5589_v15  ;;  %v4975_v14 = vpop.f32.mrf.mxu0  ;;  %v6496_v54 = vpop.f32.mrf.mxu1  ;;  %v11176_v1 = vmax.f32 %v11174_v4, %v11175_v39  ;;  %v11186_v18 = vld [vmem:[#allocation65_spill] sm:$0xff]  ;;  %v11195_v53 = vld [vmem:[#allocation150_spill] sm:$0xff] }
 0x46e   :  { %v5691_v22 = vmax.f32 %v5659_v6, 0.0  ;;  %v5592_v12 = vmax.f32 %v11177_v11, %v5494_v46  ;;  %v4420_v9 = vadd.f32 %v11179_v35, %v11178_v42  ;;  %v4428_v16 = vadd.f32 %v11181_v56, %v11180_v10  ;;  %v11199_v39 = vld [vmem:[#allocation38_spill] sm:$0xff]  ;;  %v11202_v42 = vld [vmem:[#allocation93_spill] sm:$0xff] }
 0x46f   :  { %5726 = vst.msk [vmem:[%s10561_s3 + $0x90] sm:$0xff] %vm5707_vm1, %v5693_v55  ;;  %v5662_v30 = vadd.f32 %v10172_v28, %v5623_v0  ;;  %v5660_v2 = vadd.f32 %v10172_v28, %v5621_v24  ;;  %v5626_v59 = vmax.f32 %v11176_v1, %v5594_v58  ;;  %v5505_v3 = vadd.f32 %v6496_v54, %v4960_v44  ;;  %v4977_v34 = vpop.f32.mrf.mxu0  ;;  %v5496_v63 = vpop.f32.mrf.mxu1  ;;  %v11192_v55 = vld [vmem:[#allocation124_spill] sm:$0xff]  ;;  %v11200_v1 = vld [vmem:[#allocation70_spill] sm:$0xff] }
 0x470   :  { %5724 = vst.msk [vmem:[%s10561_s3 + $0x80] sm:$0xff] %vm5707_vm1, %v5691_v22  ;;  %v11184_v60 = vmax.f32 %v11182_v20, %v11183_v27  ;;  %v5497_v45 = vadd.f32 %v5496_v63, %v4952_v19  ;;  %v4431_v32 = vadd.f32 %v11186_v18, %v11185_v37  ;;  %v4973_v38 = vadd.f32 %v4972_v47, %v4428_v16  ;;  %v11191_v47 = vld [vmem:[#allocation90_spill] sm:$0xff]  ;;  %v11194_v22 = vld [vmem:[#allocation92_spill] sm:$0xff]  ;;  %v11198_v19 = vld [vmem:[#allocation67_spill] sm:$0xff] }
 0x471   :  { %v5694_v26 = vmax.f32 %v5662_v30, 0.0  ;;  %v5692_v7 = vmax.f32 %v5660_v2, 0.0  ;;  %v5665_v31 = vadd.f32 %v10172_v28, %v5626_v59  ;;  %v5595_v25 = vmax.f32 %v11187_v48, %v5505_v3  ;;  %v4980_v6 = vpop.f32.mrf.mxu0  ;;  %v6499_v36 = vpop.f32.mrf.mxu1  ;;  %v11197_v58 = vld [vmem:[#allocation132_spill] sm:$0xff]  ;;  %v11204_v16 = vld [vmem:[#allocation98_spill] sm:$0xff]  ;;  %v11207_v63 = vld [vmem:[#allocation109_spill] sm:$0xff] }
 0x472   :  { %v5624_v23 = vmax.f32 %v11184_v60, %v5592_v12  ;;  %v4965_v15 = vadd.f32 %v10343_v13, %v4420_v9  ;;  %v5593_v5 = vmax.f32 %v11188_v8, %v5497_v45  ;;  %v4423_v33 = vadd.f32 %v11190_v57, %v11189_v52  ;;  %v11201_v12 = vld [vmem:[#allocation96_spill] sm:$0xff]  ;;  %v11208_v20 = vld [vmem:[#allocation34_spill] sm:$0xff]  ;;  %v11217_v57 = vld [vmem:[#allocation135_spill] sm:$0xff] }
 0x473   :  { %5727 = vst.msk [vmem:[%s10561_s3 + $0x98] sm:$0xff] %vm5707_vm1, %v5694_v26  ;;  %5725 = vst.msk [vmem:[%s10561_s3 + $0x88] sm:$0xff] %vm5707_vm1, %v5692_v7  ;;  %v5697_v21 = vmax.f32 %v5665_v31, 0.0  ;;  %v11193_v49 = vmax.f32 %v11191_v47, %v11192_v55  ;;  %v5518_v29 = vadd.f32 %v6499_v36, %v4973_v38  ;;  %v4982_v0 = vpop.f32.mrf.mxu0  ;;  %v5509_v13 = vpop.f32.mrf.mxu1  ;;  %v4976_v41 = vadd.f32 %v4975_v14, %v4431_v32  ;;  %v11205_v26 = vld [vmem:[#allocation103_spill] sm:$0xff]  ;;  %v11209_v27 = vld [vmem:[#allocation66_spill] sm:$0xff] }
 0x474   :  { %v5663_v61 = vadd.f32 %v10172_v28, %v5624_v23  ;;  %v11196_v51 = vmax.f32 %v11194_v22, %v11195_v53  ;;  %v5510_v24 = vadd.f32 %v5509_v13, %v4965_v15  ;;  %v4968_v54 = vadd.f32 %v10371_v43, %v4423_v33  ;;  %v11210_v32 = vld [vmem:[#allocation102_spill] sm:$0xff]  ;;  %v11213_v36 = vld [vmem:[#allocation119_spill] sm:$0xff]  ;;  %v11215_v8 = vld [vmem:[#allocation68_spill] sm:$0xff] }
 0x475   :  { %v5627_v17 = vmax.f32 %v11193_v49, %v5595_v25  ;;  %5730 = vst.msk [vmem:[%s10561_s3 + $0xb0] sm:$0xff] %vm5707_vm1, %v5697_v21  ;;  %v5598_v46 = vmax.f32 %v11197_v58, %v5518_v29  ;;  %v4983_v44 = vpop.f32.mrf.mxu0  ;;  %v6500_v30 = vpop.f32.mrf.mxu1  ;;  %v4444_v59 = vadd.f32 %v11200_v1, %v11199_v39  ;;  %v11203_v35 = vmax.f32 %v11201_v12, %v11202_v42  ;;  %v11211_v38 = vld [vmem:[#allocation126_spill] sm:$0xff]  ;;  %v11216_v52 = vld [vmem:[#allocation40_spill] sm:$0xff]  ;;  %v11224_v1 = vld [vmem:[#allocation99_spill] sm:$0xff] }
 0x476   :  { %v5695_v40 = vmax.f32 %v5663_v61, 0.0  ;;  %v5625_v50 = vmax.f32 %v11196_v51, %v5593_v5  ;;  %v5596_v2 = vmax.f32 %v11198_v19, %v5510_v24  ;;  %v5521_v4 = vadd.f32 %v6500_v30, %v4976_v41  ;;  %v11214_v61 = vld [vmem:[#allocation36_spill] sm:$0xff]  ;;  %v11223_v39 = vld [vmem:[#allocation106_spill] sm:$0xff] }
 0x477   :  { %v5666_v62 = vadd.f32 %v10172_v28, %v5627_v17  ;;  %v5630_v9 = vmax.f32 %v11203_v35, %v5598_v46  ;;  %v4985_v10 = vpop.f32.mrf.mxu0  ;;  %v5512_v43 = vpop.f32.mrf.mxu1  ;;  %v11206_v3 = vmax.f32 %v11204_v16, %v11205_v26  ;;  %v4436_v60 = vadd.f32 %v11209_v27, %v11208_v20  ;;  %v11218_v13 = vld [vmem:[#allocation104_spill] sm:$0xff]  ;;  %v11221_v46 = vld [vmem:[#allocation134_spill] sm:$0xff]  ;;  %v11229_v16 = vld [vmem:[#allocation115_spill] sm:$0xff] }
 0x478   :  { %5728 = vst.msk [vmem:[%s10561_s3 + $0xa0] sm:$0xff] %vm5707_vm1, %v5695_v40  ;;  %v5664_v14 = vadd.f32 %v10172_v28, %v5625_v50  ;;  %v5599_v7 = vmax.f32 %v11207_v63, %v5521_v4  ;;  %v5513_v31 = vadd.f32 %v5512_v43, %v4968_v54  ;;  %v11212_v48 = vmax.f32 %v11210_v32, %v11211_v38  ;;  %v11219_v40 = vld [vmem:[#allocation151_spill] sm:$0xff]  ;;  %v11226_v35 = vld [vmem:[#allocation108_spill] sm:$0xff] }
 0x479   :  { %v5698_v11 = vmax.f32 %v5666_v62, 0.0  ;;  %v5628_v34 = vmax.f32 %v11206_v3, %v5596_v2  ;;  %v5669_v23 = vadd.f32 %v10172_v28, %v5630_v9  ;;  %v4988_v45 = vpop.f32.mrf.mxu0  ;;  %v6503_v37 = vpop.f32.mrf.mxu1  ;;  %v4439_v5 = vadd.f32 %v11215_v8, %v11214_v61  ;;  %v11227_v9 = vld [vmem:[#allocation105_spill] sm:$0xff]  ;;  %v11232_v20 = vld [vmem:[#allocation128_spill] sm:$0xff] }
 0x47a   :  { %v5696_v56 = vmax.f32 %v5664_v14, 0.0  ;;  %v5631_v25 = vmax.f32 %v11212_v48, %v5599_v7  ;;  %v5597_v15 = vmax.f32 %v11213_v36, %v5513_v31  ;;  %v4989_v21 = vadd.f32 %v4988_v45, %v4444_v59  ;;  %v11222_v14 = vld [vmem:[#allocation29_spill] sm:$0xff]  ;;  %v11235_v45 = vld [vmem:[#allocation152_spill] sm:$0xff] }
 0x47b   :  { %5731 = vst.msk [vmem:[%s10561_s3 + $0xb8] sm:$0xff] %vm5707_vm1, %v5698_v11  ;;  %v5667_v18 = vadd.f32 %v10172_v28, %v5628_v34  ;;  %v4447_v33 = vadd.f32 %v11217_v57, %v11216_v52  ;;  %v4981_v47 = vadd.f32 %v4980_v6, %v4436_v60  ;;  %v5701_v55 = vmax.f32 %v5669_v23, 0.0  ;;  %v4990_v49 = vpop.f32.mrf.mxu0  ;;  %v5525_v17 = vpop.f32.mrf.mxu1  ;;  %v11230_v3 = vld [vmem:[#allocation121_spill] sm:$0xff]  ;;  %v11234_v23 = vld [vmem:[#allocation112_spill] sm:$0xff] }
 0x47c   :  { %5729 = vst.msk [vmem:[%s10561_s3 + $0xa8] sm:$0xff] %vm5707_vm1, %v5696_v56  ;;  %v5670_v0 = vadd.f32 %v10172_v28, %v5631_v25  ;;  %v11220_v41 = vmax.f32 %v11218_v13, %v11219_v40  ;;  %v5534_v53 = vadd.f32 %v6503_v37, %v4989_v21  ;;  %v4984_v51 = vadd.f32 %v4983_v44, %v4439_v5  ;;  %v11231_v31 = vld [vmem:[#allocation153_spill] sm:$0xff] }
 0x47d   :  { %v5699_v29 = vmax.f32 %v5667_v18, 0.0  ;;  %5734 = vst.msk [vmem:[%s10561_s3 + $0xd0] sm:$0xff] %vm5707_vm1, %v5701_v55  ;;  %v5526_v50 = vadd.f32 %v5525_v17, %v4981_v47  ;;  %v4991_v24 = vpop.f32.mrf.mxu0  ;;  %v6504_v6 = vpop.f32.mrf.mxu1  ;;  %v11225_v59 = vmax.f32 %v11223_v39, %v11224_v1  ;;  %v11228_v10 = vmax.f32 %v11226_v35, %v11227_v9 }
 0x47e   :  { %v5629_v22 = vmax.f32 %v11220_v41, %v5597_v15  ;;  %v5702_v62 = vmax.f32 %v5670_v0, 0.0  ;;  %v5602_v30 = vmax.f32 %v11221_v46, %v5534_v53  ;;  %v4992_v54 = vadd.f32 %v4991_v24, %v4447_v33 }
 0x47f   :  { %5732 = vst.msk [vmem:[%s10561_s3 + $0xc0] sm:$0xff] %vm5707_vm1, %v5699_v29  ;;  %v5600_v19 = vmax.f32 %v11222_v14, %v5526_v50  ;;  %v4993_v2 = vpop.f32.mrf.mxu0  ;;  %v5528_v4 = vpop.f32.mrf.mxu1  ;;  %v11233_v27 = vmax.f32 %v11231_v31, %v11232_v20  ;;  %v11236_v37 = vmax.f32 %v11234_v23, %v11235_v45 }
 0x480   :  { %v5668_v58 = vadd.f32 %v10172_v28, %v5629_v22  ;;  %5735 = vst.msk [vmem:[%s10561_s3 + $0xd8] sm:$0xff] %vm5707_vm1, %v5702_v62  ;;  %v5634_v11 = vmax.f32 %v11225_v59, %v5602_v30  ;;  %v5537_v12 = vadd.f32 %v6504_v6, %v4992_v54  ;;  %v5529_v42 = vadd.f32 %v5528_v4, %v4984_v51 }
 0x481   :  { %v5632_v43 = vmax.f32 %v11228_v10, %v5600_v19 }
 0x482   :  { %v5700_v44 = vmax.f32 %v5668_v58, 0.0  ;;  %v5673_v56 = vadd.f32 %v10172_v28, %v5634_v11  ;;  %v5603_v26 = vmax.f32 %v11229_v16, %v5537_v12  ;;  %v5601_v34 = vmax.f32 %v11230_v3, %v5529_v42 }
 0x483   :  { %v5671_v63 = vadd.f32 %v10172_v28, %v5632_v43 }
 0x484   :  { %5733 = vst.msk [vmem:[%s10561_s3 + $0xc8] sm:$0xff] %vm5707_vm1, %v5700_v44  ;;  %v5705_v7 = vmax.f32 %v5673_v56, 0.0  ;;  %v5635_v60 = vmax.f32 %v11233_v27, %v5603_v26  ;;  %v5633_v18 = vmax.f32 %v11236_v37, %v5601_v34 }
 0x485   :  { %v5703_v32 = vmax.f32 %v5671_v63, 0.0 }
 0x486   :  { %5738 = vst.msk [vmem:[%s10561_s3 + $0xf0] sm:$0xff] %vm5707_vm1, %v5705_v7  ;;  %v5674_v38 = vadd.f32 %v10172_v28, %v5635_v60  ;;  %v5672_v48 = vadd.f32 %v10172_v28, %v5633_v18 }
 0x487   :  { %5736 = vst.msk [vmem:[%s10561_s3 + $0xe0] sm:$0xff] %vm5707_vm1, %v5703_v32 }
 0x488   :  { %v5706_v25 = vmax.f32 %v5674_v38, 0.0  ;;  %v5704_v36 = vmax.f32 %v5672_v48, 0.0 }
 0x48a   :  { %5739 = vst.msk [vmem:[%s10561_s3 + $0xf8] sm:$0xff] %vm5707_vm1, %v5706_v25  ;;  %5737 = vst.msk [vmem:[%s10561_s3 + $0xe8] sm:$0xff] %vm5707_vm1, %v5704_v36 }

// kernel: global_model_forward.5
= control target key start
LH: loop header
LB: loop body
LE: loop exit
PB: predicated region body
PF: predicated region fallthrough
CT: control target
= control target key end

     0   :  { %v812_v36 = vlaneseq  ;;  %v8479_v37 = vmov 1966171168   ;;  %vm4941_vm0 = vcmask 523264   ;;  %s11223_s0 = inlined_call_operand.vmem [shape: bf16[2,3136], index: 0, kind: input, shape index: {}]   ;;  %s11224_s1 = inlined_call_operand.vmem [shape: bf16[3136,512], index: 1, kind: input, shape index: {}]   ;;  %s11225_s2 = inlined_call_operand.vmem [shape: f32[1,512], index: 2, kind: input, shape index: {}]   ;;  %s11226_s3 = inlined_call_operand.vmem [shape: bf16[512,10], index: 3, kind: input, shape index: {}]   ;;  %s11227_s4 = inlined_call_operand.vmem [shape: f32[1,10], index: 4, kind: input, shape index: {}]   ;;  %s11228_s5 = inlined_call_operand.hbm [shape: f32[2,10], index: 5, kind: output, shape index: {}]  }
   0x1   :  { %v7245_v0 = vld [vmem:[%s11224_s1 + $0xe4] ss:$16 sps:$4 sm:$0xff]   ;;  %v7249_v2 = vld [vmem:[%s11224_s1 + $0xe0] ss:$16 sps:$4 sm:$0xff]   ;;  %v838_v38 = vunpack.c.l.s4 %v8479_v37 }
   0x2   :  { %v7247_v1 = vld [vmem:[%s11224_s1 + $0x2e4] ss:$16 sps:$4 sm:$0xff]   ;;  %4945 = vmatprep.subr.bf16.mxu0 %v7245_v0  ;;  %v7250_v3 = vld [vmem:[%s11224_s1 + $0x2e0] ss:$16 sps:$4 sm:$0xff]   ;;  %v8629_v42 = vshrl.u32 %v812_v36, 7 }
   0x3   :  { %4986 = vmatprep.subr.bf16.mxu1 %v7247_v1  ;;  %v7251_v4 = vld [vmem:[%s11224_s1 + $0xc4] ss:$16 sps:$4 sm:$0xff]   ;;  %4946 = vmatpush1.bf16.msra.mxu0 %v7249_v2  ;;  %v7255_v6 = vld [vmem:[%s11224_s1 + $0xc0] ss:$16 sps:$4 sm:$0xff]   ;;  %v839_v43 = vunpack.c.0.s8 %v838_v38 }
   0x4   :  { %4987 = vmatpush1.bf16.msra.mxu1 %v7250_v3  ;;  %v7253_v5 = vld [vmem:[%s11224_s1 + $0x2c4] ss:$16 sps:$4 sm:$0xff]   ;;  %4947 = vmatprep.subr.bf16.mxu0 %v7251_v4  ;;  %v7256_v7 = vld [vmem:[%s11224_s1 + $0x2c0] ss:$16 sps:$4 sm:$0xff]  }
   0x5   :  { %4988 = vmatprep.subr.bf16.mxu1 %v7253_v5  ;;  %v7257_v8 = vld [vmem:[%s11224_s1 + $0xa4] ss:$16 sps:$4 sm:$0xff]   ;;  %v7261_v10 = vld [vmem:[%s11224_s1 + $0xa0] ss:$16 sps:$4 sm:$0xff]   ;;  %v8647_v49 = vsub.s32 %v839_v43, %v8629_v42 }
   0x6   :  { %v7259_v9 = vld [vmem:[%s11224_s1 + $0x2a4] ss:$16 sps:$4 sm:$0xff]   ;;  %v7262_v11 = vld [vmem:[%s11224_s1 + $0x2a0] ss:$16 sps:$4 sm:$0xff]  }
   0x7   :  { %4948 = vmatpush1.bf16.msra.mxu0 %v7255_v6  ;;  %v7263_v12 = vld [vmem:[%s11224_s1 + $0x84] ss:$16 sps:$4 sm:$0xff]   ;;  %v7267_v14 = vld [vmem:[%s11224_s1 + $0x80] ss:$16 sps:$4 sm:$0xff]  }
   0x8   :  { %4989 = vmatpush1.bf16.msra.mxu1 %v7256_v7  ;;  %4949 = vmatprep.subr.bf16.mxu0 %v7257_v8  ;;  %v7265_v13 = vld [vmem:[%s11224_s1 + $0x284] ss:$16 sps:$4 sm:$0xff]   ;;  %v7268_v15 = vld [vmem:[%s11224_s1 + $0x280] ss:$16 sps:$4 sm:$0xff]  }
   0x9   :  { %4990 = vmatprep.subr.bf16.mxu1 %v7259_v9  ;;  %v7269_v16 = vld [vmem:[%s11224_s1 + $0x64] ss:$16 sps:$4 sm:$0xff]   ;;  %v7273_v18 = vld [vmem:[%s11224_s1 + $0x60] ss:$16 sps:$4 sm:$0xff]  }
   0xa   :  { %v7271_v17 = vld [vmem:[%s11224_s1 + $0x264] ss:$16 sps:$4 sm:$0xff]   ;;  %v7274_v19 = vld [vmem:[%s11224_s1 + $0x260] ss:$16 sps:$4 sm:$0xff]  }
   0xb   :  { %4950 = vmatpush1.bf16.msra.mxu0 %v7261_v10  ;;  %v7275_v20 = vld [vmem:[%s11224_s1 + $0x44] ss:$16 sps:$4 sm:$0xff]   ;;  %v7279_v22 = vld [vmem:[%s11224_s1 + $0x40] ss:$16 sps:$4 sm:$0xff]  }
   0xc   :  { %4991 = vmatpush1.bf16.msra.mxu1 %v7262_v11  ;;  %4951 = vmatprep.subr.bf16.mxu0 %v7263_v12  ;;  %v7277_v21 = vld [vmem:[%s11224_s1 + $0x244] ss:$16 sps:$4 sm:$0xff]   ;;  %v7280_v23 = vld [vmem:[%s11224_s1 + $0x240] ss:$16 sps:$4 sm:$0xff]  }
   0xd   :  { %4992 = vmatprep.subr.bf16.mxu1 %v7265_v13  ;;  %v7281_v24 = vld [vmem:[%s11224_s1 + $0x24] ss:$16 sps:$4 sm:$0xff]   ;;  %v7285_v26 = vld [vmem:[%s11224_s1 + $0x20] ss:$16 sps:$4 sm:$0xff]  }
   0xe   :  { %v7283_v25 = vld [vmem:[%s11224_s1 + $0x224] ss:$16 sps:$4 sm:$0xff]   ;;  %v7286_v27 = vld [vmem:[%s11224_s1 + $0x220] ss:$16 sps:$4 sm:$0xff]  }
   0xf   :  { %4952 = vmatpush1.bf16.msra.mxu0 %v7267_v14  ;;  %v7287_v28 = vld [vmem:[%s11224_s1 + $0x4] ss:$16 sps:$4 sm:$0xff]   ;;  %v7291_v30 = vld [vmem:[%s11224_s1] ss:$16 sps:$4 sm:$0xff]  }
  0x10   :  { %4993 = vmatpush1.bf16.msra.mxu1 %v7268_v15  ;;  %4953 = vmatprep.subr.bf16.mxu0 %v7269_v16  ;;  %v7289_v29 = vld [vmem:[%s11224_s1 + $0x204] ss:$16 sps:$4 sm:$0xff]   ;;  %v7292_v31 = vld [vmem:[%s11224_s1 + $0x200] ss:$16 sps:$4 sm:$0xff]  }
  0x11   :  { %4994 = vmatprep.subr.bf16.mxu1 %v7271_v17  ;;  %v7293_v32 = vld [vmem:[%s11224_s1 + $0x1e4] ss:$16 sps:$4 sm:$0xff]   ;;  %v7297_v34 = vld [vmem:[%s11224_s1 + $0x1e0] ss:$16 sps:$4 sm:$0xff]  }
  0x12   :  { %v7295_v33 = vld [vmem:[%s11224_s1 + $0x3e4] ss:$16 sps:$4 sm:$0xff]   ;;  %v7298_v35 = vld [vmem:[%s11224_s1 + $0x3e0] ss:$16 sps:$4 sm:$0xff]  }
  0x13   :  { %4954 = vmatpush1.bf16.msra.mxu0 %v7273_v18  ;;  %v7299_v39 = vld [vmem:[%s11224_s1 + $0x1c4] ss:$16 sps:$4 sm:$0xff]   ;;  %v7303_v41 = vld [vmem:[%s11224_s1 + $0x1c0] ss:$16 sps:$4 sm:$0xff]  }
  0x14   :  { %4995 = vmatpush1.bf16.msra.mxu1 %v7274_v19  ;;  %4955 = vmatprep.subr.bf16.mxu0 %v7275_v20  ;;  %v7301_v40 = vld [vmem:[%s11224_s1 + $0x3c4] ss:$16 sps:$4 sm:$0xff]   ;;  %v7304_v44 = vld [vmem:[%s11224_s1 + $0x3c0] ss:$16 sps:$4 sm:$0xff]  }
  0x15   :  { %4996 = vmatprep.subr.bf16.mxu1 %v7277_v21  ;;  %v7305_v45 = vld [vmem:[%s11224_s1 + $0x1a4] ss:$16 sps:$4 sm:$0xff]   ;;  %v7309_v47 = vld [vmem:[%s11224_s1 + $0x1a0] ss:$16 sps:$4 sm:$0xff]  }
  0x16   :  { %v7307_v46 = vld [vmem:[%s11224_s1 + $0x3a4] ss:$16 sps:$4 sm:$0xff]   ;;  %v7310_v48 = vld [vmem:[%s11224_s1 + $0x3a0] ss:$16 sps:$4 sm:$0xff]  }
  0x17   :  { %4956 = vmatpush1.bf16.msra.mxu0 %v7279_v22  ;;  %v7311_v50 = vld [vmem:[%s11224_s1 + $0x184] ss:$16 sps:$4 sm:$0xff]   ;;  %v7315_v53 = vld [vmem:[%s11224_s1 + $0x180] ss:$16 sps:$4 sm:$0xff]  }
  0x18   :  { %4997 = vmatpush1.bf16.msra.mxu1 %v7280_v23  ;;  %4957 = vmatprep.subr.bf16.mxu0 %v7281_v24  ;;  %v7313_v51 = vld [vmem:[%s11224_s1 + $0x384] ss:$16 sps:$4 sm:$0xff]   ;;  %v7316_v55 = vld [vmem:[%s11224_s1 + $0x380] ss:$16 sps:$4 sm:$0xff]  }
  0x19   :  { %4998 = vmatprep.subr.bf16.mxu1 %v7283_v25  ;;  %v22_v52 = vld [vmem:[%s11223_s0] sm:$0xff] }
  0x1a   :  { %v843_v54 = vrot.slane %v22_v52, %v8647_v49  ;;  %v7317_v56 = vld [vmem:[%s11224_s1 + $0x164] ss:$16 sps:$4 sm:$0xff]   ;;  %v7321_v59 = vld [vmem:[%s11224_s1 + $0x160] ss:$16 sps:$4 sm:$0xff]   ;;  %v836_v1 = vcombine.high %v22_v52, %v22_v52 }
  0x1b   :  { %4958 = vmatpush1.bf16.msra.mxu0 %v7285_v26  ;;  %v7319_v57 = vld [vmem:[%s11224_s1 + $0x364] ss:$16 sps:$4 sm:$0xff]   ;;  %v7322_v61 = vld [vmem:[%s11224_s1 + $0x360] ss:$16 sps:$4 sm:$0xff]  }
  0x1c   :  { %4999 = vmatpush1.bf16.msra.mxu1 %v7286_v27  ;;  %4959 = vmatprep.subr.bf16.mxu0 %v7287_v28  ;;  %v851_v58 = vcombine.high %v843_v54, %v843_v54  ;;  %v7323_v62 = vld [vmem:[%s11224_s1 + $0x144] ss:$16 sps:$4 sm:$0xff]   ;;  %v7327_v2 = vld [vmem:[%s11224_s1 + $0x140] ss:$16 sps:$4 sm:$0xff]   ;;  %v8705_v6 = vrot.slane %v836_v1, %v8647_v49  ;;  %v8725_v13 = vrot.slane %v843_v54, %v8647_v49 }
  0x1d   :  { %5000 = vmatprep.subr.bf16.mxu1 %v7289_v29  ;;  %v7325_v63 = vld [vmem:[%s11224_s1 + $0x344] ss:$16 sps:$4 sm:$0xff]   ;;  %v7328_v3 = vld [vmem:[%s11224_s1 + $0x340] ss:$16 sps:$4 sm:$0xff]  }
  0x1e   :  { %v8675_v60 = vrot.slane %v851_v58, %v8647_v49  ;;  %v7329_v4 = vld [vmem:[%s11224_s1 + $0x124] ss:$16 sps:$4 sm:$0xff]   ;;  %v7333_v7 = vld [vmem:[%s11224_s1 + $0x120] ss:$16 sps:$4 sm:$0xff]   ;;  %v852_v11 = vcombine.high %v8705_v6, %v8705_v6  ;;  %v8741_v18 = vcombine.high %v8725_v13, %v8725_v13 }
  0x1f   :  { %4960 = vmatpush1.bf16.msra.mxu0 %v7291_v30  ;;  %v7331_v5 = vld [vmem:[%s11224_s1 + $0x324] ss:$16 sps:$4 sm:$0xff]   ;;  %v7334_v8 = vld [vmem:[%s11224_s1 + $0x320] ss:$16 sps:$4 sm:$0xff]  }
  0x20   :  { %5001 = vmatpush1.bf16.msra.mxu1 %v7292_v31  ;;  %4961 = vmatprep.subr.bf16.mxu0 %v7293_v32  ;;  %v8688_v0 = vcombine.high %v8675_v60, %v8675_v60  ;;  %v7335_v9 = vld [vmem:[%s11224_s1 + $0x104] ss:$16 sps:$4 sm:$0xff]   ;;  %v7339_v12 = vld [vmem:[%s11224_s1 + $0x100] ss:$16 sps:$4 sm:$0xff]   ;;  %v8737_v17 = vrot.slane %v852_v11, %v8647_v49 }
  0x21   :  { %5002 = vmatprep.subr.bf16.mxu1 %v7295_v33  ;;  %4977 = vmatprep.mubr.bf16.mxu0 %v8675_v60  ;;  %v7337_v10 = vld [vmem:[%s11224_s1 + $0x304] ss:$16 sps:$4 sm:$0xff]   ;;  %v7340_v14 = vld [vmem:[%s11224_s1 + $0x300] ss:$16 sps:$4 sm:$0xff]  }
  0x22   :  { %5018 = vmatprep.mubr.bf16.mxu1 %v8688_v0  ;;  %v7343_v15 = vld [vmem:[%s11224_s1 + $0x4e4] ss:$16 sps:$4 sm:$0xff]   ;;  %v7341_v19 = vld [vmem:[%s11224_s1 + $0x4e0] ss:$16 sps:$4 sm:$0xff]   ;;  %v8757_v23 = vcombine.high %v8737_v17, %v8737_v17 }
  0x23   :  { %4962 = vmatpush2.bf16.msra.mxu0 %v7297_v34  ;;  %v7346_v16 = vld [vmem:[%s11224_s1 + $0x6e4] ss:$16 sps:$4 sm:$0xff]   ;;  %v7344_v20 = vld [vmem:[%s11224_s1 + $0x6e0] ss:$16 sps:$4 sm:$0xff]  }
  0x24   :  { %5003 = vmatpush2.bf16.msra.mxu1 %v7298_v35  ;;  %4963 = vmatprep.subr.bf16.mxu0 %v7299_v39  ;;  %v7349_v21 = vld [vmem:[%s11224_s1 + $0x4c4] ss:$16 sps:$4 sm:$0xff]   ;;  %v7347_v24 = vld [vmem:[%s11224_s1 + $0x4c0] ss:$16 sps:$4 sm:$0xff]  }
  0x25   :  { %5004 = vmatprep.subr.bf16.mxu1 %v7301_v40  ;;  %v7352_v22 = vld [vmem:[%s11224_s1 + $0x6c4] ss:$16 sps:$4 sm:$0xff]   ;;  %v7350_v25 = vld [vmem:[%s11224_s1 + $0x6c0] ss:$16 sps:$4 sm:$0xff]  }
  0x26   :  { %v7355_v26 = vld [vmem:[%s11224_s1 + $0x4a4] ss:$16 sps:$4 sm:$0xff]   ;;  %v7353_v28 = vld [vmem:[%s11224_s1 + $0x4a0] ss:$16 sps:$4 sm:$0xff]  }
  0x27   :  { %4964 = vmatpush2.bf16.msra.mxu0 %v7303_v41  ;;  %v7358_v27 = vld [vmem:[%s11224_s1 + $0x6a4] ss:$16 sps:$4 sm:$0xff]   ;;  %v7356_v29 = vld [vmem:[%s11224_s1 + $0x6a0] ss:$16 sps:$4 sm:$0xff]  }
  0x28   :  { %5005 = vmatpush2.bf16.msra.mxu1 %v7304_v44  ;;  %4965 = vmatprep.subr.bf16.mxu0 %v7305_v45  ;;  %v7361_v30 = vld [vmem:[%s11224_s1 + $0x484] ss:$16 sps:$4 sm:$0xff]   ;;  %v7359_v32 = vld [vmem:[%s11224_s1 + $0x480] ss:$16 sps:$4 sm:$0xff]  }
  0x29   :  { %5006 = vmatprep.subr.bf16.mxu1 %v7307_v46  ;;  %v7364_v31 = vld [vmem:[%s11224_s1 + $0x684] ss:$16 sps:$4 sm:$0xff]   ;;  %v7362_v33 = vld [vmem:[%s11224_s1 + $0x680] ss:$16 sps:$4 sm:$0xff]  }
  0x2a   :  { %v7367_v34 = vld [vmem:[%s11224_s1 + $0x464] ss:$16 sps:$4 sm:$0xff]   ;;  %v7365_v36 = vld [vmem:[%s11224_s1 + $0x460] ss:$16 sps:$4 sm:$0xff]  }
  0x2b   :  { %4966 = vmatpush2.bf16.msra.mxu0 %v7309_v47  ;;  %v7370_v35 = vld [vmem:[%s11224_s1 + $0x664] ss:$16 sps:$4 sm:$0xff]   ;;  %v7368_v37 = vld [vmem:[%s11224_s1 + $0x660] ss:$16 sps:$4 sm:$0xff]  }
  0x2c   :  { %5007 = vmatpush2.bf16.msra.mxu1 %v7310_v48  ;;  %4967 = vmatprep.subr.bf16.mxu0 %v7311_v50  ;;  %v7373_v38 = vld [vmem:[%s11224_s1 + $0x444] ss:$16 sps:$4 sm:$0xff]   ;;  %v7371_v40 = vld [vmem:[%s11224_s1 + $0x440] ss:$16 sps:$4 sm:$0xff]  }
  0x2d   :  { %5008 = vmatprep.subr.bf16.mxu1 %v7313_v51  ;;  %v7376_v39 = vld [vmem:[%s11224_s1 + $0x644] ss:$16 sps:$4 sm:$0xff]   ;;  %v7374_v41 = vld [vmem:[%s11224_s1 + $0x640] ss:$16 sps:$4 sm:$0xff]  }
  0x2e   :  { %v7379_v43 = vld [vmem:[%s11224_s1 + $0x424] ss:$16 sps:$4 sm:$0xff]   ;;  %v7377_v45 = vld [vmem:[%s11224_s1 + $0x420] ss:$16 sps:$4 sm:$0xff]  }
  0x2f   :  { %4968 = vmatpush2.bf16.msra.mxu0 %v7315_v53  ;;  %v7382_v44 = vld [vmem:[%s11224_s1 + $0x624] ss:$16 sps:$4 sm:$0xff]   ;;  %v7380_v46 = vld [vmem:[%s11224_s1 + $0x620] ss:$16 sps:$4 sm:$0xff]  }
  0x30   :  { %5009 = vmatpush2.bf16.msra.mxu1 %v7316_v55  ;;  %4969 = vmatprep.subr.bf16.mxu0 %v7317_v56  ;;  %v7385_v47 = vld [vmem:[%s11224_s1 + $0x404] ss:$16 sps:$4 sm:$0xff]   ;;  %v7383_v50 = vld [vmem:[%s11224_s1 + $0x400] ss:$16 sps:$4 sm:$0xff]  }
  0x31   :  { %5010 = vmatprep.subr.bf16.mxu1 %v7319_v57  ;;  %v7388_v48 = vld [vmem:[%s11224_s1 + $0x604] ss:$16 sps:$4 sm:$0xff]   ;;  %v7386_v51 = vld [vmem:[%s11224_s1 + $0x600] ss:$16 sps:$4 sm:$0xff]  }
  0x32   :  { %v7391_v52 = vld [vmem:[%s11224_s1 + $0x5e4] ss:$16 sps:$4 sm:$0xff]   ;;  %v7389_v54 = vld [vmem:[%s11224_s1 + $0x5e0] ss:$16 sps:$4 sm:$0xff]  }
  0x33   :  { %4970 = vmatpush2.bf16.msra.mxu0 %v7321_v59  ;;  %v7394_v53 = vld [vmem:[%s11224_s1 + $0x7e4] ss:$16 sps:$4 sm:$0xff]   ;;  %v7392_v55 = vld [vmem:[%s11224_s1 + $0x7e0] ss:$16 sps:$4 sm:$0xff]  }
  0x34   :  { %5011 = vmatpush2.bf16.msra.mxu1 %v7322_v61  ;;  %4971 = vmatprep.subr.bf16.mxu0 %v7323_v62  ;;  %v7397_v56 = vld [vmem:[%s11224_s1 + $0x5c4] ss:$16 sps:$4 sm:$0xff]   ;;  %v7395_v58 = vld [vmem:[%s11224_s1 + $0x5c0] ss:$16 sps:$4 sm:$0xff]  }
  0x35   :  { %5012 = vmatprep.subr.bf16.mxu1 %v7325_v63  ;;  %v7400_v57 = vld [vmem:[%s11224_s1 + $0x7c4] ss:$16 sps:$4 sm:$0xff]   ;;  %v7398_v59 = vld [vmem:[%s11224_s1 + $0x7c0] ss:$16 sps:$4 sm:$0xff]  }
  0x36   :  { %v7403_v61 = vld [vmem:[%s11224_s1 + $0x5a4] ss:$16 sps:$4 sm:$0xff]   ;;  %v7401_v63 = vld [vmem:[%s11224_s1 + $0x5a0] ss:$16 sps:$4 sm:$0xff]  }
  0x37   :  { %4972 = vmatpush2.bf16.msra.mxu0 %v7327_v2  ;;  %v7406_v62 = vld [vmem:[%s11224_s1 + $0x7a4] ss:$16 sps:$4 sm:$0xff]   ;;  %v7404_v1 = vld [vmem:[%s11224_s1 + $0x7a0] ss:$16 sps:$4 sm:$0xff]  }
  0x38   :  { %5013 = vmatpush2.bf16.msra.mxu1 %v7328_v3  ;;  %4973 = vmatprep.subr.bf16.mxu0 %v7329_v4  ;;  %v7409_v2 = vld [vmem:[%s11224_s1 + $0x584] ss:$16 sps:$4 sm:$0xff]   ;;  %v7407_v4 = vld [vmem:[%s11224_s1 + $0x580] ss:$16 sps:$4 sm:$0xff]  }
  0x39   :  { %5014 = vmatprep.subr.bf16.mxu1 %v7331_v5  ;;  %v7412_v3 = vld [vmem:[%s11224_s1 + $0x784] ss:$16 sps:$4 sm:$0xff]   ;;  %v7410_v5 = vld [vmem:[%s11224_s1 + $0x780] ss:$16 sps:$4 sm:$0xff]  }
  0x3a   :  { %v7421_v11 = vld [vmem:[%s11224_s1 + $0x544] ss:$16 sps:$4 sm:$0xff]  }
  0x3b   :  { %4974 = vmatpush2.bf16.msra.mxu0 %v7333_v7  ;;  %v7415_v7 = vld [vmem:[%s11224_s1 + $0x564] ss:$16 sps:$4 sm:$0xff]  }
  0x3c   :  { %5015 = vmatpush2.bf16.msra.mxu1 %v7334_v8  ;;  %4975 = vmatprep.subr.bf16.mxu0 %v7335_v9  ;;  %v7418_v8 = vld [vmem:[%s11224_s1 + $0x764] ss:$16 sps:$4 sm:$0xff]   ;;  %v7413_v9 = vld [vmem:[%s11224_s1 + $0x560] ss:$16 sps:$4 sm:$0xff]  }
  0x3d   :  { %5016 = vmatprep.subr.bf16.mxu1 %v7337_v10  ;;  %v7416_v10 = vld [vmem:[%s11224_s1 + $0x760] ss:$16 sps:$4 sm:$0xff]  }
  0x3f   :  { %4976 = vmatpush2.bf16.msra.mxu0 %v7339_v12  ;;  %v7424_v12 = vld [vmem:[%s11224_s1 + $0x744] ss:$16 sps:$4 sm:$0xff]  }
  0x40   :  { %5017 = vmatpush2.bf16.msra.mxu1 %v7340_v14  ;;  %5027 = vmatprep.subr.bf16.mxu0 %v7343_v15  ;;  %v7419_v14 = vld [vmem:[%s11224_s1 + $0x540] ss:$16 sps:$4 sm:$0xff]  }
  0x41   :  { %5068 = vmatprep.subr.bf16.mxu1 %v7346_v16  ;;  %v7422_v15 = vld [vmem:[%s11224_s1 + $0x740] ss:$16 sps:$4 sm:$0xff]   ;;  %v7427_v16 = vld [vmem:[%s11224_s1 + $0x524] ss:$16 sps:$4 sm:$0xff]  }
  0x42   :  { %4978 = vmatmul.mubr.bf16.vlgmr.msra.gmra.mxu0 %v8725_v13 }
  0x43   :  { %5019 = vmatmul.mubr.bf16.vlgmr.msra.gmra.mxu1 %v8741_v18  ;;  %5028 = vmatpush1.bf16.msra.mxu0 %v7341_v19  ;;  %v7430_v19 = vld [vmem:[%s11224_s1 + $0x724] ss:$16 sps:$4 sm:$0xff]  }
  0x44   :  { %5069 = vmatpush1.bf16.msra.mxu1 %v7344_v20  ;;  %5029 = vmatprep.subr.bf16.mxu0 %v7349_v21  ;;  %v7425_v20 = vld [vmem:[%s11224_s1 + $0x520] ss:$16 sps:$4 sm:$0xff]  }
  0x45   :  { %5070 = vmatprep.subr.bf16.mxu1 %v7352_v22  ;;  %5059 = vmatprep.mubr.bf16.mxu0 %v8737_v17  ;;  %v7428_v21 = vld [vmem:[%s11224_s1 + $0x720] ss:$16 sps:$4 sm:$0xff]   ;;  %v7433_v22 = vld [vmem:[%s11224_s1 + $0x504] ss:$16 sps:$4 sm:$0xff]  }
  0x46   :  { %5100 = vmatprep.mubr.bf16.mxu1 %v8757_v23 }
  0x47   :  { %5030 = vmatpush1.bf16.msra.mxu0 %v7347_v24  ;;  %v7436_v24 = vld [vmem:[%s11224_s1 + $0x704] ss:$16 sps:$4 sm:$0xff]  }
  0x48   :  { %5071 = vmatpush1.bf16.msra.mxu1 %v7350_v25  ;;  %5031 = vmatprep.subr.bf16.mxu0 %v7355_v26  ;;  %v7431_v25 = vld [vmem:[%s11224_s1 + $0x500] ss:$16 sps:$4 sm:$0xff]   ;;  %v8936_v26 = vrot.slane %v8705_v6, %v8647_v49 }
  0x49   :  { %5072 = vmatprep.subr.bf16.mxu1 %v7358_v27  ;;  %v7434_v27 = vld [vmem:[%s11224_s1 + $0x700] ss:$16 sps:$4 sm:$0xff]  }
  0x4a   :  { %v8949_v6 = vcombine.high %v8936_v26, %v8936_v26 }
  0x4b   :  { %5032 = vmatpush1.bf16.msra.mxu0 %v7353_v28  ;;  %v7440_v28 = vld [vmem:[%s11224_s1 + $0x8e4] ss:$16 sps:$4 sm:$0xff]  }
  0x4c   :  { %5073 = vmatpush1.bf16.msra.mxu1 %v7356_v29  ;;  %5033 = vmatprep.subr.bf16.mxu0 %v7361_v30  ;;  %v7443_v29 = vld [vmem:[%s11224_s1 + $0xae4] ss:$16 sps:$4 sm:$0xff]   ;;  %v7438_v30 = vld [vmem:[%s11224_s1 + $0x8e0] ss:$16 sps:$4 sm:$0xff]  }
  0x4d   :  { %5074 = vmatprep.subr.bf16.mxu1 %v7364_v31  ;;  %v7441_v31 = vld [vmem:[%s11224_s1 + $0xae0] ss:$16 sps:$4 sm:$0xff]  }
  0x4f   :  { %5034 = vmatpush1.bf16.msra.mxu0 %v7359_v32  ;;  %v8960_v32 = vld [vmem:[%s11223_s0 + $0x8] sm:$0xff] }
  0x50   :  { %5075 = vmatpush1.bf16.msra.mxu1 %v7362_v33  ;;  %5035 = vmatprep.subr.bf16.mxu0 %v7367_v34  ;;  %v7446_v33 = vld [vmem:[%s11224_s1 + $0x8c4] ss:$16 sps:$4 sm:$0xff]  }
  0x51   :  { %5076 = vmatprep.subr.bf16.mxu1 %v7370_v35  ;;  %v7449_v34 = vld [vmem:[%s11224_s1 + $0xac4] ss:$16 sps:$4 sm:$0xff]   ;;  %v8970_v35 = vrot.slane %v8960_v32, %v8647_v49 }
  0x53   :  { %5036 = vmatpush1.bf16.msra.mxu0 %v7365_v36  ;;  %v900_v36 = vcombine.high %v8970_v35, %v8970_v35 }
  0x54   :  { %5077 = vmatpush1.bf16.msra.mxu1 %v7368_v37  ;;  %5037 = vmatprep.subr.bf16.mxu0 %v7373_v38  ;;  %v7444_v37 = vld [vmem:[%s11224_s1 + $0x8c0] ss:$16 sps:$4 sm:$0xff]  }
  0x55   :  { %5078 = vmatprep.subr.bf16.mxu1 %v7376_v39  ;;  %v7447_v38 = vld [vmem:[%s11224_s1 + $0xac0] ss:$16 sps:$4 sm:$0xff]   ;;  %v7452_v39 = vld [vmem:[%s11224_s1 + $0x8a4] ss:$16 sps:$4 sm:$0xff]  }
  0x57   :  { %5038 = vmatpush1.bf16.msra.mxu0 %v7371_v40  ;;  %v7455_v40 = vld [vmem:[%s11224_s1 + $0xaa4] ss:$16 sps:$4 sm:$0xff]  }
  0x58   :  { %5079 = vmatpush1.bf16.msra.mxu1 %v7374_v41  ;;  %5039 = vmatprep.subr.bf16.mxu0 %v7379_v43  ;;  %v8989_v41 = vrot.slane %v900_v36, %v8647_v49  ;;  %v7516_v36 = vld [vmem:[%s11224_s1 + $0x940] ss:$16 sps:$4 sm:$0xff]  }
  0x59   :  { %5080 = vmatprep.subr.bf16.mxu1 %v7382_v44  ;;  %v7450_v44 = vld [vmem:[%s11224_s1 + $0x8a0] ss:$16 sps:$4 sm:$0xff]  }
  0x5a   :  { %v8994_v43 = vcombine.high %v8989_v41, %v8989_v41 }
  0x5b   :  { %5040 = vmatpush1.bf16.msra.mxu0 %v7377_v45  ;;  %v7453_v45 = vld [vmem:[%s11224_s1 + $0xaa0] ss:$16 sps:$4 sm:$0xff]  }
  0x5c   :  { %5081 = vmatpush1.bf16.msra.mxu1 %v7380_v46  ;;  %5041 = vmatprep.subr.bf16.mxu0 %v7385_v47  ;;  %v7458_v46 = vld [vmem:[%s11224_s1 + $0x884] ss:$16 sps:$4 sm:$0xff]  }
  0x5d   :  { %5082 = vmatprep.subr.bf16.mxu1 %v7388_v48  ;;  %v7461_v47 = vld [vmem:[%s11224_s1 + $0xa84] ss:$16 sps:$4 sm:$0xff]   ;;  %v7456_v48 = vld [vmem:[%s11224_s1 + $0x880] ss:$16 sps:$4 sm:$0xff]  }
  0x5f   :  { %5042 = vmatpush1.bf16.msra.mxu0 %v7383_v50  ;;  %v7459_v50 = vld [vmem:[%s11224_s1 + $0xa80] ss:$16 sps:$4 sm:$0xff]  }
  0x60   :  { %5083 = vmatpush1.bf16.msra.mxu1 %v7386_v51  ;;  %5043 = vmatprep.subr.bf16.mxu0 %v7391_v52  ;;  %v7464_v51 = vld [vmem:[%s11224_s1 + $0x864] ss:$16 sps:$4 sm:$0xff]  }
  0x61   :  { %5084 = vmatprep.subr.bf16.mxu1 %v7394_v53  ;;  %v7467_v52 = vld [vmem:[%s11224_s1 + $0xa64] ss:$16 sps:$4 sm:$0xff]   ;;  %v7462_v53 = vld [vmem:[%s11224_s1 + $0x860] ss:$16 sps:$4 sm:$0xff]  }
  0x63   :  { %5044 = vmatpush2.bf16.msra.mxu0 %v7389_v54  ;;  %v7465_v54 = vld [vmem:[%s11224_s1 + $0xa60] ss:$16 sps:$4 sm:$0xff]  }
  0x64   :  { %5085 = vmatpush2.bf16.msra.mxu1 %v7392_v55  ;;  %5045 = vmatprep.subr.bf16.mxu0 %v7397_v56  ;;  %v7470_v55 = vld [vmem:[%s11224_s1 + $0x844] ss:$16 sps:$4 sm:$0xff]  }
  0x65   :  { %5086 = vmatprep.subr.bf16.mxu1 %v7400_v57  ;;  %v7473_v56 = vld [vmem:[%s11224_s1 + $0xa44] ss:$16 sps:$4 sm:$0xff]   ;;  %v7468_v57 = vld [vmem:[%s11224_s1 + $0x840] ss:$16 sps:$4 sm:$0xff]  }
  0x67   :  { %5046 = vmatpush2.bf16.msra.mxu0 %v7395_v58  ;;  %v7471_v58 = vld [vmem:[%s11224_s1 + $0xa40] ss:$16 sps:$4 sm:$0xff]  }
  0x68   :  { %5087 = vmatpush2.bf16.msra.mxu1 %v7398_v59  ;;  %5047 = vmatprep.subr.bf16.mxu0 %v7403_v61  ;;  %v7476_v59 = vld [vmem:[%s11224_s1 + $0x824] ss:$16 sps:$4 sm:$0xff]  }
  0x69   :  { %5088 = vmatprep.subr.bf16.mxu1 %v7406_v62  ;;  %v7479_v61 = vld [vmem:[%s11224_s1 + $0xa24] ss:$16 sps:$4 sm:$0xff]   ;;  %v7474_v62 = vld [vmem:[%s11224_s1 + $0x820] ss:$16 sps:$4 sm:$0xff]  }
  0x6b   :  { %5048 = vmatpush2.bf16.msra.mxu0 %v7401_v63  ;;  %v7477_v63 = vld [vmem:[%s11224_s1 + $0xa20] ss:$16 sps:$4 sm:$0xff]  }
  0x6c   :  { %5089 = vmatpush2.bf16.msra.mxu1 %v7404_v1  ;;  %5049 = vmatprep.subr.bf16.mxu0 %v7409_v2  ;;  %v7482_v1 = vld [vmem:[%s11224_s1 + $0x804] ss:$16 sps:$4 sm:$0xff]  }
  0x6d   :  { %5090 = vmatprep.subr.bf16.mxu1 %v7412_v3  ;;  %v7485_v2 = vld [vmem:[%s11224_s1 + $0xa04] ss:$16 sps:$4 sm:$0xff]   ;;  %v7480_v3 = vld [vmem:[%s11224_s1 + $0x800] ss:$16 sps:$4 sm:$0xff]  }
  0x6f   :  { %5050 = vmatpush2.bf16.msra.mxu0 %v7407_v4  ;;  %v7483_v4 = vld [vmem:[%s11224_s1 + $0xa00] ss:$16 sps:$4 sm:$0xff]  }
  0x70   :  { %5091 = vmatpush2.bf16.msra.mxu1 %v7410_v5  ;;  %5051 = vmatprep.subr.bf16.mxu0 %v7415_v7  ;;  %v7488_v5 = vld [vmem:[%s11224_s1 + $0x9e4] ss:$16 sps:$4 sm:$0xff]  }
  0x71   :  { %5092 = vmatprep.subr.bf16.mxu1 %v7418_v8  ;;  %v7491_v7 = vld [vmem:[%s11224_s1 + $0xbe4] ss:$16 sps:$4 sm:$0xff]   ;;  %v7486_v8 = vld [vmem:[%s11224_s1 + $0x9e0] ss:$16 sps:$4 sm:$0xff]  }
  0x73   :  { %5052 = vmatpush2.bf16.msra.mxu0 %v7413_v9  ;;  %v7489_v9 = vld [vmem:[%s11224_s1 + $0xbe0] ss:$16 sps:$4 sm:$0xff]  }
  0x74   :  { %5093 = vmatpush2.bf16.msra.mxu1 %v7416_v10  ;;  %5053 = vmatprep.subr.bf16.mxu0 %v7421_v11  ;;  %v7494_v10 = vld [vmem:[%s11224_s1 + $0x9c4] ss:$16 sps:$4 sm:$0xff]  }
  0x75   :  { %5094 = vmatprep.subr.bf16.mxu1 %v7424_v12  ;;  %v7497_v11 = vld [vmem:[%s11224_s1 + $0xbc4] ss:$16 sps:$4 sm:$0xff]   ;;  %v7492_v12 = vld [vmem:[%s11224_s1 + $0x9c0] ss:$16 sps:$4 sm:$0xff]  }
  0x77   :  { %5054 = vmatpush2.bf16.msra.mxu0 %v7419_v14  ;;  %v7495_v14 = vld [vmem:[%s11224_s1 + $0xbc0] ss:$16 sps:$4 sm:$0xff]  }
  0x78   :  { %5095 = vmatpush2.bf16.msra.mxu1 %v7422_v15  ;;  %5055 = vmatprep.subr.bf16.mxu0 %v7427_v16  ;;  %v7500_v15 = vld [vmem:[%s11224_s1 + $0x9a4] ss:$16 sps:$4 sm:$0xff]  }
  0x79   :  { %5096 = vmatprep.subr.bf16.mxu1 %v7430_v19  ;;  %v7503_v16 = vld [vmem:[%s11224_s1 + $0xba4] ss:$16 sps:$4 sm:$0xff]   ;;  %v7498_v19 = vld [vmem:[%s11224_s1 + $0x9a0] ss:$16 sps:$4 sm:$0xff]  }
  0x7b   :  { %5056 = vmatpush2.bf16.msra.mxu0 %v7425_v20  ;;  %v7501_v20 = vld [vmem:[%s11224_s1 + $0xba0] ss:$16 sps:$4 sm:$0xff]  }
  0x7c   :  { %5097 = vmatpush2.bf16.msra.mxu1 %v7428_v21  ;;  %5057 = vmatprep.subr.bf16.mxu0 %v7433_v22  ;;  %v7506_v21 = vld [vmem:[%s11224_s1 + $0x984] ss:$16 sps:$4 sm:$0xff]  }
  0x7d   :  { %5098 = vmatprep.subr.bf16.mxu1 %v7436_v24  ;;  %v7509_v22 = vld [vmem:[%s11224_s1 + $0xb84] ss:$16 sps:$4 sm:$0xff]   ;;  %v7504_v24 = vld [vmem:[%s11224_s1 + $0x980] ss:$16 sps:$4 sm:$0xff]  }
  0x7f   :  { %5058 = vmatpush2.bf16.msra.mxu0 %v7431_v25  ;;  %v7507_v25 = vld [vmem:[%s11224_s1 + $0xb80] ss:$16 sps:$4 sm:$0xff]  }
  0x80   :  { %5099 = vmatpush2.bf16.msra.mxu1 %v7434_v27  ;;  %5109 = vmatprep.subr.bf16.mxu0 %v7440_v28  ;;  %v7512_v27 = vld [vmem:[%s11224_s1 + $0x964] ss:$16 sps:$4 sm:$0xff]  }
  0x81   :  { %5150 = vmatprep.subr.bf16.mxu1 %v7443_v29  ;;  %v7515_v28 = vld [vmem:[%s11224_s1 + $0xb64] ss:$16 sps:$4 sm:$0xff]   ;;  %v7510_v29 = vld [vmem:[%s11224_s1 + $0x960] ss:$16 sps:$4 sm:$0xff]  }
  0x82   :  { %5060 = vmatmul.mubr.bf16.vlgmr.msra.gmra.mxu0 %v8936_v26 }
  0x83   :  { %5101 = vmatmul.mubr.bf16.vlgmr.msra.gmra.mxu1 %v8949_v6  ;;  %5110 = vmatpush1.bf16.msra.mxu0 %v7438_v30  ;;  %v7513_v30 = vld [vmem:[%s11224_s1 + $0xb60] ss:$16 sps:$4 sm:$0xff]  }
  0x84   :  { %5151 = vmatpush1.bf16.msra.mxu1 %v7441_v31  ;;  %5111 = vmatprep.subr.bf16.mxu0 %v7446_v33  ;;  %v7518_v31 = vld [vmem:[%s11224_s1 + $0x944] ss:$16 sps:$4 sm:$0xff]  }
  0x85   :  { %5152 = vmatprep.subr.bf16.mxu1 %v7449_v34  ;;  %5141 = vmatprep.mubr.bf16.mxu0 %v8989_v41  ;;  %v7521_v33 = vld [vmem:[%s11224_s1 + $0xb44] ss:$16 sps:$4 sm:$0xff]   ;;  %v885_v34 = vcombine.high %v8960_v32, %v8960_v32 }
  0x86   :  { %5182 = vmatprep.mubr.bf16.mxu1 %v8994_v43  ;;  %v7527_v32 = vld [vmem:[%s11224_s1 + $0xb24] ss:$16 sps:$4 sm:$0xff]  }
  0x87   :  { %5112 = vmatpush1.bf16.msra.mxu0 %v7444_v37  ;;  %v7519_v37 = vld [vmem:[%s11224_s1 + $0xb40] ss:$16 sps:$4 sm:$0xff]  }
  0x88   :  { %5153 = vmatpush1.bf16.msra.mxu1 %v7447_v38  ;;  %5113 = vmatprep.subr.bf16.mxu0 %v7452_v39  ;;  %v7524_v38 = vld [vmem:[%s11224_s1 + $0x924] ss:$16 sps:$4 sm:$0xff]   ;;  %v9144_v39 = vrot.slane %v885_v34, %v8647_v49  ;;  %v7585_v34 = vld [vmem:[%s11224_s1 + $0xfe0] ss:$16 sps:$4 sm:$0xff]  }
  0x89   :  { %5154 = vmatprep.subr.bf16.mxu1 %v7455_v40  ;;  %v7522_v40 = vld [vmem:[%s11224_s1 + $0x920] ss:$16 sps:$4 sm:$0xff]  }
  0x8b   :  { %5114 = vmatpush1.bf16.msra.mxu0 %v7450_v44  ;;  %v7525_v44 = vld [vmem:[%s11224_s1 + $0xb20] ss:$16 sps:$4 sm:$0xff]  }
  0x8c   :  { %5155 = vmatpush1.bf16.msra.mxu1 %v7453_v45  ;;  %5115 = vmatprep.subr.bf16.mxu0 %v7458_v46  ;;  %v7530_v45 = vld [vmem:[%s11224_s1 + $0x904] ss:$16 sps:$4 sm:$0xff]  }
  0x8d   :  { %5156 = vmatprep.subr.bf16.mxu1 %v7461_v47  ;;  %v7533_v46 = vld [vmem:[%s11224_s1 + $0xb04] ss:$16 sps:$4 sm:$0xff]   ;;  %v901_v47 = vcombine.high %v9144_v39, %v9144_v39 }
  0x8f   :  { %5116 = vmatpush1.bf16.msra.mxu0 %v7456_v48  ;;  %v7528_v48 = vld [vmem:[%s11224_s1 + $0x900] ss:$16 sps:$4 sm:$0xff]  }
  0x90   :  { %5157 = vmatpush1.bf16.msra.mxu1 %v7459_v50  ;;  %5117 = vmatprep.subr.bf16.mxu0 %v7464_v51  ;;  %v9165_v50 = vrot.slane %v8970_v35, %v8647_v49  ;;  %v7531_v51 = vld [vmem:[%s11224_s1 + $0xb00] ss:$16 sps:$4 sm:$0xff]  }
  0x91   :  { %5158 = vmatprep.subr.bf16.mxu1 %v7467_v52  ;;  %v7536_v52 = vld [vmem:[%s11224_s1 + $0xce4] ss:$16 sps:$4 sm:$0xff]  }
  0x92   :  { %v9181_v35 = vcombine.high %v9165_v50, %v9165_v50 }
  0x93   :  { %5118 = vmatpush1.bf16.msra.mxu0 %v7462_v53  ;;  %v7539_v53 = vld [vmem:[%s11224_s1 + $0xee4] ss:$16 sps:$4 sm:$0xff]  }
  0x94   :  { %5159 = vmatpush1.bf16.msra.mxu1 %v7465_v54  ;;  %5119 = vmatprep.subr.bf16.mxu0 %v7470_v55  ;;  %v9177_v54 = vrot.slane %v901_v47, %v8647_v49  ;;  %v7534_v55 = vld [vmem:[%s11224_s1 + $0xce0] ss:$16 sps:$4 sm:$0xff]   ;;  %v7602_v47 = vld [vmem:[%s11224_s1 + $0xd84] ss:$16 sps:$4 sm:$0xff]  }
  0x95   :  { %5160 = vmatprep.subr.bf16.mxu1 %v7473_v56  ;;  %v7537_v56 = vld [vmem:[%s11224_s1 + $0xee0] ss:$16 sps:$4 sm:$0xff]  }
  0x97   :  { %5120 = vmatpush1.bf16.msra.mxu0 %v7468_v57  ;;  %v7542_v57 = vld [vmem:[%s11224_s1 + $0xcc4] ss:$16 sps:$4 sm:$0xff]  }
  0x98   :  { %5161 = vmatpush1.bf16.msra.mxu1 %v7471_v58  ;;  %5121 = vmatprep.subr.bf16.mxu0 %v7476_v59  ;;  %v7545_v58 = vld [vmem:[%s11224_s1 + $0xec4] ss:$16 sps:$4 sm:$0xff]   ;;  %v9197_v59 = vcombine.high %v9177_v54, %v9177_v54 }
  0x99   :  { %5162 = vmatprep.subr.bf16.mxu1 %v7479_v61  ;;  %v7540_v61 = vld [vmem:[%s11224_s1 + $0xcc0] ss:$16 sps:$4 sm:$0xff]  }
  0x9b   :  { %5122 = vmatpush1.bf16.msra.mxu0 %v7474_v62  ;;  %v7543_v62 = vld [vmem:[%s11224_s1 + $0xec0] ss:$16 sps:$4 sm:$0xff]  }
  0x9c   :  { %5163 = vmatpush1.bf16.msra.mxu1 %v7477_v63  ;;  %5123 = vmatprep.subr.bf16.mxu0 %v7482_v1  ;;  %v7548_v63 = vld [vmem:[%s11224_s1 + $0xca4] ss:$16 sps:$4 sm:$0xff]  }
  0x9d   :  { %5164 = vmatprep.subr.bf16.mxu1 %v7485_v2  ;;  %v7551_v1 = vld [vmem:[%s11224_s1 + $0xea4] ss:$16 sps:$4 sm:$0xff]   ;;  %v7546_v2 = vld [vmem:[%s11224_s1 + $0xca0] ss:$16 sps:$4 sm:$0xff]  }
  0x9f   :  { %5124 = vmatpush1.bf16.msra.mxu0 %v7480_v3  ;;  %v7549_v3 = vld [vmem:[%s11224_s1 + $0xea0] ss:$16 sps:$4 sm:$0xff]  }
  0xa0   :  { %5165 = vmatpush1.bf16.msra.mxu1 %v7483_v4  ;;  %5125 = vmatprep.subr.bf16.mxu0 %v7488_v5  ;;  %v7554_v4 = vld [vmem:[%s11224_s1 + $0xc84] ss:$16 sps:$4 sm:$0xff]  }
  0xa1   :  { %5166 = vmatprep.subr.bf16.mxu1 %v7491_v7  ;;  %v7557_v5 = vld [vmem:[%s11224_s1 + $0xe84] ss:$16 sps:$4 sm:$0xff]   ;;  %v7552_v7 = vld [vmem:[%s11224_s1 + $0xc80] ss:$16 sps:$4 sm:$0xff]  }
  0xa3   :  { %5126 = vmatpush2.bf16.msra.mxu0 %v7486_v8  ;;  %v7555_v8 = vld [vmem:[%s11224_s1 + $0xe80] ss:$16 sps:$4 sm:$0xff]  }
  0xa4   :  { %5167 = vmatpush2.bf16.msra.mxu1 %v7489_v9  ;;  %5127 = vmatprep.subr.bf16.mxu0 %v7494_v10  ;;  %v7560_v9 = vld [vmem:[%s11224_s1 + $0xc64] ss:$16 sps:$4 sm:$0xff]  }
  0xa5   :  { %5168 = vmatprep.subr.bf16.mxu1 %v7497_v11  ;;  %v7563_v10 = vld [vmem:[%s11224_s1 + $0xe64] ss:$16 sps:$4 sm:$0xff]   ;;  %v7558_v11 = vld [vmem:[%s11224_s1 + $0xc60] ss:$16 sps:$4 sm:$0xff]  }
  0xa7   :  { %5128 = vmatpush2.bf16.msra.mxu0 %v7492_v12  ;;  %v7561_v12 = vld [vmem:[%s11224_s1 + $0xe60] ss:$16 sps:$4 sm:$0xff]  }
  0xa8   :  { %5169 = vmatpush2.bf16.msra.mxu1 %v7495_v14  ;;  %5129 = vmatprep.subr.bf16.mxu0 %v7500_v15  ;;  %v7566_v14 = vld [vmem:[%s11224_s1 + $0xc44] ss:$16 sps:$4 sm:$0xff]  }
  0xa9   :  { %5170 = vmatprep.subr.bf16.mxu1 %v7503_v16  ;;  %v7569_v15 = vld [vmem:[%s11224_s1 + $0xe44] ss:$16 sps:$4 sm:$0xff]   ;;  %v7564_v16 = vld [vmem:[%s11224_s1 + $0xc40] ss:$16 sps:$4 sm:$0xff]  }
  0xab   :  { %5130 = vmatpush2.bf16.msra.mxu0 %v7498_v19  ;;  %v7567_v19 = vld [vmem:[%s11224_s1 + $0xe40] ss:$16 sps:$4 sm:$0xff]  }
  0xac   :  { %5171 = vmatpush2.bf16.msra.mxu1 %v7501_v20  ;;  %5131 = vmatprep.subr.bf16.mxu0 %v7506_v21  ;;  %v7572_v20 = vld [vmem:[%s11224_s1 + $0xc24] ss:$16 sps:$4 sm:$0xff]  }
  0xad   :  { %5172 = vmatprep.subr.bf16.mxu1 %v7509_v22  ;;  %v7575_v21 = vld [vmem:[%s11224_s1 + $0xe24] ss:$16 sps:$4 sm:$0xff]   ;;  %v7570_v22 = vld [vmem:[%s11224_s1 + $0xc20] ss:$16 sps:$4 sm:$0xff]  }
  0xaf   :  { %5132 = vmatpush2.bf16.msra.mxu0 %v7504_v24  ;;  %v7573_v24 = vld [vmem:[%s11224_s1 + $0xe20] ss:$16 sps:$4 sm:$0xff]  }
  0xb0   :  { %5173 = vmatpush2.bf16.msra.mxu1 %v7507_v25  ;;  %5133 = vmatprep.subr.bf16.mxu0 %v7512_v27  ;;  %v7578_v25 = vld [vmem:[%s11224_s1 + $0xc04] ss:$16 sps:$4 sm:$0xff]  }
  0xb1   :  { %5174 = vmatprep.subr.bf16.mxu1 %v7515_v28  ;;  %v7581_v27 = vld [vmem:[%s11224_s1 + $0xe04] ss:$16 sps:$4 sm:$0xff]   ;;  %v7576_v28 = vld [vmem:[%s11224_s1 + $0xc00] ss:$16 sps:$4 sm:$0xff]  }
  0xb3   :  { %5134 = vmatpush2.bf16.msra.mxu0 %v7510_v29  ;;  %v7579_v29 = vld [vmem:[%s11224_s1 + $0xe00] ss:$16 sps:$4 sm:$0xff]  }
  0xb4   :  { %5175 = vmatpush2.bf16.msra.mxu1 %v7513_v30  ;;  %5135 = vmatprep.subr.bf16.mxu0 %v7518_v31  ;;  %v7584_v30 = vld [vmem:[%s11224_s1 + $0xde4] ss:$16 sps:$4 sm:$0xff]  }
  0xb5   :  { %5176 = vmatprep.subr.bf16.mxu1 %v7521_v33  ;;  %v7587_v31 = vld [vmem:[%s11224_s1 + $0xfe4] ss:$16 sps:$4 sm:$0xff]   ;;  %v7582_v33 = vld [vmem:[%s11224_s1 + $0xde0] ss:$16 sps:$4 sm:$0xff]  }
  0xb7   :  { %5136 = vmatpush2.bf16.msra.mxu0 %v7516_v36  ;;  %v7590_v36 = vld [vmem:[%s11224_s1 + $0xdc4] ss:$16 sps:$4 sm:$0xff]  }
  0xb8   :  { %5177 = vmatpush2.bf16.msra.mxu1 %v7519_v37  ;;  %5137 = vmatprep.subr.bf16.mxu0 %v7524_v38  ;;  %v7593_v37 = vld [vmem:[%s11224_s1 + $0xfc4] ss:$16 sps:$4 sm:$0xff]   ;;  %v7588_v38 = vld [vmem:[%s11224_s1 + $0xdc0] ss:$16 sps:$4 sm:$0xff]  }
  0xb9   :  { %5178 = vmatprep.subr.bf16.mxu1 %v7527_v32  ;;  %v7591_v32 = vld [vmem:[%s11224_s1 + $0xfc0] ss:$16 sps:$4 sm:$0xff]  }
  0xbb   :  { %5138 = vmatpush2.bf16.msra.mxu0 %v7522_v40  ;;  %v7596_v40 = vld [vmem:[%s11224_s1 + $0xda4] ss:$16 sps:$4 sm:$0xff]  }
  0xbc   :  { %5179 = vmatpush2.bf16.msra.mxu1 %v7525_v44  ;;  %5139 = vmatprep.subr.bf16.mxu0 %v7530_v45  ;;  %v7599_v44 = vld [vmem:[%s11224_s1 + $0xfa4] ss:$16 sps:$4 sm:$0xff]   ;;  %v7594_v45 = vld [vmem:[%s11224_s1 + $0xda0] ss:$16 sps:$4 sm:$0xff]  }
  0xbd   :  { %5180 = vmatprep.subr.bf16.mxu1 %v7533_v46  ;;  %v7597_v46 = vld [vmem:[%s11224_s1 + $0xfa0] ss:$16 sps:$4 sm:$0xff]  }
  0xbf   :  { %5140 = vmatpush2.bf16.msra.mxu0 %v7528_v48  ;;  %v7605_v48 = vld [vmem:[%s11224_s1 + $0xf84] ss:$16 sps:$4 sm:$0xff]  }
  0xc0   :  { %5181 = vmatpush2.bf16.msra.mxu1 %v7531_v51  ;;  %5191 = vmatprep.subr.bf16.mxu0 %v7536_v52  ;;  %v7600_v51 = vld [vmem:[%s11224_s1 + $0xd80] ss:$16 sps:$4 sm:$0xff]  }
  0xc1   :  { %5232 = vmatprep.subr.bf16.mxu1 %v7539_v53  ;;  %v7603_v52 = vld [vmem:[%s11224_s1 + $0xf80] ss:$16 sps:$4 sm:$0xff]   ;;  %v7608_v53 = vld [vmem:[%s11224_s1 + $0xd64] ss:$16 sps:$4 sm:$0xff]  }
  0xc2   :  { %5142 = vmatmul.mubr.bf16.vlgmr.msra.gmra.mxu0 %v9165_v50 }
  0xc3   :  { %5183 = vmatmul.mubr.bf16.vlgmr.msra.gmra.mxu1 %v9181_v35  ;;  %5192 = vmatpush1.bf16.msra.mxu0 %v7534_v55  ;;  %v7611_v55 = vld [vmem:[%s11224_s1 + $0xf64] ss:$16 sps:$4 sm:$0xff]  }
  0xc4   :  { %5233 = vmatpush1.bf16.msra.mxu1 %v7537_v56  ;;  %5193 = vmatprep.subr.bf16.mxu0 %v7542_v57  ;;  %v7606_v56 = vld [vmem:[%s11224_s1 + $0xd60] ss:$16 sps:$4 sm:$0xff]  }
  0xc5   :  { %5234 = vmatprep.subr.bf16.mxu1 %v7545_v58  ;;  %5223 = vmatprep.mubr.bf16.mxu0 %v9177_v54  ;;  %v7609_v57 = vld [vmem:[%s11224_s1 + $0xf60] ss:$16 sps:$4 sm:$0xff]   ;;  %v7614_v58 = vld [vmem:[%s11224_s1 + $0xd44] ss:$16 sps:$4 sm:$0xff]  }
  0xc6   :  { %5264 = vmatprep.mubr.bf16.mxu1 %v9197_v59 }
  0xc7   :  { %5194 = vmatpush1.bf16.msra.mxu0 %v7540_v61  ;;  %v7617_v61 = vld [vmem:[%s11224_s1 + $0xf44] ss:$16 sps:$4 sm:$0xff]  }
  0xc8   :  { %5235 = vmatpush1.bf16.msra.mxu1 %v7543_v62  ;;  %5195 = vmatprep.subr.bf16.mxu0 %v7548_v63  ;;  %v7612_v62 = vld [vmem:[%s11224_s1 + $0xd40] ss:$16 sps:$4 sm:$0xff]  }
  0xc9   :  { %5236 = vmatprep.subr.bf16.mxu1 %v7551_v1  ;;  %v7615_v63 = vld [vmem:[%s11224_s1 + $0xf40] ss:$16 sps:$4 sm:$0xff]  }
  0xca   :  { %v9356_v1 = vld [vmem:[%s11223_s0 + $0x10] sm:$0xff] }
  0xcb   :  { %5196 = vmatpush1.bf16.msra.mxu0 %v7546_v2  ;;  %v7620_v2 = vld [vmem:[%s11224_s1 + $0xd24] ss:$16 sps:$4 sm:$0xff]  }
  0xcc   :  { %5237 = vmatpush1.bf16.msra.mxu1 %v7549_v3  ;;  %5197 = vmatprep.subr.bf16.mxu0 %v7554_v4  ;;  %v7623_v3 = vld [vmem:[%s11224_s1 + $0xf24] ss:$16 sps:$4 sm:$0xff]   ;;  %v9366_v4 = vrot.slane %v9356_v1, %v8647_v49 }
  0xcd   :  { %5238 = vmatprep.subr.bf16.mxu1 %v7557_v5  ;;  %v7618_v5 = vld [vmem:[%s11224_s1 + $0xd20] ss:$16 sps:$4 sm:$0xff]  }
  0xcf   :  { %5198 = vmatpush1.bf16.msra.mxu0 %v7552_v7  ;;  %v7621_v7 = vld [vmem:[%s11224_s1 + $0xf20] ss:$16 sps:$4 sm:$0xff]  }
  0xd0   :  { %5239 = vmatpush1.bf16.msra.mxu1 %v7555_v8  ;;  %5199 = vmatprep.subr.bf16.mxu0 %v7560_v9  ;;  %v7626_v8 = vld [vmem:[%s11224_s1 + $0xd04] ss:$16 sps:$4 sm:$0xff]  }
  0xd1   :  { %5240 = vmatprep.subr.bf16.mxu1 %v7563_v10  ;;  %v7629_v9 = vld [vmem:[%s11224_s1 + $0xf04] ss:$16 sps:$4 sm:$0xff]   ;;  %v7624_v10 = vld [vmem:[%s11224_s1 + $0xd00] ss:$16 sps:$4 sm:$0xff]  }
  0xd3   :  { %5200 = vmatpush1.bf16.msra.mxu0 %v7558_v11  ;;  %v949_v11 = vcombine.high %v9366_v4, %v9366_v4 }
  0xd4   :  { %5241 = vmatpush1.bf16.msra.mxu1 %v7561_v12  ;;  %5201 = vmatprep.subr.bf16.mxu0 %v7566_v14  ;;  %v7627_v12 = vld [vmem:[%s11224_s1 + $0xf00] ss:$16 sps:$4 sm:$0xff]  }
  0xd5   :  { %5242 = vmatprep.subr.bf16.mxu1 %v7569_v15  ;;  %v810_v14 = vld [vmem:[%s11225_s2] sm:$0xf]  ;;  %v9393_v15 = vrot.slane %v9144_v39, %v8647_v49 }
  0xd7   :  { %5202 = vmatpush1.bf16.msra.mxu0 %v7564_v16  ;;  %v814_v16 = vsub.s32 0, %v8629_v42  ;;  %v9408_v39 = vcombine.high %v9393_v15, %v9393_v15 }
  0xd8   :  { %5243 = vmatpush1.bf16.msra.mxu1 %v7567_v19  ;;  %5203 = vmatprep.subr.bf16.mxu0 %v7572_v20  ;;  %v7633_v19 = vld [vmem:[%s11224_s1 + $0x10e4] ss:$16 sps:$4 sm:$0xff]  }
  0xd9   :  { %5244 = vmatprep.subr.bf16.mxu1 %v7575_v21  ;;  %v7636_v20 = vld [vmem:[%s11224_s1 + $0x12e4] ss:$16 sps:$4 sm:$0xff]   ;;  %v818_v21 = vsub.s32 1, %v8629_v42 }
  0xdb   :  { %5204 = vmatpush1.bf16.msra.mxu0 %v7570_v22  ;;  %v9404_v22 = vrot.slane %v949_v11, %v8647_v49  ;;  %v7664_v11 = vld [vmem:[%s11224_s1 + $0x1240] ss:$16 sps:$4 sm:$0xff]  }
  0xdc   :  { %5245 = vmatpush1.bf16.msra.mxu1 %v7573_v24  ;;  %5205 = vmatprep.subr.bf16.mxu0 %v7578_v25  ;;  %v7631_v24 = vld [vmem:[%s11224_s1 + $0x10e0] ss:$16 sps:$4 sm:$0xff]  }
  0xdd   :  { %5246 = vmatprep.subr.bf16.mxu1 %v7581_v27  ;;  %v7634_v25 = vld [vmem:[%s11224_s1 + $0x12e0] ss:$16 sps:$4 sm:$0xff]   ;;  %v815_v27 = vrot.slane %v810_v14, %v814_v16 }
  0xde   :  { %v7667_v16 = vld [vmem:[%s11224_s1 + $0x1020] ss:$16 sps:$4 sm:$0xff]  }
  0xdf   :  { %5206 = vmatpush1.bf16.msra.mxu0 %v7576_v28  ;;  %v7639_v28 = vld [vmem:[%s11224_s1 + $0x10c4] ss:$16 sps:$4 sm:$0xff]  }
  0xe0   :  { %5247 = vmatpush1.bf16.msra.mxu1 %v7579_v29  ;;  %5207 = vmatprep.subr.bf16.mxu0 %v7584_v30  ;;  %v7642_v29 = vld [vmem:[%s11224_s1 + $0x12c4] ss:$16 sps:$4 sm:$0xff]   ;;  %v819_v30 = vrot.slane %v810_v14, %v818_v21 }
  0xe1   :  { %5248 = vmatprep.subr.bf16.mxu1 %v7587_v31  ;;  %v9424_v31 = vcombine.high %v9404_v22, %v9404_v22  ;;  %v7672_v14 = vld [vmem:[%s11224_s1 + $0x1224] ss:$16 sps:$4 sm:$0xff]  }
  0xe2   :  { %v7678_v21 = vld [vmem:[%s11224_s1 + $0x1204] ss:$16 sps:$4 sm:$0xff]  }
  0xe3   :  { %5208 = vmatpush2.bf16.msra.mxu0 %v7582_v33 }
  0xe4   :  { %5249 = vmatpush2.bf16.msra.mxu1 %v7585_v34  ;;  %5209 = vmatprep.subr.bf16.mxu0 %v7590_v36  ;;  %v7637_v36 = vld [vmem:[%s11224_s1 + $0x10c0] ss:$16 sps:$4 sm:$0xff]  }
  0xe5   :  { %5250 = vmatprep.subr.bf16.mxu1 %v7593_v37  ;;  %v7640_v37 = vld [vmem:[%s11224_s1 + $0x12c0] ss:$16 sps:$4 sm:$0xff]  }
  0xe7   :  { %5210 = vmatpush2.bf16.msra.mxu0 %v7588_v38 }
  0xe8   :  { %5251 = vmatpush2.bf16.msra.mxu1 %v7591_v32  ;;  %5211 = vmatprep.subr.bf16.mxu0 %v7596_v40 }
  0xe9   :  { %5252 = vmatprep.subr.bf16.mxu1 %v7599_v44  ;;  %v7645_v44 = vld [vmem:[%s11224_s1 + $0x10a4] ss:$16 sps:$4 sm:$0xff]  }
  0xeb   :  { %5212 = vmatpush2.bf16.msra.mxu0 %v7594_v45  ;;  %v7648_v45 = vld [vmem:[%s11224_s1 + $0x12a4] ss:$16 sps:$4 sm:$0xff]  }
  0xec   :  { %5253 = vmatpush2.bf16.msra.mxu1 %v7597_v46  ;;  %5213 = vmatprep.subr.bf16.mxu0 %v7602_v47 }
  0xed   :  { %5254 = vmatprep.subr.bf16.mxu1 %v7605_v48  ;;  %v7643_v48 = vld [vmem:[%s11224_s1 + $0x10a0] ss:$16 sps:$4 sm:$0xff]  }
  0xef   :  { %5214 = vmatpush2.bf16.msra.mxu0 %v7600_v51  ;;  %v7646_v51 = vld [vmem:[%s11224_s1 + $0x12a0] ss:$16 sps:$4 sm:$0xff]  }
  0xf0   :  { %5255 = vmatpush2.bf16.msra.mxu1 %v7603_v52  ;;  %5215 = vmatprep.subr.bf16.mxu0 %v7608_v53 }
  0xf1   :  { %5256 = vmatprep.subr.bf16.mxu1 %v7611_v55 }
  0xf3   :  { %5216 = vmatpush2.bf16.msra.mxu0 %v7606_v56 }
  0xf4   :  { %5257 = vmatpush2.bf16.msra.mxu1 %v7609_v57  ;;  %5217 = vmatprep.subr.bf16.mxu0 %v7614_v58  ;;  %v7651_v58 = vld [vmem:[%s11224_s1 + $0x1084] ss:$16 sps:$4 sm:$0xff]  }
  0xf5   :  { %5258 = vmatprep.subr.bf16.mxu1 %v7617_v61  ;;  %v7654_v61 = vld [vmem:[%s11224_s1 + $0x1284] ss:$16 sps:$4 sm:$0xff]  }
  0xf7   :  { %5218 = vmatpush2.bf16.msra.mxu0 %v7612_v62  ;;  %v7649_v62 = vld [vmem:[%s11224_s1 + $0x1080] ss:$16 sps:$4 sm:$0xff]  }
  0xf8   :  { %5259 = vmatpush2.bf16.msra.mxu1 %v7615_v63  ;;  %5219 = vmatprep.subr.bf16.mxu0 %v7620_v2  ;;  %v7652_v63 = vld [vmem:[%s11224_s1 + $0x1280] ss:$16 sps:$4 sm:$0xff]   ;;  %v7657_v2 = vld [vmem:[%s11224_s1 + $0x1064] ss:$16 sps:$4 sm:$0xff]  }
  0xf9   :  { %5260 = vmatprep.subr.bf16.mxu1 %v7623_v3  ;;  %v7660_v3 = vld [vmem:[%s11224_s1 + $0x1264] ss:$16 sps:$4 sm:$0xff]  }
  0xfb   :  { %5220 = vmatpush2.bf16.msra.mxu0 %v7618_v5  ;;  %v7655_v5 = vld [vmem:[%s11224_s1 + $0x1060] ss:$16 sps:$4 sm:$0xff]  }
  0xfc   :  { %5261 = vmatpush2.bf16.msra.mxu1 %v7621_v7  ;;  %5221 = vmatprep.subr.bf16.mxu0 %v7626_v8  ;;  %v7658_v7 = vld [vmem:[%s11224_s1 + $0x1260] ss:$16 sps:$4 sm:$0xff]   ;;  %v7663_v8 = vld [vmem:[%s11224_s1 + $0x1044] ss:$16 sps:$4 sm:$0xff]  }
  0xfd   :  { %5262 = vmatprep.subr.bf16.mxu1 %v7629_v9  ;;  %v7666_v9 = vld [vmem:[%s11224_s1 + $0x1244] ss:$16 sps:$4 sm:$0xff]  }
  0xff   :  { %5222 = vmatpush2.bf16.msra.mxu0 %v7624_v10  ;;  %v7661_v10 = vld [vmem:[%s11224_s1 + $0x1040] ss:$16 sps:$4 sm:$0xff]  }
 0x100   :  { %5263 = vmatpush2.bf16.msra.mxu1 %v7627_v12  ;;  %5273 = vmatprep.subr.bf16.mxu0 %v7633_v19  ;;  %v7669_v12 = vld [vmem:[%s11224_s1 + $0x1024] ss:$16 sps:$4 sm:$0xff]   ;;  %v7670_v19 = vld [vmem:[%s11224_s1 + $0x1220] ss:$16 sps:$4 sm:$0xff]  }
 0x101   :  { %5314 = vmatprep.subr.bf16.mxu1 %v7636_v20  ;;  %v7675_v20 = vld [vmem:[%s11224_s1 + $0x1004] ss:$16 sps:$4 sm:$0xff]  }
 0x102   :  { %v4979_v33 = vpop.f32.mrf.mxu0  ;;  %5224 = vmatmul.mubr.bf16.vlgmr.msra.gmra.mxu0 %v9393_v15 }
 0x103   :  { %v5020_v34 = vpop.f32.mrf.mxu1  ;;  %5265 = vmatmul.mubr.bf16.vlgmr.msra.gmra.mxu1 %v9408_v39  ;;  %v4980_v38 = vadd.f32 %v4979_v33, %v815_v27  ;;  %5274 = vmatpush1.bf16.msra.mxu0 %v7631_v24  ;;  %v7673_v24 = vld [vmem:[%s11224_s1 + $0x1000] ss:$16 sps:$4 sm:$0xff]   ;;  %v7681_v27 = vld [vmem:[%s11224_s1 + $0x11e4] ss:$16 sps:$4 sm:$0xff]  }
 0x104   :  { %5315 = vmatpush1.bf16.msra.mxu1 %v7634_v25  ;;  %v4981_v32 = vpop.f32.mrf.mxu0  ;;  %5275 = vmatprep.subr.bf16.mxu0 %v7639_v28  ;;  %v7676_v25 = vld [vmem:[%s11224_s1 + $0x1200] ss:$16 sps:$4 sm:$0xff]   ;;  %v7684_v28 = vld [vmem:[%s11224_s1 + $0x13e4] ss:$16 sps:$4 sm:$0xff]  }
 0x105   :  { %v5022_v40 = vpop.f32.mrf.mxu1  ;;  %5316 = vmatprep.subr.bf16.mxu1 %v7642_v29  ;;  %v9440_v46 = vadd.f32 %v5020_v34, %v4980_v38  ;;  %v4982_v47 = vadd.f32 %v4981_v32, %v819_v30  ;;  %5305 = vmatprep.mubr.bf16.mxu0 %v9404_v22  ;;  %v7679_v29 = vld [vmem:[%s11224_s1 + $0x11e0] ss:$16 sps:$4 sm:$0xff]   ;;  %v7687_v33 = vld [vmem:[%s11224_s1 + $0x11c4] ss:$16 sps:$4 sm:$0xff]  }
 0x106   :  { %5346 = vmatprep.mubr.bf16.mxu1 %v9424_v31  ;;  %v4983_v52 = vpop.f32.mrf.mxu0  ;;  %v7682_v30 = vld [vmem:[%s11224_s1 + $0x13e0] ss:$16 sps:$4 sm:$0xff]   ;;  %v7690_v34 = vld [vmem:[%s11224_s1 + $0x13c4] ss:$16 sps:$4 sm:$0xff]  }
 0x107   :  { %v5024_v53 = vpop.f32.mrf.mxu1  ;;  %v9450_v55 = vadd.f32 %v5022_v40, %v4982_v47  ;;  %5276 = vmatpush1.bf16.msra.mxu0 %v7637_v36  ;;  %v7685_v36 = vld [vmem:[%s11224_s1 + $0x11c0] ss:$16 sps:$4 sm:$0xff]   ;;  %v7693_v38 = vld [vmem:[%s11224_s1 + $0x11a4] ss:$16 sps:$4 sm:$0xff]  }
 0x108   :  { %5317 = vmatpush1.bf16.msra.mxu1 %v7640_v37  ;;  %v4984_v56 = vpop.f32.mrf.mxu0  ;;  %5277 = vmatprep.subr.bf16.mxu0 %v7645_v44  ;;  %v7688_v37 = vld [vmem:[%s11224_s1 + $0x13c0] ss:$16 sps:$4 sm:$0xff]   ;;  %v7696_v32 = vld [vmem:[%s11224_s1 + $0x13a4] ss:$16 sps:$4 sm:$0xff]  }
 0x109   :  { %v5025_v57 = vpop.f32.mrf.mxu1  ;;  %5318 = vmatprep.subr.bf16.mxu1 %v7648_v45  ;;  %v7691_v40 = vld [vmem:[%s11224_s1 + $0x11a0] ss:$16 sps:$4 sm:$0xff]   ;;  %v7699_v45 = vld [vmem:[%s11224_s1 + $0x1184] ss:$16 sps:$4 sm:$0xff]  }
 0x10a   :  { %v7694_v44 = vld [vmem:[%s11224_s1 + $0x13a0] ss:$16 sps:$4 sm:$0xff]   ;;  %v7702_v47 = vld [vmem:[%s11224_s1 + $0x1384] ss:$16 sps:$4 sm:$0xff]  }
 0x10b   :  { %5278 = vmatpush1.bf16.msra.mxu0 %v7643_v48  ;;  %v7697_v48 = vld [vmem:[%s11224_s1 + $0x1180] ss:$16 sps:$4 sm:$0xff]   ;;  %v7705_v52 = vld [vmem:[%s11224_s1 + $0x1164] ss:$16 sps:$4 sm:$0xff]  }
 0x10c   :  { %5319 = vmatpush1.bf16.msra.mxu1 %v7646_v51  ;;  %5279 = vmatprep.subr.bf16.mxu0 %v7651_v58  ;;  %v7700_v51 = vld [vmem:[%s11224_s1 + $0x1380] ss:$16 sps:$4 sm:$0xff]   ;;  %v7708_v53 = vld [vmem:[%s11224_s1 + $0x1364] ss:$16 sps:$4 sm:$0xff]  }
 0x10d   :  { %5320 = vmatprep.subr.bf16.mxu1 %v7654_v61  ;;  %v7703_v56 = vld [vmem:[%s11224_s1 + $0x1160] ss:$16 sps:$4 sm:$0xff]   ;;  %v7711_v58 = vld [vmem:[%s11224_s1 + $0x1144] ss:$16 sps:$4 sm:$0xff]  }
 0x10e   :  { %v7706_v57 = vld [vmem:[%s11224_s1 + $0x1360] ss:$16 sps:$4 sm:$0xff]   ;;  %v7714_v61 = vld [vmem:[%s11224_s1 + $0x1344] ss:$16 sps:$4 sm:$0xff]  }
 0x10f   :  { %5280 = vmatpush1.bf16.msra.mxu0 %v7649_v62  ;;  %v934_v62 = vcombine.high %v9356_v1, %v9356_v1  ;;  %v7720_v1 = vld [vmem:[%s11224_s1 + $0x1324] ss:$16 sps:$4 sm:$0xff]  }
 0x110   :  { %5321 = vmatpush1.bf16.msra.mxu1 %v7652_v63  ;;  %5281 = vmatprep.subr.bf16.mxu0 %v7657_v2  ;;  %v7709_v63 = vld [vmem:[%s11224_s1 + $0x1140] ss:$16 sps:$4 sm:$0xff]  }
 0x111   :  { %5322 = vmatprep.subr.bf16.mxu1 %v7660_v3  ;;  %v7712_v2 = vld [vmem:[%s11224_s1 + $0x1340] ss:$16 sps:$4 sm:$0xff]   ;;  %v7717_v3 = vld [vmem:[%s11224_s1 + $0x1124] ss:$16 sps:$4 sm:$0xff]  }
 0x113   :  { %5282 = vmatpush1.bf16.msra.mxu0 %v7655_v5  ;;  %v9593_v5 = vrot.slane %v934_v62, %v8647_v49  ;;  %v7748_v62 = vld [vmem:[%s11224_s1 + $0x1680] ss:$16 sps:$4 sm:$0xff]  }
 0x114   :  { %5323 = vmatpush1.bf16.msra.mxu1 %v7658_v7  ;;  %5283 = vmatprep.subr.bf16.mxu0 %v7663_v8  ;;  %v7715_v7 = vld [vmem:[%s11224_s1 + $0x1120] ss:$16 sps:$4 sm:$0xff]  }
 0x115   :  { %5324 = vmatprep.subr.bf16.mxu1 %v7666_v9  ;;  %v7718_v8 = vld [vmem:[%s11224_s1 + $0x1320] ss:$16 sps:$4 sm:$0xff]   ;;  %v7723_v9 = vld [vmem:[%s11224_s1 + $0x1104] ss:$16 sps:$4 sm:$0xff]  }
 0x117   :  { %5284 = vmatpush1.bf16.msra.mxu0 %v7661_v10  ;;  %v7726_v10 = vld [vmem:[%s11224_s1 + $0x1304] ss:$16 sps:$4 sm:$0xff]  }
 0x118   :  { %5325 = vmatpush1.bf16.msra.mxu1 %v7664_v11  ;;  %5285 = vmatprep.subr.bf16.mxu0 %v7669_v12  ;;  %v950_v11 = vcombine.high %v9593_v5, %v9593_v5  ;;  %v9611_v12 = vrot.slane %v9366_v4, %v8647_v49  ;;  %v7732_v4 = vld [vmem:[%s11224_s1 + $0x16e4] ss:$16 sps:$4 sm:$0xff]  }
 0x119   :  { %5326 = vmatprep.subr.bf16.mxu1 %v7672_v14  ;;  %v7721_v14 = vld [vmem:[%s11224_s1 + $0x1100] ss:$16 sps:$4 sm:$0xff]  }
 0x11b   :  { %5286 = vmatpush1.bf16.msra.mxu0 %v7667_v16  ;;  %v7724_v16 = vld [vmem:[%s11224_s1 + $0x1300] ss:$16 sps:$4 sm:$0xff]  }
 0x11c   :  { %5327 = vmatpush1.bf16.msra.mxu1 %v7670_v19  ;;  %5287 = vmatprep.subr.bf16.mxu0 %v7675_v20  ;;  %v7729_v19 = vld [vmem:[%s11224_s1 + $0x14e4] ss:$16 sps:$4 sm:$0xff]   ;;  %v7727_v20 = vld [vmem:[%s11224_s1 + $0x14e0] ss:$16 sps:$4 sm:$0xff]  }
 0x11d   :  { %5328 = vmatprep.subr.bf16.mxu1 %v7678_v21  ;;  %v7730_v21 = vld [vmem:[%s11224_s1 + $0x16e0] ss:$16 sps:$4 sm:$0xff]  }
 0x11f   :  { %5288 = vmatpush1.bf16.msra.mxu0 %v7673_v24  ;;  %v9632_v24 = vrot.slane %v950_v11, %v8647_v49  ;;  %v7765_v11 = vld [vmem:[%s11224_s1 + $0x1424] ss:$16 sps:$4 sm:$0xff]  }
 0x120   :  { %5329 = vmatpush1.bf16.msra.mxu1 %v7676_v25  ;;  %5289 = vmatprep.subr.bf16.mxu0 %v7681_v27  ;;  %v9636_v25 = vcombine.high %v9611_v12, %v9611_v12  ;;  %v7735_v27 = vld [vmem:[%s11224_s1 + $0x14c4] ss:$16 sps:$4 sm:$0xff]  }
 0x121   :  { %5330 = vmatprep.subr.bf16.mxu1 %v7684_v28  ;;  %v7738_v28 = vld [vmem:[%s11224_s1 + $0x16c4] ss:$16 sps:$4 sm:$0xff]  }
 0x123   :  { %5290 = vmatpush2.bf16.msra.mxu0 %v7679_v29  ;;  %v7733_v29 = vld [vmem:[%s11224_s1 + $0x14c0] ss:$16 sps:$4 sm:$0xff]  }
 0x124   :  { %5331 = vmatpush2.bf16.msra.mxu1 %v7682_v30  ;;  %5291 = vmatprep.subr.bf16.mxu0 %v7687_v33  ;;  %v7736_v30 = vld [vmem:[%s11224_s1 + $0x16c0] ss:$16 sps:$4 sm:$0xff]   ;;  %v9652_v33 = vcombine.high %v9632_v24, %v9632_v24 }
 0x125   :  { %5332 = vmatprep.subr.bf16.mxu1 %v7690_v34 }
 0x127   :  { %5292 = vmatpush2.bf16.msra.mxu0 %v7685_v36 }
 0x128   :  { %5333 = vmatpush2.bf16.msra.mxu1 %v7688_v37  ;;  %5293 = vmatprep.subr.bf16.mxu0 %v7693_v38 }
 0x129   :  { %5334 = vmatprep.subr.bf16.mxu1 %v7696_v32 }
 0x12b   :  { %5294 = vmatpush2.bf16.msra.mxu0 %v7691_v40  ;;  %v7741_v40 = vld [vmem:[%s11224_s1 + $0x14a4] ss:$16 sps:$4 sm:$0xff]  }
 0x12c   :  { %5335 = vmatpush2.bf16.msra.mxu1 %v7694_v44  ;;  %5295 = vmatprep.subr.bf16.mxu0 %v7699_v45  ;;  %v7744_v44 = vld [vmem:[%s11224_s1 + $0x16a4] ss:$16 sps:$4 sm:$0xff]  }
 0x12d   :  { %5336 = vmatprep.subr.bf16.mxu1 %v7702_v47 }
 0x12f   :  { %5296 = vmatpush2.bf16.msra.mxu0 %v7697_v48  ;;  %v7742_v48 = vld [vmem:[%s11224_s1 + $0x16a0] ss:$16 sps:$4 sm:$0xff]  }
 0x130   :  { %5337 = vmatpush2.bf16.msra.mxu1 %v7700_v51  ;;  %5297 = vmatprep.subr.bf16.mxu0 %v7705_v52 }
 0x131   :  { %5338 = vmatprep.subr.bf16.mxu1 %v7708_v53 }
 0x133   :  { %5298 = vmatpush2.bf16.msra.mxu0 %v7703_v56 }
 0x134   :  { %5339 = vmatpush2.bf16.msra.mxu1 %v7706_v57  ;;  %5299 = vmatprep.subr.bf16.mxu0 %v7711_v58  ;;  %v7747_v57 = vld [vmem:[%s11224_s1 + $0x1484] ss:$16 sps:$4 sm:$0xff]  }
 0x135   :  { %5340 = vmatprep.subr.bf16.mxu1 %v7714_v61  ;;  %v7750_v58 = vld [vmem:[%s11224_s1 + $0x1684] ss:$16 sps:$4 sm:$0xff]   ;;  %v7745_v61 = vld [vmem:[%s11224_s1 + $0x1480] ss:$16 sps:$4 sm:$0xff]  }
 0x137   :  { %5300 = vmatpush2.bf16.msra.mxu0 %v7709_v63  ;;  %v7753_v63 = vld [vmem:[%s11224_s1 + $0x1464] ss:$16 sps:$4 sm:$0xff]  }
 0x138   :  { %5341 = vmatpush2.bf16.msra.mxu1 %v7712_v2  ;;  %5301 = vmatprep.subr.bf16.mxu0 %v7717_v3  ;;  %v7756_v2 = vld [vmem:[%s11224_s1 + $0x1664] ss:$16 sps:$4 sm:$0xff]   ;;  %v7751_v3 = vld [vmem:[%s11224_s1 + $0x1460] ss:$16 sps:$4 sm:$0xff]  }
 0x139   :  { %5342 = vmatprep.subr.bf16.mxu1 %v7720_v1  ;;  %v7754_v1 = vld [vmem:[%s11224_s1 + $0x1660] ss:$16 sps:$4 sm:$0xff]  }
 0x13b   :  { %5302 = vmatpush2.bf16.msra.mxu0 %v7715_v7  ;;  %v7759_v7 = vld [vmem:[%s11224_s1 + $0x1444] ss:$16 sps:$4 sm:$0xff]  }
 0x13c   :  { %5343 = vmatpush2.bf16.msra.mxu1 %v7718_v8  ;;  %5303 = vmatprep.subr.bf16.mxu0 %v7723_v9  ;;  %v7762_v8 = vld [vmem:[%s11224_s1 + $0x1644] ss:$16 sps:$4 sm:$0xff]   ;;  %v7757_v9 = vld [vmem:[%s11224_s1 + $0x1440] ss:$16 sps:$4 sm:$0xff]  }
 0x13d   :  { %5344 = vmatprep.subr.bf16.mxu1 %v7726_v10  ;;  %v7760_v10 = vld [vmem:[%s11224_s1 + $0x1640] ss:$16 sps:$4 sm:$0xff]  }
 0x13f   :  { %5304 = vmatpush2.bf16.msra.mxu0 %v7721_v14  ;;  %v7768_v14 = vld [vmem:[%s11224_s1 + $0x1624] ss:$16 sps:$4 sm:$0xff]  }
 0x140   :  { %5345 = vmatpush2.bf16.msra.mxu1 %v7724_v16  ;;  %5355 = vmatprep.subr.bf16.mxu0 %v7729_v19  ;;  %v7763_v16 = vld [vmem:[%s11224_s1 + $0x1420] ss:$16 sps:$4 sm:$0xff]  }
 0x141   :  { %5396 = vmatprep.subr.bf16.mxu1 %v7732_v4  ;;  %v7766_v19 = vld [vmem:[%s11224_s1 + $0x1620] ss:$16 sps:$4 sm:$0xff]   ;;  %v7771_v4 = vld [vmem:[%s11224_s1 + $0x1404] ss:$16 sps:$4 sm:$0xff]  }
 0x142   :  { %v5061_v34 = vpop.f32.mrf.mxu0  ;;  %5306 = vmatmul.mubr.bf16.vlgmr.msra.gmra.mxu0 %v9611_v12 }
 0x143   :  { %v5102_v36 = vpop.f32.mrf.mxu1  ;;  %5347 = vmatmul.mubr.bf16.vlgmr.msra.gmra.mxu1 %v9636_v25  ;;  %v5062_v37 = vadd.f32 %v5061_v34, %v9440_v46  ;;  %5356 = vmatpush1.bf16.msra.mxu0 %v7727_v20  ;;  %v7739_v46 = vld [vmem:[%s11224_s1 + $0x14a0] ss:$16 sps:$4 sm:$0xff]   ;;  %v7774_v20 = vld [vmem:[%s11224_s1 + $0x1604] ss:$16 sps:$4 sm:$0xff]  }
 0x144   :  { %5397 = vmatpush1.bf16.msra.mxu1 %v7730_v21  ;;  %v5063_v38 = vpop.f32.mrf.mxu0  ;;  %5357 = vmatprep.subr.bf16.mxu0 %v7735_v27  ;;  %v7769_v21 = vld [vmem:[%s11224_s1 + $0x1400] ss:$16 sps:$4 sm:$0xff]  }
 0x145   :  { %v5104_v32 = vpop.f32.mrf.mxu1  ;;  %5398 = vmatprep.subr.bf16.mxu1 %v7738_v28  ;;  %v9663_v45 = vadd.f32 %v5102_v36, %v5062_v37  ;;  %v5064_v47 = vadd.f32 %v5063_v38, %v9450_v55  ;;  %5387 = vmatprep.mubr.bf16.mxu0 %v9632_v24  ;;  %v7772_v27 = vld [vmem:[%s11224_s1 + $0x1600] ss:$16 sps:$4 sm:$0xff]   ;;  %v7777_v28 = vld [vmem:[%s11224_s1 + $0x15e4] ss:$16 sps:$4 sm:$0xff]  }
 0x146   :  { %5428 = vmatprep.mubr.bf16.mxu1 %v9652_v33  ;;  %v5065_v51 = vpop.f32.mrf.mxu0  ;;  %v7778_v34 = vld [vmem:[%s11224_s1 + $0x17e0] ss:$16 sps:$4 sm:$0xff]   ;;  %v7783_v36 = vld [vmem:[%s11224_s1 + $0x15c4] ss:$16 sps:$4 sm:$0xff]  }
 0x147   :  { %v5106_v52 = vpop.f32.mrf.mxu1  ;;  %v9674_v53 = vadd.f32 %v5104_v32, %v5064_v47  ;;  %5358 = vmatpush1.bf16.msra.mxu0 %v7733_v29  ;;  %v7780_v29 = vld [vmem:[%s11224_s1 + $0x17e4] ss:$16 sps:$4 sm:$0xff]   ;;  %v7781_v38 = vld [vmem:[%s11224_s1 + $0x15c0] ss:$16 sps:$4 sm:$0xff]  }
 0x148   :  { %5399 = vmatpush1.bf16.msra.mxu1 %v7736_v30  ;;  %v5066_v56 = vpop.f32.mrf.mxu0  ;;  %5359 = vmatprep.subr.bf16.mxu0 %v7741_v40  ;;  %v7775_v30 = vld [vmem:[%s11224_s1 + $0x15e0] ss:$16 sps:$4 sm:$0xff]   ;;  %v7786_v37 = vld [vmem:[%s11224_s1 + $0x17c4] ss:$16 sps:$4 sm:$0xff]  }
 0x149   :  { %v5107_v55 = vpop.f32.mrf.mxu1  ;;  %5400 = vmatprep.subr.bf16.mxu1 %v7744_v44  ;;  %v7784_v32 = vld [vmem:[%s11224_s1 + $0x17c0] ss:$16 sps:$4 sm:$0xff]   ;;  %v7789_v40 = vld [vmem:[%s11224_s1 + $0x15a4] ss:$16 sps:$4 sm:$0xff]  }
 0x14a   :  { %v7792_v44 = vld [vmem:[%s11224_s1 + $0x17a4] ss:$16 sps:$4 sm:$0xff]   ;;  %v7787_v47 = vld [vmem:[%s11224_s1 + $0x15a0] ss:$16 sps:$4 sm:$0xff]  }
 0x14b   :  { %5360 = vmatpush1.bf16.msra.mxu0 %v7739_v46  ;;  %v7790_v46 = vld [vmem:[%s11224_s1 + $0x17a0] ss:$16 sps:$4 sm:$0xff]   ;;  %v7798_v51 = vld [vmem:[%s11224_s1 + $0x1784] ss:$16 sps:$4 sm:$0xff]  }
 0x14c   :  { %5401 = vmatpush1.bf16.msra.mxu1 %v7742_v48  ;;  %5361 = vmatprep.subr.bf16.mxu0 %v7747_v57  ;;  %v7795_v48 = vld [vmem:[%s11224_s1 + $0x1584] ss:$16 sps:$4 sm:$0xff]   ;;  %v7793_v52 = vld [vmem:[%s11224_s1 + $0x1580] ss:$16 sps:$4 sm:$0xff]  }
 0x14d   :  { %5402 = vmatprep.subr.bf16.mxu1 %v7750_v58  ;;  %v7796_v56 = vld [vmem:[%s11224_s1 + $0x1780] ss:$16 sps:$4 sm:$0xff]   ;;  %v7801_v55 = vld [vmem:[%s11224_s1 + $0x1564] ss:$16 sps:$4 sm:$0xff]  }
 0x14e   :  { %v7804_v57 = vld [vmem:[%s11224_s1 + $0x1764] ss:$16 sps:$4 sm:$0xff]   ;;  %v7799_v58 = vld [vmem:[%s11224_s1 + $0x1560] ss:$16 sps:$4 sm:$0xff]  }
 0x14f   :  { %5362 = vmatpush1.bf16.msra.mxu0 %v7745_v61  ;;  %v7802_v61 = vld [vmem:[%s11224_s1 + $0x1760] ss:$16 sps:$4 sm:$0xff]  }
 0x150   :  { %5403 = vmatpush1.bf16.msra.mxu1 %v7748_v62  ;;  %5363 = vmatprep.subr.bf16.mxu0 %v7753_v63  ;;  %v7807_v62 = vld [vmem:[%s11224_s1 + $0x1544] ss:$16 sps:$4 sm:$0xff]  }
 0x151   :  { %5404 = vmatprep.subr.bf16.mxu1 %v7756_v2  ;;  %v7810_v63 = vld [vmem:[%s11224_s1 + $0x1744] ss:$16 sps:$4 sm:$0xff]   ;;  %v7805_v2 = vld [vmem:[%s11224_s1 + $0x1540] ss:$16 sps:$4 sm:$0xff]  }
 0x153   :  { %5364 = vmatpush1.bf16.msra.mxu0 %v7751_v3  ;;  %v7808_v3 = vld [vmem:[%s11224_s1 + $0x1740] ss:$16 sps:$4 sm:$0xff]  }
 0x154   :  { %5405 = vmatpush1.bf16.msra.mxu1 %v7754_v1  ;;  %5365 = vmatprep.subr.bf16.mxu0 %v7759_v7  ;;  %v7813_v1 = vld [vmem:[%s11224_s1 + $0x1524] ss:$16 sps:$4 sm:$0xff]  }
 0x155   :  { %5406 = vmatprep.subr.bf16.mxu1 %v7762_v8  ;;  %v7816_v7 = vld [vmem:[%s11224_s1 + $0x1724] ss:$16 sps:$4 sm:$0xff]   ;;  %v7811_v8 = vld [vmem:[%s11224_s1 + $0x1520] ss:$16 sps:$4 sm:$0xff]  }
 0x157   :  { %5366 = vmatpush1.bf16.msra.mxu0 %v7757_v9  ;;  %v7814_v9 = vld [vmem:[%s11224_s1 + $0x1720] ss:$16 sps:$4 sm:$0xff]  }
 0x158   :  { %5407 = vmatpush1.bf16.msra.mxu1 %v7760_v10  ;;  %5367 = vmatprep.subr.bf16.mxu0 %v7765_v11  ;;  %v7819_v10 = vld [vmem:[%s11224_s1 + $0x1504] ss:$16 sps:$4 sm:$0xff]  }
 0x159   :  { %5408 = vmatprep.subr.bf16.mxu1 %v7768_v14  ;;  %v7822_v11 = vld [vmem:[%s11224_s1 + $0x1704] ss:$16 sps:$4 sm:$0xff]   ;;  %v9828_v14 = vrot.slane %v9593_v5, %v8647_v49  ;;  %v7829_v5 = vld [vmem:[%s11224_s1 + $0xec] ss:$16 sps:$4 sm:$0xff]  }
 0x15b   :  { %5368 = vmatpush1.bf16.msra.mxu0 %v7763_v16  ;;  %v7817_v16 = vld [vmem:[%s11224_s1 + $0x1500] ss:$16 sps:$4 sm:$0xff]  }
 0x15c   :  { %5409 = vmatpush1.bf16.msra.mxu1 %v7766_v19  ;;  %5369 = vmatprep.subr.bf16.mxu0 %v7771_v4  ;;  %v7820_v19 = vld [vmem:[%s11224_s1 + $0x1700] ss:$16 sps:$4 sm:$0xff]   ;;  %v7826_v4 = vld [vmem:[%s11224_s1 + $0x1864] ss:$16 sps:$4 sm:$0xff]  }
 0x15d   :  { %5410 = vmatprep.subr.bf16.mxu1 %v7774_v20  ;;  %v7824_v20 = vld [vmem:[%s11224_s1 + $0x1860] ss:$16 sps:$4 sm:$0xff]  }
 0x15f   :  { %5370 = vmatpush1.bf16.msra.mxu0 %v7769_v21  ;;  %v7827_v21 = vld [vmem:[%s11224_s1 + $0xe8] ss:$16 sps:$4 sm:$0xff]  }
 0x160   :  { %5411 = vmatpush1.bf16.msra.mxu1 %v7772_v27  ;;  %5371 = vmatprep.subr.bf16.mxu0 %v7777_v28  ;;  %v9850_v27 = vcombine.high %v9828_v14, %v9828_v14  ;;  %v7832_v28 = vld [vmem:[%s11224_s1 + $0x1844] ss:$16 sps:$4 sm:$0xff]  }
 0x161   :  { %5412 = vmatprep.subr.bf16.mxu1 %v7780_v29  ;;  %v7835_v29 = vld [vmem:[%s11224_s1 + $0xcc] ss:$16 sps:$4 sm:$0xff]  }
 0x163   :  { %5372 = vmatpush2.bf16.msra.mxu0 %v7775_v30  ;;  %v7830_v30 = vld [vmem:[%s11224_s1 + $0x1840] ss:$16 sps:$4 sm:$0xff]  }
 0x164   :  { %5413 = vmatpush2.bf16.msra.mxu1 %v7778_v34  ;;  %5373 = vmatprep.subr.bf16.mxu0 %v7783_v36  ;;  %v7833_v34 = vld [vmem:[%s11224_s1 + $0xc8] ss:$16 sps:$4 sm:$0xff]  }
 0x165   :  { %5414 = vmatprep.subr.bf16.mxu1 %v7786_v37 }
 0x167   :  { %5374 = vmatpush2.bf16.msra.mxu0 %v7781_v38 }
 0x168   :  { %5415 = vmatpush2.bf16.msra.mxu1 %v7784_v32  ;;  %5375 = vmatprep.subr.bf16.mxu0 %v7789_v40 }
 0x169   :  { %5416 = vmatprep.subr.bf16.mxu1 %v7792_v44  ;;  %v7838_v44 = vld [vmem:[%s11224_s1 + $0x1824] ss:$16 sps:$4 sm:$0xff]  }
 0x16b   :  { %5376 = vmatpush2.bf16.msra.mxu0 %v7787_v47  ;;  %v7841_v47 = vld [vmem:[%s11224_s1 + $0xac] ss:$16 sps:$4 sm:$0xff]  }
 0x16c   :  { %5417 = vmatpush2.bf16.msra.mxu1 %v7790_v46  ;;  %5377 = vmatprep.subr.bf16.mxu0 %v7795_v48 }
 0x16d   :  { %5418 = vmatprep.subr.bf16.mxu1 %v7798_v51  ;;  %v7839_v51 = vld [vmem:[%s11224_s1 + $0xa8] ss:$16 sps:$4 sm:$0xff]  }
 0x16f   :  { %5378 = vmatpush2.bf16.msra.mxu0 %v7793_v52  ;;  %v8480_v52 = vmov 0  }
 0x170   :  { %5419 = vmatpush2.bf16.msra.mxu1 %v7796_v56  ;;  %5379 = vmatprep.subr.bf16.mxu0 %v7801_v55 }
 0x171   :  { %5420 = vmatprep.subr.bf16.mxu1 %v7804_v57 }
 0x173   :  { %5380 = vmatpush2.bf16.msra.mxu0 %v7799_v58 }
 0x174   :  { %5421 = vmatpush2.bf16.msra.mxu1 %v7802_v61  ;;  %5381 = vmatprep.subr.bf16.mxu0 %v7807_v62  ;;  %v7844_v61 = vld [vmem:[%s11224_s1 + $0x1804] ss:$16 sps:$4 sm:$0xff]   ;;  %v7847_v62 = vld [vmem:[%s11224_s1 + $0x8c] ss:$16 sps:$4 sm:$0xff]  }
 0x175   :  { %5422 = vmatprep.subr.bf16.mxu1 %v7810_v63  ;;  %v7845_v63 = vld [vmem:[%s11224_s1 + $0x88] ss:$16 sps:$4 sm:$0xff]  }
 0x177   :  { %5382 = vmatpush2.bf16.msra.mxu0 %v7805_v2  ;;  %v6378_v2 = vld.sshfl [vmem:[%s11223_s0 + $0x18] sm:$0x1 pattern:$0x75316420] }
 0x178   :  { %5423 = vmatpush2.bf16.msra.mxu1 %v7808_v3  ;;  %5383 = vmatprep.subr.bf16.mxu0 %v7813_v1  ;;  %v7850_v3 = vld [vmem:[%s11224_s1 + $0x6c] ss:$16 sps:$4 sm:$0xff]  }
 0x179   :  { %5424 = vmatprep.subr.bf16.mxu1 %v7816_v7  ;;  %v7853_v1 = vld [vmem:[%s11224_s1 + $0x2ec] ss:$16 sps:$4 sm:$0xff]   ;;  %v7848_v7 = vld [vmem:[%s11224_s1 + $0x68] ss:$16 sps:$4 sm:$0xff]  }
 0x17b   :  { %5384 = vmatpush2.bf16.msra.mxu0 %v7811_v8  ;;  %v7851_v8 = vld [vmem:[%s11224_s1 + $0x2e8] ss:$16 sps:$4 sm:$0xff]  }
 0x17c   :  { %5425 = vmatpush2.bf16.msra.mxu1 %v7814_v9  ;;  %5385 = vmatprep.subr.bf16.mxu0 %v7819_v10  ;;  %v9914_v9 = vrot.slane %v6378_v2, %v8647_v49  ;;  %v7856_v10 = vld [vmem:[%s11224_s1 + $0x4c] ss:$16 sps:$4 sm:$0xff]   ;;  %v7854_v49 = vld [vmem:[%s11224_s1 + $0x48] ss:$16 sps:$4 sm:$0xff]  }
 0x17d   :  { %5426 = vmatprep.subr.bf16.mxu1 %v7822_v11  ;;  %v7859_v11 = vld [vmem:[%s11224_s1 + $0x2cc] ss:$16 sps:$4 sm:$0xff]  }
 0x17e   :  { %v7904_v2 = vld [vmem:[%s11224_s1 + $0x14c] ss:$16 sps:$4 sm:$0xff]  }
 0x17f   :  { %5386 = vmatpush2.bf16.msra.mxu0 %v7817_v16  ;;  %v7857_v16 = vld [vmem:[%s11224_s1 + $0x2c8] ss:$16 sps:$4 sm:$0xff]  }
 0x180   :  { %5427 = vmatpush2.bf16.msra.mxu1 %v7820_v19  ;;  %5445 = vmatprep.subr.bf16.mxu0 %v7826_v4  ;;  %v7862_v19 = vld [vmem:[%s11224_s1 + $0x2c] ss:$16 sps:$4 sm:$0xff]  }
 0x181   :  { %5478 = vmatprep.subr.bf16.mxu1 %v7829_v5  ;;  %v7865_v4 = vld [vmem:[%s11224_s1 + $0x2ac] ss:$16 sps:$4 sm:$0xff]   ;;  %v7860_v5 = vld [vmem:[%s11224_s1 + $0x28] ss:$16 sps:$4 sm:$0xff]  }
 0x182   :  { %v5143_v36 = vpop.f32.mrf.mxu0  ;;  %5388 = vmatmul.mubr.bf16.vlgmr.msra.gmra.mxu0 %v9828_v14 }
 0x183   :  { %v5184_v37 = vpop.f32.mrf.mxu1  ;;  %5429 = vmatmul.mubr.bf16.vlgmr.msra.gmra.mxu1 %v9850_v27  ;;  %v5144_v38 = vadd.f32 %v5143_v36, %v9663_v45  ;;  %5446 = vmatpush1.bf16.msra.mxu0 %v7824_v20  ;;  %v7836_v45 = vld [vmem:[%s11224_s1 + $0x1820] ss:$16 sps:$4 sm:$0xff]   ;;  %v7863_v20 = vld [vmem:[%s11224_s1 + $0x2a8] ss:$16 sps:$4 sm:$0xff]  }
 0x184   :  { %5479 = vmatpush1.bf16.msra.mxu1 %v7827_v21  ;;  %v5145_v32 = vpop.f32.mrf.mxu0  ;;  %5447 = vmatprep.subr.bf16.mxu0 %v7832_v28  ;;  %v7868_v21 = vld [vmem:[%s11224_s1 + $0xc] ss:$16 sps:$4 sm:$0xff]   ;;  %v7866_v28 = vld [vmem:[%s11224_s1 + $0x8] ss:$16 sps:$4 sm:$0xff]  }
 0x185   :  { %v5186_v40 = vpop.f32.mrf.mxu1  ;;  %5480 = vmatprep.subr.bf16.mxu1 %v7835_v29  ;;  %v9873_v46 = vadd.f32 %v5184_v37, %v5144_v38  ;;  %v5146_v48 = vadd.f32 %v5145_v32, %v9674_v53  ;;  %5469 = vmatprep.mubr.bf16.mxu0 %v8480_v52  ;;  %v7869_v29 = vld [vmem:[%s11224_s1 + $0x288] ss:$16 sps:$4 sm:$0xff]   ;;  %v7880_v38 = vld [vmem:[%s11224_s1 + $0x1cc] ss:$16 sps:$4 sm:$0xff]  }
 0x186   :  { %5510 = vmatprep.mubr.bf16.mxu1 %v8675_v60  ;;  %v5147_v56 = vpop.f32.mrf.mxu0  ;;  %v7842_v60 = vld [vmem:[%s11224_s1 + $0x1800] ss:$16 sps:$4 sm:$0xff]   ;;  %v7872_v36 = vld [vmem:[%s11224_s1 + $0x1e8] ss:$16 sps:$4 sm:$0xff]   ;;  %v7883_v32 = vld [vmem:[%s11224_s1 + $0x24c] ss:$16 sps:$4 sm:$0xff]  }
 0x187   :  { %v5188_v55 = vpop.f32.mrf.mxu1  ;;  %v9884_v57 = vadd.f32 %v5186_v40, %v5146_v48  ;;  %5448 = vmatpush1.bf16.msra.mxu0 %v7830_v30  ;;  %v7874_v30 = vld [vmem:[%s11224_s1 + $0x1ec] ss:$16 sps:$4 sm:$0xff]   ;;  %v7875_v37 = vld [vmem:[%s11224_s1 + $0x268] ss:$16 sps:$4 sm:$0xff]  }
 0x188   :  { %5481 = vmatpush1.bf16.msra.mxu1 %v7833_v34  ;;  %v5148_v53 = vpop.f32.mrf.mxu0  ;;  %5449 = vmatprep.subr.bf16.mxu0 %v7838_v44  ;;  %v7877_v34 = vld [vmem:[%s11224_s1 + $0x26c] ss:$16 sps:$4 sm:$0xff]   ;;  %v7878_v40 = vld [vmem:[%s11224_s1 + $0x1c8] ss:$16 sps:$4 sm:$0xff]  }
 0x189   :  { %v5189_v58 = vpop.f32.mrf.mxu1  ;;  %5482 = vmatprep.subr.bf16.mxu1 %v7841_v47  ;;  %v7881_v44 = vld [vmem:[%s11224_s1 + $0x248] ss:$16 sps:$4 sm:$0xff]   ;;  %v7886_v47 = vld [vmem:[%s11224_s1 + $0x1ac] ss:$16 sps:$4 sm:$0xff]  }
 0x18a   :  { %v7889_v48 = vld [vmem:[%s11224_s1 + $0x22c] ss:$16 sps:$4 sm:$0xff]   ;;  %v7890_v53 = vld [vmem:[%s11224_s1 + $0x188] ss:$16 sps:$4 sm:$0xff]  }
 0x18b   :  { %5450 = vmatpush1.bf16.msra.mxu0 %v7836_v45  ;;  %v7884_v45 = vld [vmem:[%s11224_s1 + $0x1a8] ss:$16 sps:$4 sm:$0xff]   ;;  %v7892_v56 = vld [vmem:[%s11224_s1 + $0x18c] ss:$16 sps:$4 sm:$0xff]  }
 0x18c   :  { %5483 = vmatpush1.bf16.msra.mxu1 %v7839_v51  ;;  %5451 = vmatprep.subr.bf16.mxu0 %v7844_v61  ;;  %v7887_v51 = vld [vmem:[%s11224_s1 + $0x228] ss:$16 sps:$4 sm:$0xff]   ;;  %v7895_v55 = vld [vmem:[%s11224_s1 + $0x20c] ss:$16 sps:$4 sm:$0xff]  }
 0x18d   :  { %5484 = vmatprep.subr.bf16.mxu1 %v7847_v62  ;;  %v7893_v58 = vld [vmem:[%s11224_s1 + $0x208] ss:$16 sps:$4 sm:$0xff]   ;;  %v7898_v61 = vld [vmem:[%s11224_s1 + $0x16c] ss:$16 sps:$4 sm:$0xff]  }
 0x18e   :  { %v7901_v62 = vld [vmem:[%s11224_s1 + $0x3ec] ss:$16 sps:$4 sm:$0xff]  }
 0x18f   :  { %5452 = vmatpush1.bf16.msra.mxu0 %v7842_v60  ;;  %v7896_v60 = vld [vmem:[%s11224_s1 + $0x168] ss:$16 sps:$4 sm:$0xff]  }
 0x190   :  { %5485 = vmatpush1.bf16.msra.mxu1 %v7845_v63  ;;  %5519 = vmatprep.subr.bf16.mxu0 %v7853_v1  ;;  %v7899_v63 = vld [vmem:[%s11224_s1 + $0x3e8] ss:$16 sps:$4 sm:$0xff]  }
 0x191   :  { %5486 = vmatprep.subr.bf16.mxu1 %v7850_v3  ;;  %v7907_v3 = vld [vmem:[%s11224_s1 + $0x3cc] ss:$16 sps:$4 sm:$0xff]   ;;  %v7902_v1 = vld [vmem:[%s11224_s1 + $0x148] ss:$16 sps:$4 sm:$0xff]  }
 0x192   :  { %7163 = vmatmul.mubr.msk.bf16.vlgmr.msra.gmra.mxu0 %vm4941_vm0, %v9914_v9 }
 0x193   :  { %5520 = vmatpush1.bf16.msra.mxu0 %v7851_v8  ;;  %5551 = vmatprep.mubr.bf16.mxu0 %v8688_v0  ;;  %v7871_v0 = vld [vmem:[%s11224_s1 + $0x28c] ss:$16 sps:$4 sm:$0xff]  }
 0x194   :  { %5487 = vmatpush1.bf16.msra.mxu1 %v7848_v7  ;;  %5521 = vmatprep.subr.bf16.mxu0 %v7859_v11  ;;  %v7905_v7 = vld [vmem:[%s11224_s1 + $0x3c8] ss:$16 sps:$4 sm:$0xff]   ;;  %v7910_v8 = vld [vmem:[%s11224_s1 + $0x12c] ss:$16 sps:$4 sm:$0xff]  }
 0x195   :  { %5488 = vmatprep.subr.bf16.mxu1 %v7856_v10  ;;  %v7913_v10 = vld [vmem:[%s11224_s1 + $0x3ac] ss:$16 sps:$4 sm:$0xff]   ;;  %v7908_v11 = vld [vmem:[%s11224_s1 + $0x128] ss:$16 sps:$4 sm:$0xff]  }
 0x197   :  { %5522 = vmatpush1.bf16.msra.mxu0 %v7857_v16  ;;  %v7916_v16 = vld [vmem:[%s11224_s1 + $0x10c] ss:$16 sps:$4 sm:$0xff]  }
 0x198   :  { %5489 = vmatpush1.bf16.msra.mxu1 %v7854_v49  ;;  %5523 = vmatprep.subr.bf16.mxu0 %v7865_v4  ;;  %v7911_v49 = vld [vmem:[%s11224_s1 + $0x3a8] ss:$16 sps:$4 sm:$0xff]  }
 0x199   :  { %5490 = vmatprep.subr.bf16.mxu1 %v7862_v19  ;;  %v7919_v19 = vld [vmem:[%s11224_s1 + $0x38c] ss:$16 sps:$4 sm:$0xff]   ;;  %v7914_v4 = vld [vmem:[%s11224_s1 + $0x108] ss:$16 sps:$4 sm:$0xff]  }
 0x19b   :  { %5524 = vmatpush1.bf16.msra.mxu0 %v7863_v20  ;;  %v7922_v20 = vld [vmem:[%s11224_s1 + $0x36c] ss:$16 sps:$4 sm:$0xff]  }
 0x19c   :  { %5491 = vmatpush1.bf16.msra.mxu1 %v7860_v5  ;;  %5525 = vmatprep.subr.bf16.mxu0 %v7871_v0  ;;  %v7917_v5 = vld [vmem:[%s11224_s1 + $0x388] ss:$16 sps:$4 sm:$0xff]  }
 0x19d   :  { %5492 = vmatprep.subr.bf16.mxu1 %v7868_v21  ;;  %v7925_v21 = vld [vmem:[%s11224_s1 + $0x4ec] ss:$16 sps:$4 sm:$0xff]   ;;  %v7920_v0 = vld [vmem:[%s11224_s1 + $0x368] ss:$16 sps:$4 sm:$0xff]  }
 0x19f   :  { %5526 = vmatpush1.bf16.msra.mxu0 %v7869_v29  ;;  %v7928_v29 = vld [vmem:[%s11224_s1 + $0x34c] ss:$16 sps:$4 sm:$0xff]  }
 0x1a0   :  { %5493 = vmatpush1.bf16.msra.mxu1 %v7866_v28  ;;  %5527 = vmatprep.subr.bf16.mxu0 %v7877_v34  ;;  %v7923_v28 = vld [vmem:[%s11224_s1 + $0x4e8] ss:$16 sps:$4 sm:$0xff]  }
 0x1a1   :  { %5494 = vmatprep.subr.bf16.mxu1 %v7874_v30  ;;  %v7931_v30 = vld [vmem:[%s11224_s1 + $0x4cc] ss:$16 sps:$4 sm:$0xff]   ;;  %v7926_v34 = vld [vmem:[%s11224_s1 + $0x348] ss:$16 sps:$4 sm:$0xff]  }
 0x1a3   :  { %5528 = vmatpush1.bf16.msra.mxu0 %v7875_v37 }
 0x1a4   :  { %5495 = vmatpush2.bf16.msra.mxu1 %v7872_v36  ;;  %5529 = vmatprep.subr.bf16.mxu0 %v7883_v32  ;;  %v7929_v36 = vld [vmem:[%s11224_s1 + $0x4c8] ss:$16 sps:$4 sm:$0xff]  }
 0x1a5   :  { %5496 = vmatprep.subr.bf16.mxu1 %v7880_v38 }
 0x1a7   :  { %5530 = vmatpush1.bf16.msra.mxu0 %v7881_v44 }
 0x1a8   :  { %5497 = vmatpush2.bf16.msra.mxu1 %v7878_v40  ;;  %5531 = vmatprep.subr.bf16.mxu0 %v7889_v48  ;;  %v7937_v48 = vld [vmem:[%s11224_s1 + $0x4ac] ss:$16 sps:$4 sm:$0xff]  }
 0x1a9   :  { %5498 = vmatprep.subr.bf16.mxu1 %v7886_v47  ;;  %v7934_v47 = vld [vmem:[%s11224_s1 + $0x32c] ss:$16 sps:$4 sm:$0xff]  }
 0x1ab   :  { %5532 = vmatpush1.bf16.msra.mxu0 %v7887_v51  ;;  %v7935_v51 = vld [vmem:[%s11224_s1 + $0x4a8] ss:$16 sps:$4 sm:$0xff]  }
 0x1ac   :  { %5499 = vmatpush2.bf16.msra.mxu1 %v7884_v45  ;;  %5533 = vmatprep.subr.bf16.mxu0 %v7895_v55 }
 0x1ad   :  { %5500 = vmatprep.subr.bf16.mxu1 %v7892_v56 }
 0x1af   :  { %5534 = vmatpush1.bf16.msra.mxu0 %v7893_v58 }
 0x1b0   :  { %5501 = vmatpush2.bf16.msra.mxu1 %v7890_v53  ;;  %5535 = vmatprep.subr.bf16.mxu0 %v7901_v62  ;;  %v7943_v62 = vld [vmem:[%s11224_s1 + $0x48c] ss:$16 sps:$4 sm:$0xff]  }
 0x1b1   :  { %5502 = vmatprep.subr.bf16.mxu1 %v7898_v61 }
 0x1b3   :  { %5536 = vmatpush2.bf16.msra.mxu0 %v7899_v63  ;;  %v7946_v63 = vld [vmem:[%s11224_s1 + $0x46c] ss:$16 sps:$4 sm:$0xff]  }
 0x1b4   :  { %5503 = vmatpush2.bf16.msra.mxu1 %v7896_v60  ;;  %5537 = vmatprep.subr.bf16.mxu0 %v7907_v3  ;;  %v7941_v60 = vld [vmem:[%s11224_s1 + $0x488] ss:$16 sps:$4 sm:$0xff]  }
 0x1b5   :  { %5504 = vmatprep.subr.bf16.mxu1 %v7904_v2  ;;  %v7949_v2 = vld [vmem:[%s11224_s1 + $0x6ec] ss:$16 sps:$4 sm:$0xff]   ;;  %v7944_v3 = vld [vmem:[%s11224_s1 + $0x468] ss:$16 sps:$4 sm:$0xff]  }
 0x1b7   :  { %5538 = vmatpush2.bf16.msra.mxu0 %v7905_v7  ;;  %v7952_v7 = vld [vmem:[%s11224_s1 + $0x44c] ss:$16 sps:$4 sm:$0xff]  }
 0x1b8   :  { %5505 = vmatpush2.bf16.msra.mxu1 %v7902_v1  ;;  %5539 = vmatprep.subr.bf16.mxu0 %v7913_v10  ;;  %v7947_v1 = vld [vmem:[%s11224_s1 + $0x6e8] ss:$16 sps:$4 sm:$0xff]  }
 0x1b9   :  { %5506 = vmatprep.subr.bf16.mxu1 %v7910_v8  ;;  %v7955_v8 = vld [vmem:[%s11224_s1 + $0x6cc] ss:$16 sps:$4 sm:$0xff]   ;;  %v7950_v10 = vld [vmem:[%s11224_s1 + $0x448] ss:$16 sps:$4 sm:$0xff]  }
 0x1bb   :  { %5540 = vmatpush2.bf16.msra.mxu0 %v7911_v49  ;;  %v7958_v49 = vld [vmem:[%s11224_s1 + $0x42c] ss:$16 sps:$4 sm:$0xff]  }
 0x1bc   :  { %5507 = vmatpush2.bf16.msra.mxu1 %v7908_v11  ;;  %5541 = vmatprep.subr.bf16.mxu0 %v7919_v19  ;;  %v7953_v11 = vld [vmem:[%s11224_s1 + $0x6c8] ss:$16 sps:$4 sm:$0xff]  }
 0x1bd   :  { %5508 = vmatprep.subr.bf16.mxu1 %v7916_v16  ;;  %v7961_v16 = vld [vmem:[%s11224_s1 + $0x6ac] ss:$16 sps:$4 sm:$0xff]   ;;  %v7956_v19 = vld [vmem:[%s11224_s1 + $0x428] ss:$16 sps:$4 sm:$0xff]  }
 0x1bf   :  { %5542 = vmatpush2.bf16.msra.mxu0 %v7917_v5  ;;  %v7967_v5 = vld [vmem:[%s11224_s1 + $0x68c] ss:$16 sps:$4 sm:$0xff]  }
 0x1c0   :  { %5509 = vmatpush2.bf16.msra.mxu1 %v7914_v4  ;;  %5543 = vmatprep.subr.bf16.mxu0 %v7922_v20  ;;  %v7964_v4 = vld [vmem:[%s11224_s1 + $0x40c] ss:$16 sps:$4 sm:$0xff]   ;;  %v7962_v20 = vld [vmem:[%s11224_s1 + $0x408] ss:$16 sps:$4 sm:$0xff]  }
 0x1c1   :  { %5560 = vmatprep.subr.bf16.mxu1 %v7925_v21  ;;  %v7970_v21 = vld [vmem:[%s11224_s1 + $0x5ec] ss:$16 sps:$4 sm:$0xff]  }
 0x1c2   :  { %v5225_v37 = vpop.f32.mrf.mxu0 }
 0x1c3   :  { %v5266_v38 = vpop.f32.mrf.mxu1  ;;  %5511 = vmatmul.mubr.bf16.vlgmr.msra.gmra.mxu1 %v8725_v13  ;;  %v5226_v32 = vadd.f32 %v5225_v37, %v9873_v46  ;;  %5544 = vmatpush2.bf16.msra.mxu0 %v7920_v0  ;;  %v7932_v46 = vld [vmem:[%s11224_s1 + $0x328] ss:$16 sps:$4 sm:$0xff]   ;;  %v7973_v0 = vld [vmem:[%s11224_s1 + $0x66c] ss:$16 sps:$4 sm:$0xff]  }
 0x1c4   :  { %5561 = vmatpush1.bf16.msra.mxu1 %v7923_v28  ;;  %v5227_v40 = vpop.f32.mrf.mxu0  ;;  %5545 = vmatprep.subr.bf16.mxu0 %v7928_v29  ;;  %v7968_v28 = vld [vmem:[%s11224_s1 + $0x5e8] ss:$16 sps:$4 sm:$0xff]  }
 0x1c5   :  { %v5268_v44 = vpop.f32.mrf.mxu1  ;;  %5562 = vmatprep.subr.bf16.mxu1 %v7931_v30  ;;  %v10083_v45 = vadd.f32 %v5266_v38, %v5226_v32  ;;  %v5228_v13 = vadd.f32 %v5227_v40, %v9884_v57  ;;  %5592 = vmatprep.mubr.bf16.mxu1 %v8737_v17  ;;  %v7940_v57 = vld [vmem:[%s11224_s1 + $0x30c] ss:$16 sps:$4 sm:$0xff]   ;;  %v7938_v17 = vld [vmem:[%s11224_s1 + $0x308] ss:$16 sps:$4 sm:$0xff]  }
 0x1c6   :  { %v5229_v56 = vpop.f32.mrf.mxu0  ;;  %v7971_v29 = vld [vmem:[%s11224_s1 + $0x668] ss:$16 sps:$4 sm:$0xff]   ;;  %v7976_v30 = vld [vmem:[%s11224_s1 + $0x5cc] ss:$16 sps:$4 sm:$0xff]  }
 0x1c7   :  { %v5270_v55 = vpop.f32.mrf.mxu1  ;;  %v10093_v53 = vadd.f32 %v5268_v44, %v5228_v13  ;;  %5546 = vmatpush2.bf16.msra.mxu0 %v7926_v34  ;;  %v7979_v34 = vld [vmem:[%s11224_s1 + $0x64c] ss:$16 sps:$4 sm:$0xff]   ;;  %v7977_v37 = vld [vmem:[%s11224_s1 + $0x648] ss:$16 sps:$4 sm:$0xff]  }
 0x1c8   :  { %5563 = vmatpush1.bf16.msra.mxu1 %v7929_v36  ;;  %v5230_v58 = vpop.f32.mrf.mxu0  ;;  %5547 = vmatprep.subr.bf16.mxu0 %v7934_v47  ;;  %v7974_v36 = vld [vmem:[%s11224_s1 + $0x5c8] ss:$16 sps:$4 sm:$0xff]   ;;  %v7982_v38 = vld [vmem:[%s11224_s1 + $0x5ac] ss:$16 sps:$4 sm:$0xff]  }
 0x1c9   :  { %v5271_v61 = vpop.f32.mrf.mxu1  ;;  %5564 = vmatprep.subr.bf16.mxu1 %v7937_v48  ;;  %v7985_v32 = vld [vmem:[%s11224_s1 + $0x62c] ss:$16 sps:$4 sm:$0xff]   ;;  %v7980_v40 = vld [vmem:[%s11224_s1 + $0x5a8] ss:$16 sps:$4 sm:$0xff]  }
 0x1ca   :  { %v7983_v44 = vld [vmem:[%s11224_s1 + $0x628] ss:$16 sps:$4 sm:$0xff]   ;;  %v7988_v47 = vld [vmem:[%s11224_s1 + $0x58c] ss:$16 sps:$4 sm:$0xff]  }
 0x1cb   :  { %5548 = vmatpush2.bf16.msra.mxu0 %v7932_v46  ;;  %v7991_v48 = vld [vmem:[%s11224_s1 + $0x60c] ss:$16 sps:$4 sm:$0xff]  }
 0x1cc   :  { %5565 = vmatpush1.bf16.msra.mxu1 %v7935_v51  ;;  %5549 = vmatprep.subr.bf16.mxu0 %v7940_v57 }
 0x1cd   :  { %5566 = vmatprep.subr.bf16.mxu1 %v7943_v62 }
 0x1cf   :  { %5550 = vmatpush2.bf16.msra.mxu0 %v7938_v17 }
 0x1d0   :  { %5567 = vmatpush1.bf16.msra.mxu1 %v7941_v60  ;;  %5601 = vmatprep.subr.bf16.mxu0 %v7949_v2 }
 0x1d1   :  { %5568 = vmatprep.subr.bf16.mxu1 %v7946_v63 }
 0x1d2   :  { %5552 = vmatmul.mubr.bf16.vlgmr.msra.gmra.mxu0 %v8741_v18  ;;  %v7959_v18 = vld [vmem:[%s11224_s1 + $0x6a8] ss:$16 sps:$4 sm:$0xff]  }
 0x1d3   :  { %5602 = vmatpush1.bf16.msra.mxu0 %v7947_v1  ;;  %5633 = vmatprep.mubr.bf16.mxu0 %v8757_v23  ;;  %v7965_v23 = vld [vmem:[%s11224_s1 + $0x688] ss:$16 sps:$4 sm:$0xff]  }
 0x1d4   :  { %5569 = vmatpush1.bf16.msra.mxu1 %v7944_v3  ;;  %5603 = vmatprep.subr.bf16.mxu0 %v7955_v8 }
 0x1d5   :  { %5570 = vmatprep.subr.bf16.mxu1 %v7952_v7 }
 0x1d7   :  { %5604 = vmatpush1.bf16.msra.mxu0 %v7953_v11 }
 0x1d8   :  { %5571 = vmatpush1.bf16.msra.mxu1 %v7950_v10  ;;  %5605 = vmatprep.subr.bf16.mxu0 %v7961_v16 }
 0x1d9   :  { %5572 = vmatprep.subr.bf16.mxu1 %v7958_v49 }
 0x1db   :  { %5606 = vmatpush1.bf16.msra.mxu0 %v7959_v18 }
 0x1dc   :  { %5573 = vmatpush1.bf16.msra.mxu1 %v7956_v19  ;;  %5607 = vmatprep.subr.bf16.mxu0 %v7967_v5 }
 0x1dd   :  { %5574 = vmatprep.subr.bf16.mxu1 %v7964_v4 }
 0x1df   :  { %5608 = vmatpush1.bf16.msra.mxu0 %v7965_v23 }
 0x1e0   :  { %5575 = vmatpush1.bf16.msra.mxu1 %v7962_v20  ;;  %5609 = vmatprep.subr.bf16.mxu0 %v7973_v0 }
 0x1e1   :  { %5576 = vmatprep.subr.bf16.mxu1 %v7970_v21 }
 0x1e3   :  { %5610 = vmatpush1.bf16.msra.mxu0 %v7971_v29 }
 0x1e4   :  { %5577 = vmatpush2.bf16.msra.mxu1 %v7968_v28  ;;  %5611 = vmatprep.subr.bf16.mxu0 %v7979_v34 }
 0x1e5   :  { %5578 = vmatprep.subr.bf16.mxu1 %v7976_v30 }
 0x1e7   :  { %5612 = vmatpush1.bf16.msra.mxu0 %v7977_v37 }
 0x1e8   :  { %5579 = vmatpush2.bf16.msra.mxu1 %v7974_v36  ;;  %5613 = vmatprep.subr.bf16.mxu0 %v7985_v32 }
 0x1e9   :  { %5580 = vmatprep.subr.bf16.mxu1 %v7982_v38 }
 0x1ea   :  { %10 = vsyncpa [#allocation3], 0  ;;  %v7986_v13 = vld [vmem:[%s11224_s1 + $0x588] ss:$16 sps:$4 sm:$0xff]   ;;  %v7994_v51 = vld [vmem:[%s11224_s1 + $0x56c] ss:$16 sps:$4 sm:$0xff]  }
 0x1eb   :  { %5614 = vmatpush1.bf16.msra.mxu0 %v7983_v44  ;;  %v7989_v46 = vld [vmem:[%s11224_s1 + $0x608] ss:$16 sps:$4 sm:$0xff]   ;;  %v7997_v56 = vld [vmem:[%s11224_s1 + $0x7ec] ss:$16 sps:$4 sm:$0xff]   ;;  %s8481_s16 = smov [#allocation2]   ;;  %vm6362_vm1 = vcmask 74752  }
 0x1ec   :  { %5581 = vmatpush2.bf16.msra.mxu1 %v7980_v40  ;;  %5615 = vmatprep.subr.bf16.mxu0 %v7991_v48  ;;  %v7992_v55 = vld [vmem:[%s11224_s1 + $0x568] ss:$16 sps:$4 sm:$0xff]   ;;  %v8000_v61 = vld [vmem:[%s11224_s1 + $0x54c] ss:$16 sps:$4 sm:$0xff]   ;;  %s6370_s17 = sshll.u32 %s8481_s16, 4  ;;  %s6371_s17 = int_to_ptr.vmem [resolvable:$true] %s6370_s17 }
 0x1ed   :  { %5582 = vmatprep.subr.bf16.mxu1 %v7988_v47  ;;  %v7995_v58 = vld [vmem:[%s11224_s1 + $0x7e8] ss:$16 sps:$4 sm:$0xff]   ;;  %v8003_v57 = vld [vmem:[%s11224_s1 + $0x7cc] ss:$16 sps:$4 sm:$0xff]   ;;  %s8457_s18 = scalar_lea.vmem %s6371_s17, 32  ;;  %p8462_p1 = scmp.lt.s32.totalorder %s6371_s17, %s6371_s17 }
 0x1ee   :  { %v7998_v62 = vld [vmem:[%s11224_s1 + $0x548] ss:$16 sps:$4 sm:$0xff]   ;;  %v8006_v60 = vld [vmem:[%s11224_s1 + $0x52c] ss:$16 sps:$4 sm:$0xff]   ;;  %p8458_p0 = scmp.ne.s32.totalorder %s6371_s17, %s8457_s18  ;;  %p8463_p2 = scmp.lt.s32.totalorder %s8457_s18, %s8457_s18 }
 0x1ef   :  { %5616 = vmatpush1.bf16.msra.mxu0 %v7989_v46  ;;  %v8001_v17 = vld [vmem:[%s11224_s1 + $0x7c8] ss:$16 sps:$4 sm:$0xff]   ;;  %v8009_v63 = vld [vmem:[%s11224_s1 + $0x7ac] ss:$16 sps:$4 sm:$0xff]  }
 0x1f0   :  { %5583 = vmatpush2.bf16.msra.mxu1 %v7986_v13  ;;  %5617 = vmatprep.subr.bf16.mxu0 %v7997_v56  ;;  %v8004_v2 = vld [vmem:[%s11224_s1 + $0x528] ss:$16 sps:$4 sm:$0xff]   ;;  %v8012_v1 = vld [vmem:[%s11224_s1 + $0x50c] ss:$16 sps:$4 sm:$0xff]   ;;  %p8464_p3 = por %p8463_p2, %p8462_p1 }
 0x1f1   :  { %5584 = vmatprep.subr.bf16.mxu1 %v7994_v51  ;;  %v8007_v3 = vld [vmem:[%s11224_s1 + $0x7a8] ss:$16 sps:$4 sm:$0xff]   ;;  %v8015_v7 = vld [vmem:[%s11224_s1 + $0x78c] ss:$16 sps:$4 sm:$0xff]  }
 0x1f2   :  { %v8010_v8 = vld [vmem:[%s11224_s1 + $0x508] ss:$16 sps:$4 sm:$0xff]   ;;  %v8018_v11 = vld [vmem:[%s11224_s1 + $0x76c] ss:$16 sps:$4 sm:$0xff]   ;;  %p8465_p4 = pnand %p8464_p3, %p8458_p0 }
 0x1f3   :  { %5618 = vmatpush2.bf16.msra.mxu0 %v7995_v58  ;;  %v8013_v10 = vld [vmem:[%s11224_s1 + $0x788] ss:$16 sps:$4 sm:$0xff]   ;;  %v8021_v49 = vld [vmem:[%s11224_s1 + $0x8ec] ss:$16 sps:$4 sm:$0xff]  }
 0x1f4   :  { %5585 = vmatpush2.bf16.msra.mxu1 %v7992_v55  ;;  %5619 = vmatprep.subr.bf16.mxu0 %v8003_v57  ;;  %v8016_v16 = vld [vmem:[%s11224_s1 + $0x768] ss:$16 sps:$4 sm:$0xff]   ;;  %v8024_v18 = vld [vmem:[%s11224_s1 + $0x74c] ss:$16 sps:$4 sm:$0xff]  }
 0x1f5   :  { %5586 = vmatprep.subr.bf16.mxu1 %v8000_v61  ;;  %v8019_v19 = vld [vmem:[%s11224_s1 + $0x8e8] ss:$16 sps:$4 sm:$0xff]   ;;  %v8027_v4 = vld [vmem:[%s11224_s1 + $0x8cc] ss:$16 sps:$4 sm:$0xff]  }
 0x1f6   :  { %v8022_v21 = vld [vmem:[%s11224_s1 + $0x748] ss:$16 sps:$4 sm:$0xff]   ;;  %v8042_v46 = vld [vmem:[%s11224_s1 + $0x86c] ss:$16 sps:$4 sm:$0xff]  }
 0x1f7   :  { %5620 = vmatpush2.bf16.msra.mxu0 %v8001_v17  ;;  %v8025_v0 = vld [vmem:[%s11224_s1 + $0x8c8] ss:$16 sps:$4 sm:$0xff]   ;;  %v8045_v51 = vld [vmem:[%s11224_s1 + $0xaec] ss:$16 sps:$4 sm:$0xff]  }
 0x1f8   :  { %5587 = vmatpush2.bf16.msra.mxu1 %v7998_v62  ;;  %5621 = vmatprep.subr.bf16.mxu0 %v8009_v63  ;;  %v8028_v32 = vld [vmem:[%s11224_s1 + $0x728] ss:$16 sps:$4 sm:$0xff]   ;;  %v8048_v58 = vld [vmem:[%s11224_s1 + $0x84c] ss:$16 sps:$4 sm:$0xff]  }
 0x1f9   :  { %5588 = vmatprep.subr.bf16.mxu1 %v8006_v60  ;;  %v8031_v40 = vld [vmem:[%s11224_s1 + $0x8a8] ss:$16 sps:$4 sm:$0xff]   ;;  %v8051_v61 = vld [vmem:[%s11224_s1 + $0xacc] ss:$16 sps:$4 sm:$0xff]  }
 0x1fa   :  { %v8034_v48 = vld [vmem:[%s11224_s1 + $0x708] ss:$16 sps:$4 sm:$0xff]   ;;  %v8054_v17 = vld [vmem:[%s11224_s1 + $0x82c] ss:$16 sps:$4 sm:$0xff]  }
 0x1fb   :  { %5622 = vmatpush2.bf16.msra.mxu0 %v8007_v3  ;;  %v8037_v13 = vld [vmem:[%s11224_s1 + $0x888] ss:$16 sps:$4 sm:$0xff]  }
 0x1fc   :  { %5589 = vmatpush2.bf16.msra.mxu1 %v8004_v2  ;;  %5623 = vmatprep.subr.bf16.mxu0 %v8015_v7  ;;  %v8040_v56 = vld [vmem:[%s11224_s1 + $0x868] ss:$16 sps:$4 sm:$0xff]   ;;  %v8060_v2 = vld [vmem:[%s11224_s1 + $0x80c] ss:$16 sps:$4 sm:$0xff]  }
 0x1fd   :  { %5590 = vmatprep.subr.bf16.mxu1 %v8012_v1  ;;  %v8043_v55 = vld [vmem:[%s11224_s1 + $0xae8] ss:$16 sps:$4 sm:$0xff]   ;;  %v8066_v7 = vld [vmem:[%s11224_s1 + $0x9ec] ss:$16 sps:$4 sm:$0xff]  }
 0x1fe   :  { %v8046_v57 = vld [vmem:[%s11224_s1 + $0x848] ss:$16 sps:$4 sm:$0xff]  }
 0x1ff   :  { %5624 = vmatpush2.bf16.msra.mxu0 %v8013_v10  ;;  %v8049_v62 = vld [vmem:[%s11224_s1 + $0xac8] ss:$16 sps:$4 sm:$0xff]  }
 0x200   :  { %5591 = vmatpush2.bf16.msra.mxu1 %v8010_v8  ;;  %5625 = vmatprep.subr.bf16.mxu0 %v8018_v11  ;;  %v8052_v60 = vld [vmem:[%s11224_s1 + $0x828] ss:$16 sps:$4 sm:$0xff]   ;;  %v8069_v8 = vld [vmem:[%s11224_s1 + $0xa6c] ss:$16 sps:$4 sm:$0xff]  }
 0x201   :  { %5642 = vmatprep.subr.bf16.mxu1 %v8021_v49  ;;  %v8055_v63 = vld [vmem:[%s11224_s1 + $0xaa8] ss:$16 sps:$4 sm:$0xff]   ;;  %v8072_v49 = vld [vmem:[%s11224_s1 + $0x9cc] ss:$16 sps:$4 sm:$0xff]  }
 0x202   :  { %v5307_v5 = vpop.f32.mrf.mxu0  ;;  %v8058_v3 = vld [vmem:[%s11224_s1 + $0x808] ss:$16 sps:$4 sm:$0xff]  }
 0x203   :  { %v5348_v20 = vpop.f32.mrf.mxu1  ;;  %5593 = vmatmul.mubr.bf16.vlgmr.msra.gmra.mxu1 %v8936_v26  ;;  %v5308_v23 = vadd.f32 %v5307_v5, %v10083_v45  ;;  %5626 = vmatpush2.bf16.msra.mxu0 %v8016_v16  ;;  %v8030_v26 = vld [vmem:[%s11224_s1 + $0x72c] ss:$16 sps:$4 sm:$0xff]   ;;  %v8061_v1 = vld [vmem:[%s11224_s1 + $0xa88] ss:$16 sps:$4 sm:$0xff]  }
 0x204   :  { %5643 = vmatpush1.bf16.msra.mxu1 %v8019_v19  ;;  %v5309_v28 = vpop.f32.mrf.mxu0  ;;  %5627 = vmatprep.subr.bf16.mxu0 %v8024_v18  ;;  %v8033_v45 = vld [vmem:[%s11224_s1 + $0x8ac] ss:$16 sps:$4 sm:$0xff]   ;;  %v8064_v10 = vld [vmem:[%s11224_s1 + $0x9e8] ss:$16 sps:$4 sm:$0xff]  }
 0x205   :  { %v5350_v29 = vpop.f32.mrf.mxu1  ;;  %5644 = vmatprep.subr.bf16.mxu1 %v8027_v4  ;;  %v10285_v30 = vadd.f32 %v5348_v20, %v5308_v23  ;;  %v5310_v34 = vadd.f32 %v5309_v28, %v10093_v53  ;;  %5674 = vmatprep.mubr.bf16.mxu1 %v8989_v41  ;;  %v8036_v41 = vld [vmem:[%s11224_s1 + $0x70c] ss:$16 sps:$4 sm:$0xff]   ;;  %v8067_v11 = vld [vmem:[%s11224_s1 + $0xa68] ss:$16 sps:$4 sm:$0xff]  }
 0x206   :  { %v5311_v36 = vpop.f32.mrf.mxu0  ;;  %v8039_v53 = vld [vmem:[%s11224_s1 + $0x88c] ss:$16 sps:$4 sm:$0xff]   ;;  %v8070_v19 = vld [vmem:[%s11224_s1 + $0x9c8] ss:$16 sps:$4 sm:$0xff]  }
 0x207   :  { %v5352_v37 = vpop.f32.mrf.mxu1  ;;  %v10289_v38 = vadd.f32 %v5350_v29, %v5310_v34  ;;  %5628 = vmatpush2.bf16.msra.mxu0 %v8022_v21  ;;  %v8075_v16 = vld [vmem:[%s11224_s1 + $0xa4c] ss:$16 sps:$4 sm:$0xff]   ;;  %v8073_v18 = vld [vmem:[%s11224_s1 + $0xa48] ss:$16 sps:$4 sm:$0xff]  }
 0x208   :  { %5645 = vmatpush1.bf16.msra.mxu1 %v8025_v0  ;;  %v5312_v44 = vpop.f32.mrf.mxu0  ;;  %5629 = vmatprep.subr.bf16.mxu0 %v8030_v26  ;;  %v8078_v4 = vld [vmem:[%s11224_s1 + $0x9ac] ss:$16 sps:$4 sm:$0xff]   ;;  %v8076_v20 = vld [vmem:[%s11224_s1 + $0x9a8] ss:$16 sps:$4 sm:$0xff]  }
 0x209   :  { %v5353_v47 = vpop.f32.mrf.mxu1  ;;  %5646 = vmatprep.subr.bf16.mxu1 %v8033_v45  ;;  %v8081_v5 = vld [vmem:[%s11224_s1 + $0xa2c] ss:$16 sps:$4 sm:$0xff]   ;;  %v8079_v23 = vld [vmem:[%s11224_s1 + $0xa28] ss:$16 sps:$4 sm:$0xff]  }
 0x20a   :  { %v8084_v21 = vld [vmem:[%s11224_s1 + $0x98c] ss:$16 sps:$4 sm:$0xff]   ;;  %v8082_v28 = vld [vmem:[%s11224_s1 + $0x988] ss:$16 sps:$4 sm:$0xff]  }
 0x20b   :  { %5630 = vmatpush2.bf16.msra.mxu0 %v8028_v32  ;;  %v8087_v0 = vld [vmem:[%s11224_s1 + $0xa0c] ss:$16 sps:$4 sm:$0xff]   ;;  %v8085_v29 = vld [vmem:[%s11224_s1 + $0xa08] ss:$16 sps:$4 sm:$0xff]  }
 0x20c   :  { %5647 = vmatpush1.bf16.msra.mxu1 %v8031_v40  ;;  %5631 = vmatprep.subr.bf16.mxu0 %v8036_v41  ;;  %v8090_v26 = vld [vmem:[%s11224_s1 + $0x96c] ss:$16 sps:$4 sm:$0xff]   ;;  %v8088_v34 = vld [vmem:[%s11224_s1 + $0x968] ss:$16 sps:$4 sm:$0xff]  }
 0x20d   :  { %5648 = vmatprep.subr.bf16.mxu1 %v8039_v53  ;;  %v8093_v45 = vld [vmem:[%s11224_s1 + $0xbec] ss:$16 sps:$4 sm:$0xff]   ;;  %v8091_v36 = vld [vmem:[%s11224_s1 + $0xbe8] ss:$16 sps:$4 sm:$0xff]  }
 0x20e   :  { %v8096_v37 = vld [vmem:[%s11224_s1 + $0x94c] ss:$16 sps:$4 sm:$0xff]   ;;  %v8094_v40 = vld [vmem:[%s11224_s1 + $0x948] ss:$16 sps:$4 sm:$0xff]  }
 0x20f   :  { %5632 = vmatpush2.bf16.msra.mxu0 %v8034_v48  ;;  %v8099_v32 = vld [vmem:[%s11224_s1 + $0xbcc] ss:$16 sps:$4 sm:$0xff]   ;;  %v8097_v44 = vld [vmem:[%s11224_s1 + $0xbc8] ss:$16 sps:$4 sm:$0xff]  }
 0x210   :  { %5649 = vmatpush1.bf16.msra.mxu1 %v8037_v13  ;;  %5683 = vmatprep.subr.bf16.mxu0 %v8045_v51  ;;  %v8102_v47 = vld [vmem:[%s11224_s1 + $0x92c] ss:$16 sps:$4 sm:$0xff]   ;;  %v8100_v53 = vld [vmem:[%s11224_s1 + $0x928] ss:$16 sps:$4 sm:$0xff]  }
 0x211   :  { %5650 = vmatprep.subr.bf16.mxu1 %v8042_v46  ;;  %v8105_v41 = vld [vmem:[%s11224_s1 + $0xbac] ss:$16 sps:$4 sm:$0xff]   ;;  %v8103_v48 = vld [vmem:[%s11224_s1 + $0xba8] ss:$16 sps:$4 sm:$0xff]  }
 0x212   :  { %5634 = vmatmul.mubr.bf16.vlgmr.msra.gmra.mxu0 %v8949_v6  ;;  %v8057_v6 = vld [vmem:[%s11224_s1 + $0xaac] ss:$16 sps:$4 sm:$0xff]   ;;  %v8106_v51 = vld [vmem:[%s11224_s1 + $0x908] ss:$16 sps:$4 sm:$0xff]  }
 0x213   :  { %5684 = vmatpush1.bf16.msra.mxu0 %v8043_v55  ;;  %5715 = vmatprep.mubr.bf16.mxu0 %v8994_v43  ;;  %v8063_v43 = vld [vmem:[%s11224_s1 + $0xa8c] ss:$16 sps:$4 sm:$0xff]  }
 0x214   :  { %5651 = vmatpush1.bf16.msra.mxu1 %v8040_v56  ;;  %5685 = vmatprep.subr.bf16.mxu0 %v8051_v61  ;;  %v8108_v13 = vld [vmem:[%s11224_s1 + $0x90c] ss:$16 sps:$4 sm:$0xff]   ;;  %v8109_v56 = vld [vmem:[%s11224_s1 + $0xb88] ss:$16 sps:$4 sm:$0xff]  }
 0x215   :  { %5652 = vmatprep.subr.bf16.mxu1 %v8048_v58  ;;  %v8111_v46 = vld [vmem:[%s11224_s1 + $0xb8c] ss:$16 sps:$4 sm:$0xff]   ;;  %v8112_v61 = vld [vmem:[%s11224_s1 + $0xb68] ss:$16 sps:$4 sm:$0xff]  }
 0x216   :  { %v8114_v55 = vld [vmem:[%s11224_s1 + $0xb6c] ss:$16 sps:$4 sm:$0xff]  }
 0x217   :  { %5686 = vmatpush1.bf16.msra.mxu0 %v8049_v62  ;;  %v8117_v58 = vld [vmem:[%s11224_s1 + $0xcec] ss:$16 sps:$4 sm:$0xff]  }
 0x218   :  { %5653 = vmatpush1.bf16.msra.mxu1 %v8046_v57  ;;  %5687 = vmatprep.subr.bf16.mxu0 %v8057_v6  ;;  %v8115_v57 = vld [vmem:[%s11224_s1 + $0xce8] ss:$16 sps:$4 sm:$0xff]   ;;  %v8120_v62 = vld [vmem:[%s11224_s1 + $0xb4c] ss:$16 sps:$4 sm:$0xff]  }
 0x219   :  { %5654 = vmatprep.subr.bf16.mxu1 %v8054_v17  ;;  %v8123_v17 = vld [vmem:[%s11224_s1 + $0xccc] ss:$16 sps:$4 sm:$0xff]  }
 0x21b   :  { %5688 = vmatpush1.bf16.msra.mxu0 %v8055_v63 }
 0x21c   :  { %5655 = vmatpush1.bf16.msra.mxu1 %v8052_v60  ;;  %5689 = vmatprep.subr.bf16.mxu0 %v8063_v43  ;;  %v8121_v43 = vld [vmem:[%s11224_s1 + $0xcc8] ss:$16 sps:$4 sm:$0xff]  }
 0x21d   :  { %5656 = vmatprep.subr.bf16.mxu1 %v8060_v2  ;;  %v8118_v2 = vld [vmem:[%s11224_s1 + $0xb48] ss:$16 sps:$4 sm:$0xff]  }
 0x21f   :  { %5690 = vmatpush1.bf16.msra.mxu0 %v8061_v1 }
 0x220   :  { %5657 = vmatpush1.bf16.msra.mxu1 %v8058_v3  ;;  %5691 = vmatprep.subr.bf16.mxu0 %v8069_v8 }
 0x221   :  { %5658 = vmatprep.subr.bf16.mxu1 %v8066_v7 }
 0x223   :  { %5692 = vmatpush1.bf16.msra.mxu0 %v8067_v11 }
 0x224   :  { %5659 = vmatpush2.bf16.msra.mxu1 %v8064_v10  ;;  %5693 = vmatprep.subr.bf16.mxu0 %v8075_v16  ;;  %v8124_v16 = vld [vmem:[%s11224_s1 + $0xb28] ss:$16 sps:$4 sm:$0xff]  }
 0x225   :  { %5660 = vmatprep.subr.bf16.mxu1 %v8072_v49 }
 0x227   :  { %5694 = vmatpush1.bf16.msra.mxu0 %v8073_v18 }
 0x228   :  { %5661 = vmatpush2.bf16.msra.mxu1 %v8070_v19  ;;  %5695 = vmatprep.subr.bf16.mxu0 %v8081_v5  ;;  %v8127_v19 = vld [vmem:[%s11224_s1 + $0xca8] ss:$16 sps:$4 sm:$0xff]  }
 0x229   :  { %5662 = vmatprep.subr.bf16.mxu1 %v8078_v4  ;;  %v8130_v5 = vld [vmem:[%s11224_s1 + $0xb08] ss:$16 sps:$4 sm:$0xff]  }
 0x22b   :  { %5696 = vmatpush1.bf16.msra.mxu0 %v8079_v23  ;;  %v8138_v23 = vld [vmem:[%s11224_s1 + $0xc6c] ss:$16 sps:$4 sm:$0xff]  }
 0x22c   :  { %5663 = vmatpush2.bf16.msra.mxu1 %v8076_v20  ;;  %5697 = vmatprep.subr.bf16.mxu0 %v8087_v0  ;;  %v8133_v20 = vld [vmem:[%s11224_s1 + $0xc88] ss:$16 sps:$4 sm:$0xff]  }
 0x22d   :  { %5664 = vmatprep.subr.bf16.mxu1 %v8084_v21  ;;  %v8141_v21 = vld [vmem:[%s11224_s1 + $0xeec] ss:$16 sps:$4 sm:$0xff]   ;;  %v8136_v0 = vld [vmem:[%s11224_s1 + $0xc68] ss:$16 sps:$4 sm:$0xff]  }
 0x22f   :  { %5698 = vmatpush1.bf16.msra.mxu0 %v8085_v29  ;;  %v8144_v29 = vld [vmem:[%s11224_s1 + $0xc4c] ss:$16 sps:$4 sm:$0xff]  }
 0x230   :  { %5665 = vmatpush2.bf16.msra.mxu1 %v8082_v28  ;;  %5699 = vmatprep.subr.bf16.mxu0 %v8093_v45  ;;  %v8139_v28 = vld [vmem:[%s11224_s1 + $0xee8] ss:$16 sps:$4 sm:$0xff]  }
 0x231   :  { %5666 = vmatprep.subr.bf16.mxu1 %v8090_v26  ;;  %v8147_v26 = vld [vmem:[%s11224_s1 + $0xecc] ss:$16 sps:$4 sm:$0xff]  }
 0x233   :  { %5700 = vmatpush2.bf16.msra.mxu0 %v8091_v36  ;;  %v8142_v36 = vld [vmem:[%s11224_s1 + $0xc48] ss:$16 sps:$4 sm:$0xff]  }
 0x234   :  { %5667 = vmatpush2.bf16.msra.mxu1 %v8088_v34  ;;  %5701 = vmatprep.subr.bf16.mxu0 %v8099_v32 }
 0x235   :  { %5668 = vmatprep.subr.bf16.mxu1 %v8096_v37  ;;  %v8145_v37 = vld [vmem:[%s11224_s1 + $0xec8] ss:$16 sps:$4 sm:$0xff]  }
 0x237   :  { %5702 = vmatpush2.bf16.msra.mxu0 %v8097_v44 }
 0x238   :  { %5669 = vmatpush2.bf16.msra.mxu1 %v8094_v40  ;;  %5703 = vmatprep.subr.bf16.mxu0 %v8105_v41  ;;  %v8150_v40 = vld [vmem:[%s11224_s1 + $0xc2c] ss:$16 sps:$4 sm:$0xff]   ;;  %v8148_v41 = vld [vmem:[%s11224_s1 + $0xc28] ss:$16 sps:$4 sm:$0xff]  }
 0x239   :  { %5670 = vmatprep.subr.bf16.mxu1 %v8102_v47 }
 0x23b   :  { %5704 = vmatpush2.bf16.msra.mxu0 %v8103_v48 }
 0x23c   :  { %5671 = vmatpush2.bf16.msra.mxu1 %v8100_v53  ;;  %5705 = vmatprep.subr.bf16.mxu0 %v8111_v46  ;;  %v8151_v53 = vld [vmem:[%s11224_s1 + $0xea8] ss:$16 sps:$4 sm:$0xff]  }
 0x23d   :  { %5672 = vmatprep.subr.bf16.mxu1 %v8108_v13  ;;  %v8156_v13 = vld [vmem:[%s11224_s1 + $0xc0c] ss:$16 sps:$4 sm:$0xff]   ;;  %v8154_v46 = vld [vmem:[%s11224_s1 + $0xc08] ss:$16 sps:$4 sm:$0xff]  }
 0x23f   :  { %5706 = vmatpush2.bf16.msra.mxu0 %v8109_v56  ;;  %v8162_v56 = vld [vmem:[%s11224_s1 + $0xdec] ss:$16 sps:$4 sm:$0xff]  }
 0x240   :  { %5673 = vmatpush2.bf16.msra.mxu1 %v8106_v51  ;;  %5707 = vmatprep.subr.bf16.mxu0 %v8114_v55  ;;  %v8157_v51 = vld [vmem:[%s11224_s1 + $0xe88] ss:$16 sps:$4 sm:$0xff]   ;;  %v8165_v55 = vld [vmem:[%s11224_s1 + $0xe6c] ss:$16 sps:$4 sm:$0xff]  }
 0x241   :  { %5724 = vmatprep.subr.bf16.mxu1 %v8117_v58  ;;  %v8160_v58 = vld [vmem:[%s11224_s1 + $0xde8] ss:$16 sps:$4 sm:$0xff]  }
 0x242   :  { %v5389_v6 = vpop.f32.mrf.mxu0 }
 0x243   :  { %v5430_v60 = vpop.f32.mrf.mxu1  ;;  %5675 = vmatmul.mubr.bf16.vlgmr.msra.gmra.mxu1 %v9165_v50  ;;  %v5390_v63 = vadd.f32 %v5389_v6, %v10285_v30  ;;  %5708 = vmatpush2.bf16.msra.mxu0 %v8112_v61  ;;  %v8126_v50 = vld [vmem:[%s11224_s1 + $0xb2c] ss:$16 sps:$4 sm:$0xff]   ;;  %v8163_v61 = vld [vmem:[%s11224_s1 + $0xe68] ss:$16 sps:$4 sm:$0xff]  }
 0x244   :  { %5725 = vmatpush1.bf16.msra.mxu1 %v8115_v57  ;;  %v5391_v3 = vpop.f32.mrf.mxu0  ;;  %5709 = vmatprep.subr.bf16.mxu0 %v8120_v62  ;;  %v8129_v30 = vld [vmem:[%s11224_s1 + $0xcac] ss:$16 sps:$4 sm:$0xff]   ;;  %v8169_v6 = vld [vmem:[%s11224_s1 + $0xe48] ss:$16 sps:$4 sm:$0xff]  }
 0x245   :  { %v5432_v1 = vpop.f32.mrf.mxu1  ;;  %5726 = vmatprep.subr.bf16.mxu1 %v8123_v17  ;;  %v5431_v7 = vadd.f32 %v5430_v60, %v5390_v63  ;;  %v5392_v8 = vadd.f32 %v5391_v3, %v10289_v38  ;;  %5756 = vmatprep.mubr.bf16.mxu1 %v9177_v54  ;;  %v8132_v54 = vld [vmem:[%s11224_s1 + $0xb0c] ss:$16 sps:$4 sm:$0xff]   ;;  %v8166_v17 = vld [vmem:[%s11224_s1 + $0xdc8] ss:$16 sps:$4 sm:$0xff]  }
 0x246   :  { %v5393_v10 = vpop.f32.mrf.mxu0  ;;  %v8135_v38 = vld [vmem:[%s11224_s1 + $0xc8c] ss:$16 sps:$4 sm:$0xff]  }
 0x247   :  { %v5434_v11 = vpop.f32.mrf.mxu1  ;;  %v5433_v49 = vadd.f32 %v5432_v1, %v5392_v8  ;;  %5710 = vmatpush2.bf16.msra.mxu0 %v8118_v2  ;;  %v8168_v57 = vld [vmem:[%s11224_s1 + $0xdcc] ss:$16 sps:$4 sm:$0xff]   ;;  %v8172_v2 = vld [vmem:[%s11224_s1 + $0xda8] ss:$16 sps:$4 sm:$0xff]  }
 0x248   :  { %5727 = vmatpush1.bf16.msra.mxu1 %v8121_v43  ;;  %v5394_v18 = vpop.f32.mrf.mxu0  ;;  %5711 = vmatprep.subr.bf16.mxu0 %v8126_v50  ;;  %v8171_v62 = vld [vmem:[%s11224_s1 + $0xe4c] ss:$16 sps:$4 sm:$0xff]   ;;  %v8175_v43 = vld [vmem:[%s11224_s1 + $0xe28] ss:$16 sps:$4 sm:$0xff]  }
 0x249   :  { %v5435_v4 = vpop.f32.mrf.mxu1  ;;  %5728 = vmatprep.subr.bf16.mxu1 %v8129_v30  ;;  %v8174_v60 = vld [vmem:[%s11224_s1 + $0xdac] ss:$16 sps:$4 sm:$0xff]   ;;  %v8178_v50 = vld [vmem:[%s11224_s1 + $0xd88] ss:$16 sps:$4 sm:$0xff]  }
 0x24a   :  { %v8177_v63 = vld [vmem:[%s11224_s1 + $0xe2c] ss:$16 sps:$4 sm:$0xff]   ;;  %v8181_v30 = vld [vmem:[%s11224_s1 + $0xe08] ss:$16 sps:$4 sm:$0xff]  }
 0x24b   :  { %5712 = vmatpush2.bf16.msra.mxu0 %v8124_v16  ;;  %v8180_v3 = vld [vmem:[%s11224_s1 + $0xd8c] ss:$16 sps:$4 sm:$0xff]   ;;  %v8184_v10 = vld [vmem:[%s11224_s1 + $0xd68] ss:$16 sps:$4 sm:$0xff]  }
 0x24c   :  { %5729 = vmatpush1.bf16.msra.mxu1 %v8127_v19  ;;  %5713 = vmatprep.subr.bf16.mxu0 %v8132_v54  ;;  %v8183_v1 = vld [vmem:[%s11224_s1 + $0xe0c] ss:$16 sps:$4 sm:$0xff]   ;;  %v8187_v11 = vld [vmem:[%s11224_s1 + $0xfe8] ss:$16 sps:$4 sm:$0xff]  }
 0x24d   :  { %5730 = vmatprep.subr.bf16.mxu1 %v8135_v38  ;;  %v8189_v8 = vld [vmem:[%s11224_s1 + $0xfec] ss:$16 sps:$4 sm:$0xff]   ;;  %v8190_v19 = vld [vmem:[%s11224_s1 + $0xd48] ss:$16 sps:$4 sm:$0xff]  }
 0x24e   :  { %v8195_v16 = vld [vmem:[%s11224_s1 + $0xfcc] ss:$16 sps:$4 sm:$0xff]   ;;  %v8193_v18 = vld [vmem:[%s11224_s1 + $0xfc8] ss:$16 sps:$4 sm:$0xff]  }
 0x24f   :  { %5714 = vmatpush2.bf16.msra.mxu0 %v8130_v5  ;;  %v8198_v4 = vld [vmem:[%s11224_s1 + $0xd2c] ss:$16 sps:$4 sm:$0xff]   ;;  %v8196_v38 = vld [vmem:[%s11224_s1 + $0xd28] ss:$16 sps:$4 sm:$0xff]  }
 0x250   :  { %5731 = vmatpush1.bf16.msra.mxu1 %v8133_v20  ;;  %5765 = vmatprep.subr.bf16.mxu0 %v8141_v21  ;;  %v8201_v54 = vld [vmem:[%s11224_s1 + $0xfac] ss:$16 sps:$4 sm:$0xff]   ;;  %v8199_v5 = vld [vmem:[%s11224_s1 + $0xfa8] ss:$16 sps:$4 sm:$0xff]  }
 0x251   :  { %5732 = vmatprep.subr.bf16.mxu1 %v8138_v23  ;;  %v8204_v20 = vld [vmem:[%s11224_s1 + $0xd0c] ss:$16 sps:$4 sm:$0xff]   ;;  %v8202_v21 = vld [vmem:[%s11224_s1 + $0xd08] ss:$16 sps:$4 sm:$0xff]  }
 0x252   :  { %v5471_v45 = vpop.f32.mrf.mxu0  ;;  %5716 = vmatmul.mubr.bf16.vlgmr.msra.gmra.mxu0 %v9181_v35  ;;  %v8153_v35 = vld [vmem:[%s11224_s1 + $0xeac] ss:$16 sps:$4 sm:$0xff]  }
 0x253   :  { %v10526_v34 = vadd.f32 %v5471_v45, %v5431_v7  ;;  %5766 = vmatpush1.bf16.msra.mxu0 %v8139_v28  ;;  %5797 = vmatprep.mubr.bf16.mxu0 %v9197_v59  ;;  %v8159_v59 = vld [vmem:[%s11224_s1 + $0xe8c] ss:$16 sps:$4 sm:$0xff]   ;;  %v8211_v45 = vld [vmem:[%s11224_s1 + $0x10e8] ss:$16 sps:$4 sm:$0xff]  }
 0x254   :  { %5733 = vmatpush1.bf16.msra.mxu1 %v8136_v0  ;;  %v5473_v32 = vpop.f32.mrf.mxu0  ;;  %5767 = vmatprep.subr.bf16.mxu0 %v8147_v26  ;;  %v8186_v7 = vld [vmem:[%s11224_s1 + $0xd6c] ss:$16 sps:$4 sm:$0xff]   ;;  %v8205_v0 = vld [vmem:[%s11224_s1 + $0xf88] ss:$16 sps:$4 sm:$0xff]  }
 0x255   :  { %5734 = vmatprep.subr.bf16.mxu1 %v8144_v29  ;;  %v10540_v44 = vadd.f32 %v5473_v32, %v5433_v49  ;;  %v8192_v49 = vld [vmem:[%s11224_s1 + $0xd4c] ss:$16 sps:$4 sm:$0xff]   ;;  %v8208_v26 = vld [vmem:[%s11224_s1 + $0xf68] ss:$16 sps:$4 sm:$0xff]  }
 0x256   :  { %v5475_v47 = vpop.f32.mrf.mxu0  ;;  %v8207_v23 = vld [vmem:[%s11224_s1 + $0xf8c] ss:$16 sps:$4 sm:$0xff]  }
 0x257   :  { %5768 = vmatpush1.bf16.msra.mxu0 %v8145_v37  ;;  %v8210_v28 = vld [vmem:[%s11224_s1 + $0xf6c] ss:$16 sps:$4 sm:$0xff]  }
 0x258   :  { %5735 = vmatpush1.bf16.msra.mxu1 %v8142_v36  ;;  %v5476_v48 = vpop.f32.mrf.mxu0  ;;  %5769 = vmatprep.subr.bf16.mxu0 %v8153_v35  ;;  %v8213_v29 = vld [vmem:[%s11224_s1 + $0x10ec] ss:$16 sps:$4 sm:$0xff]   ;;  %v8217_v35 = vld [vmem:[%s11224_s1 + $0x10c8] ss:$16 sps:$4 sm:$0xff]  }
 0x259   :  { %5736 = vmatprep.subr.bf16.mxu1 %v8150_v40  ;;  %v8216_v36 = vld [vmem:[%s11224_s1 + $0xf4c] ss:$16 sps:$4 sm:$0xff]   ;;  %v8214_v40 = vld [vmem:[%s11224_s1 + $0xf48] ss:$16 sps:$4 sm:$0xff]  }
 0x25a   :  { %v8219_v37 = vld [vmem:[%s11224_s1 + $0x10cc] ss:$16 sps:$4 sm:$0xff]   ;;  %v8220_v48 = vld [vmem:[%s11224_s1 + $0xf28] ss:$16 sps:$4 sm:$0xff]  }
 0x25b   :  { %5770 = vmatpush1.bf16.msra.mxu0 %v8151_v53 }
 0x25c   :  { %5737 = vmatpush1.bf16.msra.mxu1 %v8148_v41  ;;  %5771 = vmatprep.subr.bf16.mxu0 %v8159_v59  ;;  %v8222_v41 = vld [vmem:[%s11224_s1 + $0xf2c] ss:$16 sps:$4 sm:$0xff]  }
 0x25d   :  { %5738 = vmatprep.subr.bf16.mxu1 %v8156_v13  ;;  %v8223_v13 = vld [vmem:[%s11224_s1 + $0x10a8] ss:$16 sps:$4 sm:$0xff]  }
 0x25f   :  { %5772 = vmatpush1.bf16.msra.mxu0 %v8157_v51  ;;  %v822_v51 = vsub.s32 2, %v8629_v42 }
 0x260   :  { %5739 = vmatpush1.bf16.msra.mxu1 %v8154_v46  ;;  %5773 = vmatprep.subr.bf16.mxu0 %v8165_v55  ;;  %v8228_v46 = vld [vmem:[%s11224_s1 + $0xf0c] ss:$16 sps:$4 sm:$0xff]   ;;  %v8226_v55 = vld [vmem:[%s11224_s1 + $0xf08] ss:$16 sps:$4 sm:$0xff]  }
 0x261   :  { %5740 = vmatprep.subr.bf16.mxu1 %v8162_v56  ;;  %v826_v56 = vsub.s32 3, %v8629_v42  ;;  %v8237_v42 = vld [vmem:[%s11224_s1 + $0x12ec] ss:$16 sps:$4 sm:$0xff]  }
 0x263   :  { %5774 = vmatpush1.bf16.msra.mxu0 %v8163_v61  ;;  %v8234_v61 = vld [vmem:[%s11224_s1 + $0x106c] ss:$16 sps:$4 sm:$0xff]  }
 0x264   :  { %5741 = vmatpush2.bf16.msra.mxu1 %v8160_v58  ;;  %5775 = vmatprep.subr.bf16.mxu0 %v8171_v62  ;;  %v8229_v58 = vld [vmem:[%s11224_s1 + $0x1088] ss:$16 sps:$4 sm:$0xff]  }
 0x265   :  { %5742 = vmatprep.subr.bf16.mxu1 %v8168_v57  ;;  %v8456_v57 = vld [vmem:[%s11225_s2] sm:$0xf] }
 0x266   :  { %v823_v62 = vrot.slane %v8456_v57, %v822_v51  ;;  %v8289_v51 = vld [vmem:[%s11224_s1 + $0x13c8] ss:$16 sps:$4 sm:$0xff]  }
 0x267   :  { %5776 = vmatpush1.bf16.msra.mxu0 %v8169_v6  ;;  %v8232_v6 = vld [vmem:[%s11224_s1 + $0x1068] ss:$16 sps:$4 sm:$0xff]  }
 0x268   :  { %5743 = vmatpush2.bf16.msra.mxu1 %v8166_v17  ;;  %5777 = vmatprep.subr.bf16.mxu0 %v8177_v63  ;;  %v827_v17 = vrot.slane %v8456_v57, %v826_v56  ;;  %v8240_v63 = vld [vmem:[%s11224_s1 + $0x104c] ss:$16 sps:$4 sm:$0xff]  }
 0x269   :  { %5744 = vmatprep.subr.bf16.mxu1 %v8174_v60  ;;  %v8235_v60 = vld [vmem:[%s11224_s1 + $0x12e8] ss:$16 sps:$4 sm:$0xff]   ;;  %v8294_v56 = vld [vmem:[%s11224_s1 + $0x112c] ss:$16 sps:$4 sm:$0xff]  }
 0x26a   :  { %v8303_v57 = vld [vmem:[%s11224_s1 + $0x138c] ss:$16 sps:$4 sm:$0xff]  }
 0x26b   :  { %5778 = vmatpush1.bf16.msra.mxu0 %v8175_v43 }
 0x26c   :  { %5745 = vmatpush2.bf16.msra.mxu1 %v8172_v2  ;;  %5779 = vmatprep.subr.bf16.mxu0 %v8183_v1  ;;  %v8243_v2 = vld [vmem:[%s11224_s1 + $0x12cc] ss:$16 sps:$4 sm:$0xff]  }
 0x26d   :  { %5746 = vmatprep.subr.bf16.mxu1 %v8180_v3 }
 0x26f   :  { %5780 = vmatpush1.bf16.msra.mxu0 %v8181_v30  ;;  %v8238_v30 = vld [vmem:[%s11224_s1 + $0x1048] ss:$16 sps:$4 sm:$0xff]  }
 0x270   :  { %5747 = vmatpush2.bf16.msra.mxu1 %v8178_v50  ;;  %5781 = vmatprep.subr.bf16.mxu0 %v8189_v8 }
 0x271   :  { %5748 = vmatprep.subr.bf16.mxu1 %v8186_v7  ;;  %v8241_v7 = vld [vmem:[%s11224_s1 + $0x12c8] ss:$16 sps:$4 sm:$0xff]  }
 0x273   :  { %5782 = vmatpush2.bf16.msra.mxu0 %v8187_v11 }
 0x274   :  { %5749 = vmatpush2.bf16.msra.mxu1 %v8184_v10  ;;  %5783 = vmatprep.subr.bf16.mxu0 %v8195_v16  ;;  %v8249_v10 = vld [vmem:[%s11224_s1 + $0x12ac] ss:$16 sps:$4 sm:$0xff]   ;;  %v8244_v16 = vld [vmem:[%s11224_s1 + $0x1028] ss:$16 sps:$4 sm:$0xff]  }
 0x275   :  { %5750 = vmatprep.subr.bf16.mxu1 %v8192_v49 }
 0x277   :  { %5784 = vmatpush2.bf16.msra.mxu0 %v8193_v18 }
 0x278   :  { %5751 = vmatpush2.bf16.msra.mxu1 %v8190_v19  ;;  %5785 = vmatprep.subr.bf16.mxu0 %v8201_v54  ;;  %v8247_v19 = vld [vmem:[%s11224_s1 + $0x12a8] ss:$16 sps:$4 sm:$0xff]  }
 0x279   :  { %5752 = vmatprep.subr.bf16.mxu1 %v8198_v4  ;;  %v8252_v4 = vld [vmem:[%s11224_s1 + $0x100c] ss:$16 sps:$4 sm:$0xff]   ;;  %v8250_v54 = vld [vmem:[%s11224_s1 + $0x1008] ss:$16 sps:$4 sm:$0xff]  }
 0x27b   :  { %5786 = vmatpush2.bf16.msra.mxu0 %v8199_v5  ;;  %v8258_v5 = vld [vmem:[%s11224_s1 + $0x11ec] ss:$16 sps:$4 sm:$0xff]  }
 0x27c   :  { %5753 = vmatpush2.bf16.msra.mxu1 %v8196_v38  ;;  %5787 = vmatprep.subr.bf16.mxu0 %v8207_v23  ;;  %v8253_v38 = vld [vmem:[%s11224_s1 + $0x1288] ss:$16 sps:$4 sm:$0xff]  }
 0x27d   :  { %5754 = vmatprep.subr.bf16.mxu1 %v8204_v20  ;;  %v8261_v20 = vld [vmem:[%s11224_s1 + $0x126c] ss:$16 sps:$4 sm:$0xff]   ;;  %v8256_v23 = vld [vmem:[%s11224_s1 + $0x11e8] ss:$16 sps:$4 sm:$0xff]  }
 0x27f   :  { %5788 = vmatpush2.bf16.msra.mxu0 %v8205_v0  ;;  %v8264_v0 = vld [vmem:[%s11224_s1 + $0x11cc] ss:$16 sps:$4 sm:$0xff]  }
 0x280   :  { %5755 = vmatpush2.bf16.msra.mxu1 %v8202_v21  ;;  %5789 = vmatprep.subr.bf16.mxu0 %v8210_v28  ;;  %v8259_v21 = vld [vmem:[%s11224_s1 + $0x1268] ss:$16 sps:$4 sm:$0xff]   ;;  %v8267_v28 = vld [vmem:[%s11224_s1 + $0x124c] ss:$16 sps:$4 sm:$0xff]  }
 0x281   :  { %5806 = vmatprep.subr.bf16.mxu1 %v8213_v29  ;;  %v8262_v29 = vld [vmem:[%s11224_s1 + $0x11c8] ss:$16 sps:$4 sm:$0xff]  }
 0x283   :  { %v5512_v32 = vpop.f32.mrf.mxu1  ;;  %5757 = vmatmul.mubr.bf16.vlgmr.msra.gmra.mxu1 %v9393_v15  ;;  %5790 = vmatpush2.bf16.msra.mxu0 %v8208_v26  ;;  %v8225_v15 = vld [vmem:[%s11224_s1 + $0x10ac] ss:$16 sps:$4 sm:$0xff]   ;;  %v8265_v26 = vld [vmem:[%s11224_s1 + $0x1248] ss:$16 sps:$4 sm:$0xff]  }
 0x284   :  { %5807 = vmatpush1.bf16.msra.mxu1 %v8211_v45  ;;  %5791 = vmatprep.subr.bf16.mxu0 %v8216_v36  ;;  %v5513_v43 = vadd.f32 %v5512_v32, %v823_v62  ;;  %v8270_v45 = vld [vmem:[%s11224_s1 + $0x11ac] ss:$16 sps:$4 sm:$0xff]   ;;  %v8271_v32 = vld [vmem:[%s11224_s1 + $0x1228] ss:$16 sps:$4 sm:$0xff]  }
 0x285   :  { %v5514_v47 = vpop.f32.mrf.mxu1  ;;  %5808 = vmatprep.subr.bf16.mxu1 %v8219_v37  ;;  %5838 = vmatprep.mubr.bf16.mxu1 %v9404_v22  ;;  %v8231_v22 = vld [vmem:[%s11224_s1 + $0x108c] ss:$16 sps:$4 sm:$0xff]   ;;  %v8268_v37 = vld [vmem:[%s11224_s1 + $0x11a8] ss:$16 sps:$4 sm:$0xff]  }
 0x286   :  { %v5515_v1 = vadd.f32 %v5514_v47, %v827_v17  ;;  %v8273_v36 = vld [vmem:[%s11224_s1 + $0x122c] ss:$16 sps:$4 sm:$0xff]   ;;  %v8274_v47 = vld [vmem:[%s11224_s1 + $0x1188] ss:$16 sps:$4 sm:$0xff]  }
 0x287   :  { %v5516_v53 = vpop.f32.mrf.mxu1  ;;  %5792 = vmatpush2.bf16.msra.mxu0 %v8214_v40  ;;  %v8276_v40 = vld [vmem:[%s11224_s1 + $0x118c] ss:$16 sps:$4 sm:$0xff]   ;;  %v8298_v62 = vld [vmem:[%s11224_s1 + $0x1108] ss:$16 sps:$4 sm:$0xff]  }
 0x288   :  { %5809 = vmatpush1.bf16.msra.mxu1 %v8217_v35  ;;  %5793 = vmatprep.subr.bf16.mxu0 %v8222_v41  ;;  %v8279_v35 = vld [vmem:[%s11224_s1 + $0x120c] ss:$16 sps:$4 sm:$0xff]   ;;  %v8277_v41 = vld [vmem:[%s11224_s1 + $0x1208] ss:$16 sps:$4 sm:$0xff]  }
 0x289   :  { %v5517_v59 = vpop.f32.mrf.mxu1  ;;  %5810 = vmatprep.subr.bf16.mxu1 %v8225_v15  ;;  %v8282_v15 = vld [vmem:[%s11224_s1 + $0x116c] ss:$16 sps:$4 sm:$0xff]   ;;  %v8301_v17 = vld [vmem:[%s11224_s1 + $0x1388] ss:$16 sps:$4 sm:$0xff]  }
 0x28a   :  { %v8285_v53 = vld [vmem:[%s11224_s1 + $0x13ec] ss:$16 sps:$4 sm:$0xff]  }
 0x28b   :  { %5794 = vmatpush2.bf16.msra.mxu0 %v8220_v48  ;;  %v8280_v48 = vld [vmem:[%s11224_s1 + $0x1168] ss:$16 sps:$4 sm:$0xff]   ;;  %v8288_v59 = vld [vmem:[%s11224_s1 + $0x114c] ss:$16 sps:$4 sm:$0xff]  }
 0x28c   :  { %5811 = vmatpush1.bf16.msra.mxu1 %v8223_v13  ;;  %5795 = vmatprep.subr.bf16.mxu0 %v8228_v46  ;;  %v8283_v13 = vld [vmem:[%s11224_s1 + $0x13e8] ss:$16 sps:$4 sm:$0xff]   ;;  %v8291_v46 = vld [vmem:[%s11224_s1 + $0x13cc] ss:$16 sps:$4 sm:$0xff]  }
 0x28d   :  { %5812 = vmatprep.subr.bf16.mxu1 %v8231_v22  ;;  %v8286_v22 = vld [vmem:[%s11224_s1 + $0x1148] ss:$16 sps:$4 sm:$0xff]  }
 0x28f   :  { %5796 = vmatpush2.bf16.msra.mxu0 %v8226_v55  ;;  %v8297_v55 = vld [vmem:[%s11224_s1 + $0x13ac] ss:$16 sps:$4 sm:$0xff]  }
 0x290   :  { %5813 = vmatpush1.bf16.msra.mxu1 %v8229_v58  ;;  %5847 = vmatprep.subr.bf16.mxu0 %v8237_v42  ;;  %v8292_v58 = vld [vmem:[%s11224_s1 + $0x1128] ss:$16 sps:$4 sm:$0xff]   ;;  %v8300_v42 = vld [vmem:[%s11224_s1 + $0x110c] ss:$16 sps:$4 sm:$0xff]  }
 0x291   :  { %5814 = vmatprep.subr.bf16.mxu1 %v8234_v61  ;;  %v8295_v61 = vld [vmem:[%s11224_s1 + $0x13a8] ss:$16 sps:$4 sm:$0xff]  }
 0x292   :  { %v5553_v3 = vpop.f32.mrf.mxu0  ;;  %5798 = vmatmul.mubr.bf16.vlgmr.msra.gmra.mxu0 %v9408_v39  ;;  %v8246_v39 = vld [vmem:[%s11224_s1 + $0x102c] ss:$16 sps:$4 sm:$0xff]  }
 0x293   :  { %v10731_v50 = vadd.f32 %v5553_v3, %v5513_v43  ;;  %5848 = vmatpush1.bf16.msra.mxu0 %v8235_v60  ;;  %5879 = vmatprep.mubr.bf16.mxu0 %v9424_v31  ;;  %v8255_v31 = vld [vmem:[%s11224_s1 + $0x128c] ss:$16 sps:$4 sm:$0xff]  }
 0x294   :  { %5815 = vmatpush1.bf16.msra.mxu1 %v8232_v6  ;;  %v5555_v8 = vpop.f32.mrf.mxu0  ;;  %5849 = vmatprep.subr.bf16.mxu0 %v8243_v2  ;;  %v8306_v6 = vld [vmem:[%s11224_s1 + $0x136c] ss:$16 sps:$4 sm:$0xff]   ;;  %v8307_v2 = vld [vmem:[%s11224_s1 + $0x14e8] ss:$16 sps:$4 sm:$0xff]  }
 0x295   :  { %5816 = vmatprep.subr.bf16.mxu1 %v8240_v63  ;;  %v10745_v11 = vadd.f32 %v5555_v8, %v5515_v1  ;;  %v8309_v60 = vld [vmem:[%s11224_s1 + $0x14ec] ss:$16 sps:$4 sm:$0xff]   ;;  %v8304_v63 = vld [vmem:[%s11224_s1 + $0x1368] ss:$16 sps:$4 sm:$0xff]  }
 0x296   :  { %v5557_v49 = vpop.f32.mrf.mxu0  ;;  %v8312_v43 = vld [vmem:[%s11224_s1 + $0x134c] ss:$16 sps:$4 sm:$0xff]   ;;  %v8313_v8 = vld [vmem:[%s11224_s1 + $0x14c8] ss:$16 sps:$4 sm:$0xff]  }
 0x297   :  { %5850 = vmatpush1.bf16.msra.mxu0 %v8241_v7  ;;  %v8315_v3 = vld [vmem:[%s11224_s1 + $0x14cc] ss:$16 sps:$4 sm:$0xff]   ;;  %v8310_v7 = vld [vmem:[%s11224_s1 + $0x1348] ss:$16 sps:$4 sm:$0xff]  }
 0x298   :  { %5817 = vmatpush1.bf16.msra.mxu1 %v8238_v30  ;;  %v5558_v18 = vpop.f32.mrf.mxu0  ;;  %5851 = vmatprep.subr.bf16.mxu0 %v8249_v10  ;;  %v8318_v10 = vld [vmem:[%s11224_s1 + $0x132c] ss:$16 sps:$4 sm:$0xff]  }
 0x299   :  { %5818 = vmatprep.subr.bf16.mxu1 %v8246_v39 }
 0x29b   :  { %5852 = vmatpush1.bf16.msra.mxu0 %v8247_v19  ;;  %v8319_v19 = vld [vmem:[%s11224_s1 + $0x14a8] ss:$16 sps:$4 sm:$0xff]  }
 0x29c   :  { %5819 = vmatpush1.bf16.msra.mxu1 %v8244_v16  ;;  %5853 = vmatprep.subr.bf16.mxu0 %v8255_v31  ;;  %v8316_v16 = vld [vmem:[%s11224_s1 + $0x1328] ss:$16 sps:$4 sm:$0xff]  }
 0x29d   :  { %5820 = vmatprep.subr.bf16.mxu1 %v8252_v4  ;;  %v8322_v4 = vld [vmem:[%s11224_s1 + $0x1308] ss:$16 sps:$4 sm:$0xff]  }
 0x29e   :  { %v8325_v31 = vld [vmem:[%s11224_s1 + $0x1488] ss:$16 sps:$4 sm:$0xff]  }
 0x29f   :  { %5854 = vmatpush1.bf16.msra.mxu0 %v8253_v38  ;;  %v8333_v38 = vld [vmem:[%s11224_s1 + $0x16ec] ss:$16 sps:$4 sm:$0xff]  }
 0x2a0   :  { %5821 = vmatpush1.bf16.msra.mxu1 %v8250_v54  ;;  %5855 = vmatprep.subr.bf16.mxu0 %v8261_v20  ;;  %v8330_v54 = vld [vmem:[%s11224_s1 + $0x146c] ss:$16 sps:$4 sm:$0xff]   ;;  %v8331_v20 = vld [vmem:[%s11224_s1 + $0x16e8] ss:$16 sps:$4 sm:$0xff]  }
 0x2a1   :  { %5822 = vmatprep.subr.bf16.mxu1 %v8258_v5  ;;  %v8328_v5 = vld [vmem:[%s11224_s1 + $0x1468] ss:$16 sps:$4 sm:$0xff]  }
 0x2a3   :  { %5856 = vmatpush1.bf16.msra.mxu0 %v8259_v21  ;;  %v8339_v21 = vld [vmem:[%s11224_s1 + $0x16cc] ss:$16 sps:$4 sm:$0xff]  }
 0x2a4   :  { %5823 = vmatpush2.bf16.msra.mxu1 %v8256_v23  ;;  %5857 = vmatprep.subr.bf16.mxu0 %v8267_v28  ;;  %v8336_v23 = vld [vmem:[%s11224_s1 + $0x144c] ss:$16 sps:$4 sm:$0xff]  }
 0x2a5   :  { %5824 = vmatprep.subr.bf16.mxu1 %v8264_v0 }
 0x2a7   :  { %5858 = vmatpush1.bf16.msra.mxu0 %v8265_v26  ;;  %v8337_v26 = vld [vmem:[%s11224_s1 + $0x16c8] ss:$16 sps:$4 sm:$0xff]  }
 0x2a8   :  { %5825 = vmatpush2.bf16.msra.mxu1 %v8262_v29  ;;  %5859 = vmatprep.subr.bf16.mxu0 %v8273_v36  ;;  %v8334_v29 = vld [vmem:[%s11224_s1 + $0x1448] ss:$16 sps:$4 sm:$0xff]   ;;  %v8342_v36 = vld [vmem:[%s11224_s1 + $0x142c] ss:$16 sps:$4 sm:$0xff]  }
 0x2a9   :  { %5826 = vmatprep.subr.bf16.mxu1 %v8270_v45 }
 0x2ab   :  { %5860 = vmatpush1.bf16.msra.mxu0 %v8271_v32 }
 0x2ac   :  { %5827 = vmatpush2.bf16.msra.mxu1 %v8268_v37  ;;  %5861 = vmatprep.subr.bf16.mxu0 %v8279_v35  ;;  %v8343_v35 = vld [vmem:[%s11224_s1 + $0x16a8] ss:$16 sps:$4 sm:$0xff]  }
 0x2ad   :  { %5828 = vmatprep.subr.bf16.mxu1 %v8276_v40  ;;  %v8340_v40 = vld [vmem:[%s11224_s1 + $0x1428] ss:$16 sps:$4 sm:$0xff]  }
 0x2af   :  { %5862 = vmatpush1.bf16.msra.mxu0 %v8277_v41  ;;  %v8348_v41 = vld [vmem:[%s11224_s1 + $0x140c] ss:$16 sps:$4 sm:$0xff]  }
 0x2b0   :  { %5829 = vmatpush2.bf16.msra.mxu1 %v8274_v47  ;;  %5863 = vmatprep.subr.bf16.mxu0 %v8285_v53  ;;  %v8349_v53 = vld [vmem:[%s11224_s1 + $0x1688] ss:$16 sps:$4 sm:$0xff]  }
 0x2b1   :  { %5830 = vmatprep.subr.bf16.mxu1 %v8282_v15  ;;  %v8346_v15 = vld [vmem:[%s11224_s1 + $0x1408] ss:$16 sps:$4 sm:$0xff]  }
 0x2b3   :  { %5864 = vmatpush2.bf16.msra.mxu0 %v8283_v13  ;;  %v8357_v13 = vld [vmem:[%s11224_s1 + $0x166c] ss:$16 sps:$4 sm:$0xff]  }
 0x2b4   :  { %5831 = vmatpush2.bf16.msra.mxu1 %v8280_v48  ;;  %5865 = vmatprep.subr.bf16.mxu0 %v8291_v46  ;;  %v8354_v48 = vld [vmem:[%s11224_s1 + $0x15ec] ss:$16 sps:$4 sm:$0xff]   ;;  %v8355_v46 = vld [vmem:[%s11224_s1 + $0x1668] ss:$16 sps:$4 sm:$0xff]  }
 0x2b5   :  { %5832 = vmatprep.subr.bf16.mxu1 %v8288_v59  ;;  %v8352_v59 = vld [vmem:[%s11224_s1 + $0x15e8] ss:$16 sps:$4 sm:$0xff]  }
 0x2b7   :  { %5866 = vmatpush2.bf16.msra.mxu0 %v8289_v51  ;;  %v8363_v51 = vld [vmem:[%s11224_s1 + $0x164c] ss:$16 sps:$4 sm:$0xff]  }
 0x2b8   :  { %5833 = vmatpush2.bf16.msra.mxu1 %v8286_v22  ;;  %5867 = vmatprep.subr.bf16.mxu0 %v8297_v55  ;;  %v8360_v22 = vld [vmem:[%s11224_s1 + $0x15cc] ss:$16 sps:$4 sm:$0xff]   ;;  %v8361_v55 = vld [vmem:[%s11224_s1 + $0x1648] ss:$16 sps:$4 sm:$0xff]  }
 0x2b9   :  { %5834 = vmatprep.subr.bf16.mxu1 %v8294_v56  ;;  %v8358_v56 = vld [vmem:[%s11224_s1 + $0x15c8] ss:$16 sps:$4 sm:$0xff]  }
 0x2bb   :  { %5868 = vmatpush2.bf16.msra.mxu0 %v8295_v61  ;;  %v8369_v61 = vld [vmem:[%s11224_s1 + $0x162c] ss:$16 sps:$4 sm:$0xff]  }
 0x2bc   :  { %5835 = vmatpush2.bf16.msra.mxu1 %v8292_v58  ;;  %5869 = vmatprep.subr.bf16.mxu0 %v8303_v57  ;;  %v8366_v58 = vld [vmem:[%s11224_s1 + $0x15ac] ss:$16 sps:$4 sm:$0xff]   ;;  %v8367_v57 = vld [vmem:[%s11224_s1 + $0x1628] ss:$16 sps:$4 sm:$0xff]  }
 0x2bd   :  { %5836 = vmatprep.subr.bf16.mxu1 %v8300_v42  ;;  %v8364_v42 = vld [vmem:[%s11224_s1 + $0x15a8] ss:$16 sps:$4 sm:$0xff]  }
 0x2bf   :  { %5870 = vmatpush2.bf16.msra.mxu0 %v8301_v17  ;;  %v8375_v17 = vld [vmem:[%s11224_s1 + $0x160c] ss:$16 sps:$4 sm:$0xff]  }
 0x2c0   :  { %5837 = vmatpush2.bf16.msra.mxu1 %v8298_v62  ;;  %5871 = vmatprep.subr.bf16.mxu0 %v8306_v6  ;;  %v8372_v62 = vld [vmem:[%s11224_s1 + $0x158c] ss:$16 sps:$4 sm:$0xff]   ;;  %v8370_v6 = vld [vmem:[%s11224_s1 + $0x1588] ss:$16 sps:$4 sm:$0xff]  }
 0x2c1   :  { %5888 = vmatprep.subr.bf16.mxu1 %v8309_v60  ;;  %v8373_v60 = vld [vmem:[%s11224_s1 + $0x1608] ss:$16 sps:$4 sm:$0xff]  }
 0x2c3   :  { %v5594_v1 = vpop.f32.mrf.mxu1  ;;  %5839 = vmatmul.mubr.bf16.vlgmr.msra.gmra.mxu1 %v9611_v12  ;;  %5872 = vmatpush2.bf16.msra.mxu0 %v8304_v63  ;;  %v8321_v12 = vld [vmem:[%s11224_s1 + $0x14ac] ss:$16 sps:$4 sm:$0xff]  }
 0x2c4   :  { %v5595_v30 = vadd.f32 %v5594_v1, %v10731_v50  ;;  %5889 = vmatpush1.bf16.msra.mxu1 %v8307_v2  ;;  %5873 = vmatprep.subr.bf16.mxu0 %v8312_v43  ;;  %v8378_v63 = vld [vmem:[%s11224_s1 + $0x156c] ss:$16 sps:$4 sm:$0xff]   ;;  %v8376_v43 = vld [vmem:[%s11224_s1 + $0x1568] ss:$16 sps:$4 sm:$0xff]  }
 0x2c5   :  { %v5596_v39 = vpop.f32.mrf.mxu1  ;;  %5890 = vmatprep.subr.bf16.mxu1 %v8315_v3  ;;  %5920 = vmatprep.mubr.bf16.mxu1 %v9632_v24  ;;  %v8327_v24 = vld [vmem:[%s11224_s1 + $0x148c] ss:$16 sps:$4 sm:$0xff]   ;;  %v8379_v3 = vld [vmem:[%s11224_s1 + $0x17e8] ss:$16 sps:$4 sm:$0xff]  }
 0x2c6   :  { %v5597_v50 = vadd.f32 %v5596_v39, %v10745_v11  ;;  %v8324_v11 = vld [vmem:[%s11224_s1 + $0x130c] ss:$16 sps:$4 sm:$0xff]  }
 0x2c7   :  { %v5598_v49 = vpop.f32.mrf.mxu1  ;;  %5874 = vmatpush2.bf16.msra.mxu0 %v8310_v7  ;;  %v8381_v2 = vld [vmem:[%s11224_s1 + $0x17ec] ss:$16 sps:$4 sm:$0xff]   ;;  %v8382_v7 = vld [vmem:[%s11224_s1 + $0x1548] ss:$16 sps:$4 sm:$0xff]  }
 0x2c8   :  { %5891 = vmatpush1.bf16.msra.mxu1 %v8313_v8  ;;  %5875 = vmatprep.subr.bf16.mxu0 %v8318_v10  ;;  %v8384_v1 = vld [vmem:[%s11224_s1 + $0x154c] ss:$16 sps:$4 sm:$0xff]   ;;  %v8385_v8 = vld [vmem:[%s11224_s1 + $0x17c8] ss:$16 sps:$4 sm:$0xff]  }
 0x2c9   :  { %v5599_v18 = vpop.f32.mrf.mxu1  ;;  %5892 = vmatprep.subr.bf16.mxu1 %v8321_v12  ;;  %v8390_v39 = vld [vmem:[%s11224_s1 + $0x152c] ss:$16 sps:$4 sm:$0xff]   ;;  %v8388_v12 = vld [vmem:[%s11224_s1 + $0x1528] ss:$16 sps:$4 sm:$0xff]  }
 0x2ca   :  { %v8393_v10 = vld [vmem:[%s11224_s1 + $0x17ac] ss:$16 sps:$4 sm:$0xff]   ;;  %v8397_v18 = vld [vmem:[%s11224_s1 + $0x1788] ss:$16 sps:$4 sm:$0xff]  }
 0x2cb   :  { %5876 = vmatpush2.bf16.msra.mxu0 %v8316_v16  ;;  %v8396_v49 = vld [vmem:[%s11224_s1 + $0x150c] ss:$16 sps:$4 sm:$0xff]  }
 0x2cc   :  { %5893 = vmatpush1.bf16.msra.mxu1 %v8319_v19  ;;  %5877 = vmatprep.subr.bf16.mxu0 %v8324_v11  ;;  %v8399_v16 = vld [vmem:[%s11224_s1 + $0x178c] ss:$16 sps:$4 sm:$0xff]   ;;  %v8394_v19 = vld [vmem:[%s11224_s1 + $0x1508] ss:$16 sps:$4 sm:$0xff]  }
 0x2cd   :  { %5894 = vmatprep.subr.bf16.mxu1 %v8327_v24  ;;  %v8402_v11 = vld [vmem:[%s11224_s1 + $0x176c] ss:$16 sps:$4 sm:$0xff]  }
 0x2ce   :  { %v8405_v24 = vld [vmem:[%s11224_s1 + $0x186c] ss:$16 sps:$4 sm:$0xff]  }
 0x2cf   :  { %5878 = vmatpush2.bf16.msra.mxu0 %v8322_v4  ;;  %v8400_v4 = vld [vmem:[%s11224_s1 + $0x1768] ss:$16 sps:$4 sm:$0xff]  }
 0x2d0   :  { %5895 = vmatpush1.bf16.msra.mxu1 %v8325_v31  ;;  %5929 = vmatprep.subr.bf16.mxu0 %v8333_v38  ;;  %v8403_v31 = vld [vmem:[%s11224_s1 + $0x1868] ss:$16 sps:$4 sm:$0xff]   ;;  %v8411_v38 = vld [vmem:[%s11224_s1 + $0x184c] ss:$16 sps:$4 sm:$0xff]  }
 0x2d1   :  { %5896 = vmatprep.subr.bf16.mxu1 %v8330_v54  ;;  %v8408_v54 = vld [vmem:[%s11224_s1 + $0x174c] ss:$16 sps:$4 sm:$0xff]  }
 0x2d2   :  { %v5635_v0 = vpop.f32.mrf.mxu0  ;;  %5880 = vmatmul.mubr.bf16.vlgmr.msra.gmra.mxu0 %v9636_v25  ;;  %v8345_v25 = vld [vmem:[%s11224_s1 + $0x16ac] ss:$16 sps:$4 sm:$0xff]  }
 0x2d3   :  { %v10933_v28 = vadd.f32 %v5635_v0, %v5595_v30  ;;  %5930 = vmatpush1.bf16.msra.mxu0 %v8331_v20  ;;  %5961 = vmatprep.mubr.bf16.mxu0 %v9652_v33  ;;  %v8351_v33 = vld [vmem:[%s11224_s1 + $0x168c] ss:$16 sps:$4 sm:$0xff]  }
 0x2d4   :  { %5897 = vmatpush1.bf16.msra.mxu1 %v8328_v5  ;;  %v5637_v45 = vpop.f32.mrf.mxu0  ;;  %5931 = vmatprep.subr.bf16.mxu0 %v8339_v21  ;;  %v8387_v30 = vld [vmem:[%s11224_s1 + $0x17cc] ss:$16 sps:$4 sm:$0xff]   ;;  %v8409_v21 = vld [vmem:[%s11224_s1 + $0x1848] ss:$16 sps:$4 sm:$0xff]  }
 0x2d5   :  { %5898 = vmatprep.subr.bf16.mxu1 %v8336_v23  ;;  %v10947_v37 = vadd.f32 %v5637_v45, %v5597_v50  ;;  %v8391_v50 = vld [vmem:[%s11224_s1 + $0x17a8] ss:$16 sps:$4 sm:$0xff]  }
 0x2d6   :  { %v5639_v32 = vpop.f32.mrf.mxu0  ;;  %v8406_v23 = vld [vmem:[%s11224_s1 + $0x1748] ss:$16 sps:$4 sm:$0xff]  }
 0x2d7   :  { %5932 = vmatpush1.bf16.msra.mxu0 %v8337_v26  ;;  %v8412_v45 = vld [vmem:[%s11224_s1 + $0x1728] ss:$16 sps:$4 sm:$0xff]  }
 0x2d8   :  { %5899 = vmatpush1.bf16.msra.mxu1 %v8334_v29  ;;  %v5640_v47 = vpop.f32.mrf.mxu0  ;;  %5933 = vmatprep.subr.bf16.mxu0 %v8345_v25  ;;  %v8414_v29 = vld [vmem:[%s11224_s1 + $0x172c] ss:$16 sps:$4 sm:$0xff]   ;;  %v8418_v32 = vld [vmem:[%s11224_s1 + $0x1708] ss:$16 sps:$4 sm:$0xff]  }
 0x2d9   :  { %5900 = vmatprep.subr.bf16.mxu1 %v8342_v36  ;;  %v8415_v36 = vld [vmem:[%s11224_s1 + $0x1828] ss:$16 sps:$4 sm:$0xff]   ;;  %v6012_v47 = vmax.f32 %v10540_v44, 0.0  ;;  %v8427_v44 = vld [vmem:[%s11226_s3 + $0x30] sm:$0xff]  }
 0x2db   :  { %5934 = vmatpush1.bf16.msra.mxu0 %v8343_v35  ;;  %v8424_v35 = vld [vmem:[%s11226_s3 + $0x78] sm:$0xff]  }
 0x2dc   :  { %5901 = vmatpush1.bf16.msra.mxu1 %v8340_v40  ;;  %5935 = vmatprep.subr.bf16.mxu0 %v8351_v33  ;;  %v8421_v40 = vld [vmem:[%s11224_s1 + $0x1808] ss:$16 sps:$4 sm:$0xff]   ;;  %v8426_v33 = vld [vmem:[%s11226_s3 + $0x70] sm:$0xff]  }
 0x2dd   :  { %5902 = vmatprep.subr.bf16.mxu1 %v8348_v41  ;;  %v8425_v41 = vld [vmem:[%s11226_s3 + $0x38] sm:$0xff]  }
 0x2df   :  { %5936 = vmatpush1.bf16.msra.mxu0 %v8349_v53 }
 0x2e0   :  { %5903 = vmatpush1.bf16.msra.mxu1 %v8346_v15  ;;  %5937 = vmatprep.subr.bf16.mxu0 %v8357_v13  ;;  %v6016_v15 = vpack.c.bf16 %v6012_v47, %v6012_v47 }
 0x2e1   :  { %5904 = vmatprep.subr.bf16.mxu1 %v8354_v48 }
 0x2e3   :  { %5938 = vmatpush1.bf16.msra.mxu0 %v8355_v46 }
 0x2e4   :  { %5905 = vmatpush2.bf16.msra.mxu1 %v8352_v59  ;;  %5939 = vmatprep.subr.bf16.mxu0 %v8363_v51  ;;  %v8428_v59 = vld [vmem:[%s11226_s3 + $0x68] sm:$0xff]   ;;  %v8430_v51 = vld [vmem:[%s11226_s3 + $0x60] sm:$0xff]  }
 0x2e5   :  { %5906 = vmatprep.subr.bf16.mxu1 %v8360_v22 }
 0x2e7   :  { %5940 = vmatpush1.bf16.msra.mxu0 %v8361_v55  ;;  %v8441_v55 = vld [vmem:[%s11226_s3 + $0xb8] sm:$0xff]  }
 0x2e8   :  { %5907 = vmatpush2.bf16.msra.mxu1 %v8358_v56  ;;  %5941 = vmatprep.subr.bf16.mxu0 %v8369_v61  ;;  %v8440_v56 = vld [vmem:[%s11226_s3 + $0xf8] sm:$0xff]  }
 0x2e9   :  { %5908 = vmatprep.subr.bf16.mxu1 %v8366_v58  ;;  %v8431_v58 = vld [vmem:[%s11226_s3 + $0x20] sm:$0xff]   ;;  %v8432_v61 = vld [vmem:[%s11226_s3 + $0x58] sm:$0xff]  }
 0x2eb   :  { %5942 = vmatpush1.bf16.msra.mxu0 %v8367_v57  ;;  %v8434_v57 = vld [vmem:[%s11226_s3 + $0x50] sm:$0xff]  }
 0x2ec   :  { %5909 = vmatpush2.bf16.msra.mxu1 %v8364_v42  ;;  %5943 = vmatprep.subr.bf16.mxu0 %v8375_v17  ;;  %v8433_v42 = vld [vmem:[%s11226_s3 + $0x18] sm:$0xff]   ;;  %v8436_v17 = vld [vmem:[%s11226_s3 + $0x48] sm:$0xff]  }
 0x2ed   :  { %5910 = vmatprep.subr.bf16.mxu1 %v8372_v62  ;;  %v8435_v62 = vld [vmem:[%s11226_s3 + $0x10] sm:$0xff]  }
 0x2ef   :  { %5944 = vmatpush1.bf16.msra.mxu0 %v8373_v60  ;;  %v8438_v60 = vld [vmem:[%s11226_s3 + $0x40] sm:$0xff]  }
 0x2f0   :  { %5911 = vmatpush2.bf16.msra.mxu1 %v8370_v6  ;;  %5945 = vmatprep.subr.bf16.mxu0 %v8381_v2  ;;  %v8437_v6 = vld [vmem:[%s11226_s3 + $0x8] sm:$0xff]   ;;  %v6011_v2 = vmax.f32 %v10526_v34, 0.0 }
 0x2f1   :  { %5912 = vmatprep.subr.bf16.mxu1 %v8378_v63  ;;  %v8439_v63 = vld [vmem:[%s11226_s3] sm:$0xff]   ;;  %v8444_v34 = vld [vmem:[%s11226_s3 + $0xe8] sm:$0xff]  }
 0x2f3   :  { %5946 = vmatpush2.bf16.msra.mxu0 %v8379_v3  ;;  %v8442_v3 = vld [vmem:[%s11226_s3 + $0xf0] sm:$0xff]  }
 0x2f4   :  { %5913 = vmatpush2.bf16.msra.mxu1 %v8376_v43  ;;  %5947 = vmatprep.subr.bf16.mxu0 %v8387_v30  ;;  %v6015_v43 = vpack.c.bf16 %v6011_v2, %v6011_v2 }
 0x2f5   :  { %5914 = vmatprep.subr.bf16.mxu1 %v8384_v1  ;;  %v8443_v1 = vld [vmem:[%s11226_s3 + $0xb0] sm:$0xff]  }
 0x2f7   :  { %5948 = vmatpush2.bf16.msra.mxu0 %v8385_v8 }
 0x2f8   :  { %5915 = vmatpush2.bf16.msra.mxu1 %v8382_v7  ;;  %5949 = vmatprep.subr.bf16.mxu0 %v8393_v10  ;;  %v8445_v10 = vld [vmem:[%s11226_s3 + $0xa8] sm:$0xff]  }
 0x2f9   :  { %5916 = vmatprep.subr.bf16.mxu1 %v8390_v39 }
 0x2fb   :  { %5950 = vmatpush2.bf16.msra.mxu0 %v8391_v50 }
 0x2fc   :  { %5917 = vmatpush2.bf16.msra.mxu1 %v8388_v12  ;;  %5951 = vmatprep.subr.bf16.mxu0 %v8399_v16  ;;  %v8447_v16 = vld [vmem:[%s11226_s3 + $0xa0] sm:$0xff]  }
 0x2fd   :  { %5918 = vmatprep.subr.bf16.mxu1 %v8396_v49  ;;  %v8446_v49 = vld [vmem:[%s11226_s3 + $0xe0] sm:$0xff]  }
 0x2ff   :  { %5952 = vmatpush2.bf16.msra.mxu0 %v8397_v18  ;;  %v8449_v18 = vld [vmem:[%s11226_s3 + $0x98] sm:$0xff]  }
 0x300   :  { %5919 = vmatpush2.bf16.msra.mxu1 %v8394_v19  ;;  %5953 = vmatprep.subr.bf16.mxu0 %v8402_v11  ;;  %v8448_v19 = vld [vmem:[%s11226_s3 + $0xd8] sm:$0xff]   ;;  %v8450_v11 = vld [vmem:[%s11226_s3 + $0xd0] sm:$0xff]  }
 0x301   :  { %5978 = vmatprep.subr.bf16.mxu1 %v8405_v24  ;;  %v8451_v24 = vld [vmem:[%s11226_s3 + $0x90] sm:$0xff]  }
 0x303   :  { %v5676_v5 = vpop.f32.mrf.mxu1  ;;  %5921 = vmatmul.mubr.bf16.vlgmr.msra.gmra.mxu1 %v9828_v14  ;;  %5954 = vmatpush2.bf16.msra.mxu0 %v8400_v4  ;;  %v8417_v14 = vld [vmem:[%s11224_s1 + $0x182c] ss:$16 sps:$4 sm:$0xff]  }
 0x304   :  { %v5677_v20 = vadd.f32 %v5676_v5, %v10933_v28  ;;  %5979 = vmatpush1.bf16.msra.mxu1 %v8403_v31  ;;  %5955 = vmatprep.subr.bf16.mxu0 %v8408_v54 }
 0x305   :  { %v5678_v0 = vpop.f32.mrf.mxu1  ;;  %5980 = vmatprep.subr.bf16.mxu1 %v8411_v38  ;;  %6002 = vmatprep.mubr.bf16.mxu1 %v8480_v52  ;;  %v8423_v52 = vld [vmem:[%s11224_s1 + $0x180c] ss:$16 sps:$4 sm:$0xff]  }
 0x306   :  { %v5679_v28 = vadd.f32 %v5678_v0, %v10947_v37  ;;  %v8420_v37 = vld [vmem:[%s11224_s1 + $0x170c] ss:$16 sps:$4 sm:$0xff]   ;;  %v8454_v0 = vld [vmem:[%s11226_s3 + $0xc0] sm:$0xff]  }
 0x307   :  { %v5680_v26 = vpop.f32.mrf.mxu1  ;;  %5956 = vmatpush2.bf16.msra.mxu0 %v8406_v23  ;;  %v8452_v38 = vld [vmem:[%s11226_s3 + $0xc8] sm:$0xff]  }
 0x308   :  { %5981 = vmatpush1.bf16.msra.mxu1 %v8409_v21  ;;  %5957 = vmatprep.subr.bf16.mxu0 %v8414_v29  ;;  %v8455_v29 = vld [vmem:[%s11226_s3 + $0x80] sm:$0xff]  }
 0x309   :  { %v5681_v25 = vpop.f32.mrf.mxu1  ;;  %5982 = vmatprep.subr.bf16.mxu1 %v8417_v14 }
 0x30b   :  { %5958 = vmatpush2.bf16.msra.mxu0 %v8412_v45 }
 0x30c   :  { %5983 = vmatpush1.bf16.msra.mxu1 %v8415_v36  ;;  %5959 = vmatprep.subr.bf16.mxu0 %v8420_v37 }
 0x30d   :  { %5984 = vmatprep.subr.bf16.mxu1 %v8423_v52 }
 0x30f   :  { %5960 = vmatpush2.bf16.msra.mxu0 %v8418_v32 }
 0x310   :  { %5985 = vmatpush1.bf16.msra.mxu1 %v8421_v40  ;;  %7198 = vmatprep.subr.bf16.mxu0 %v8424_v35 }
 0x311   :  { %7220 = vmatprep.subr.bf16.mxu1 %v8440_v56 }
 0x312   :  { %v5717_v53 = vpop.f32.mrf.mxu0  ;;  %5962 = vmatmul.mubr.bf16.vlgmr.msra.gmra.mxu0 %v9850_v27  ;;  %v8429_v27 = vld [vmem:[%s11226_s3 + $0x28] sm:$0xff]  }
 0x313   :  { %7164 = vmatmul.mubr.msk.bf16.vlgmr.msra.gmra.mxu1 %vm4941_vm0, %v9914_v9  ;;  %v5718_v48 = vadd.f32 %v5717_v53, %v5677_v20  ;;  %7199 = vmatpush3.bf16.msra.mxu0 %v8425_v41  ;;  %v8453_v20 = vld [vmem:[%s11226_s3 + $0x88] sm:$0xff]  }
 0x314   :  { %6314 = vmatprep.mubr.bf16.mxu0 %v6016_v15  ;;  %v5719_v13 = vpop.f32.mrf.mxu0  ;;  %7200 = vmatprep.subr.bf16.mxu0 %v8426_v33 }
 0x315   :  { %v5720_v46 = vadd.f32 %v5719_v13, %v5679_v28  ;;  %7221 = vmatpush3.bf16.msra.mxu1 %v8441_v55 }
 0x316   :  { %v5721_v22 = vpop.f32.mrf.mxu0  ;;  %7222 = vmatprep.subr.bf16.mxu1 %v8442_v3 }
 0x317   :  { %7201 = vmatpush3.bf16.msra.mxu0 %v8427_v44 }
 0x318   :  { %v5722_v9 = vpop.f32.mrf.mxu0  ;;  %7202 = vmatprep.subr.bf16.mxu0 %v8428_v59 }
 0x319   :  { %7223 = vmatpush3.bf16.msra.mxu1 %v8443_v1  ;;  %v7165_v1 = vld [vmem:[%s11227_s4] ss:$0 sm:$0xff] }
 0x31a   :  { %7224 = vmatprep.subr.bf16.mxu1 %v8444_v34 }
 0x31b   :  { %7203 = vmatpush3.bf16.msra.mxu0 %v8429_v27 }
 0x31c   :  { %7204 = vmatprep.subr.bf16.mxu0 %v8430_v51 }
 0x31d   :  { %7225 = vmatpush3.bf16.msra.mxu1 %v8445_v10 }
 0x31e   :  { %7226 = vmatprep.subr.bf16.mxu1 %v8446_v49 }
 0x31f   :  { %7205 = vmatpush3.bf16.msra.mxu0 %v8431_v58 }
 0x320   :  { %7206 = vmatprep.subr.bf16.mxu0 %v8432_v61 }
 0x321   :  { %7227 = vmatpush3.bf16.msra.mxu1 %v8447_v16 }
 0x322   :  { %7228 = vmatprep.subr.bf16.mxu1 %v8448_v19 }
 0x323   :  { %7207 = vmatpush3.bf16.msra.mxu0 %v8433_v42 }
 0x324   :  { %7208 = vmatprep.subr.bf16.mxu0 %v8434_v57 }
 0x325   :  { %7229 = vmatpush3.bf16.msra.mxu1 %v8449_v18 }
 0x326   :  { %7230 = vmatprep.subr.bf16.mxu1 %v8450_v11 }
 0x327   :  { %7209 = vmatpush3.bf16.msra.mxu0 %v8435_v62 }
 0x328   :  { %7210 = vmatprep.subr.bf16.mxu0 %v8436_v17 }
 0x329   :  { %7231 = vmatpush3.bf16.msra.mxu1 %v8451_v24 }
 0x32a   :  { %7232 = vmatprep.subr.bf16.mxu1 %v8452_v38 }
 0x32b   :  { %7211 = vmatpush3.bf16.msra.mxu0 %v8437_v6 }
 0x32c   :  { %7212 = vmatprep.subr.bf16.mxu0 %v8438_v60 }
 0x32d   :  { %7233 = vmatpush3.bf16.msra.mxu1 %v8453_v20 }
 0x32e   :  { %7234 = vmatprep.subr.bf16.mxu1 %v8454_v0 }
 0x32f   :  { %7213 = vmatpush3.bf16.msra.mxu0 %v8439_v63 }
 0x331   :  { %7235 = vmatpush3.bf16.msra.mxu1 %v8455_v29 }
 0x332   :  { %6315 = vmatmul.mubr.bf16.vlgmr.msra.gmra.mxu0 %v6015_v43 }
 0x343   :  { %v5758_v30 = vpop.f32.mrf.mxu1 }
 0x344   :  { %v5759_v7 = vadd.f32 %v5758_v30, %v5718_v48 }
 0x345   :  { %v5760_v8 = vpop.f32.mrf.mxu1 }
 0x346   :  { %v5761_v39 = vadd.f32 %v5760_v8, %v5720_v46 }
 0x347   :  { %v5762_v12 = vpop.f32.mrf.mxu1 }
 0x349   :  { %v5763_v50 = vpop.f32.mrf.mxu1 }
 0x352   :  { %v5799_v4 = vpop.f32.mrf.mxu0 }
 0x353   :  { %v5800_v31 = vadd.f32 %v5799_v4, %v5759_v7 }
 0x354   :  { %v5801_v54 = vpop.f32.mrf.mxu0 }
 0x355   :  { %v5802_v5 = vadd.f32 %v5801_v54, %v5761_v39 }
 0x356   :  { %v5803_v23 = vpop.f32.mrf.mxu0 }
 0x358   :  { %v5804_v21 = vpop.f32.mrf.mxu0 }
 0x383   :  { %v5840_v14 = vpop.f32.mrf.mxu1 }
 0x384   :  { %v5841_v28 = vadd.f32 %v5840_v14, %v5800_v31 }
 0x385   :  { %v5842_v26 = vpop.f32.mrf.mxu1 }
 0x386   :  { %v5843_v45 = vadd.f32 %v5842_v26, %v5802_v5 }
 0x387   :  { %v5844_v36 = vpop.f32.mrf.mxu1 }
 0x389   :  { %v5845_v25 = vpop.f32.mrf.mxu1 }
 0x392   :  { %v5881_v37 = vpop.f32.mrf.mxu0 }
 0x393   :  { %v5882_v15 = vadd.f32 %v5881_v37, %v5841_v28 }
 0x394   :  { %v5883_v52 = vpop.f32.mrf.mxu0 }
 0x395   :  { %v5884_v53 = vadd.f32 %v5883_v52, %v5843_v45 }
 0x396   :  { %v5885_v32 = vpop.f32.mrf.mxu0 }
 0x398   :  { %v5886_v40 = vpop.f32.mrf.mxu0 }
 0x3c3   :  { %v5922_v35 = vpop.f32.mrf.mxu1 }
 0x3c4   :  { %v5923_v48 = vadd.f32 %v5922_v35, %v5882_v15 }
 0x3c5   :  { %v5924_v47 = vpop.f32.mrf.mxu1 }
 0x3c6   :  { %v5925_v59 = vadd.f32 %v5924_v47, %v5884_v53 }
 0x3c7   :  { %v5926_v41 = vpop.f32.mrf.mxu1 }
 0x3c9   :  { %v5927_v33 = vpop.f32.mrf.mxu1 }
 0x3d2   :  { %v5963_v44 = vpop.f32.mrf.mxu0 }
 0x3d3   :  { %v6004_v13 = vpop.f32.mrf.mxu1  ;;  %v5964_v46 = vadd.f32 %v5963_v44, %v5923_v48 }
 0x3d4   :  { %v5965_v22 = vpop.f32.mrf.mxu0 }
 0x3d5   :  { %v6006_v27 = vpop.f32.mrf.mxu1  ;;  %v6005_v9 = vadd.f32 %v6004_v13, %v5964_v46  ;;  %v5966_v51 = vadd.f32 %v5965_v22, %v5925_v59 }
 0x3d6   :  { %v5967_v56 = vpop.f32.mrf.mxu0 }
 0x3d7   :  { %v6008_v55 = vpop.f32.mrf.mxu1  ;;  %v6007_v58 = vadd.f32 %v6006_v27, %v5966_v51  ;;  %v6013_v61 = vmax.f32 %v6005_v9, 0.0 }
 0x3d8   :  { %v5968_v42 = vpop.f32.mrf.mxu0 }
 0x3d9   :  { %v6009_v57 = vpop.f32.mrf.mxu1  ;;  %v6014_v62 = vmax.f32 %v6007_v58, 0.0  ;;  %v6017_v6 = vpack.c.bf16 %v6013_v61, %v6013_v61 }
 0x3db   :  { %v6018_v17 = vpack.c.bf16 %v6014_v62, %v6014_v62 }
 0x3dd   :  { %6354 = vmatprep.mubr.bf16.mxu1 %v6018_v17 }
 0x3de   :  { %6355 = vmatmul.mubr.bf16.vlgmr.msra.gmra.mxu1 %v6017_v6 }
 0x3f2   :  { %v7214_v60 = vpop.f32.mrf.mxu0 }
 0x3f4   :  { %v7215_v63 = vpop.f32.mrf.mxu0 }
 0x3f5   :  { %v7216_v2 = vadd.f32 %v7215_v63, %v7214_v60 }
 0x3f6   :  { %v7217_v43 = vpop.f32.mrf.mxu0 }
 0x3f7   :  { %v6317_v8 = vadd.f32 %v7216_v2, %v7165_v1 }
 0x3f8   :  { %v7218_v3 = vpop.f32.mrf.mxu0 }
 0x49e   :  { %v7236_v30 = vpop.f32.mrf.mxu1 }
 0x4a0   :  { %v7237_v7 = vpop.f32.mrf.mxu1 }
 0x4a1   :  { %v7238_v34 = vadd.f32 %v7237_v7, %v7236_v30 }
 0x4a2   :  { %v7239_v39 = vpop.f32.mrf.mxu1 }
 0x4a3   :  { %v6357_v10 = vadd.f32 %v7238_v34, %v6317_v8 }
 0x4a4   :  { %v7240_v12 = vpop.f32.mrf.mxu1 }
 0x4a5   :  { %6363 = vst.msk [vmem:[#allocation2] sm:$0x3] %vm6362_vm1, %v6357_v10 }
 0x4a6   :  { %8468 = shalt.err (!%p8465_p4)
}
 0x4a7   :  { %6373 = dma.vmem_to_hbm [thread:$0]  %s6371_s17, 32, %s11228_s5, [#allocation3]  }
 0x4a8   :  { %8477 = dma.done.wait [#allocation3], 32  }
 0x4a9   :  { %8478 = vsyncadd [#allocation3], 4294967264 }
 0x4aa   :  { %6377 = vsyncpa [#allocation3], 1 }

</bundles_post_ra>
